<compile_context>
chip_gen: v6e
topology: v6e:2x2x1
jax: 0.10.0
libtpu: 0.0.40
codegen_flags: <defaults>
</compile_context>

<pallas_src>
import functools

import jax
import jax.numpy as jnp
from jax.experimental import pallas as pl
from jax.experimental.pallas import tpu as pltpu

C_IN = 512     # fixed by nn.Linear(512, 32)
C_HID = 32     # true hidden width of the attention MLP
HID_PAD = 128  # lane-padded hidden width (zero padding -> numerically identical)
BN_EPS = 1e-5


def _round_up(a, b):
    return (a + b - 1) // b * b


def _channel_attention_kernel(x_ref, w1_ref, b1_ref, w2_ref, b2_ref,
                              o_ref, acc_ref, *, inv_hw, lane_chunks):
    """grid = (N_blocks, HW_blocks); axis 1 (HW) is the reduction axis."""
    k = pl.program_id(1)

    @pl.when(k == 0)
    def _():
        acc_ref[...] = jnp.zeros_like(acc_ref)

    # x block: (n_tile, 512, hw_tile) -- NCHW read directly (channels in
    # sublanes, spatial in lanes).  Accumulate per-lane partial sums of shape
    # (n_tile, 512, 128): every aligned 128-lane chunk of the HW axis is a
    # vreg-aligned static slice, so this stage is pure VPU adds (no XLU).
    partial = x_ref[:, :, 0:128].astype(jnp.float32)
    for j in range(1, lane_chunks):
        partial = partial + x_ref[:, :, j * 128:(j + 1) * 128].astype(jnp.float32)
    acc_ref[...] += partial

    @pl.when(k == pl.num_programs(1) - 1)
    def _():
        # One cross-lane (XLU) reduce per N-block; hidden under the next DMA.
        sa = jnp.sum(acc_ref[...], axis=2) * inv_hw            # (n_tile, 512)

        # Linear(512 -> 32) with eval-mode BatchNorm1d folded into (w1, b1);
        # hidden dim zero-padded 32 -> 128 lanes (numerically identical).
        h = jnp.dot(sa, w1_ref[...], preferred_element_type=jnp.float32)
        h = jnp.maximum(h + b1_ref[...], 0.0)                  # ReLU

        # Linear(32 -> 512), sigmoid gate, multiply with pooled features.
        y = jnp.dot(h, w2_ref[...], preferred_element_type=jnp.float32)
        y = jax.nn.sigmoid(y + b2_ref[...])
        o_ref[...] = (sa * y).astype(o_ref.dtype)


def _fold_and_pad_params(params):
    """Fold eval-mode BN into the first linear; zero-pad hidden 32 -> 128."""
    scale = params["bn_gamma"] * jax.lax.rsqrt(params["bn_var"] + BN_EPS)   # (1, 32)
    w1 = params["w1"] * scale                                               # (512, 32)
    b1 = (params["b1"] - params["bn_mean"]) * scale + params["bn_beta"]     # (1, 32)
    pad = HID_PAD - C_HID
    return (
        jnp.pad(w1, ((0, 0), (0, pad))),
        jnp.pad(b1, ((0, 0), (0, pad))),
        jnp.pad(params["w2"], ((0, pad), (0, 0))),
        params["b2"],
    )


def _const_param_spec(shape, single_buffer):
    """BlockSpec for a grid-invariant parameter (block index never changes)."""
    index_map = lambda i, k: (0,) * len(shape)
    if single_buffer and hasattr(pl, "Buffered"):
        try:
            # Params are DMA'd once; a single buffer saves ~0.5 MiB of VMEM.
            return pl.BlockSpec(shape, index_map, pipeline_mode=pl.Buffered(1))
        except TypeError:
            pass
    return pl.BlockSpec(shape, index_map)


def channel_attention(x_nchw, params, *, hw_tile=512,
                      vmem_limit_bytes=40 << 20, single_buffer_params=False):
    """x_nchw: (N, 512, H, W) float32/bfloat16 -> (N, 512) float32.

    Tile-size guidance (prefer growing hw_tile, never n_tile):
      v6e : hw_tile=512  (8 MiB f32 block) -- the default
      v7x : hw_tile=512..1024 with vmem_limit_bytes ~40 MiB (64 MiB physical)
      v5e : hw_tile<=384 fits the 16 MiB scoped default; hw_tile=512 is fine
            together with the explicit vmem_limit_bytes used here.
    Feeding x as bfloat16 halves HBM traffic; accumulation stays float32.
    """
    n, c, h, w = x_nchw.shape
    assert c == C_IN, f"ChannelAttention expects {C_IN} channels, got {c}"
    hw = h * w

    # Read NCHW directly: (N, C, H*W) is a free, contiguous reshape.
    x = x_nchw.reshape(n, c, hw)

    # hw_tile must be a multiple of 128 (aligned lane chunks in the kernel).
    hw_tile = max(128, _round_up(min(int(hw_tile), hw), 128))
    hw_pad = _round_up(hw, hw_tile)
    if hw_pad != hw:
        # Only ragged H*W pays for a pad copy; zeros don't change the pooled
        # sum (we divide by the true H*W).
        x = jnp.pad(x, ((0, 0), (0, 0), (0, hw_pad - hw)))

    # Batch tiling: no padding -- Pallas boundary blocks cover a ragged N.
    n_tile = 8 if n >= 8 else n
    grid = (pl.cdiv(n, n_tile), hw_pad // hw_tile)
    # TODO(synk): on v7x (2 TensorCores) a single N-block (N <= 8) leaves one
    # core idle during the pooling loop; a core-parallel split of the HW
    # reduction would be needed to use both cores for tiny batches.

    p = _fold_and_pad_params(params)
    param_specs = [_const_param_spec(q.shape, single_buffer_params) for q in p]

    kernel = functools.partial(_channel_attention_kernel,
                               inv_hw=1.0 / float(hw),
                               lane_chunks=hw_tile // 128)

    # Single pass over x + tiny params/output (transpose eliminated).
    cost = pl.CostEstimate(
        flops=int(n * C_IN * hw                       # pooling adds
                  + 2 * 2 * n * C_IN * HID_PAD        # two matmuls
                  + 8 * n * C_IN),                    # epilogue elementwise
        transcendentals=int(n * C_IN),                # sigmoid
        bytes_accessed=int(x.size * x.dtype.itemsize
                           + n * C_IN * 4
                           + sum(int(q.size) * 4 for q in p)),
    )

    out = pl.pallas_call(
        kernel,
        out_shape=jax.ShapeDtypeStruct((n, C_IN), jnp.float32),
        grid_spec=pltpu.PrefetchScalarGridSpec(
            num_scalar_prefetch=0,
            grid=grid,
            in_specs=[pl.BlockSpec((n_tile, C_IN, hw_tile),
                                   lambda i, k: (i, 0, k))] + param_specs,
            out_specs=pl.BlockSpec((n_tile, C_IN), lambda i, k: (i, 0)),
            scratch_shapes=[pltpu.VMEM((n_tile, C_IN, 128), jnp.float32)],
        ),
        compiler_params=pltpu.CompilerParams(
            dimension_semantics=("parallel", "arbitrary"),
            vmem_limit_bytes=vmem_limit_bytes),
        cost_estimate=cost,
    )(x, *p)
    return out


def init_params(key):
    """Deterministic synthetic parameters matching the PyTorch module shapes."""
    k1, k2, k3, k4 = jax.random.split(key, 4)
    # PyTorch Linear stores (out, in); we pre-transpose to (in, out) for x @ W.
    bound1 = 1.0 / jnp.sqrt(C_IN)
    bound2 = 1.0 / jnp.sqrt(C_HID)
    return {
        "w1": jax.random.uniform(k1, (C_IN, C_HID), jnp.float32, -bound1, bound1),
        "b1": jax.random.uniform(k2, (1, C_HID), jnp.float32, -bound1, bound1),
        "bn_gamma": jnp.ones((1, C_HID), jnp.float32),
        "bn_beta": jnp.zeros((1, C_HID), jnp.float32),
        "bn_mean": jnp.zeros((1, C_HID), jnp.float32),
        "bn_var": jnp.ones((1, C_HID), jnp.float32),
        "w2": jax.random.uniform(k3, (C_HID, C_IN), jnp.float32, -bound2, bound2),
        "b2": jax.random.uniform(k4, (1, C_IN), jnp.float32, -bound2, bound2),
    }


def _reference(x_nchw, params):
    """Pure-JAX reference (unfolded BN) for correctness checking."""
    sa = jnp.mean(x_nchw, axis=(2, 3))
    h = sa @ params["w1"] + params["b1"]
    h = (h - params["bn_mean"]) * jax.lax.rsqrt(params["bn_var"] + BN_EPS)
    h = h * params["bn_gamma"] + params["bn_beta"]
    h = jnp.maximum(h, 0.0)
    y = jax.nn.sigmoid(h @ params["w2"] + params["b2"])
    return sa * y


if __name__ == "__main__":
    key = jax.random.PRNGKey(0)
    kx, kp = jax.random.split(key)

    # Channels MUST be 512 (nn.Linear(512, 32)).  16x16 spatial with
    # hw_tile=128 exercises the tiled accumulation path (init / accumulate /
    # finalize) across two HW grid steps.
    x = jax.random.normal(kx, (2, C_IN, 16, 16), jnp.float32)
    params = init_params(kp)

    out = channel_attention(x, params, hw_tile=128)
    out = jax.block_until_ready(out)

    ref = _reference(x, params)
    assert out.shape == (2, C_IN)
    assert jnp.allclose(out, ref, atol=3e-5, rtol=1e-4), "mismatch vs reference"

    print("KERNEL_OK")
</pallas_src>

<mosaic_0001>
module attributes {stable_mosaic.version = 11 : i64} {
  func.func @_channel_attention_kernel(%arg0: i32, %arg1: i32, %arg2: memref<2x512x128xf32, #tpu.memory_space<vmem>>, %arg3: memref<512x128xf32, #tpu.memory_space<vmem>>, %arg4: memref<1x128xf32, #tpu.memory_space<vmem>>, %arg5: memref<128x512xf32, #tpu.memory_space<vmem>>, %arg6: memref<1x512xf32, #tpu.memory_space<vmem>>, %arg7: memref<2x512xf32, #tpu.memory_space<vmem>>, %arg8: memref<2x512x128xf32, #tpu.memory_space<vmem>>) attributes {dimension_semantics = [#tpu.dimension_semantics<parallel>, #tpu.dimension_semantics<arbitrary>], iteration_bounds = array<i64: 1, 2>, scalar_prefetch = 0 : i64, scratch_operands = 1 : i64, tpu.core_type = #tpu.core_type<tc>, window_params = [{transform_indices = @transform_0, window_bounds = array<i64: 2, 512, 128>}, {pipeline_mode = #tpu.pipeline_mode<synchronous>, transform_indices = @transform_1, window_bounds = array<i64: 512, 128>}, {pipeline_mode = #tpu.pipeline_mode<synchronous>, transform_indices = @transform_2, window_bounds = array<i64: 1, 128>}, {pipeline_mode = #tpu.pipeline_mode<synchronous>, transform_indices = @transform_3, window_bounds = array<i64: 128, 512>}, {pipeline_mode = #tpu.pipeline_mode<synchronous>, transform_indices = @transform_4, window_bounds = array<i64: 1, 512>}, {transform_indices = @transform_5, window_bounds = array<i64: 2, 512>}]} {
    %c0_i32 = arith.constant 0 : i32
    %0 = arith.cmpi eq, %arg1, %c0_i32 : i32
    %1 = arith.extui %0 : i1 to i32
    %c0_i32_0 = arith.constant 0 : i32
    %2 = arith.cmpi ne, %1, %c0_i32_0 : i32
    scf.if %2 {
      %cst = arith.constant 0.000000e+00 : f32
      %10 = vector.broadcast %cst : f32 to vector<2x512x128xf32>
      %c0_10 = arith.constant 0 : index
      %c0_11 = arith.constant 0 : index
      %c0_12 = arith.constant 0 : index
      %11 = vector.load %arg8[%c0_10, %c0_11, %c0_12] : memref<2x512x128xf32, #tpu.memory_space<vmem>>, vector<2x512x128xf32>
      tpu.vector_store %arg8[%c0_10, %c0_11, %c0_12], %10 {strides = array<i32>} : memref<2x512x128xf32, #tpu.memory_space<vmem>>, vector<2x512x128xf32>,
    } else {
    }
    %c0 = arith.constant 0 : index
    %c0_1 = arith.constant 0 : index
    %c0_2 = arith.constant 0 : index
    %3 = vector.load %arg2[%c0, %c0_1, %c0_2] : memref<2x512x128xf32, #tpu.memory_space<vmem>>, vector<2x512x128xf32>
    %c0_3 = arith.constant 0 : index
    %c0_4 = arith.constant 0 : index
    %c0_5 = arith.constant 0 : index
    %4 = vector.load %arg8[%c0_3, %c0_4, %c0_5] : memref<2x512x128xf32, #tpu.memory_space<vmem>>, vector<2x512x128xf32>
    %5 = arith.addf %4, %3 : vector<2x512x128xf32>
    %c0_6 = arith.constant 0 : index
    %c0_7 = arith.constant 0 : index
    %c0_8 = arith.constant 0 : index
    %6 = vector.load %arg8[%c0_6, %c0_7, %c0_8] : memref<2x512x128xf32, #tpu.memory_space<vmem>>, vector<2x512x128xf32>
    tpu.vector_store %arg8[%c0_6, %c0_7, %c0_8], %5 {strides = array<i32>} : memref<2x512x128xf32, #tpu.memory_space<vmem>>, vector<2x512x128xf32>,
    %c1_i32 = arith.constant 1 : i32
    %7 = arith.cmpi eq, %arg1, %c1_i32 : i32
    %8 = arith.extui %7 : i1 to i32
    %c0_i32_9 = arith.constant 0 : i32
    %9 = arith.cmpi ne, %8, %c0_i32_9 : i32
    scf.if %9 {
      %c0_10 = arith.constant 0 : index
      %c0_11 = arith.constant 0 : index
      %c0_12 = arith.constant 0 : index
      %10 = vector.load %arg8[%c0_10, %c0_11, %c0_12] : memref<2x512x128xf32, #tpu.memory_space<vmem>>, vector<2x512x128xf32>
      %cst = arith.constant dense<0.000000e+00> : vector<2x512xf32>
      %11 = vector.multi_reduction <add>, %10, %cst [2] : vector<2x512x128xf32> to vector<2x512xf32>
      %cst_13 = arith.constant 3.906250e-03 : f32
      %12 = vector.broadcast %cst_13 : f32 to vector<2x512xf32>
      %13 = arith.mulf %11, %12 : vector<2x512xf32>
      %c0_14 = arith.constant 0 : index
      %c0_15 = arith.constant 0 : index
      %14 = vector.load %arg3[%c0_14, %c0_15] : memref<512x128xf32, #tpu.memory_space<vmem>>, vector<512x128xf32>
      %cst_16 = arith.constant dense<0.000000e+00> : vector<2x128xf32>
      %15 = tpu.matmul %13, %14, %cst_16 {dimension_numbers = #tpu.dot_dimension_numbers<[1], [0], [0], [1], [0, 0, 1, 1], [], []>} : vector<2x512xf32>, vector<512x128xf32>, vector<2x128xf32> -> vector<2x128xf32>
      %c0_17 = arith.constant 0 : index
      %c0_18 = arith.constant 0 : index
      %16 = vector.load %arg4[%c0_17, %c0_18] : memref<1x128xf32, #tpu.memory_space<vmem>>, vector<1x128xf32>
      %17 = vector.broadcast %16 : vector<1x128xf32> to vector<2x128xf32>
      %18 = arith.addf %15, %17 : vector<2x128xf32>
      %cst_19 = arith.constant 0.000000e+00 : f32
      %19 = vector.broadcast %cst_19 : f32 to vector<2x128xf32>
      %20 = arith.maximumf %18, %19 : vector<2x128xf32>
      %c0_20 = arith.constant 0 : index
      %c0_21 = arith.constant 0 : index
      %21 = vector.load %arg5[%c0_20, %c0_21] : memref<128x512xf32, #tpu.memory_space<vmem>>, vector<128x512xf32>
      %cst_22 = arith.constant dense<0.000000e+00> : vector<2x512xf32>
      %22 = tpu.matmul %20, %21, %cst_22 {dimension_numbers = #tpu.dot_dimension_numbers<[1], [0], [0], [1], [0, 0, 1, 1], [], []>} : vector<2x128xf32>, vector<128x512xf32>, vector<2x512xf32> -> vector<2x512xf32>
      %c0_23 = arith.constant 0 : index
      %c0_24 = arith.constant 0 : index
      %23 = vector.load %arg6[%c0_23, %c0_24] : memref<1x512xf32, #tpu.memory_space<vmem>>, vector<1x512xf32>
      %24 = vector.broadcast %23 : vector<1x512xf32> to vector<2x512xf32>
      %25 = arith.addf %22, %24 : vector<2x512xf32>
      %26 = arith.negf %25 : vector<2x512xf32>
      %27 = math.exp %26 : vector<2x512xf32>
      %cst_25 = arith.constant 1.000000e+00 : f32
      %28 = vector.broadcast %cst_25 : f32 to vector<2x512xf32>
      %29 = arith.addf %28, %27 : vector<2x512xf32>
      %30 = arith.divf %28, %29 : vector<2x512xf32>
      %31 = arith.mulf %13, %30 : vector<2x512xf32>
      %c0_26 = arith.constant 0 : index
      %c0_27 = arith.constant 0 : index
      %32 = vector.load %arg7[%c0_26, %c0_27] : memref<2x512xf32, #tpu.memory_space<vmem>>, vector<2x512xf32>
      tpu.vector_store %arg7[%c0_26, %c0_27], %31 {strides = array<i32>} : memref<2x512xf32, #tpu.memory_space<vmem>>, vector<2x512xf32>,
    } else {
    }
    return
  }
  func.func @transform_0(%arg0: i32, %arg1: i32) -> (i32, i32, i32) {
    %c0_i32 = arith.constant 0 : i32
    %c0_i32_0 = arith.constant 0 : i32
    return %arg0, %c0_i32, %arg1 : i32, i32, i32
  }
  func.func @transform_1(%arg0: i32, %arg1: i32) -> (i32, i32) {
    %c0_i32 = arith.constant 0 : i32
    %c0_i32_0 = arith.constant 0 : i32
    %c0_i32_1 = arith.constant 0 : i32
    return %c0_i32, %c0_i32_0 : i32, i32
  }
  func.func @transform_2(%arg0: i32, %arg1: i32) -> (i32, i32) {
    %c0_i32 = arith.constant 0 : i32
    %c0_i32_0 = arith.constant 0 : i32
    %c0_i32_1 = arith.constant 0 : i32
    return %c0_i32, %c0_i32_0 : i32, i32
  }
  func.func @transform_3(%arg0: i32, %arg1: i32) -> (i32, i32) {
    %c0_i32 = arith.constant 0 : i32
    %c0_i32_0 = arith.constant 0 : i32
    %c0_i32_1 = arith.constant 0 : i32
    return %c0_i32, %c0_i32_0 : i32, i32
  }
  func.func @transform_4(%arg0: i32, %arg1: i32) -> (i32, i32) {
    %c0_i32 = arith.constant 0 : i32
    %c0_i32_0 = arith.constant 0 : i32
    %c0_i32_1 = arith.constant 0 : i32
    return %c0_i32, %c0_i32_0 : i32, i32
  }
  func.func @transform_5(%arg0: i32, %arg1: i32) -> (i32, i32) {
    %c0_i32 = arith.constant 0 : i32
    %c0_i32_0 = arith.constant 0 : i32
    return %arg0, %c0_i32 : i32, i32
  }
}

</mosaic_0001>

<bundles_post_ra>
// kernel: tpu_custom_call.1
= control target key start
LH: loop header
LB: loop body
LE: loop exit
PB: predicated region body
PF: predicated region fallthrough
CT: control target
= control target key end

     0   :  { %10 = vsyncpa [#allocation4], 0  ;;  %s13468_s0 = inlined_call_operand.hbm [shape: f32[2,512,256], index: 0, kind: input, shape index: {}]   ;;  %s13469_s1 = inlined_call_operand.hbm [shape: f32[512,128], index: 1, kind: input, shape index: {}]   ;;  %s13470_s2 = inlined_call_operand.vmem [shape: f32[1,128], index: 2, kind: input, shape index: {}]   ;;  %s13471_s3 = inlined_call_operand.hbm [shape: f32[128,512], index: 3, kind: input, shape index: {}]   ;;  %s13472_s4 = inlined_call_operand.vmem [shape: f32[1,512], index: 4, kind: input, shape index: {}]   ;;  %s13473_s5 = inlined_call_operand.hbm [shape: f32[2,512], index: 5, kind: output, shape index: {}]  }
   0x1   :  { %12 = vsyncpa [#allocation4 + $0x1], 0 }
   0x2   :  { %13 = vsyncpa [#allocation7], 0 }
   0x3   :  { %14 = vsyncpa [#allocation5], 0  ;;  %s9523_s18 = smov 0   ;;  %s9525_s19 = smov 0  }
   0x4   :  { %s9527_s20 = smov 0   ;;  %s9529_s21 = smov 0  }
   0x5   :  { %s9531_s22 = smov 0   ;;  %s9533_s23 = smov 0  }
   0x6 LB: > { %s13476_s24 = sadd.s32 4294967295, %s9478_s23   ;;  %p48_p0 = scmp.ne.s32.totalorder %s9466_s20, %s9462_s19  ;;  %s9478_s23 = sphi %s9533_s23, %s20_s23   ;;  %s9474_s22 = sphi %s9531_s22, %s14517_s22   ;;  %s9470_s21 = sphi %s9529_s21, %s14516_s21   ;;  %s9466_s20 = sphi %s9527_s20, %s14515_s20   ;;  %s9462_s19 = sphi %s9525_s19, %s14514_s19   ;;  %s9458_s18 = sphi %s9523_s18, %s14513_s18  }
   0x7   : > { %p49_p1 = scmp.eq.s32.totalorder %s9478_s23, 0  ;;  %p54_p2 = scmp.ne.s32.totalorder %s9462_s19, %s9458_s18 }
   0x8   : > { %p9558_p3 = scmp.eq.s32.totalorder %s13476_s24, 0  ;;  %p9115_p4 = scmp.ge.s32.totalorder %s9478_s23, 1 }
   0x9   : > { %p50_p5 = por %p49_p1, %p48_p0  ;;  %p175_p6 = scmp.lt.s32.totalorder %s9478_s23, 3 }
   0xa   : > { %s13676_s25 = scalar_select %p9558_p3, 1, 0 }
   0xb   : > { %p9566_p7 = por %p9558_p3, %p54_p2  ;;  %p9570_p8 = pnand %p9115_p4, %p175_p6 }
   0xc   : > { %s9480_s28 = smov [#allocation6]   ;;  %p9233_p11 = scmp.lt.s32.totalorder %s9478_s23, 2 }
   0xd   : > { %s187_s29 = sshll.u32 %s9480_s28, 4  ;;  %p9220_p9 = pneg %p9570_p8  ;;  %s188_s29 = int_to_ptr.vmem [resolvable:$true] %s187_s29 }
   0xe   : > { %p9583_p12 = pnand %p9233_p11, %p50_p5  ;;  %s9327_s7 = scalar_lea.vmem %s188_s29, 8192 }
   0xf   : > { %p9578_p10 = pnand %p9220_p9, %p9558_p3  ;;  %p9328_p0 = scmp.ne.s32.totalorder %s188_s29, %s9327_s7 }
  0x10   : > { %p9335_p4 = scmp.lt.s32.totalorder %s188_s29, %s188_s29  ;;  %p9336_p6 = scmp.lt.s32.totalorder %s9327_s7, %s9327_s7 }
  0x11   : > { %p9318_p13 = pneg %p9578_p10 }
  0x12   : > { %p9337_p9 = por %p9336_p6, %p9335_p4 }
  0x13   : > { %p9330_p1 = pnand %p9328_p0, %p9318_p13 }
  0x15   : > { %p9331_p2 = pneg %p9330_p1 }
  0x17   : > { %p9338_p3 = pnand %p9337_p9, %p9331_p2 }
  0x19   : > { %9341 = shalt.err (!%p9338_p3)
}
  0x1a   : > { %s13477_s8 = smov 128   ;;  %s13478_s9 = smov 8  }
  0x1b   : > { %9223 = dma.hbm_to_vmem [thread:$0]  (!%p9578_p10), %s13469_s1, 8192, %s188_s29, [#allocation7], %s13477_s8, %s13477_s8, %s13478_s9  }
  0x1c   : > { %s9483_s12 = smov [#allocation8]  }
  0x1d   : > { %s203_s13 = sshll.u32 %s9483_s12, 4  ;;  %s204_s13 = int_to_ptr.vmem [resolvable:$true] %s203_s13 }
  0x1e   : > { %s9353_s14 = scalar_lea.vmem %s204_s13, 8192  ;;  %p9361_p0 = scmp.lt.s32.totalorder %s204_s13, %s204_s13 }
  0x1f   : > { %p9354_p5 = scmp.ne.s32.totalorder %s204_s13, %s9353_s14  ;;  %p9362_p1 = scmp.lt.s32.totalorder %s9353_s14, %s9353_s14 }
  0x21   : > { %p9356_p3 = pnand %p9354_p5, %p9318_p13  ;;  %p9363_p2 = por %p9362_p1, %p9361_p0 }
  0x23   : > { %p9357_p11 = pneg %p9356_p3 }
  0x25   : > { %p9364_p4 = pnand %p9363_p2, %p9357_p11 }
  0x27   : > { %9367 = shalt.err (!%p9364_p4)
}
  0x28   : > { %s9484_s15 = smov 512   ;;  %s9485_s16 = smov 32  }
  0x29   : > { %9226 = dma.hbm_to_vmem [thread:$0]  (!%p9578_p10), %s13471_s3, 8192, %s204_s13, [#allocation7], %s9484_s15, %s9484_s15, %s9485_s16  }
  0x2a   : > { %s41_s28 = sadd.s32 1, %s9466_s20  ;;  %s220_s29 = sand.u32 1, %s9466_s20  }
  0x2b   : > { %s29_s7 = sadd.s32 1, %s9474_s22  ;;  %s9119_s10 = sshll.u32 %s220_s29, 10 }
  0x2c   : > { %p30_p13 = scmp.ge.s32.totalorder %s29_s7, 2  ;;  %s9120_s11 = sshll.u32 %s9474_s22, 7 }
  0x2d   : > { %s232_s24 = scalar_lea.hbm %s13468_s0, %s9120_s11  ;;  %s224_s8 = scalar_lea.vmem [#allocation3], %s9119_s10 }
  0x2e   : > { %s14519_s7 = smov (%p30_p13, %s29_s7), 0  ;;  %s233_s30 = sshll.u32 %s224_s8, 4  ;;  %s234_s30 = int_to_ptr.vmem [resolvable:$true] %s233_s30 }
  0x2f   : > { %s37_s9 = ssub.s32 %s9474_s22, %s14519_s7  ;;  %s221_s13 = scalar_lea.sflag [#allocation4], %s220_s29 }
  0x30   : > { %p9619_p6 = scmp.eq.s32.totalorder %s37_s9, 0  ;;  %p9370_p10 = pneg %p9583_p12 }
  0x31   : > { %s9381_s15 = scalar_lea.vmem %s234_s30, 16384  ;;  %s9486_s16 = smov [#allocation3]  }
  0x32   : > { %p9382_p9 = scmp.ne.s32.totalorder %s234_s30, %s9381_s15  ;;  %s9386_s18 = sshll.u32 %s9486_s16, 4  ;;  %s9387_s18 = int_to_ptr.vmem [resolvable:$false] %s9386_s18 }
  0x33   : > { %s9388_s12 = scalar_lea.vmem %s9387_s18, 32768  ;;  %p9389_p11 = scmp.lt.s32.totalorder %s234_s30, %s9387_s18 }
  0x34   : > { %p9384_p5 = pnand %p9382_p9, %p9370_p10  ;;  %p9390_p0 = scmp.lt.s32.totalorder %s9388_s12, %s9381_s15 }
  0x36   : > { %p9385_p3 = pneg %p9384_p5  ;;  %p9391_p1 = por %p9390_p0, %p9389_p11 }
  0x38   : > { %p9392_p2 = pnand %p9391_p1, %p9385_p3 }
  0x3a   : > { %9395 = shalt.err (!%p9392_p2)
}
  0x3b   : > { %s9487_s8 = smov 256   ;;  %s13682_s9 = smov 8  }
  0x3c   : > { %s13683_s29 = smov 128   ;;  %245 = sbr.rel (%p9570_p8) target bundleno = 1816 (0x718), region = 40 }
  0x3d   : > { %9230 = dma.hbm_to_vmem [thread:$0]  (!%p9583_p12), %s232_s24, 16384, %s234_s30, %s221_s13, %s9487_s8, %s13683_s29, %s13682_s9  }
  0x3e   : > { %s9634_s10 = scalar_select %p9619_p6, %s9466_s20, %s41_s28  }
  0x3f   : > { %s247_s11 = sand.u32 (!%p9570_p8), 1, %s9462_s19  }
  0x40   : > { %s9122_s14 = sshll.u32 (!%p9570_p8), %s247_s11, 10  ;;  %s248_s15 = scalar_lea.sflag (!%p9570_p8), [#allocation4], %s247_s11 }
  0x41   : > { %s9639_s16 = scalar_lea.vmem [#allocation3], %s9122_s14 }
  0x42   : > { %9445 = dma.done.wait (%p9566_p7), %s248_s15, 16384  }
  0x43   : > { %9447 = vsyncadd (%p9566_p7), %s248_s15, 4294950912  ;;  %p13684_p12 = scmp.ne.s32.totalorder %s13676_s25, 0 }
  0x45   : > { %9449 = dma.done.wait (%p13684_p12), [#allocation7], 16384  }
  0x46   : > { %9451 = vsyncadd (%p13684_p12), [#allocation7], 4294950912  ;;  %p9125_p8 = scmp.ne.s32.totalorder %s9470_s21, 0 }
  0x48   : > { %285 = sbr.rel (%p9125_p8) target bundleno = 142 (0x8e), region = 56 }
  0x4d   : > { %v9488_v0 = vmov 0.0  }
  0x4e   : > { %286 = vst [vmem:[#allocation2 + $0x2b0] sm:$0xff] %v9488_v0  ;;  %287 = vst [vmem:[#allocation2 + $0x3b0] sm:$0xff] %v9488_v0 }
  0x4f   : > { %288 = vst [vmem:[#allocation2 + $0xd8] sm:$0xff] %v9488_v0  ;;  %289 = vst [vmem:[#allocation2 + $0x18] sm:$0xff] %v9488_v0 }
  0x50   : > { %290 = vst [vmem:[#allocation2 + $0x50] sm:$0xff] %v9488_v0  ;;  %291 = vst [vmem:[#allocation2 + $0x368] sm:$0xff] %v9488_v0 }
  0x51   : > { %292 = vst [vmem:[#allocation2 + $0x330] sm:$0xff] %v9488_v0  ;;  %293 = vst [vmem:[#allocation2 + $0x48] sm:$0xff] %v9488_v0 }
  0x52   : > { %294 = vst [vmem:[#allocation2 + $0x380] sm:$0xff] %v9488_v0  ;;  %295 = vst [vmem:[#allocation2 + $0x110] sm:$0xff] %v9488_v0 }
  0x53   : > { %296 = vst [vmem:[#allocation2 + $0x118] sm:$0xff] %v9488_v0  ;;  %297 = vst [vmem:[#allocation2 + $0x98] sm:$0xff] %v9488_v0 }
  0x54   : > { %298 = vst [vmem:[#allocation2 + $0x320] sm:$0xff] %v9488_v0  ;;  %299 = vst [vmem:[#allocation2 + $0x150] sm:$0xff] %v9488_v0 }
  0x55   : > { %300 = vst [vmem:[#allocation2 + $0x108] sm:$0xff] %v9488_v0  ;;  %301 = vst [vmem:[#allocation2 + $0x60] sm:$0xff] %v9488_v0 }
  0x56   : > { %302 = vst [vmem:[#allocation2 + $0x2e0] sm:$0xff] %v9488_v0  ;;  %303 = vst [vmem:[#allocation2 + $0x388] sm:$0xff] %v9488_v0 }
  0x57   : > { %304 = vst [vmem:[#allocation2 + $0x338] sm:$0xff] %v9488_v0  ;;  %305 = vst [vmem:[#allocation2 + $0x340] sm:$0xff] %v9488_v0 }
  0x58   : > { %306 = vst [vmem:[#allocation2 + $0x80] sm:$0xff] %v9488_v0  ;;  %307 = vst [vmem:[#allocation2 + $0x1a8] sm:$0xff] %v9488_v0 }
  0x59   : > { %308 = vst [vmem:[#allocation2 + $0x1b8] sm:$0xff] %v9488_v0  ;;  %309 = vst [vmem:[#allocation2 + $0x168] sm:$0xff] %v9488_v0 }
  0x5a   : > { %310 = vst [vmem:[#allocation2 + $0x3e8] sm:$0xff] %v9488_v0  ;;  %311 = vst [vmem:[#allocation2 + $0x2f8] sm:$0xff] %v9488_v0 }
  0x5b   : > { %312 = vst [vmem:[#allocation2 + $0x290] sm:$0xff] %v9488_v0  ;;  %313 = vst [vmem:[#allocation2 + $0x28] sm:$0xff] %v9488_v0 }
  0x5c   : > { %314 = vst [vmem:[#allocation2 + $0x138] sm:$0xff] %v9488_v0  ;;  %315 = vst [vmem:[#allocation2 + $0xc0] sm:$0xff] %v9488_v0 }
  0x5d   : > { %316 = vst [vmem:[#allocation2 + $0x1c0] sm:$0xff] %v9488_v0  ;;  %317 = vst [vmem:[#allocation2 + $0x280] sm:$0xff] %v9488_v0 }
  0x5e   : > { %318 = vst [vmem:[#allocation2 + $0x100] sm:$0xff] %v9488_v0  ;;  %319 = vst [vmem:[#allocation2 + $0x3c0] sm:$0xff] %v9488_v0 }
  0x5f   : > { %320 = vst [vmem:[#allocation2 + $0x158] sm:$0xff] %v9488_v0  ;;  %321 = vst [vmem:[#allocation2 + $0x3e0] sm:$0xff] %v9488_v0 }
  0x60   : > { %322 = vst [vmem:[#allocation2 + $0x218] sm:$0xff] %v9488_v0  ;;  %323 = vst [vmem:[#allocation2 + $0x3f8] sm:$0xff] %v9488_v0 }
  0x61   : > { %324 = vst [vmem:[#allocation2 + $0x8] sm:$0xff] %v9488_v0  ;;  %325 = vst [vmem:[#allocation2 + $0x128] sm:$0xff] %v9488_v0 }
  0x62   : > { %326 = vst [vmem:[#allocation2 + $0x2a0] sm:$0xff] %v9488_v0  ;;  %327 = vst [vmem:[#allocation2 + $0x3f0] sm:$0xff] %v9488_v0 }
  0x63   : > { %328 = vst [vmem:[#allocation2 + $0xa0] sm:$0xff] %v9488_v0  ;;  %329 = vst [vmem:[#allocation2 + $0x2c0] sm:$0xff] %v9488_v0 }
  0x64   : > { %330 = vst [vmem:[#allocation2 + $0xb0] sm:$0xff] %v9488_v0  ;;  %331 = vst [vmem:[#allocation2 + $0x1e0] sm:$0xff] %v9488_v0 }
  0x65   : > { %332 = vst [vmem:[#allocation2 + $0x1f0] sm:$0xff] %v9488_v0  ;;  %333 = vst [vmem:[#allocation2 + $0x10] sm:$0xff] %v9488_v0 }
  0x66   : > { %334 = vst [vmem:[#allocation2 + $0x230] sm:$0xff] %v9488_v0  ;;  %335 = vst [vmem:[#allocation2 + $0x240] sm:$0xff] %v9488_v0 }
  0x67   : > { %336 = vst [vmem:[#allocation2 + $0x90] sm:$0xff] %v9488_v0  ;;  %337 = vst [vmem:[#allocation2 + $0x3a0] sm:$0xff] %v9488_v0 }
  0x68   : > { %338 = vst [vmem:[#allocation2 + $0x208] sm:$0xff] %v9488_v0  ;;  %339 = vst [vmem:[#allocation2 + $0xd0] sm:$0xff] %v9488_v0 }
  0x69   : > { %340 = vst [vmem:[#allocation2 + $0x88] sm:$0xff] %v9488_v0  ;;  %341 = vst [vmem:[#allocation2 + $0x2f0] sm:$0xff] %v9488_v0 }
  0x6a   : > { %342 = vst [vmem:[#allocation2 + $0x358] sm:$0xff] %v9488_v0  ;;  %343 = vst [vmem:[#allocation2 + $0x268] sm:$0xff] %v9488_v0 }
  0x6b   : > { %344 = vst [vmem:[#allocation2 + $0x350] sm:$0xff] %v9488_v0  ;;  %345 = vst [vmem:[#allocation2 + $0x188] sm:$0xff] %v9488_v0 }
  0x6c   : > { %346 = vst [vmem:[#allocation2 + $0x1d8] sm:$0xff] %v9488_v0  ;;  %347 = vst [vmem:[#allocation2 + $0x30] sm:$0xff] %v9488_v0 }
  0x6d   : > { %348 = vst [vmem:[#allocation2 + $0x140] sm:$0xff] %v9488_v0  ;;  %349 = vst [vmem:[#allocation2 + $0x2a8] sm:$0xff] %v9488_v0 }
  0x6e   : > { %350 = vst [vmem:[#allocation2 + $0x130] sm:$0xff] %v9488_v0  ;;  %351 = vst [vmem:[#allocation2 + $0x200] sm:$0xff] %v9488_v0 }
  0x6f   : > { %352 = vst [vmem:[#allocation2 + $0x318] sm:$0xff] %v9488_v0  ;;  %353 = vst [vmem:[#allocation2 + $0x220] sm:$0xff] %v9488_v0 }
  0x70   : > { %354 = vst [vmem:[#allocation2 + $0x70] sm:$0xff] %v9488_v0  ;;  %355 = vst [vmem:[#allocation2 + $0x300] sm:$0xff] %v9488_v0 }
  0x71   : > { %356 = vst [vmem:[#allocation2 + $0xe0] sm:$0xff] %v9488_v0  ;;  %357 = vst [vmem:[#allocation2 + $0x178] sm:$0xff] %v9488_v0 }
  0x72   : > { %358 = vst [vmem:[#allocation2 + $0x328] sm:$0xff] %v9488_v0  ;;  %359 = vst [vmem:[#allocation2 + $0x260] sm:$0xff] %v9488_v0 }
  0x73   : > { %360 = vst [vmem:[#allocation2 + $0x3b8] sm:$0xff] %v9488_v0  ;;  %361 = vst [vmem:[#allocation2 + $0x2b8] sm:$0xff] %v9488_v0 }
  0x74   : > { %362 = vst [vmem:[#allocation2 + $0x248] sm:$0xff] %v9488_v0  ;;  %363 = vst [vmem:[#allocation2 + $0x40] sm:$0xff] %v9488_v0 }
  0x75   : > { %364 = vst [vmem:[#allocation2 + $0x20] sm:$0xff] %v9488_v0  ;;  %365 = vst [vmem:[#allocation2 + $0xe8] sm:$0xff] %v9488_v0 }
  0x76   : > { %366 = vst [vmem:[#allocation2 + $0x288] sm:$0xff] %v9488_v0  ;;  %367 = vst [vmem:[#allocation2 + $0x3a8] sm:$0xff] %v9488_v0 }
  0x77   : > { %368 = vst [vmem:[#allocation2 + $0x3c8] sm:$0xff] %v9488_v0  ;;  %369 = vst [vmem:[#allocation2 + $0x160] sm:$0xff] %v9488_v0 }
  0x78   : > { %370 = vst [vmem:[#allocation2 + $0x2c8] sm:$0xff] %v9488_v0  ;;  %371 = vst [vmem:[#allocation2 + $0x210] sm:$0xff] %v9488_v0 }
  0x79   : > { %372 = vst [vmem:[#allocation2 + $0x3d8] sm:$0xff] %v9488_v0  ;;  %373 = vst [vmem:[#allocation2 + $0x1e8] sm:$0xff] %v9488_v0 }
  0x7a   : > { %374 = vst [vmem:[#allocation2 + $0x1b0] sm:$0xff] %v9488_v0  ;;  %375 = vst [vmem:[#allocation2 + $0x1c8] sm:$0xff] %v9488_v0 }
  0x7b   : > { %376 = vst [vmem:[#allocation2 + $0x2d0] sm:$0xff] %v9488_v0  ;;  %377 = vst [vmem:[#allocation2 + $0x1d0] sm:$0xff] %v9488_v0 }
  0x7c   : > { %378 = vst [vmem:[#allocation2 + $0x58] sm:$0xff] %v9488_v0  ;;  %379 = vst [vmem:[#allocation2 + $0x120] sm:$0xff] %v9488_v0 }
  0x7d   : > { %380 = vst [vmem:[#allocation2 + $0x198] sm:$0xff] %v9488_v0  ;;  %381 = vst [vmem:[#allocation2 + $0x2e8] sm:$0xff] %v9488_v0 }
  0x7e   : > { %382 = vst [vmem:[#allocation2 + $0x1f8] sm:$0xff] %v9488_v0  ;;  %383 = vst [vmem:[#allocation2 + $0x238] sm:$0xff] %v9488_v0 }
  0x7f   : > { %384 = vst [vmem:[#allocation2 + $0x398] sm:$0xff] %v9488_v0  ;;  %385 = vst [vmem:[#allocation2 + $0x390] sm:$0xff] %v9488_v0 }
  0x80   : > { %386 = vst [vmem:[#allocation2 + $0x1a0] sm:$0xff] %v9488_v0  ;;  %387 = vst [vmem:[#allocation2 + $0xa8] sm:$0xff] %v9488_v0 }
  0x81   : > { %388 = vst [vmem:[#allocation2 + $0x258] sm:$0xff] %v9488_v0  ;;  %389 = vst [vmem:[#allocation2 + $0x2d8] sm:$0xff] %v9488_v0 }
  0x82   : > { %390 = vst [vmem:[#allocation2 + $0xf0] sm:$0xff] %v9488_v0  ;;  %391 = vst [vmem:[#allocation2 + $0x180] sm:$0xff] %v9488_v0 }
  0x83   : > { %392 = vst [vmem:[#allocation2 + $0x170] sm:$0xff] %v9488_v0  ;;  %393 = vst [vmem:[#allocation2 + $0x3d0] sm:$0xff] %v9488_v0 }
  0x84   : > { %394 = vst [vmem:[#allocation2 + $0x250] sm:$0xff] %v9488_v0  ;;  %395 = vst [vmem:[#allocation2 + $0x378] sm:$0xff] %v9488_v0 }
  0x85   : > { %396 = vst [vmem:[#allocation2 + $0xb8] sm:$0xff] %v9488_v0  ;;  %397 = vst [vmem:[#allocation2 + $0x38] sm:$0xff] %v9488_v0 }
  0x86   : > { %398 = vst [vmem:[#allocation2 + $0x78] sm:$0xff] %v9488_v0  ;;  %399 = vst [vmem:[#allocation2 + $0x308] sm:$0xff] %v9488_v0 }
  0x87   : > { %400 = vst [vmem:[#allocation2 + $0x370] sm:$0xff] %v9488_v0  ;;  %401 = vst [vmem:[#allocation2 + $0xc8] sm:$0xff] %v9488_v0 }
  0x88   : > { %402 = vst [vmem:[#allocation2 + $0x278] sm:$0xff] %v9488_v0  ;;  %403 = vst [vmem:[#allocation2 + $0x360] sm:$0xff] %v9488_v0 }
  0x89   : > { %404 = vst [vmem:[#allocation2 + $0x228] sm:$0xff] %v9488_v0  ;;  %405 = vst [vmem:[#allocation2 + $0x348] sm:$0xff] %v9488_v0 }
  0x8a   : > { %406 = vst [vmem:[#allocation2 + $0x148] sm:$0xff] %v9488_v0  ;;  %407 = vst [vmem:[#allocation2 + $0xf8] sm:$0xff] %v9488_v0 }
  0x8b   : > { %408 = vst [vmem:[#allocation2 + $0x68] sm:$0xff] %v9488_v0  ;;  %409 = vst [vmem:[#allocation2] sm:$0xff] %v9488_v0 }
  0x8c   : > { %410 = vst [vmem:[#allocation2 + $0x298] sm:$0xff] %v9488_v0  ;;  %411 = vst [vmem:[#allocation2 + $0x270] sm:$0xff] %v9488_v0 }
  0x8d   : > { %412 = vst [vmem:[#allocation2 + $0x310] sm:$0xff] %v9488_v0  ;;  %413 = vst [vmem:[#allocation2 + $0x190] sm:$0xff] %v9488_v0 }
  0x8e PF: > { %v414_v1 = vld [vmem:[%s9639_s16] sm:$0xff]  ;;  %v542_v2 = vld [vmem:[#allocation2 + $0x2b0] sm:$0xff]  ;;  %v415_v3 = vld [vmem:[%s9639_s16 + $0x8] sm:$0xff]  ;;  %p9126_p7 = scmp.ne.s32.totalorder %s9470_s21, 1 }
  0x8f   : > { %v670_v4 = vadd.f32 %v542_v2, %v414_v1  ;;  %v543_v5 = vld [vmem:[#allocation2 + $0x3b0] sm:$0xff]  ;;  %v544_v7 = vld [vmem:[#allocation2 + $0xd8] sm:$0xff]  ;;  %v418_v12 = vld [vmem:[%s9639_s16 + $0x20] sm:$0xff] }
  0x90   : > { %v416_v6 = vld [vmem:[%s9639_s16 + $0x10] sm:$0xff]  ;;  %v671_v8 = vadd.f32 %v543_v5, %v415_v3  ;;  %v417_v10 = vld [vmem:[%s9639_s16 + $0x18] sm:$0xff]  ;;  %v419_v15 = vld [vmem:[%s9639_s16 + $0x28] sm:$0xff] }
  0x91   : > { %v672_v9 = vadd.f32 %v544_v7, %v416_v6  ;;  %v545_v11 = vld [vmem:[#allocation2 + $0x18] sm:$0xff]  ;;  %798 = vst [vmem:[#allocation2 + $0x2b0] sm:$0xff] %v670_v4  ;;  %v546_v14 = vld [vmem:[#allocation2 + $0x50] sm:$0xff]  ;;  %v547_v16 = vld [vmem:[#allocation2 + $0x368] sm:$0xff] }
  0x92   : > { %v673_v13 = vadd.f32 %v545_v11, %v417_v10  ;;  %799 = vst [vmem:[#allocation2 + $0x3b0] sm:$0xff] %v671_v8  ;;  %v674_v17 = vadd.f32 %v546_v14, %v418_v12  ;;  %v675_v18 = vadd.f32 %v547_v16, %v419_v15  ;;  %v420_v19 = vld [vmem:[%s9639_s16 + $0x30] sm:$0xff]  ;;  %v421_v21 = vld [vmem:[%s9639_s16 + $0x38] sm:$0xff]  ;;  %v549_v23 = vld [vmem:[#allocation2 + $0x48] sm:$0xff] }
  0x93   : > { %800 = vst [vmem:[#allocation2 + $0xd8] sm:$0xff] %v672_v9  ;;  %v548_v20 = vld [vmem:[#allocation2 + $0x330] sm:$0xff]  ;;  %v422_v24 = vld [vmem:[%s9639_s16 + $0x40] sm:$0xff]  ;;  %v677_v26 = vadd.f32 %v549_v23, %v421_v21  ;;  %v423_v28 = vld [vmem:[%s9639_s16 + $0x48] sm:$0xff] }
  0x94   : > { %801 = vst [vmem:[#allocation2 + $0x18] sm:$0xff] %v673_v13  ;;  %v676_v22 = vadd.f32 %v548_v20, %v420_v19  ;;  %v550_v25 = vld [vmem:[#allocation2 + $0x380] sm:$0xff]  ;;  %802 = vst [vmem:[#allocation2 + $0x50] sm:$0xff] %v674_v17  ;;  %v551_v29 = vld [vmem:[#allocation2 + $0x110] sm:$0xff] }
  0x95   : > { %803 = vst [vmem:[#allocation2 + $0x368] sm:$0xff] %v675_v18  ;;  %v678_v27 = vadd.f32 %v550_v25, %v422_v24  ;;  %v424_v30 = vld [vmem:[%s9639_s16 + $0x50] sm:$0xff]  ;;  %v679_v31 = vadd.f32 %v551_v29, %v423_v28  ;;  %v552_v32 = vld [vmem:[#allocation2 + $0x118] sm:$0xff]  ;;  %805 = vst [vmem:[#allocation2 + $0x48] sm:$0xff] %v677_v26 }
  0x96   : > { %804 = vst [vmem:[#allocation2 + $0x330] sm:$0xff] %v676_v22  ;;  %v425_v33 = vld [vmem:[%s9639_s16 + $0x58] sm:$0xff]  ;;  %v680_v35 = vadd.f32 %v552_v32, %v424_v30  ;;  %v426_v37 = vld [vmem:[%s9639_s16 + $0x60] sm:$0xff]  ;;  %v427_v39 = vld [vmem:[%s9639_s16 + $0x68] sm:$0xff] }
  0x97   : > { %v553_v34 = vld [vmem:[#allocation2 + $0x98] sm:$0xff]  ;;  %806 = vst [vmem:[#allocation2 + $0x380] sm:$0xff] %v678_v27  ;;  %v554_v38 = vld [vmem:[#allocation2 + $0x320] sm:$0xff]  ;;  %807 = vst [vmem:[#allocation2 + $0x110] sm:$0xff] %v679_v31 }
  0x98   : > { %v681_v36 = vadd.f32 %v553_v34, %v425_v33  ;;  %v682_v40 = vadd.f32 %v554_v38, %v426_v37  ;;  %v555_v41 = vld [vmem:[#allocation2 + $0x150] sm:$0xff]  ;;  %v556_v43 = vld [vmem:[#allocation2 + $0x108] sm:$0xff]  ;;  %808 = vst [vmem:[#allocation2 + $0x118] sm:$0xff] %v680_v35  ;;  %v429_v46 = vld [vmem:[%s9639_s16 + $0x78] sm:$0xff] }
  0x99   : > { %v428_v42 = vld [vmem:[%s9639_s16 + $0x70] sm:$0xff]  ;;  %v683_v44 = vadd.f32 %v555_v41, %v427_v39  ;;  %v557_v47 = vld [vmem:[#allocation2 + $0x60] sm:$0xff]  ;;  %v431_v51 = vld [vmem:[%s9639_s16 + $0x88] sm:$0xff] }
  0x9a   : > { %809 = vst [vmem:[#allocation2 + $0x98] sm:$0xff] %v681_v36  ;;  %v684_v45 = vadd.f32 %v556_v43, %v428_v42  ;;  %v430_v48 = vld [vmem:[%s9639_s16 + $0x80] sm:$0xff]  ;;  %810 = vst [vmem:[#allocation2 + $0x320] sm:$0xff] %v682_v40  ;;  %v685_v49 = vadd.f32 %v557_v47, %v429_v46  ;;  %v559_v52 = vld [vmem:[#allocation2 + $0x388] sm:$0xff] }
  0x9b   : > { %v558_v50 = vld [vmem:[#allocation2 + $0x2e0] sm:$0xff]  ;;  %811 = vst [vmem:[#allocation2 + $0x150] sm:$0xff] %v683_v44  ;;  %v687_v54 = vadd.f32 %v559_v52, %v431_v51  ;;  %v432_v55 = vld [vmem:[%s9639_s16 + $0x90] sm:$0xff]  ;;  %v560_v56 = vld [vmem:[#allocation2 + $0x338] sm:$0xff] }
  0x9c   : > { %812 = vst [vmem:[#allocation2 + $0x108] sm:$0xff] %v684_v45  ;;  %v686_v53 = vadd.f32 %v558_v50, %v430_v48  ;;  %v433_v57 = vld [vmem:[%s9639_s16 + $0x98] sm:$0xff]  ;;  %813 = vst [vmem:[#allocation2 + $0x60] sm:$0xff] %v685_v49  ;;  %v688_v58 = vadd.f32 %v560_v56, %v432_v55  ;;  %v561_v59 = vld [vmem:[#allocation2 + $0x340] sm:$0xff] }
  0x9d   : > { %v434_v60 = vld [vmem:[%s9639_s16 + $0xa0] sm:$0xff]  ;;  %815 = vst [vmem:[#allocation2 + $0x388] sm:$0xff] %v687_v54  ;;  %v689_v62 = vadd.f32 %v561_v59, %v433_v57  ;;  %v435_v0 = vld [vmem:[%s9639_s16 + $0xa8] sm:$0xff]  ;;  %v436_v2 = vld [vmem:[%s9639_s16 + $0xb0] sm:$0xff] }
  0x9e   : > { %v562_v61 = vld [vmem:[#allocation2 + $0x80] sm:$0xff]  ;;  %814 = vst [vmem:[#allocation2 + $0x2e0] sm:$0xff] %v686_v53  ;;  %v563_v1 = vld [vmem:[#allocation2 + $0x1a8] sm:$0xff]  ;;  %816 = vst [vmem:[#allocation2 + $0x338] sm:$0xff] %v688_v58 }
  0x9f   : > { %v690_v63 = vadd.f32 %v562_v61, %v434_v60  ;;  %v691_v3 = vadd.f32 %v563_v1, %v435_v0  ;;  %v564_v4 = vld [vmem:[#allocation2 + $0x1b8] sm:$0xff]  ;;  %v565_v6 = vld [vmem:[#allocation2 + $0x168] sm:$0xff]  ;;  %817 = vst [vmem:[#allocation2 + $0x340] sm:$0xff] %v689_v62  ;;  %v438_v9 = vld [vmem:[%s9639_s16 + $0xc0] sm:$0xff] }
  0xa0   : > { %v437_v5 = vld [vmem:[%s9639_s16 + $0xb8] sm:$0xff]  ;;  %v692_v7 = vadd.f32 %v564_v4, %v436_v2  ;;  %v566_v10 = vld [vmem:[#allocation2 + $0x3e8] sm:$0xff]  ;;  %v440_v14 = vld [vmem:[%s9639_s16 + $0xd0] sm:$0xff] }
  0xa1   : > { %818 = vst [vmem:[#allocation2 + $0x80] sm:$0xff] %v690_v63  ;;  %v693_v8 = vadd.f32 %v565_v6, %v437_v5  ;;  %v439_v11 = vld [vmem:[%s9639_s16 + $0xc8] sm:$0xff]  ;;  %819 = vst [vmem:[#allocation2 + $0x1a8] sm:$0xff] %v691_v3  ;;  %v694_v12 = vadd.f32 %v566_v10, %v438_v9  ;;  %v567_v13 = vld [vmem:[#allocation2 + $0x2f8] sm:$0xff] }
  0xa2   : > { %v568_v15 = vld [vmem:[#allocation2 + $0x290] sm:$0xff]  ;;  %820 = vst [vmem:[#allocation2 + $0x1b8] sm:$0xff] %v692_v7  ;;  %v695_v16 = vadd.f32 %v567_v13, %v439_v11  ;;  %v441_v18 = vld [vmem:[%s9639_s16 + $0xd8] sm:$0xff]  ;;  %v569_v19 = vld [vmem:[#allocation2 + $0x28] sm:$0xff] }
  0xa3   : > { %821 = vst [vmem:[#allocation2 + $0x168] sm:$0xff] %v693_v8  ;;  %v696_v17 = vadd.f32 %v568_v15, %v440_v14  ;;  %v442_v20 = vld [vmem:[%s9639_s16 + $0xe0] sm:$0xff]  ;;  %822 = vst [vmem:[#allocation2 + $0x3e8] sm:$0xff] %v694_v12  ;;  %v697_v21 = vadd.f32 %v569_v19, %v441_v18  ;;  %v570_v22 = vld [vmem:[#allocation2 + $0x138] sm:$0xff] }
  0xa4   : > { %v443_v23 = vld [vmem:[%s9639_s16 + $0xe8] sm:$0xff]  ;;  %v571_v24 = vld [vmem:[#allocation2 + $0xc0] sm:$0xff]  ;;  %823 = vst [vmem:[#allocation2 + $0x2f8] sm:$0xff] %v695_v16  ;;  %v698_v25 = vadd.f32 %v570_v22, %v442_v20  ;;  %v444_v27 = vld [vmem:[%s9639_s16 + $0xf0] sm:$0xff] }
  0xa5   : > { %824 = vst [vmem:[#allocation2 + $0x290] sm:$0xff] %v696_v17  ;;  %v699_v26 = vadd.f32 %v571_v24, %v443_v23  ;;  %v572_v28 = vld [vmem:[#allocation2 + $0x1c0] sm:$0xff]  ;;  %v445_v29 = vld [vmem:[%s9639_s16 + $0xf8] sm:$0xff]  ;;  %825 = vst [vmem:[#allocation2 + $0x28] sm:$0xff] %v697_v21 }
  0xa6   : > { %v700_v30 = vadd.f32 %v572_v28, %v444_v27  ;;  %v573_v31 = vld [vmem:[#allocation2 + $0x280] sm:$0xff]  ;;  %826 = vst [vmem:[#allocation2 + $0x138] sm:$0xff] %v698_v25  ;;  %v447_v36 = vld [vmem:[%s9639_s16 + $0x108] sm:$0xff]  ;;  %v448_v38 = vld [vmem:[%s9639_s16 + $0x110] sm:$0xff] }
  0xa7   : > { %v446_v32 = vld [vmem:[%s9639_s16 + $0x100] sm:$0xff]  ;;  %827 = vst [vmem:[#allocation2 + $0xc0] sm:$0xff] %v699_v26  ;;  %v701_v34 = vadd.f32 %v573_v31, %v445_v29  ;;  %v576_v40 = vld [vmem:[#allocation2 + $0x158] sm:$0xff]  ;;  %v451_v47 = vld [vmem:[%s9639_s16 + $0x128] sm:$0xff] }
  0xa8   : > { %v574_v33 = vld [vmem:[#allocation2 + $0x100] sm:$0xff]  ;;  %828 = vst [vmem:[#allocation2 + $0x1c0] sm:$0xff] %v700_v30  ;;  %v449_v41 = vld [vmem:[%s9639_s16 + $0x118] sm:$0xff]  ;;  %v704_v43 = vadd.f32 %v576_v40, %v448_v38  ;;  %v452_v50 = vld [vmem:[%s9639_s16 + $0x130] sm:$0xff] }
  0xa9   : > { %v702_v35 = vadd.f32 %v574_v33, %v446_v32  ;;  %v575_v37 = vld [vmem:[#allocation2 + $0x3c0] sm:$0xff]  ;;  %829 = vst [vmem:[#allocation2 + $0x280] sm:$0xff] %v701_v34  ;;  %v578_v46 = vld [vmem:[#allocation2 + $0x218] sm:$0xff]  ;;  %v580_v51 = vld [vmem:[#allocation2 + $0x8] sm:$0xff] }
  0xaa   : > { %v703_v39 = vadd.f32 %v575_v37, %v447_v36  ;;  %v577_v42 = vld [vmem:[#allocation2 + $0x3e0] sm:$0xff]  ;;  %v579_v49 = vld [vmem:[#allocation2 + $0x3f8] sm:$0xff]  ;;  %832 = vst [vmem:[#allocation2 + $0x158] sm:$0xff] %v704_v43  ;;  %v708_v53 = vadd.f32 %v580_v51, %v452_v50  ;;  %v581_v55 = vld [vmem:[#allocation2 + $0x128] sm:$0xff] }
  0xab   : > { %830 = vst [vmem:[#allocation2 + $0x100] sm:$0xff] %v702_v35  ;;  %v705_v44 = vadd.f32 %v577_v42, %v449_v41  ;;  %v450_v45 = vld [vmem:[%s9639_s16 + $0x120] sm:$0xff]  ;;  %v707_v52 = vadd.f32 %v579_v49, %v451_v47  ;;  %v453_v54 = vld [vmem:[%s9639_s16 + $0x138] sm:$0xff]  ;;  %v455_v59 = vld [vmem:[%s9639_s16 + $0x148] sm:$0xff] }
  0xac   : > { %831 = vst [vmem:[#allocation2 + $0x3c0] sm:$0xff] %v703_v39  ;;  %v706_v48 = vadd.f32 %v578_v46, %v450_v45  ;;  %v454_v56 = vld [vmem:[%s9639_s16 + $0x140] sm:$0xff]  ;;  %v709_v57 = vadd.f32 %v581_v55, %v453_v54  ;;  %v583_v60 = vld [vmem:[#allocation2 + $0x3f0] sm:$0xff]  ;;  %836 = vst [vmem:[#allocation2 + $0x8] sm:$0xff] %v708_v53 }
  0xad   : > { %833 = vst [vmem:[#allocation2 + $0x3e0] sm:$0xff] %v705_v44  ;;  %v582_v58 = vld [vmem:[#allocation2 + $0x2a0] sm:$0xff]  ;;  %835 = vst [vmem:[#allocation2 + $0x3f8] sm:$0xff] %v707_v52  ;;  %v711_v62 = vadd.f32 %v583_v60, %v455_v59  ;;  %v456_v63 = vld [vmem:[%s9639_s16 + $0x150] sm:$0xff] }
  0xae   : > { %834 = vst [vmem:[#allocation2 + $0x218] sm:$0xff] %v706_v48  ;;  %v710_v61 = vadd.f32 %v582_v58, %v454_v56  ;;  %v584_v0 = vld [vmem:[#allocation2 + $0xa0] sm:$0xff]  ;;  %v457_v1 = vld [vmem:[%s9639_s16 + $0x158] sm:$0xff]  ;;  %837 = vst [vmem:[#allocation2 + $0x128] sm:$0xff] %v709_v57 }
  0xaf   : > { %v712_v2 = vadd.f32 %v584_v0, %v456_v63  ;;  %v585_v3 = vld [vmem:[#allocation2 + $0x2c0] sm:$0xff]  ;;  %v586_v5 = vld [vmem:[#allocation2 + $0xb0] sm:$0xff]  ;;  %839 = vst [vmem:[#allocation2 + $0x3f0] sm:$0xff] %v711_v62  ;;  %v459_v8 = vld [vmem:[%s9639_s16 + $0x168] sm:$0xff] }
  0xb0   : > { %v458_v4 = vld [vmem:[%s9639_s16 + $0x160] sm:$0xff]  ;;  %838 = vst [vmem:[#allocation2 + $0x2a0] sm:$0xff] %v710_v61  ;;  %v713_v6 = vadd.f32 %v585_v3, %v457_v1  ;;  %v460_v10 = vld [vmem:[%s9639_s16 + $0x170] sm:$0xff]  ;;  %v461_v13 = vld [vmem:[%s9639_s16 + $0x178] sm:$0xff] }
  0xb1   : > { %v714_v7 = vadd.f32 %v586_v5, %v458_v4  ;;  %v587_v9 = vld [vmem:[#allocation2 + $0x1e0] sm:$0xff]  ;;  %840 = vst [vmem:[#allocation2 + $0xa0] sm:$0xff] %v712_v2  ;;  %v588_v12 = vld [vmem:[#allocation2 + $0x1f0] sm:$0xff]  ;;  %v463_v19 = vld [vmem:[%s9639_s16 + $0x188] sm:$0xff] }
  0xb2   : > { %v715_v11 = vadd.f32 %v587_v9, %v459_v8  ;;  %v589_v14 = vld [vmem:[#allocation2 + $0x10] sm:$0xff]  ;;  %841 = vst [vmem:[#allocation2 + $0x2c0] sm:$0xff] %v713_v6  ;;  %v716_v15 = vadd.f32 %v588_v12, %v460_v10  ;;  %v462_v17 = vld [vmem:[%s9639_s16 + $0x180] sm:$0xff]  ;;  %v465_v26 = vld [vmem:[%s9639_s16 + $0x198] sm:$0xff] }
  0xb3   : > { %842 = vst [vmem:[#allocation2 + $0xb0] sm:$0xff] %v714_v7  ;;  %v717_v16 = vadd.f32 %v589_v14, %v461_v13  ;;  %v590_v18 = vld [vmem:[#allocation2 + $0x230] sm:$0xff]  ;;  %v591_v21 = vld [vmem:[#allocation2 + $0x240] sm:$0xff]  ;;  %v594_v30 = vld [vmem:[#allocation2 + $0x208] sm:$0xff] }
  0xb4   : > { %843 = vst [vmem:[#allocation2 + $0x1e0] sm:$0xff] %v715_v11  ;;  %v718_v20 = vadd.f32 %v590_v18, %v462_v17  ;;  %v464_v22 = vld [vmem:[%s9639_s16 + $0x190] sm:$0xff]  ;;  %844 = vst [vmem:[#allocation2 + $0x1f0] sm:$0xff] %v716_v15  ;;  %v719_v24 = vadd.f32 %v591_v21, %v463_v19  ;;  %v593_v27 = vld [vmem:[#allocation2 + $0x3a0] sm:$0xff] }
  0xb5   : > { %v592_v23 = vld [vmem:[#allocation2 + $0x90] sm:$0xff]  ;;  %845 = vst [vmem:[#allocation2 + $0x10] sm:$0xff] %v717_v16  ;;  %v466_v28 = vld [vmem:[%s9639_s16 + $0x1a0] sm:$0xff]  ;;  %v721_v29 = vadd.f32 %v593_v27, %v465_v26  ;;  %v467_v31 = vld [vmem:[%s9639_s16 + $0x1a8] sm:$0xff] }
  0xb6   : > { %v720_v25 = vadd.f32 %v592_v23, %v464_v22  ;;  %846 = vst [vmem:[#allocation2 + $0x230] sm:$0xff] %v718_v20  ;;  %v595_v32 = vld [vmem:[#allocation2 + $0xd0] sm:$0xff]  ;;  %847 = vst [vmem:[#allocation2 + $0x240] sm:$0xff] %v719_v24  ;;  %v722_v33 = vadd.f32 %v594_v30, %v466_v28  ;;  %v596_v36 = vld [vmem:[#allocation2 + $0x88] sm:$0xff] }
  0xb7   : > { %v723_v34 = vadd.f32 %v595_v32, %v467_v31  ;;  %v468_v35 = vld [vmem:[%s9639_s16 + $0x1b0] sm:$0xff]  ;;  %v469_v37 = vld [vmem:[%s9639_s16 + $0x1b8] sm:$0xff]  ;;  %849 = vst [vmem:[#allocation2 + $0x3a0] sm:$0xff] %v721_v29  ;;  %v470_v40 = vld [vmem:[%s9639_s16 + $0x1c0] sm:$0xff] }
  0xb8   : > { %848 = vst [vmem:[#allocation2 + $0x90] sm:$0xff] %v720_v25  ;;  %v724_v38 = vadd.f32 %v596_v36, %v468_v35  ;;  %v597_v39 = vld [vmem:[#allocation2 + $0x2f0] sm:$0xff]  ;;  %v598_v41 = vld [vmem:[#allocation2 + $0x358] sm:$0xff]  ;;  %850 = vst [vmem:[#allocation2 + $0x208] sm:$0xff] %v722_v33 }
  0xb9   : > { %851 = vst [vmem:[#allocation2 + $0xd0] sm:$0xff] %v723_v34  ;;  %v725_v42 = vadd.f32 %v597_v39, %v469_v37  ;;  %v726_v43 = vadd.f32 %v598_v41, %v470_v40  ;;  %v471_v44 = vld [vmem:[%s9639_s16 + $0x1c8] sm:$0xff]  ;;  %v472_v46 = vld [vmem:[%s9639_s16 + $0x1d0] sm:$0xff]  ;;  %v473_v49 = vld [vmem:[%s9639_s16 + $0x1d8] sm:$0xff] }
  0xba   : > { %v599_v45 = vld [vmem:[#allocation2 + $0x268] sm:$0xff]  ;;  %852 = vst [vmem:[#allocation2 + $0x88] sm:$0xff] %v724_v38  ;;  %v600_v48 = vld [vmem:[#allocation2 + $0x350] sm:$0xff]  ;;  %v474_v53 = vld [vmem:[%s9639_s16 + $0x1e0] sm:$0xff] }
  0xbb   : > { %v727_v47 = vadd.f32 %v599_v45, %v471_v44  ;;  %v601_v50 = vld [vmem:[#allocation2 + $0x188] sm:$0xff]  ;;  %853 = vst [vmem:[#allocation2 + $0x2f0] sm:$0xff] %v725_v42  ;;  %854 = vst [vmem:[#allocation2 + $0x358] sm:$0xff] %v726_v43  ;;  %v728_v51 = vadd.f32 %v600_v48, %v472_v46  ;;  %v602_v54 = vld [vmem:[#allocation2 + $0x1d8] sm:$0xff] }
  0xbc   : > { %v729_v52 = vadd.f32 %v601_v50, %v473_v49  ;;  %v475_v55 = vld [vmem:[%s9639_s16 + $0x1e8] sm:$0xff]  ;;  %v730_v56 = vadd.f32 %v602_v54, %v474_v53  ;;  %v603_v57 = vld [vmem:[#allocation2 + $0x30] sm:$0xff]  ;;  %v604_v59 = vld [vmem:[#allocation2 + $0x140] sm:$0xff] }
  0xbd   : > { %855 = vst [vmem:[#allocation2 + $0x268] sm:$0xff] %v727_v47  ;;  %v476_v58 = vld [vmem:[%s9639_s16 + $0x1f0] sm:$0xff]  ;;  %856 = vst [vmem:[#allocation2 + $0x350] sm:$0xff] %v728_v51  ;;  %v731_v60 = vadd.f32 %v603_v57, %v475_v55  ;;  %v477_v62 = vld [vmem:[%s9639_s16 + $0x1f8] sm:$0xff] }
  0xbe   : > { %857 = vst [vmem:[#allocation2 + $0x188] sm:$0xff] %v729_v52  ;;  %v732_v61 = vadd.f32 %v604_v59, %v476_v58  ;;  %v605_v63 = vld [vmem:[#allocation2 + $0x2a8] sm:$0xff]  ;;  %v478_v0 = vld [vmem:[%s9639_s16 + $0x200] sm:$0xff]  ;;  %858 = vst [vmem:[#allocation2 + $0x1d8] sm:$0xff] %v730_v56 }
  0xbf   : > { %v733_v1 = vadd.f32 %v605_v63, %v477_v62  ;;  %v606_v2 = vld [vmem:[#allocation2 + $0x130] sm:$0xff]  ;;  %v479_v3 = vld [vmem:[%s9639_s16 + $0x208] sm:$0xff]  ;;  %v607_v4 = vld [vmem:[#allocation2 + $0x200] sm:$0xff]  ;;  %859 = vst [vmem:[#allocation2 + $0x30] sm:$0xff] %v731_v60 }
  0xc0   : > { %860 = vst [vmem:[#allocation2 + $0x140] sm:$0xff] %v732_v61  ;;  %v734_v5 = vadd.f32 %v606_v2, %v478_v0  ;;  %v735_v6 = vadd.f32 %v607_v4, %v479_v3  ;;  %v480_v7 = vld [vmem:[%s9639_s16 + $0x210] sm:$0xff]  ;;  %v608_v8 = vld [vmem:[#allocation2 + $0x318] sm:$0xff]  ;;  %v609_v11 = vld [vmem:[#allocation2 + $0x220] sm:$0xff] }
  0xc1   : > { %v481_v9 = vld [vmem:[%s9639_s16 + $0x218] sm:$0xff]  ;;  %861 = vst [vmem:[#allocation2 + $0x2a8] sm:$0xff] %v733_v1  ;;  %v736_v10 = vadd.f32 %v608_v8, %v480_v7  ;;  %v482_v12 = vld [vmem:[%s9639_s16 + $0x220] sm:$0xff]  ;;  %v610_v13 = vld [vmem:[#allocation2 + $0x70] sm:$0xff] }
  0xc2   : > { %862 = vst [vmem:[#allocation2 + $0x130] sm:$0xff] %v734_v5  ;;  %863 = vst [vmem:[#allocation2 + $0x200] sm:$0xff] %v735_v6  ;;  %v737_v14 = vadd.f32 %v609_v11, %v481_v9  ;;  %v738_v15 = vadd.f32 %v610_v13, %v482_v12  ;;  %v483_v16 = vld [vmem:[%s9639_s16 + $0x228] sm:$0xff]  ;;  %v611_v17 = vld [vmem:[#allocation2 + $0x300] sm:$0xff] }
  0xc3   : > { %v484_v18 = vld [vmem:[%s9639_s16 + $0x230] sm:$0xff]  ;;  %864 = vst [vmem:[#allocation2 + $0x318] sm:$0xff] %v736_v10  ;;  %v739_v19 = vadd.f32 %v611_v17, %v483_v16  ;;  %v612_v20 = vld [vmem:[#allocation2 + $0xe0] sm:$0xff]  ;;  %v485_v21 = vld [vmem:[%s9639_s16 + $0x238] sm:$0xff] }
  0xc4   : > { %v613_v22 = vld [vmem:[#allocation2 + $0x178] sm:$0xff]  ;;  %865 = vst [vmem:[#allocation2 + $0x220] sm:$0xff] %v737_v14  ;;  %866 = vst [vmem:[#allocation2 + $0x70] sm:$0xff] %v738_v15  ;;  %v740_v23 = vadd.f32 %v612_v20, %v484_v18  ;;  %v486_v25 = vld [vmem:[%s9639_s16 + $0x240] sm:$0xff] }
  0xc5   : > { %v741_v24 = vadd.f32 %v613_v22, %v485_v21  ;;  %v614_v26 = vld [vmem:[#allocation2 + $0x328] sm:$0xff]  ;;  %867 = vst [vmem:[#allocation2 + $0x300] sm:$0xff] %v739_v19  ;;  %v615_v29 = vld [vmem:[#allocation2 + $0x260] sm:$0xff]  ;;  %v488_v30 = vld [vmem:[%s9639_s16 + $0x250] sm:$0xff] }
  0xc6   : > { %v487_v27 = vld [vmem:[%s9639_s16 + $0x248] sm:$0xff]  ;;  %v742_v28 = vadd.f32 %v614_v26, %v486_v25  ;;  %v616_v31 = vld [vmem:[#allocation2 + $0x3b8] sm:$0xff]  ;;  %868 = vst [vmem:[#allocation2 + $0xe0] sm:$0xff] %v740_v23  ;;  %v490_v36 = vld [vmem:[%s9639_s16 + $0x260] sm:$0xff] }
  0xc7   : > { %869 = vst [vmem:[#allocation2 + $0x178] sm:$0xff] %v741_v24  ;;  %v743_v32 = vadd.f32 %v615_v29, %v487_v27  ;;  %v744_v33 = vadd.f32 %v616_v31, %v488_v30  ;;  %v489_v34 = vld [vmem:[%s9639_s16 + $0x258] sm:$0xff]  ;;  %v618_v38 = vld [vmem:[#allocation2 + $0x248] sm:$0xff]  ;;  %v619_v40 = vld [vmem:[#allocation2 + $0x40] sm:$0xff] }
  0xc8   : > { %v617_v35 = vld [vmem:[#allocation2 + $0x2b8] sm:$0xff]  ;;  %870 = vst [vmem:[#allocation2 + $0x328] sm:$0xff] %v742_v28  ;;  %v491_v39 = vld [vmem:[%s9639_s16 + $0x268] sm:$0xff]  ;;  %v746_v41 = vadd.f32 %v618_v38, %v490_v36  ;;  %v492_v43 = vld [vmem:[%s9639_s16 + $0x270] sm:$0xff] }
  0xc9   : > { %v745_v37 = vadd.f32 %v617_v35, %v489_v34  ;;  %871 = vst [vmem:[#allocation2 + $0x260] sm:$0xff] %v743_v32  ;;  %872 = vst [vmem:[#allocation2 + $0x3b8] sm:$0xff] %v744_v33  ;;  %v747_v42 = vadd.f32 %v619_v40, %v491_v39  ;;  %v620_v44 = vld [vmem:[#allocation2 + $0x20] sm:$0xff]  ;;  %v493_v45 = vld [vmem:[%s9639_s16 + $0x278] sm:$0xff] }
  0xca   : > { %v748_v46 = vadd.f32 %v620_v44, %v492_v43  ;;  %v621_v47 = vld [vmem:[#allocation2 + $0xe8] sm:$0xff]  ;;  %v494_v48 = vld [vmem:[%s9639_s16 + $0x280] sm:$0xff]  ;;  %874 = vst [vmem:[#allocation2 + $0x248] sm:$0xff] %v746_v41  ;;  %v496_v54 = vld [vmem:[%s9639_s16 + $0x290] sm:$0xff] }
  0xcb   : > { %873 = vst [vmem:[#allocation2 + $0x2b8] sm:$0xff] %v745_v37  ;;  %v622_v49 = vld [vmem:[#allocation2 + $0x288] sm:$0xff]  ;;  %875 = vst [vmem:[#allocation2 + $0x40] sm:$0xff] %v747_v42  ;;  %v749_v50 = vadd.f32 %v621_v47, %v493_v45  ;;  %v497_v57 = vld [vmem:[%s9639_s16 + $0x298] sm:$0xff] }
  0xcc   : > { %v750_v51 = vadd.f32 %v622_v49, %v494_v48  ;;  %v495_v52 = vld [vmem:[%s9639_s16 + $0x288] sm:$0xff]  ;;  %876 = vst [vmem:[#allocation2 + $0x20] sm:$0xff] %v748_v46  ;;  %v625_v58 = vld [vmem:[#allocation2 + $0x160] sm:$0xff]  ;;  %v627_v1 = vld [vmem:[#allocation2 + $0x210] sm:$0xff] }
  0xcd   : > { %v623_v53 = vld [vmem:[#allocation2 + $0x3a8] sm:$0xff]  ;;  %877 = vst [vmem:[#allocation2 + $0xe8] sm:$0xff] %v749_v50  ;;  %v753_v60 = vadd.f32 %v625_v58, %v497_v57  ;;  %v498_v61 = vld [vmem:[%s9639_s16 + $0x2a0] sm:$0xff]  ;;  %v500_v2 = vld [vmem:[%s9639_s16 + $0x2b0] sm:$0xff] }
  0xce   : > { %v751_v55 = vadd.f32 %v623_v53, %v495_v52  ;;  %v624_v56 = vld [vmem:[#allocation2 + $0x3c8] sm:$0xff]  ;;  %878 = vst [vmem:[#allocation2 + $0x288] sm:$0xff] %v750_v51  ;;  %v628_v3 = vld [vmem:[#allocation2 + $0x3d8] sm:$0xff]  ;;  %v502_v8 = vld [vmem:[%s9639_s16 + $0x2c0] sm:$0xff] }
  0xcf   : > { %v752_v59 = vadd.f32 %v624_v56, %v496_v54  ;;  %v626_v62 = vld [vmem:[#allocation2 + $0x2c8] sm:$0xff]  ;;  %881 = vst [vmem:[#allocation2 + $0x160] sm:$0xff] %v753_v60  ;;  %v756_v5 = vadd.f32 %v628_v3, %v500_v2  ;;  %v501_v6 = vld [vmem:[%s9639_s16 + $0x2b8] sm:$0xff]  ;;  %v630_v10 = vld [vmem:[#allocation2 + $0x1b0] sm:$0xff] }
  0xd0   : > { %v499_v63 = vld [vmem:[%s9639_s16 + $0x2a8] sm:$0xff]  ;;  %879 = vst [vmem:[#allocation2 + $0x3a8] sm:$0xff] %v751_v55  ;;  %v754_v0 = vadd.f32 %v626_v62, %v498_v61  ;;  %v758_v13 = vadd.f32 %v630_v10, %v502_v8  ;;  %v504_v15 = vld [vmem:[%s9639_s16 + $0x2d0] sm:$0xff]  ;;  %v505_v17 = vld [vmem:[%s9639_s16 + $0x2d8] sm:$0xff] }
  0xd1   : > { %880 = vst [vmem:[#allocation2 + $0x3c8] sm:$0xff] %v752_v59  ;;  %v755_v4 = vadd.f32 %v627_v1, %v499_v63  ;;  %v629_v7 = vld [vmem:[#allocation2 + $0x1e8] sm:$0xff]  ;;  %884 = vst [vmem:[#allocation2 + $0x3d8] sm:$0xff] %v756_v5  ;;  %v632_v16 = vld [vmem:[#allocation2 + $0x2d0] sm:$0xff] }
  0xd2   : > { %882 = vst [vmem:[#allocation2 + $0x2c8] sm:$0xff] %v754_v0  ;;  %v757_v9 = vadd.f32 %v629_v7, %v501_v6  ;;  %v503_v11 = vld [vmem:[%s9639_s16 + $0x2c8] sm:$0xff]  ;;  %v760_v18 = vadd.f32 %v632_v16, %v504_v15  ;;  %v633_v19 = vld [vmem:[#allocation2 + $0x1d0] sm:$0xff]  ;;  %v506_v20 = vld [vmem:[%s9639_s16 + $0x2e0] sm:$0xff] }
  0xd3   : > { %v631_v12 = vld [vmem:[#allocation2 + $0x1c8] sm:$0xff]  ;;  %883 = vst [vmem:[#allocation2 + $0x210] sm:$0xff] %v755_v4  ;;  %v634_v21 = vld [vmem:[#allocation2 + $0x58] sm:$0xff]  ;;  %886 = vst [vmem:[#allocation2 + $0x1b0] sm:$0xff] %v758_v13  ;;  %v761_v22 = vadd.f32 %v633_v19, %v505_v17 }
  0xd4   : > { %v759_v14 = vadd.f32 %v631_v12, %v503_v11  ;;  %885 = vst [vmem:[#allocation2 + $0x1e8] sm:$0xff] %v757_v9  ;;  %v762_v23 = vadd.f32 %v634_v21, %v506_v20  ;;  %v507_v24 = vld [vmem:[%s9639_s16 + $0x2e8] sm:$0xff]  ;;  %v635_v25 = vld [vmem:[#allocation2 + $0x120] sm:$0xff]  ;;  %v508_v26 = vld [vmem:[%s9639_s16 + $0x2f0] sm:$0xff] }
  0xd5   : > { %888 = vst [vmem:[#allocation2 + $0x2d0] sm:$0xff] %v760_v18  ;;  %v763_v27 = vadd.f32 %v635_v25, %v507_v24  ;;  %v636_v28 = vld [vmem:[#allocation2 + $0x198] sm:$0xff]  ;;  %v637_v30 = vld [vmem:[#allocation2 + $0x2e8] sm:$0xff]  ;;  %889 = vst [vmem:[#allocation2 + $0x1d0] sm:$0xff] %v761_v22 }
  0xd6   : > { %887 = vst [vmem:[#allocation2 + $0x1c8] sm:$0xff] %v759_v14  ;;  %v509_v29 = vld [vmem:[%s9639_s16 + $0x2f8] sm:$0xff]  ;;  %890 = vst [vmem:[#allocation2 + $0x58] sm:$0xff] %v762_v23  ;;  %v764_v31 = vadd.f32 %v636_v28, %v508_v26  ;;  %v510_v33 = vld [vmem:[%s9639_s16 + $0x300] sm:$0xff] }
  0xd7   : > { %v765_v32 = vadd.f32 %v637_v30, %v509_v29  ;;  %v638_v34 = vld [vmem:[#allocation2 + $0x1f8] sm:$0xff]  ;;  %v511_v35 = vld [vmem:[%s9639_s16 + $0x308] sm:$0xff]  ;;  %891 = vst [vmem:[#allocation2 + $0x120] sm:$0xff] %v763_v27  ;;  %v512_v38 = vld [vmem:[%s9639_s16 + $0x310] sm:$0xff] }
  0xd8   : > { %v766_v36 = vadd.f32 %v638_v34, %v510_v33  ;;  %v639_v37 = vld [vmem:[#allocation2 + $0x238] sm:$0xff]  ;;  %892 = vst [vmem:[#allocation2 + $0x198] sm:$0xff] %v764_v31  ;;  %v641_v43 = vld [vmem:[#allocation2 + $0x390] sm:$0xff]  ;;  %v514_v44 = vld [vmem:[%s9639_s16 + $0x320] sm:$0xff] }
  0xd9   : > { %v640_v39 = vld [vmem:[#allocation2 + $0x398] sm:$0xff]  ;;  %893 = vst [vmem:[#allocation2 + $0x2e8] sm:$0xff] %v765_v32  ;;  %v767_v40 = vadd.f32 %v639_v37, %v511_v35  ;;  %v642_v46 = vld [vmem:[#allocation2 + $0x1a0] sm:$0xff]  ;;  %v515_v47 = vld [vmem:[%s9639_s16 + $0x328] sm:$0xff] }
  0xda   : > { %v768_v41 = vadd.f32 %v640_v39, %v512_v38  ;;  %v513_v42 = vld [vmem:[%s9639_s16 + $0x318] sm:$0xff]  ;;  %894 = vst [vmem:[#allocation2 + $0x1f8] sm:$0xff] %v766_v36  ;;  %v643_v48 = vld [vmem:[#allocation2 + $0xa8] sm:$0xff]  ;;  %v770_v49 = vadd.f32 %v642_v46, %v514_v44  ;;  %v516_v51 = vld [vmem:[%s9639_s16 + $0x330] sm:$0xff] }
  0xdb   : > { %v769_v45 = vadd.f32 %v641_v43, %v513_v42  ;;  %895 = vst [vmem:[#allocation2 + $0x238] sm:$0xff] %v767_v40  ;;  %v771_v50 = vadd.f32 %v643_v48, %v515_v47  ;;  %v644_v52 = vld [vmem:[#allocation2 + $0x258] sm:$0xff]  ;;  %v518_v56 = vld [vmem:[%s9639_s16 + $0x340] sm:$0xff]  ;;  %v646_v57 = vld [vmem:[#allocation2 + $0xf0] sm:$0xff] }
  0xdc   : > { %896 = vst [vmem:[#allocation2 + $0x398] sm:$0xff] %v768_v41  ;;  %v517_v53 = vld [vmem:[%s9639_s16 + $0x338] sm:$0xff]  ;;  %v772_v54 = vadd.f32 %v644_v52, %v516_v51  ;;  %898 = vst [vmem:[#allocation2 + $0x1a0] sm:$0xff] %v770_v49  ;;  %v774_v59 = vadd.f32 %v646_v57, %v518_v56  ;;  %v519_v60 = vld [vmem:[%s9639_s16 + $0x348] sm:$0xff] }
  0xdd   : > { %897 = vst [vmem:[#allocation2 + $0x390] sm:$0xff] %v769_v45  ;;  %v645_v55 = vld [vmem:[#allocation2 + $0x2d8] sm:$0xff]  ;;  %899 = vst [vmem:[#allocation2 + $0xa8] sm:$0xff] %v771_v50  ;;  %v647_v61 = vld [vmem:[#allocation2 + $0x180] sm:$0xff] }
  0xde   : > { %v773_v58 = vadd.f32 %v645_v55, %v517_v53  ;;  %v520_v62 = vld [vmem:[%s9639_s16 + $0x350] sm:$0xff]  ;;  %900 = vst [vmem:[#allocation2 + $0x258] sm:$0xff] %v772_v54  ;;  %v775_v63 = vadd.f32 %v647_v61, %v519_v60  ;;  %v521_v1 = vld [vmem:[%s9639_s16 + $0x358] sm:$0xff]  ;;  %902 = vst [vmem:[#allocation2 + $0xf0] sm:$0xff] %v774_v59 }
  0xdf   : > { %v648_v0 = vld [vmem:[#allocation2 + $0x170] sm:$0xff]  ;;  %v522_v5 = vld [vmem:[%s9639_s16 + $0x360] sm:$0xff]  ;;  %v523_v7 = vld [vmem:[%s9639_s16 + $0x368] sm:$0xff] }
  0xe0   : > { %v649_v2 = vld [vmem:[#allocation2 + $0x3d0] sm:$0xff]  ;;  %901 = vst [vmem:[#allocation2 + $0x2d8] sm:$0xff] %v773_v58  ;;  %v776_v3 = vadd.f32 %v648_v0, %v520_v62  ;;  %903 = vst [vmem:[#allocation2 + $0x180] sm:$0xff] %v775_v63  ;;  %v651_v9 = vld [vmem:[#allocation2 + $0x378] sm:$0xff] }
  0xe1   : > { %v777_v4 = vadd.f32 %v649_v2, %v521_v1  ;;  %v650_v6 = vld [vmem:[#allocation2 + $0x250] sm:$0xff]  ;;  %v652_v11 = vld [vmem:[#allocation2 + $0xb8] sm:$0xff]  ;;  %v779_v12 = vadd.f32 %v651_v9, %v523_v7  ;;  %v526_v16 = vld [vmem:[%s9639_s16 + $0x380] sm:$0xff] }
  0xe2   : > { %v778_v8 = vadd.f32 %v650_v6, %v522_v5  ;;  %v524_v10 = vld [vmem:[%s9639_s16 + $0x370] sm:$0xff]  ;;  %904 = vst [vmem:[#allocation2 + $0x170] sm:$0xff] %v776_v3  ;;  %v525_v14 = vld [vmem:[%s9639_s16 + $0x378] sm:$0xff]  ;;  %v527_v19 = vld [vmem:[%s9639_s16 + $0x388] sm:$0xff] }
  0xe3   : > { %905 = vst [vmem:[#allocation2 + $0x3d0] sm:$0xff] %v777_v4  ;;  %v780_v13 = vadd.f32 %v652_v11, %v524_v10  ;;  %v653_v15 = vld [vmem:[#allocation2 + $0x38] sm:$0xff]  ;;  %v655_v20 = vld [vmem:[#allocation2 + $0x308] sm:$0xff]  ;;  %907 = vst [vmem:[#allocation2 + $0x378] sm:$0xff] %v779_v12 }
  0xe4   : > { %906 = vst [vmem:[#allocation2 + $0x250] sm:$0xff] %v778_v8  ;;  %v781_v17 = vadd.f32 %v653_v15, %v525_v14  ;;  %v654_v18 = vld [vmem:[#allocation2 + $0x78] sm:$0xff]  ;;  %v783_v22 = vadd.f32 %v655_v20, %v527_v19  ;;  %v528_v23 = vld [vmem:[%s9639_s16 + $0x390] sm:$0xff]  ;;  %v657_v27 = vld [vmem:[#allocation2 + $0xc8] sm:$0xff] }
  0xe5   : > { %908 = vst [vmem:[#allocation2 + $0xb8] sm:$0xff] %v780_v13  ;;  %v782_v21 = vadd.f32 %v654_v18, %v526_v16  ;;  %v656_v24 = vld [vmem:[#allocation2 + $0x370] sm:$0xff]  ;;  %v529_v25 = vld [vmem:[%s9639_s16 + $0x398] sm:$0xff]  ;;  %v530_v28 = vld [vmem:[%s9639_s16 + $0x3a0] sm:$0xff] }
  0xe6   : > { %909 = vst [vmem:[#allocation2 + $0x38] sm:$0xff] %v781_v17  ;;  %v784_v26 = vadd.f32 %v656_v24, %v528_v23  ;;  %v658_v29 = vld [vmem:[#allocation2 + $0x278] sm:$0xff]  ;;  %911 = vst [vmem:[#allocation2 + $0x308] sm:$0xff] %v783_v22  ;;  %v785_v30 = vadd.f32 %v657_v27, %v529_v25  ;;  %v531_v32 = vld [vmem:[%s9639_s16 + $0x3a8] sm:$0xff] }
  0xe7   : > { %910 = vst [vmem:[#allocation2 + $0x78] sm:$0xff] %v782_v21  ;;  %v786_v31 = vadd.f32 %v658_v29, %v530_v28  ;;  %v659_v33 = vld [vmem:[#allocation2 + $0x360] sm:$0xff]  ;;  %v532_v34 = vld [vmem:[%s9639_s16 + $0x3b0] sm:$0xff]  ;;  %v660_v36 = vld [vmem:[#allocation2 + $0x228] sm:$0xff] }
  0xe8   : > { %912 = vst [vmem:[#allocation2 + $0x370] sm:$0xff] %v784_v26  ;;  %v787_v35 = vadd.f32 %v659_v33, %v531_v32  ;;  %v533_v37 = vld [vmem:[%s9639_s16 + $0x3b8] sm:$0xff]  ;;  %v661_v38 = vld [vmem:[#allocation2 + $0x348] sm:$0xff]  ;;  %913 = vst [vmem:[#allocation2 + $0xc8] sm:$0xff] %v785_v30  ;;  %v788_v39 = vadd.f32 %v660_v36, %v532_v34 }
  0xe9   : > { %914 = vst [vmem:[#allocation2 + $0x278] sm:$0xff] %v786_v31  ;;  %v789_v40 = vadd.f32 %v661_v38, %v533_v37  ;;  %v534_v41 = vld [vmem:[%s9639_s16 + $0x3c0] sm:$0xff]  ;;  %v662_v42 = vld [vmem:[#allocation2 + $0x148] sm:$0xff]  ;;  %v663_v45 = vld [vmem:[#allocation2 + $0xf8] sm:$0xff] }
  0xea   : > { %v535_v43 = vld [vmem:[%s9639_s16 + $0x3c8] sm:$0xff]  ;;  %915 = vst [vmem:[#allocation2 + $0x360] sm:$0xff] %v787_v35  ;;  %v790_v44 = vadd.f32 %v662_v42, %v534_v41  ;;  %v536_v46 = vld [vmem:[%s9639_s16 + $0x3d0] sm:$0xff]  ;;  %916 = vst [vmem:[#allocation2 + $0x228] sm:$0xff] %v788_v39 }
  0xeb   : > { %v664_v47 = vld [vmem:[#allocation2 + $0x68] sm:$0xff]  ;;  %917 = vst [vmem:[#allocation2 + $0x348] sm:$0xff] %v789_v40  ;;  %v791_v48 = vadd.f32 %v663_v45, %v535_v43  ;;  %v537_v50 = vld [vmem:[%s9639_s16 + $0x3d8] sm:$0xff]  ;;  %v665_v51 = vld [vmem:[#allocation2] sm:$0xff] }
  0xec   : > { %v792_v49 = vadd.f32 %v664_v47, %v536_v46  ;;  %v538_v52 = vld [vmem:[%s9639_s16 + $0x3e0] sm:$0xff]  ;;  %918 = vst [vmem:[#allocation2 + $0x148] sm:$0xff] %v790_v44  ;;  %v793_v53 = vadd.f32 %v665_v51, %v537_v50  ;;  %v666_v54 = vld [vmem:[#allocation2 + $0x298] sm:$0xff]  ;;  %v539_v55 = vld [vmem:[%s9639_s16 + $0x3e8] sm:$0xff] }
  0xed   : > { %v667_v56 = vld [vmem:[#allocation2 + $0x270] sm:$0xff]  ;;  %919 = vst [vmem:[#allocation2 + $0xf8] sm:$0xff] %v791_v48  ;;  %v794_v57 = vadd.f32 %v666_v54, %v538_v52  ;;  %v541_v61 = vld [vmem:[%s9639_s16 + $0x3f8] sm:$0xff] }
  0xee   : > { %920 = vst [vmem:[#allocation2 + $0x68] sm:$0xff] %v792_v49  ;;  %v795_v58 = vadd.f32 %v667_v56, %v539_v55  ;;  %v540_v59 = vld [vmem:[%s9639_s16 + $0x3f0] sm:$0xff]  ;;  %921 = vst [vmem:[#allocation2] sm:$0xff] %v793_v53 }
  0xef   : > { %v668_v60 = vld [vmem:[#allocation2 + $0x310] sm:$0xff]  ;;  %922 = vst [vmem:[#allocation2 + $0x298] sm:$0xff] %v794_v57  ;;  %929 = sbr.rel (%p9126_p7) target bundleno = 1801 (0x709), region = 60 }
  0xf0   : > { %v796_v62 = vadd.f32 %v668_v60, %v540_v59  ;;  %v669_v63 = vld [vmem:[#allocation2 + $0x190] sm:$0xff]  ;;  %923 = vst [vmem:[#allocation2 + $0x270] sm:$0xff] %v795_v58 }
  0xf1   : > { %v797_v0 = vadd.f32 %v669_v63, %v541_v61 }
  0xf2   : > { %924 = vst [vmem:[#allocation2 + $0x310] sm:$0xff] %v796_v62 }
  0xf3   : > { %925 = vst [vmem:[#allocation2 + $0x190] sm:$0xff] %v797_v0 }
  0xf4   : > { %v932_v1 = vld [vmem:[#allocation2 + $0xd8] sm:$0xff]  ;;  %v930_v2 = vld [vmem:[#allocation2 + $0x2b0] sm:$0xff]  ;;  %v935_v5 = vld [vmem:[#allocation2 + $0x368] sm:$0xff]  ;;  %vm1652_vm0 = vcmask 130112   ;;  %vm1659_vm1 = vcmask 195712   ;;  %vm1666_vm2 = vcmask 261312  }
  0xf5   : > { %1062 = vadd.xlane.f32.xlu1 %v932_v1  ;;  %1058 = vadd.xlane.f32.xlu0 %v930_v2  ;;  %v933_v3 = vld [vmem:[#allocation2 + $0x18] sm:$0xff]  ;;  %v931_v4 = vld [vmem:[#allocation2 + $0x3b0] sm:$0xff]  ;;  %v937_v7 = vld [vmem:[#allocation2 + $0x48] sm:$0xff]  ;;  %vm1673_vm3 = vcmask 326912   ;;  %vm1680_vm4 = vcmask 392512   ;;  %vm1687_vm5 = vcmask 458112  }
  0xf6   : > { %v934_v6 = vld [vmem:[#allocation2 + $0x50] sm:$0xff]  ;;  %v938_v10 = vld [vmem:[#allocation2 + $0x380] sm:$0xff]  ;;  %v941_v11 = vld [vmem:[#allocation2 + $0x98] sm:$0xff]  ;;  %vm1694_vm6 = vcmask 523712   ;;  %vm1701_vm7 = vcmask 589312   ;;  %vm1708_vm8 = vcmask 654912  }
  0xf7   : > { %v936_v8 = vld [vmem:[#allocation2 + $0x330] sm:$0xff]  ;;  %v940_v12 = vld [vmem:[#allocation2 + $0x118] sm:$0xff]  ;;  %v942_v14 = vld [vmem:[#allocation2 + $0x320] sm:$0xff]  ;;  %vm1715_vm9 = vcmask 720512   ;;  %vm1722_vm10 = vcmask 786112   ;;  %vm1729_vm11 = vcmask 851712  }
  0xf8   : > { %v939_v9 = vld [vmem:[#allocation2 + $0x110] sm:$0xff]  ;;  %v945_v15 = vld [vmem:[#allocation2 + $0x60] sm:$0xff]  ;;  %v944_v16 = vld [vmem:[#allocation2 + $0x108] sm:$0xff]  ;;  %vm1736_vm12 = vcmask 917312   ;;  %vm1743_vm13 = vcmask 982912   ;;  %vm1750_vm14 = vcmask 1048512  }
  0xf9   : > { %1064 = vadd.xlane.f32.xlu1 %v933_v3  ;;  %1060 = vadd.xlane.f32.xlu0 %v931_v4  ;;  %v943_v13 = vld [vmem:[#allocation2 + $0x150] sm:$0xff]  ;;  %v947_v17 = vld [vmem:[#allocation2 + $0x388] sm:$0xff]  ;;  %v946_v18 = vld [vmem:[#allocation2 + $0x2e0] sm:$0xff]  ;;  %vm2305_vm15 = vcmask 1041409  }
  0xfa   : > { %v949_v19 = vld [vmem:[#allocation2 + $0x340] sm:$0xff]  ;;  %v948_v20 = vld [vmem:[#allocation2 + $0x338] sm:$0xff]  ;;  %v951_v21 = vld [vmem:[#allocation2 + $0x1a8] sm:$0xff] }
  0xfb   : > { %v950_v22 = vld [vmem:[#allocation2 + $0x80] sm:$0xff]  ;;  %v953_v23 = vld [vmem:[#allocation2 + $0x168] sm:$0xff]  ;;  %v952_v24 = vld [vmem:[#allocation2 + $0x1b8] sm:$0xff] }
  0xfc   : > { %v955_v25 = vld [vmem:[#allocation2 + $0x2f8] sm:$0xff]  ;;  %v954_v26 = vld [vmem:[#allocation2 + $0x3e8] sm:$0xff]  ;;  %v956_v28 = vld [vmem:[#allocation2 + $0x290] sm:$0xff] }
  0xfd   : > { %1068 = vadd.xlane.f32.xlu1 %v935_v5  ;;  %1066 = vadd.xlane.f32.xlu0 %v934_v6  ;;  %v957_v27 = vld [vmem:[#allocation2 + $0x28] sm:$0xff]  ;;  %v959_v29 = vld [vmem:[#allocation2 + $0xc0] sm:$0xff]  ;;  %v958_v30 = vld [vmem:[#allocation2 + $0x138] sm:$0xff] }
  0xfe   : > { %v961_v31 = vld [vmem:[#allocation2 + $0x280] sm:$0xff]  ;;  %v964_v36 = vld [vmem:[#allocation2 + $0x158] sm:$0xff]  ;;  %v969_v39 = vld [vmem:[#allocation2 + $0x128] sm:$0xff] }
  0xff   : > { %v960_v32 = vld [vmem:[#allocation2 + $0x1c0] sm:$0xff]  ;;  %v967_v37 = vld [vmem:[#allocation2 + $0x3f8] sm:$0xff]  ;;  %v968_v40 = vld [vmem:[#allocation2 + $0x8] sm:$0xff] }
 0x100   : > { %v963_v33 = vld [vmem:[#allocation2 + $0x3c0] sm:$0xff]  ;;  %v966_v38 = vld [vmem:[#allocation2 + $0x218] sm:$0xff]  ;;  %v971_v41 = vld [vmem:[#allocation2 + $0x3f0] sm:$0xff] }
 0x101   : > { %1072 = vadd.xlane.f32.xlu1 %v937_v7  ;;  %1070 = vadd.xlane.f32.xlu0 %v936_v8  ;;  %v962_v34 = vld [vmem:[#allocation2 + $0x100] sm:$0xff]  ;;  %v974_v46 = vld [vmem:[#allocation2 + $0xb0] sm:$0xff]  ;;  %v982_v54 = vld [vmem:[#allocation2 + $0x208] sm:$0xff] }
 0x102   : > { %v965_v35 = vld [vmem:[#allocation2 + $0x3e0] sm:$0xff]  ;;  %v977_v47 = vld [vmem:[#allocation2 + $0x10] sm:$0xff]  ;;  %v984_v56 = vld [vmem:[#allocation2 + $0x88] sm:$0xff] }
 0x103   : > { %v970_v42 = vld [vmem:[#allocation2 + $0x2a0] sm:$0xff]  ;;  %v976_v48 = vld [vmem:[#allocation2 + $0x1f0] sm:$0xff]  ;;  %v987_v57 = vld [vmem:[#allocation2 + $0x268] sm:$0xff] }
 0x104   : > { %v973_v43 = vld [vmem:[#allocation2 + $0x2c0] sm:$0xff]  ;;  %v978_v50 = vld [vmem:[#allocation2 + $0x230] sm:$0xff]  ;;  %v986_v58 = vld [vmem:[#allocation2 + $0x358] sm:$0xff] }
 0x105   : > { %1076 = vadd.xlane.f32.xlu1 %v939_v9  ;;  %1074 = vadd.xlane.f32.xlu0 %v938_v10  ;;  %v972_v44 = vld [vmem:[#allocation2 + $0xa0] sm:$0xff]  ;;  %v980_v52 = vld [vmem:[#allocation2 + $0x90] sm:$0xff]  ;;  %v989_v59 = vld [vmem:[#allocation2 + $0x188] sm:$0xff] }
 0x106   : > { %v975_v45 = vld [vmem:[#allocation2 + $0x1e0] sm:$0xff]  ;;  %v983_v53 = vld [vmem:[#allocation2 + $0xd0] sm:$0xff]  ;;  %v990_v62 = vld [vmem:[#allocation2 + $0x1d8] sm:$0xff] }
 0x107   : > { %v979_v49 = vld [vmem:[#allocation2 + $0x240] sm:$0xff]  ;;  %v985_v55 = vld [vmem:[#allocation2 + $0x2f0] sm:$0xff]  ;;  %v993_v63 = vld [vmem:[#allocation2 + $0x2a8] sm:$0xff] }
 0x108   : > { %v981_v51 = vld [vmem:[#allocation2 + $0x3a0] sm:$0xff]  ;;  %v988_v60 = vld [vmem:[#allocation2 + $0x350] sm:$0xff]  ;;  %v996_v4 = vld [vmem:[#allocation2 + $0x318] sm:$0xff] }
 0x109   : > { %1080 = vadd.xlane.f32.xlu1 %v941_v11  ;;  %1078 = vadd.xlane.f32.xlu0 %v940_v12  ;;  %v991_v61 = vld [vmem:[#allocation2 + $0x30] sm:$0xff]  ;;  %v992_v0 = vld [vmem:[#allocation2 + $0x140] sm:$0xff]  ;;  %v1001_v9 = vld [vmem:[#allocation2 + $0x178] sm:$0xff] }
 0x10a   : > { %v995_v1 = vld [vmem:[#allocation2 + $0x200] sm:$0xff]  ;;  %v994_v2 = vld [vmem:[#allocation2 + $0x130] sm:$0xff] }
 0x10b   : > { %v997_v3 = vld [vmem:[#allocation2 + $0x220] sm:$0xff]  ;;  %v998_v6 = vld [vmem:[#allocation2 + $0x70] sm:$0xff] }
 0x10c   : > { %v999_v5 = vld [vmem:[#allocation2 + $0x300] sm:$0xff] }
 0x10d   : > { %1084 = vadd.xlane.f32.xlu1 %v943_v13  ;;  %1082 = vadd.xlane.f32.xlu0 %v942_v14  ;;  %v1000_v10 = vld [vmem:[#allocation2 + $0xe0] sm:$0xff]  ;;  %v1002_v14 = vld [vmem:[#allocation2 + $0x328] sm:$0xff] }
 0x10e   : > { %v1003_v13 = vld [vmem:[#allocation2 + $0x260] sm:$0xff] }
 0x111   : > { %1088 = vadd.xlane.f32.xlu1 %v945_v15  ;;  %1086 = vadd.xlane.f32.xlu0 %v944_v16 }
 0x115   : > { %1092 = vadd.xlane.f32.xlu1 %v947_v17  ;;  %1090 = vadd.xlane.f32.xlu0 %v946_v18  ;;  %v1005_v17 = vld [vmem:[#allocation2 + $0x2b8] sm:$0xff] }
 0x116   : > { %v1004_v18 = vld [vmem:[#allocation2 + $0x3b8] sm:$0xff] }
 0x119   : > { %1096 = vadd.xlane.f32.xlu1 %v949_v19  ;;  %1094 = vadd.xlane.f32.xlu0 %v948_v20 }
 0x11d   : > { %1100 = vadd.xlane.f32.xlu1 %v951_v21  ;;  %1098 = vadd.xlane.f32.xlu0 %v950_v22  ;;  %v1007_v21 = vld [vmem:[#allocation2 + $0x40] sm:$0xff]  ;;  %v1006_v22 = vld [vmem:[#allocation2 + $0x248] sm:$0xff] }
 0x121   : > { %1104 = vadd.xlane.f32.xlu1 %v953_v23  ;;  %1102 = vadd.xlane.f32.xlu0 %v952_v24 }
 0x125   : > { %1108 = vadd.xlane.f32.xlu1 %v955_v25  ;;  %1106 = vadd.xlane.f32.xlu0 %v954_v26  ;;  %v1009_v25 = vld [vmem:[#allocation2 + $0xe8] sm:$0xff]  ;;  %v1008_v26 = vld [vmem:[#allocation2 + $0x20] sm:$0xff] }
 0x129   : > { %1112 = vadd.xlane.f32.xlu1 %v957_v27  ;;  %1110 = vadd.xlane.f32.xlu0 %v956_v28 }
 0x12d   : > { %1116 = vadd.xlane.f32.xlu1 %v959_v29  ;;  %1114 = vadd.xlane.f32.xlu0 %v958_v30  ;;  %v1011_v29 = vld [vmem:[#allocation2 + $0x3a8] sm:$0xff] }
 0x12e   : > { %v1010_v30 = vld [vmem:[#allocation2 + $0x288] sm:$0xff] }
 0x131   : > { %1120 = vadd.xlane.f32.xlu1 %v961_v31  ;;  %1118 = vadd.xlane.f32.xlu0 %v960_v32 }
 0x135   : > { %1124 = vadd.xlane.f32.xlu1 %v963_v33  ;;  %1122 = vadd.xlane.f32.xlu0 %v962_v34  ;;  %v1013_v33 = vld [vmem:[#allocation2 + $0x160] sm:$0xff]  ;;  %v1012_v34 = vld [vmem:[#allocation2 + $0x3c8] sm:$0xff] }
 0x139   : > { %1128 = vadd.xlane.f32.xlu1 %v965_v35  ;;  %1126 = vadd.xlane.f32.xlu0 %v964_v36 }
 0x13d   : > { %1132 = vadd.xlane.f32.xlu1 %v967_v37  ;;  %1130 = vadd.xlane.f32.xlu0 %v966_v38  ;;  %v1015_v37 = vld [vmem:[#allocation2 + $0x210] sm:$0xff]  ;;  %v1014_v38 = vld [vmem:[#allocation2 + $0x2c8] sm:$0xff] }
 0x141   : > { %1136 = vadd.xlane.f32.xlu1 %v969_v39  ;;  %1134 = vadd.xlane.f32.xlu0 %v968_v40 }
 0x145   : > { %1140 = vadd.xlane.f32.xlu1 %v971_v41  ;;  %1138 = vadd.xlane.f32.xlu0 %v970_v42  ;;  %v1017_v41 = vld [vmem:[#allocation2 + $0x1e8] sm:$0xff]  ;;  %v1016_v42 = vld [vmem:[#allocation2 + $0x3d8] sm:$0xff] }
 0x149   : > { %1144 = vadd.xlane.f32.xlu1 %v973_v43  ;;  %1142 = vadd.xlane.f32.xlu0 %v972_v44 }
 0x14d   : > { %1148 = vadd.xlane.f32.xlu1 %v975_v45  ;;  %1146 = vadd.xlane.f32.xlu0 %v974_v46  ;;  %v1019_v45 = vld [vmem:[#allocation2 + $0x1c8] sm:$0xff]  ;;  %v1018_v46 = vld [vmem:[#allocation2 + $0x1b0] sm:$0xff] }
 0x151   : > { %1152 = vadd.xlane.f32.xlu1 %v977_v47  ;;  %1150 = vadd.xlane.f32.xlu0 %v976_v48  ;;  %v1473_v47 = vld [vmem:[#allocation6 + $0xf8] sm:$0xff] }
 0x152   : > { %9136 = vmatprep.subr.mxu0 %v1473_v47  ;;  %v1457_v48 = vld [vmem:[#allocation6 + $0x78] sm:$0xff]  ;;  %v1463_v47 = vld [vmem:[#allocation6 + $0xa8] sm:$0xff] }
 0x153   : > { %9137 = vmatpush3.msra.mxu0 %v1457_v48  ;;  %v1447_v48 = vld [vmem:[#allocation6 + $0x28] sm:$0xff] }
 0x155   : > { %1156 = vadd.xlane.f32.xlu1 %v979_v49  ;;  %1154 = vadd.xlane.f32.xlu0 %v978_v50  ;;  %v1472_v49 = vld [vmem:[#allocation6 + $0xf0] sm:$0xff] }
 0x156   : > { %v1456_v50 = vld [vmem:[#allocation6 + $0x70] sm:$0xff]  ;;  %9138 = vmatprep.subr.mxu0 %v1472_v49  ;;  %v1462_v49 = vld [vmem:[#allocation6 + $0xa0] sm:$0xff] }
 0x157   : > { %9139 = vmatpush3.msra.mxu0 %v1456_v50 }
 0x159   : > { %1160 = vadd.xlane.f32.xlu1 %v981_v51  ;;  %1158 = vadd.xlane.f32.xlu0 %v980_v52 }
 0x15d   : > { %1164 = vadd.xlane.f32.xlu1 %v983_v53  ;;  %1162 = vadd.xlane.f32.xlu0 %v982_v54  ;;  %v1021_v53 = vld [vmem:[#allocation2 + $0x1d0] sm:$0xff] }
 0x15e   : > { %v1020_v54 = vld [vmem:[#allocation2 + $0x2d0] sm:$0xff] }
 0x161   : > { %1168 = vadd.xlane.f32.xlu1 %v985_v55  ;;  %1166 = vadd.xlane.f32.xlu0 %v984_v56  ;;  %v1471_v55 = vld [vmem:[#allocation6 + $0xe8] sm:$0xff] }
 0x162   : > { %v1455_v56 = vld [vmem:[#allocation6 + $0x68] sm:$0xff]  ;;  %9140 = vmatprep.subr.mxu0 %v1471_v55  ;;  %v1032_v55 = vld [vmem:[#allocation2 + $0x258] sm:$0xff] }
 0x163   : > { %9141 = vmatpush3.msra.mxu0 %v1455_v56  ;;  %v1446_v56 = vld [vmem:[#allocation6 + $0x20] sm:$0xff] }
 0x165   : > { %1172 = vadd.xlane.f32.xlu1 %v987_v57  ;;  %1170 = vadd.xlane.f32.xlu0 %v986_v58  ;;  %v1470_v57 = vld [vmem:[#allocation6 + $0xe0] sm:$0xff] }
 0x166   : > { %v1454_v58 = vld [vmem:[#allocation6 + $0x60] sm:$0xff]  ;;  %9142 = vmatprep.subr.mxu0 %v1470_v57  ;;  %v1461_v57 = vld [vmem:[#allocation6 + $0x98] sm:$0xff] }
 0x167   : > { %9143 = vmatpush3.msra.mxu0 %v1454_v58  ;;  %v1445_v58 = vld [vmem:[#allocation6 + $0x18] sm:$0xff] }
 0x169   : > { %1176 = vadd.xlane.f32.xlu1 %v989_v59  ;;  %1174 = vadd.xlane.f32.xlu0 %v988_v60 }
 0x16d   : > { %1180 = vadd.xlane.f32.xlu1 %v991_v61  ;;  %1178 = vadd.xlane.f32.xlu0 %v990_v62  ;;  %v1023_v61 = vld [vmem:[#allocation2 + $0x120] sm:$0xff]  ;;  %v1022_v62 = vld [vmem:[#allocation2 + $0x58] sm:$0xff] }
 0x171   : > { %1184 = vadd.xlane.f32.xlu1 %v993_v63  ;;  %1182 = vadd.xlane.f32.xlu0 %v992_v0  ;;  %v1469_v63 = vld [vmem:[#allocation6 + $0xd8] sm:$0xff] }
 0x172   : > { %v1453_v0 = vld [vmem:[#allocation6 + $0x58] sm:$0xff]  ;;  %9144 = vmatprep.subr.mxu0 %v1469_v63  ;;  %v1035_v63 = vld [vmem:[#allocation2 + $0x180] sm:$0xff] }
 0x173   : > { %9145 = vmatpush3.msra.mxu0 %v1453_v0  ;;  %v1034_v0 = vld [vmem:[#allocation2 + $0xf0] sm:$0xff] }
 0x175   : > { %1188 = vadd.xlane.f32.xlu1 %v995_v1  ;;  %1186 = vadd.xlane.f32.xlu0 %v994_v2  ;;  %v1468_v1 = vld [vmem:[#allocation6 + $0xd0] sm:$0xff] }
 0x176   : > { %9146 = vmatprep.subr.mxu0 %v1468_v1  ;;  %v1460_v1 = vld [vmem:[#allocation6 + $0x90] sm:$0xff] }
 0x179   : > { %1192 = vadd.xlane.f32.xlu1 %v997_v3  ;;  %1190 = vadd.xlane.f32.xlu0 %v996_v4  ;;  %v1025_v4 = vld [vmem:[#allocation2 + $0x2e8] sm:$0xff] }
 0x17d   : > { %1196 = vadd.xlane.f32.xlu1 %v999_v5  ;;  %1194 = vadd.xlane.f32.xlu0 %v998_v6  ;;  %v1024_v5 = vld [vmem:[#allocation2 + $0x198] sm:$0xff]  ;;  %v1452_v6 = vld [vmem:[#allocation6 + $0x50] sm:$0xff] }
 0x17e   : > { %v9907_v7 = vpop.xlane.xlu1 %1062  ;;  %v9909_v8 = vpop.xlane.xlu0 %1058  ;;  %9147 = vmatpush3.msra.mxu0 %v1452_v6 }
 0x181   : > { %1200 = vadd.xlane.f32.xlu1 %v1001_v9  ;;  %1198 = vadd.xlane.f32.xlu0 %v1000_v10  ;;  %v1467_v9 = vld [vmem:[#allocation6 + $0xc8] sm:$0xff] }
 0x182   : > { %v9911_v11 = vpop.xlane.xlu1 %1064  ;;  %v9913_v12 = vpop.xlane.xlu0 %1060  ;;  %v1451_v10 = vld [vmem:[#allocation6 + $0x48] sm:$0xff]  ;;  %9148 = vmatprep.subr.mxu0 %v1467_v9 }
 0x183   : > { %9149 = vmatpush3.msra.mxu0 %v1451_v10  ;;  %v1037_v10 = vld [vmem:[#allocation2 + $0x3d0] sm:$0xff] }
 0x185   : > { %1204 = vadd.xlane.f32.xlu1 %v1003_v13  ;;  %1202 = vadd.xlane.f32.xlu0 %v1002_v14 }
 0x186   : > { %v9915_v15 = vpop.xlane.xlu1 %1068  ;;  %v9917_v16 = vpop.xlane.xlu0 %1066 }
 0x189   : > { %1208 = vadd.xlane.f32.xlu1 %v1005_v17  ;;  %1206 = vadd.xlane.f32.xlu0 %v1004_v18  ;;  %v1027_v17 = vld [vmem:[#allocation2 + $0x238] sm:$0xff] }
 0x18a   : > { %v9919_v19 = vpop.xlane.xlu1 %1072  ;;  %v9921_v20 = vpop.xlane.xlu0 %1070  ;;  %v1026_v18 = vld [vmem:[#allocation2 + $0x1f8] sm:$0xff] }
 0x18d   : > { %1212 = vadd.xlane.f32.xlu1 %v1007_v21  ;;  %1210 = vadd.xlane.f32.xlu0 %v1006_v22  ;;  %v1466_v21 = vld [vmem:[#allocation6 + $0xc0] sm:$0xff] }
 0x18e   : > { %v9923_v23 = vpop.xlane.xlu1 %1076  ;;  %v9925_v24 = vpop.xlane.xlu0 %1074  ;;  %v1450_v22 = vld [vmem:[#allocation6 + $0x40] sm:$0xff]  ;;  %9150 = vmatprep.subr.mxu0 %v1466_v21 }
 0x18f   : > { %9151 = vmatpush3.msra.mxu0 %v1450_v22  ;;  %v1458_v21 = vld [vmem:[#allocation6 + $0x80] sm:$0xff] }
 0x190   : > { %v1442_v22 = vld [vmem:[#allocation6] sm:$0xff] }
 0x191   : > { %1216 = vadd.xlane.f32.xlu1 %v1009_v25  ;;  %1214 = vadd.xlane.f32.xlu0 %v1008_v26  ;;  %v1465_v25 = vld [vmem:[#allocation6 + $0xb8] sm:$0xff] }
 0x192   : > { %v9927_v27 = vpop.xlane.xlu1 %1080  ;;  %v9929_v28 = vpop.xlane.xlu0 %1078  ;;  %9152 = vmatprep.subr.mxu0 %v1465_v25 }
 0x195   : > { %1220 = vadd.xlane.f32.xlu1 %v1011_v29  ;;  %1218 = vadd.xlane.f32.xlu0 %v1010_v30  ;;  %v1029_v30 = vld [vmem:[#allocation2 + $0x390] sm:$0xff] }
 0x196   : > { %v9931_v31 = vpop.xlane.xlu1 %1084  ;;  %v9933_v32 = vpop.xlane.xlu0 %1082 }
 0x199   : > { %1224 = vadd.xlane.f32.xlu1 %v1013_v33  ;;  %1222 = vadd.xlane.f32.xlu0 %v1012_v34  ;;  %v1028_v33 = vld [vmem:[#allocation2 + $0x398] sm:$0xff] }
 0x19a   : > { %v9935_v35 = vpop.xlane.xlu1 %1088  ;;  %v9937_v36 = vpop.xlane.xlu0 %1086  ;;  %v1449_v34 = vld [vmem:[#allocation6 + $0x38] sm:$0xff] }
 0x19b   : > { %9153 = vmatpush3.msra.mxu0 %v1449_v34  ;;  %v1038_v34 = vld [vmem:[#allocation2 + $0x250] sm:$0xff] }
 0x19d   : > { %1228 = vadd.xlane.f32.xlu1 %v1015_v37  ;;  %1226 = vadd.xlane.f32.xlu0 %v1014_v38  ;;  %v1464_v37 = vld [vmem:[#allocation6 + $0xb0] sm:$0xff] }
 0x19e   : > { %v9939_v39 = vpop.xlane.xlu1 %1092  ;;  %v9941_v40 = vpop.xlane.xlu0 %1090  ;;  %v1448_v38 = vld [vmem:[#allocation6 + $0x30] sm:$0xff]  ;;  %9154 = vmatprep.subr.mxu0 %v1464_v37 }
 0x19f   : > { %9155 = vmatpush3.msra.mxu0 %v1448_v38 }
 0x1a0   : > { %9156 = vmatprep.subr.mxu0 %v1463_v47 }
 0x1a1   : > { %1232 = vadd.xlane.f32.xlu1 %v1017_v41  ;;  %1230 = vadd.xlane.f32.xlu0 %v1016_v42 }
 0x1a2   : > { %v9943_v43 = vpop.xlane.xlu1 %1096  ;;  %v9945_v44 = vpop.xlane.xlu0 %1094  ;;  %9157 = vmatpush3.msra.mxu0 %v1447_v48 }
 0x1a3   : > { %9158 = vmatprep.subr.mxu0 %v1462_v49  ;;  %v1043_v49 = vld [vmem:[#allocation2 + $0x308] sm:$0xff] }
 0x1a4   : > { %9159 = vmatpush3.msra.mxu0 %v1446_v56 }
 0x1a5   : > { %1236 = vadd.xlane.f32.xlu1 %v1019_v45  ;;  %1234 = vadd.xlane.f32.xlu0 %v1018_v46  ;;  %v1031_v45 = vld [vmem:[#allocation2 + $0xa8] sm:$0xff]  ;;  %v1030_v46 = vld [vmem:[#allocation2 + $0x1a0] sm:$0xff] }
 0x1a6   : > { %v9947_v51 = vpop.xlane.xlu1 %1100  ;;  %v9949_v52 = vpop.xlane.xlu0 %1098  ;;  %9160 = vmatprep.subr.mxu0 %v1461_v57  ;;  %v1044_v57 = vld [vmem:[#allocation2 + $0x370] sm:$0xff] }
 0x1a7   : > { %9161 = vmatpush3.msra.mxu0 %v1445_v58  ;;  %v1045_v58 = vld [vmem:[#allocation2 + $0xc8] sm:$0xff] }
 0x1a8   : > { %9162 = vmatprep.subr.mxu0 %v1460_v1  ;;  %v1046_v1 = vld [vmem:[#allocation2 + $0x278] sm:$0xff] }
 0x1a9   : > { %1240 = vadd.xlane.f32.xlu1 %v1021_v53  ;;  %1238 = vadd.xlane.f32.xlu0 %v1020_v54  ;;  %v1033_v54 = vld [vmem:[#allocation2 + $0x2d8] sm:$0xff] }
 0x1aa   : > { %v9951_v59 = vpop.xlane.xlu1 %1104  ;;  %v9953_v60 = vpop.xlane.xlu0 %1102 }
 0x1ad   : > { %1244 = vadd.xlane.f32.xlu1 %v1023_v61  ;;  %1242 = vadd.xlane.f32.xlu0 %v1022_v62 }
 0x1ae   : > { %v9955_v2 = vpop.xlane.xlu1 %1108  ;;  %v9957_v3 = vpop.xlane.xlu0 %1106 }
 0x1b1   : > { %1248 = vadd.xlane.f32.xlu1 %v1025_v4  ;;  %1246 = vadd.xlane.f32.xlu0 %v1024_v5  ;;  %v1444_v4 = vld [vmem:[#allocation6 + $0x10] sm:$0xff]  ;;  %v1459_v5 = vld [vmem:[#allocation6 + $0x88] sm:$0xff] }
 0x1b2   : > { %v9959_v13 = vpop.xlane.xlu1 %1112  ;;  %v9961_v14 = vpop.xlane.xlu0 %1110  ;;  %9163 = vmatpush3.msra.mxu0 %v1444_v4  ;;  %v1047_v4 = vld [vmem:[#allocation2 + $0x360] sm:$0xff] }
 0x1b3   : > { %9164 = vmatprep.subr.mxu0 %v1459_v5 }
 0x1b5   : > { %1252 = vadd.xlane.f32.xlu1 %v1027_v17  ;;  %1250 = vadd.xlane.f32.xlu0 %v1026_v18  ;;  %v1036_v17 = vld [vmem:[#allocation2 + $0x170] sm:$0xff]  ;;  %v1443_v18 = vld [vmem:[#allocation6 + $0x8] sm:$0xff] }
 0x1b6   : > { %v9963_v26 = vpop.xlane.xlu1 %1116  ;;  %v9965_v29 = vpop.xlane.xlu0 %1114  ;;  %9165 = vmatpush3.msra.mxu0 %v1443_v18  ;;  %v1049_v18 = vld [vmem:[#allocation2 + $0x348] sm:$0xff] }
 0x1b7   : > { %9166 = vmatprep.subr.mxu0 %v1458_v21 }
 0x1b8   : > { %9167 = vmatpush3.msra.mxu0 %v1442_v22 }
 0x1b9   : > { %1256 = vadd.xlane.f32.xlu1 %v1029_v30  ;;  %1254 = vadd.xlane.f32.xlu0 %v1028_v33  ;;  %v1039_v33 = vld [vmem:[#allocation2 + $0x378] sm:$0xff] }
 0x1ba   : > { %v9967_v41 = vpop.xlane.xlu1 %1120  ;;  %v9969_v42 = vpop.xlane.xlu0 %1118 }
 0x1bd   : > { %1260 = vadd.xlane.f32.xlu1 %v1031_v45  ;;  %1258 = vadd.xlane.f32.xlu0 %v1030_v46  ;;  %v1041_v45 = vld [vmem:[#allocation2 + $0x38] sm:$0xff] }
 0x1be   : > { %v9971_v50 = vpop.xlane.xlu1 %1124  ;;  %v9973_v53 = vpop.xlane.xlu0 %1122  ;;  %v1040_v46 = vld [vmem:[#allocation2 + $0xb8] sm:$0xff] }
 0x1bf   : > { %13685 = vst [vmem:[#allocation13_spill] sm:$0xff] %v9971_v50  ;;  %13686 = vst [vmem:[#allocation14_spill] sm:$0xff] %v9973_v53  ;;  %v10210_v53 = vmul.f32 0.00390625, %v9933_v32 }
 0x1c1   : > { %1264 = vadd.xlane.f32.xlu1 %v1033_v54  ;;  %1262 = vadd.xlane.f32.xlu0 %v1032_v55  ;;  %v1042_v54 = vld [vmem:[#allocation2 + $0x78] sm:$0xff]  ;;  %13749 = vst [vmem:[#allocation77_spill] sm:$0xff] %v10210_v53 }
 0x1c2   : > { %v9975_v61 = vpop.xlane.xlu1 %1128  ;;  %v9977_v62 = vpop.xlane.xlu0 %1126 }
 0x1c3   : > { %13687 = vst [vmem:[#allocation15_spill] sm:$0xff] %v9975_v61  ;;  %13688 = vst [vmem:[#allocation16_spill] sm:$0xff] %v9977_v62 }
 0x1c5   : > { %1268 = vadd.xlane.f32.xlu1 %v1035_v63  ;;  %1266 = vadd.xlane.f32.xlu0 %v1034_v0 }
 0x1c6   : > { %v9979_v6 = vpop.xlane.xlu1 %1132  ;;  %v9981_v9 = vpop.xlane.xlu0 %1130 }
 0x1c7   : > { %13689 = vst [vmem:[#allocation17_spill] sm:$0xff] %v9979_v6  ;;  %13690 = vst [vmem:[#allocation18_spill] sm:$0xff] %v9981_v9 }
 0x1c9   : > { %1272 = vadd.xlane.f32.xlu1 %v1037_v10  ;;  %1270 = vadd.xlane.f32.xlu0 %v1036_v17  ;;  %v1048_v17 = vld [vmem:[#allocation2 + $0x228] sm:$0xff] }
 0x1ca   : > { %v9983_v25 = vpop.xlane.xlu1 %1136  ;;  %v9985_v30 = vpop.xlane.xlu0 %1134 }
 0x1cb   : > { %13691 = vst [vmem:[#allocation19_spill] sm:$0xff] %v9983_v25  ;;  %13692 = vst [vmem:[#allocation20_spill] sm:$0xff] %v9985_v30 }
 0x1cd   : > { %1276 = vadd.xlane.f32.xlu1 %v1039_v33  ;;  %1274 = vadd.xlane.f32.xlu0 %v1038_v34  ;;  %v1050_v33 = vld [vmem:[#allocation2 + $0x148] sm:$0xff]  ;;  %v1051_v34 = vld [vmem:[#allocation2 + $0xf8] sm:$0xff] }
 0x1ce   : > { %v9987_v37 = vpop.xlane.xlu1 %1140  ;;  %v9989_v38 = vpop.xlane.xlu0 %1138 }
 0x1cf   : > { %13693 = vst [vmem:[#allocation21_spill] sm:$0xff] %v9987_v37  ;;  %13694 = vst [vmem:[#allocation22_spill] sm:$0xff] %v9989_v38 }
 0x1d1   : > { %1280 = vadd.xlane.f32.xlu1 %v1041_v45  ;;  %1278 = vadd.xlane.f32.xlu0 %v1040_v46  ;;  %v1505_v45 = vld [vmem:[#allocation6 + $0x1f8] sm:$0xff] }
 0x1d2   : > { %v9991_v47 = vpop.xlane.xlu1 %1144  ;;  %v9993_v48 = vpop.xlane.xlu0 %1142  ;;  %9171 = vmatprep.subr.mxu1 %v1505_v45  ;;  %v1489_v46 = vld [vmem:[#allocation6 + $0x178] sm:$0xff]  ;;  %v1486_v45 = vld [vmem:[#allocation6 + $0x160] sm:$0xff] }
 0x1d3   : > { %13695 = vst [vmem:[#allocation23_spill] sm:$0xff] %v9991_v47  ;;  %13696 = vst [vmem:[#allocation24_spill] sm:$0xff] %v9993_v48  ;;  %9172 = vmatpush3.msra.mxu1 %v1489_v46 }
 0x1d5   : > { %1284 = vadd.xlane.f32.xlu1 %v1043_v49  ;;  %1282 = vadd.xlane.f32.xlu0 %v1042_v54  ;;  %v1504_v49 = vld [vmem:[#allocation6 + $0x1f0] sm:$0xff] }
 0x1d6   : > { %v9995_v55 = vpop.xlane.xlu1 %1148  ;;  %v9997_v56 = vpop.xlane.xlu0 %1146  ;;  %v1488_v54 = vld [vmem:[#allocation6 + $0x170] sm:$0xff]  ;;  %9173 = vmatprep.subr.mxu1 %v1504_v49 }
 0x1d7   : > { %13697 = vst [vmem:[#allocation25_spill] sm:$0xff] %v9995_v55  ;;  %13698 = vst [vmem:[#allocation26_spill] sm:$0xff] %v9997_v56  ;;  %9174 = vmatpush3.msra.mxu1 %v1488_v54  ;;  %v1500_v49 = vld [vmem:[#allocation6 + $0x1d0] sm:$0xff]  ;;  %v1475_v56 = vld [vmem:[#allocation6 + $0x108] sm:$0xff] }
 0x1d9   : > { %1286 = vadd.xlane.f32.xlu0 %v1044_v57  ;;  %1288 = vadd.xlane.f32.xlu1 %v1045_v58 }
 0x1da   : > { %v9999_v63 = vpop.xlane.xlu1 %1152  ;;  %v10001_v0 = vpop.xlane.xlu0 %1150 }
 0x1db   : > { %13699 = vst [vmem:[#allocation27_spill] sm:$0xff] %v9999_v63  ;;  %13700 = vst [vmem:[#allocation28_spill] sm:$0xff] %v10001_v0  ;;  %v1502_v63 = vld [vmem:[#allocation6 + $0x1e0] sm:$0xff]  ;;  %v1055_v0 = vld [vmem:[#allocation2 + $0x270] sm:$0xff] }
 0x1dd   : > { %1290 = vadd.xlane.f32.xlu0 %v1046_v1  ;;  %1292 = vadd.xlane.f32.xlu1 %v1047_v4  ;;  %v1052_v1 = vld [vmem:[#allocation2 + $0x68] sm:$0xff]  ;;  %v1053_v4 = vld [vmem:[#allocation2] sm:$0xff] }
 0x1de   : > { %v10003_v5 = vpop.xlane.xlu1 %1156  ;;  %v10005_v10 = vpop.xlane.xlu0 %1154 }
 0x1df   : > { %13701 = vst [vmem:[#allocation29_spill] sm:$0xff] %v10003_v5  ;;  %13702 = vst [vmem:[#allocation30_spill] sm:$0xff] %v10005_v10 }
 0x1e1   : > { %1294 = vadd.xlane.f32.xlu0 %v1048_v17  ;;  %1296 = vadd.xlane.f32.xlu1 %v1049_v18  ;;  %v1503_v17 = vld [vmem:[#allocation6 + $0x1e8] sm:$0xff] }
 0x1e2   : > { %v10007_v21 = vpop.xlane.xlu1 %1160  ;;  %v10009_v22 = vpop.xlane.xlu0 %1158  ;;  %v1487_v18 = vld [vmem:[#allocation6 + $0x168] sm:$0xff]  ;;  %9175 = vmatprep.subr.mxu1 %v1503_v17 }
 0x1e3   : > { %13703 = vst [vmem:[#allocation31_spill] sm:$0xff] %v10007_v21  ;;  %13704 = vst [vmem:[#allocation32_spill] sm:$0xff] %v10009_v22  ;;  %9176 = vmatpush3.msra.mxu1 %v1487_v18  ;;  %v10065_v22 = vmul.f32 0.00390625, %v9907_v7  ;;  %v1474_v7 = vld [vmem:[#allocation6 + $0x100] sm:$0xff] }
 0x1e4   : > { %9177 = vmatprep.subr.mxu1 %v1502_v63  ;;  %v1483_v63 = vld [vmem:[#allocation6 + $0x148] sm:$0xff] }
 0x1e5   : > { %1298 = vadd.xlane.f32.xlu0 %v1050_v33  ;;  %1300 = vadd.xlane.f32.xlu1 %v1051_v34  ;;  %v1054_v34 = vld [vmem:[#allocation2 + $0x298] sm:$0xff]  ;;  %13723 = vst [vmem:[#allocation51_spill] sm:$0xff] %v10065_v22 }
 0x1e6   : > { %v10011_v57 = vpop.xlane.xlu1 %1164  ;;  %v10013_v58 = vpop.xlane.xlu0 %1162  ;;  %9178 = vmatpush3.msra.mxu1 %v1486_v45 }
 0x1e7   : > { %13705 = vst [vmem:[#allocation33_spill] sm:$0xff] %v10011_v57  ;;  %13706 = vst [vmem:[#allocation34_spill] sm:$0xff] %v10013_v58  ;;  %v1501_v57 = vld [vmem:[#allocation6 + $0x1d8] sm:$0xff] }
 0x1e8   : > { %v1485_v58 = vld [vmem:[#allocation6 + $0x158] sm:$0xff]  ;;  %9179 = vmatprep.subr.mxu1 %v1501_v57 }
 0x1e9   : > { %1302 = vadd.xlane.f32.xlu0 %v1052_v1  ;;  %1304 = vadd.xlane.f32.xlu1 %v1053_v4  ;;  %v1056_v1 = vld [vmem:[#allocation2 + $0x310] sm:$0xff]  ;;  %v1481_v57 = vld [vmem:[#allocation6 + $0x138] sm:$0xff] }
 0x1ea   : > { %v10015_v46 = vpop.xlane.xlu1 %1168  ;;  %v10017_v33 = vpop.xlane.xlu0 %1166  ;;  %v1057_v4 = vld [vmem:[#allocation2 + $0x190] sm:$0xff]  ;;  %9180 = vmatpush3.msra.mxu1 %v1485_v58 }
 0x1eb   : > { %13707 = vst [vmem:[#allocation35_spill] sm:$0xff] %v10015_v46  ;;  %13708 = vst [vmem:[#allocation36_spill] sm:$0xff] %v10017_v33  ;;  %v1484_v46 = vld [vmem:[#allocation6 + $0x150] sm:$0xff]  ;;  %9181 = vmatprep.subr.mxu1 %v1500_v49  ;;  %v1499_v33 = vld [vmem:[#allocation6 + $0x1c8] sm:$0xff] }
 0x1ec   : > { %9182 = vmatpush3.msra.mxu1 %v1484_v46  ;;  %v1495_v46 = vld [vmem:[#allocation6 + $0x1a8] sm:$0xff] }
 0x1ed   : > { %1306 = vadd.xlane.f32.xlu0 %v1054_v34  ;;  %1308 = vadd.xlane.f32.xlu1 %v1055_v0  ;;  %v1498_v0 = vld [vmem:[#allocation6 + $0x1c0] sm:$0xff]  ;;  %v1641_v34 = vlaneseq }
 0x1ee   : > { %v10019_v54 = vpop.xlane.xlu1 %1172  ;;  %v10021_v17 = vpop.xlane.xlu0 %1170  ;;  %9183 = vmatprep.subr.mxu1 %v1499_v33  ;;  %v1479_v33 = vld [vmem:[#allocation6 + $0x128] sm:$0xff] }
 0x1ef   : > { %13709 = vst [vmem:[#allocation37_spill] sm:$0xff] %v10019_v54  ;;  %13710 = vst [vmem:[#allocation38_spill] sm:$0xff] %v10021_v17  ;;  %v1482_v54 = vld [vmem:[#allocation6 + $0x140] sm:$0xff]  ;;  %9184 = vmatpush3.msra.mxu1 %v1483_v63  ;;  %v1497_v17 = vld [vmem:[#allocation6 + $0x1b8] sm:$0xff]  ;;  %v10038_v21 = vshrl.u32 %v1641_v34, 7 }
 0x1f0   : > { %9185 = vmatprep.subr.mxu1 %v1498_v0 }
 0x1f1   : > { %1310 = vadd.xlane.f32.xlu0 %v1056_v1  ;;  %1312 = vadd.xlane.f32.xlu1 %v1057_v4  ;;  %v1496_v1 = vld [vmem:[#allocation6 + $0x1b0] sm:$0xff]  ;;  %v10031_v4 = vand.u32 127, %v1641_v34  ;;  %13717 = vst [vmem:[#allocation45_spill] sm:$0xff] %v10038_v21 }
 0x1f2   : > { %v10023_v18 = vpop.xlane.xlu1 %1176  ;;  %v10025_v45 = vpop.xlane.xlu0 %1174  ;;  %9186 = vmatpush3.msra.mxu1 %v1482_v54  ;;  %v1478_v54 = vld [vmem:[#allocation6 + $0x120] sm:$0xff]  ;;  %v1492_v34 = vld [vmem:[#allocation6 + $0x190] sm:$0xff] }
 0x1f3   : > { %13711 = vst [vmem:[#allocation39_spill] sm:$0xff] %v10023_v18  ;;  %13712 = vst [vmem:[#allocation40_spill] sm:$0xff] %v10025_v45  ;;  %9187 = vmatprep.subr.mxu1 %v1497_v17  ;;  %v1480_v18 = vld [vmem:[#allocation6 + $0x130] sm:$0xff]  ;;  %v1647_v45 = vadd.s32 4294967288, %v10031_v4  ;;  %v1675_v47 = vadd.s32 4294967256, %v10031_v4  ;;  %v1717_v25 = vadd.s32 4294967208, %v10031_v4 }
 0x1f4   : > { %9188 = vmatpush3.msra.mxu1 %v1481_v57  ;;  %v10044_v57 = vmul.f32 0.00390625, %v9913_v12  ;;  %v1661_v12 = vadd.s32 4294967272, %v10031_v4 }
 0x1f5   : > { %9189 = vmatprep.subr.mxu1 %v1496_v1  ;;  %v10041_v17 = vsub.s32 %v1647_v45, %v10038_v21  ;;  %v1477_v1 = vld [vmem:[#allocation6 + $0x118] sm:$0xff]  ;;  %v10056_v45 = vmul.f32 0.00390625, %v9909_v8  ;;  %v1668_v8 = vadd.s32 4294967264, %v10031_v4 }
 0x1f6   : > { %v10027_v58 = vpop.xlane.xlu1 %1180  ;;  %v10029_v49 = vpop.xlane.xlu0 %1178  ;;  %9190 = vmatpush3.msra.mxu1 %v1480_v18  ;;  %13719 = vst [vmem:[#allocation47_spill] sm:$0xff] %v10044_v57 }
 0x1f7   : > { %13713 = vst [vmem:[#allocation41_spill] sm:$0xff] %v10027_v58  ;;  %13714 = vst [vmem:[#allocation42_spill] sm:$0xff] %v10029_v49  ;;  %v1494_v58 = vld [vmem:[#allocation6 + $0x1a0] sm:$0xff]  ;;  %9191 = vmatprep.subr.mxu1 %v1495_v46  ;;  %v1493_v49 = vld [vmem:[#allocation6 + $0x198] sm:$0xff]  ;;  %v10053_v46 = vsub.s32 %v10031_v4, %v10038_v21 }
 0x1f8   : > { %9192 = vmatpush3.msra.mxu1 %v1479_v33  ;;  %13718 = vst [vmem:[#allocation46_spill] sm:$0xff] %v10041_v17  ;;  %13721 = vst [vmem:[#allocation49_spill] sm:$0xff] %v10056_v45  ;;  %v1491_v33 = vld [vmem:[#allocation6 + $0x188] sm:$0xff] }
 0x1f9   : > { %9193 = vmatprep.subr.mxu1 %v1494_v58  ;;  %13720 = vst [vmem:[#allocation48_spill] sm:$0xff] %v10053_v46  ;;  %v1476_v58 = vld [vmem:[#allocation6 + $0x110] sm:$0xff] }
 0x1fa   : > { %v10034_v63 = vpop.xlane.xlu1 %1184  ;;  %v10036_v0 = vpop.xlane.xlu0 %1182  ;;  %9194 = vmatpush3.msra.mxu1 %v1478_v54 }
 0x1fb   : > { %13715 = vst [vmem:[#allocation43_spill] sm:$0xff] %v10034_v63  ;;  %13716 = vst [vmem:[#allocation44_spill] sm:$0xff] %v10036_v0  ;;  %v1654_v63 = vadd.s32 4294967280, %v10031_v4  ;;  %9195 = vmatprep.subr.mxu1 %v1493_v49  ;;  %v1651_v0 = vrot.slane %v10044_v57, %v10041_v17  ;;  %v1646_v57 = vrot.slane %v10056_v45, %v10053_v46 }
 0x1fc   : > { %9196 = vmatpush3.msra.mxu1 %v1477_v1  ;;  %v1490_v1 = vld [vmem:[#allocation6 + $0x180] sm:$0xff]  ;;  %v10085_v45 = vsub.s32 %v1668_v8, %v10038_v21  ;;  %v10102_v8 = vmul.f32 0.00390625, %v9915_v15 }
 0x1fd   : > { %9197 = vmatprep.subr.mxu1 %v1492_v34  ;;  %v10062_v54 = vsub.s32 %v1654_v63, %v10038_v21  ;;  %v10075_v34 = vsub.s32 %v1661_v12, %v10038_v21  ;;  %v10078_v63 = vmul.f32 0.00390625, %v9911_v11  ;;  %v1653_v5 = vsel %vm1652_vm0, %v1651_v0, %v1646_v57 }
 0x1fe   : > { %v10047_v55 = vpop.xlane.xlu1 %1188  ;;  %v10049_v18 = vpop.xlane.xlu0 %1186  ;;  %9198 = vmatpush3.msra.mxu1 %v1476_v58  ;;  %13726 = vst [vmem:[#allocation54_spill] sm:$0xff] %v10085_v45  ;;  %v10088_v12 = vmul.f32 0.00390625, %v9917_v16  ;;  %v1682_v11 = vadd.s32 4294967248, %v10031_v4  ;;  %13729 = vst [vmem:[#allocation57_spill] sm:$0xff] %v10102_v8  ;;  %v1689_v16 = vadd.s32 4294967240, %v10031_v4 }
 0x1ff   : > { %13722 = vst [vmem:[#allocation50_spill] sm:$0xff] %v10062_v54  ;;  %13724 = vst [vmem:[#allocation52_spill] sm:$0xff] %v10075_v34  ;;  %9199 = vmatprep.subr.mxu1 %v1491_v33  ;;  %v1658_v58 = vrot.slane %v10065_v22, %v10062_v54  ;;  %v1665_v0 = vrot.slane %v10078_v63, %v10075_v34 }
 0x200   : > { %13725 = vst [vmem:[#allocation53_spill] sm:$0xff] %v10078_v63  ;;  %9200 = vmatpush3.msra.mxu1 %v1475_v56  ;;  %13727 = vst [vmem:[#allocation55_spill] sm:$0xff] %v10088_v12  ;;  %v1672_v22 = vrot.slane %v10088_v12, %v10085_v45  ;;  %v10108_v48 = vsub.s32 %v1682_v11, %v10038_v21  ;;  %v10122_v12 = vsub.s32 %v1689_v16, %v10038_v21 }
 0x201   : > { %9201 = vmatprep.subr.mxu1 %v1490_v1  ;;  %v1660_v57 = vsel %vm1659_vm1, %v1658_v58, %v1653_v5  ;;  %v10099_v1 = vsub.s32 %v1675_v47, %v10038_v21  ;;  %v1696_v5 = vadd.s32 4294967232, %v10031_v4  ;;  %v10125_v11 = vmul.f32 0.00390625, %v9919_v19 }
 0x202   : > { %v10068_v10 = vpop.xlane.xlu1 %1192  ;;  %v10070_v49 = vpop.xlane.xlu0 %1190  ;;  %9202 = vmatpush3.msra.mxu1 %v1474_v7  ;;  %13730 = vst [vmem:[#allocation58_spill] sm:$0xff] %v10108_v48  ;;  %v10111_v7 = vmul.f32 0.00390625, %v9921_v20  ;;  %v1667_v15 = vsel %vm1666_vm2, %v1665_v0, %v1660_v57  ;;  %13732 = vst [vmem:[#allocation60_spill] sm:$0xff] %v10122_v12  ;;  %v1703_v20 = vadd.s32 4294967224, %v10031_v4  ;;  %v10135_v57 = vmul.f32 0.00390625, %v9925_v24 }
 0x203   : > { %13728 = vst [vmem:[#allocation56_spill] sm:$0xff] %v10099_v1  ;;  %v1679_v63 = vrot.slane %v10102_v8, %v10099_v1  ;;  %13733 = vst [vmem:[#allocation61_spill] sm:$0xff] %v10125_v11  ;;  %v1674_v37 = vsel %vm1673_vm3, %v1672_v22, %v1667_v15  ;;  %v10132_v0 = vsub.s32 %v1696_v5, %v10038_v21  ;;  %v1710_v19 = vadd.s32 4294967216, %v10031_v4 }
 0x204   : > { %13731 = vst [vmem:[#allocation59_spill] sm:$0xff] %v10111_v7  ;;  %v1686_v38 = vrot.slane %v10111_v7, %v10108_v48  ;;  %13735 = vst [vmem:[#allocation63_spill] sm:$0xff] %v10135_v57  ;;  %v1693_v22 = vrot.slane %v10125_v11, %v10122_v12  ;;  %v10147_v5 = vsub.s32 %v1703_v20, %v10038_v21  ;;  %v10150_v24 = vmul.f32 0.00390625, %v9923_v23 }
 0x205   : > { %13734 = vst [vmem:[#allocation62_spill] sm:$0xff] %v10132_v0  ;;  %v1681_v15 = vsel %vm1680_vm4, %v1679_v63, %v1674_v37  ;;  %v1700_v30 = vrot.slane %v10135_v57, %v10132_v0  ;;  %v10160_v11 = vsub.s32 %v1710_v19, %v10038_v21  ;;  %v10163_v37 = vmul.f32 0.00390625, %v9929_v28 }
 0x206   : > { %v10091_v33 = vpop.xlane.xlu1 %1196  ;;  %v10093_v56 = vpop.xlane.xlu0 %1194  ;;  %13736 = vst [vmem:[#allocation64_spill] sm:$0xff] %v10147_v5  ;;  %13737 = vst [vmem:[#allocation65_spill] sm:$0xff] %v10150_v24  ;;  %v1688_v7 = vsel %vm1687_vm5, %v1686_v38, %v1681_v15  ;;  %v1724_v23 = vadd.s32 4294967200, %v10031_v4  ;;  %v10167_v63 = vsub.s32 %v1717_v25, %v10038_v21  ;;  %v1731_v38 = vadd.s32 4294967192, %v10031_v4 }
 0x207   : > { %13738 = vst [vmem:[#allocation66_spill] sm:$0xff] %v10160_v11  ;;  %13739 = vst [vmem:[#allocation67_spill] sm:$0xff] %v10163_v37  ;;  %v1707_v20 = vrot.slane %v10150_v24, %v10147_v5  ;;  %v1695_v15 = vsel %vm1694_vm6, %v1693_v22, %v1688_v7  ;;  %v10174_v57 = vmul.f32 0.00390625, %v9927_v27  ;;  %v10178_v19 = vmul.f32 0.00390625, %v9939_v39 }
 0x208   : > { %13740 = vst [vmem:[#allocation68_spill] sm:$0xff] %v10167_v63  ;;  %v1702_v28 = vsel %vm1701_vm7, %v1700_v30, %v1695_v15  ;;  %v10181_v25 = vmul.f32 0.00390625, %v9941_v40  ;;  %v1714_v7 = vrot.slane %v10163_v37, %v10160_v11  ;;  %v10190_v27 = vsub.s32 %v1724_v23, %v10038_v21 }
 0x209   : > { %13741 = vst [vmem:[#allocation69_spill] sm:$0xff] %v10174_v57  ;;  %13742 = vst [vmem:[#allocation70_spill] sm:$0xff] %v10178_v19  ;;  %v1738_v22 = vadd.s32 4294967184, %v10031_v4  ;;  %v10194_v30 = vmul.f32 0.00390625, %v9945_v44  ;;  %v10197_v39 = vsub.s32 %v1731_v38, %v10038_v21  ;;  %v1745_v40 = vadd.s32 4294967176, %v10031_v4 }
 0x20a   : > { %v10114_v58 = vpop.xlane.xlu1 %1200  ;;  %v10116_v47 = vpop.xlane.xlu0 %1198  ;;  %13743 = vst [vmem:[#allocation71_spill] sm:$0xff] %v10181_v25  ;;  %13744 = vst [vmem:[#allocation72_spill] sm:$0xff] %v10190_v27  ;;  %v10201_v15 = vmul.f32 0.00390625, %v10047_v55  ;;  %v10204_v24 = vmul.f32 0.00390625, %v10049_v18  ;;  %v1721_v23 = vrot.slane %v10174_v57, %v10167_v63  ;;  %v1709_v37 = vsel %vm1708_vm8, %v1707_v20, %v1702_v28 }
 0x20b   : > { %13745 = vst [vmem:[#allocation73_spill] sm:$0xff] %v10194_v30  ;;  %13746 = vst [vmem:[#allocation74_spill] sm:$0xff] %v10197_v39  ;;  %v10213_v44 = vmul.f32 0.00390625, %v10070_v49  ;;  %v10216_v38 = vmul.f32 0.00390625, %v9931_v31  ;;  %v1759_v55 = vrot.slane %v10178_v19, %v10041_v17  ;;  %v1755_v4 = vrot.slane %v10181_v25, %v10053_v46 }
 0x20c   : > { %13747 = vst [vmem:[#allocation75_spill] sm:$0xff] %v10201_v15  ;;  %13748 = vst [vmem:[#allocation76_spill] sm:$0xff] %v10204_v24  ;;  %v10223_v18 = vmul.f32 0.00390625, %v9943_v43  ;;  %v1716_v32 = vsel %vm1715_vm9, %v1714_v7, %v1709_v37  ;;  %v10231_v49 = vsub.s32 %v1738_v22, %v10038_v21  ;;  %v1764_v31 = vrot.slane %v10194_v30, %v10062_v54 }
 0x20d   : > { %13750 = vst [vmem:[#allocation78_spill] sm:$0xff] %v10213_v44  ;;  %v10236_v28 = vmul.f32 0.00390625, %v9949_v52  ;;  %v1996_v43 = vrot.slane %v10201_v15, %v10041_v17  ;;  %v1992_v19 = vrot.slane %v10204_v24, %v10053_v46  ;;  %v10243_v25 = vmul.f32 0.00390625, %v10068_v10 }
 0x20e   : > { %v10137_v8 = vpop.xlane.xlu1 %1204  ;;  %v10139_v16 = vpop.xlane.xlu0 %1202  ;;  %13751 = vst [vmem:[#allocation79_spill] sm:$0xff] %v10223_v18  ;;  %13752 = vst [vmem:[#allocation80_spill] sm:$0xff] %v10231_v49  ;;  %v1728_v37 = vrot.slane %v10210_v53, %v10190_v27  ;;  %v10248_v7 = vsub.s32 %v1745_v40, %v10038_v21  ;;  %v2001_v22 = vrot.slane %v10213_v44, %v10062_v54  ;;  %v10253_v52 = vmul.f32 0.00390625, %v10093_v56 }
 0x20f   : > { %13753 = vst [vmem:[#allocation81_spill] sm:$0xff] %v10236_v28  ;;  %13754 = vst [vmem:[#allocation82_spill] sm:$0xff] %v10243_v25  ;;  %v1723_v15 = vsel %vm1722_vm10, %v1721_v23, %v1716_v32  ;;  %v1760_v10 = vsel %vm1652_vm0, %v1759_v55, %v1755_v4  ;;  %v1769_v24 = vrot.slane %v10223_v18, %v10075_v34  ;;  %v10263_v21 = vmul.f32 0.00390625, %v9947_v51 }
 0x210   : > { %13755 = vst [vmem:[#allocation83_spill] sm:$0xff] %v10248_v7  ;;  %13756 = vst [vmem:[#allocation84_spill] sm:$0xff] %v10253_v52  ;;  %v1765_v40 = vsel %vm1659_vm1, %v1764_v31, %v1760_v10  ;;  %v1774_v30 = vrot.slane %v10236_v28, %v10085_v45  ;;  %v1997_v23 = vsel %vm1652_vm0, %v1996_v43, %v1992_v19  ;;  %v10275_v4 = vmul.f32 0.00390625, %v10091_v33 }
 0x211   : > { %13757 = vst [vmem:[#allocation85_spill] sm:$0xff] %v10263_v21  ;;  %v2006_v55 = vrot.slane %v10243_v25, %v10075_v34  ;;  %v10278_v32 = vsel %vm1729_vm11, %v1728_v37, %v1723_v15  ;;  %v2002_v51 = vsel %vm1659_vm1, %v2001_v22, %v1997_v23  ;;  %v10287_v31 = vmul.f32 0.00390625, %v9937_v36 }
 0x212   : > { %v10155_v6 = vpop.xlane.xlu1 %1208  ;;  %v10157_v9 = vpop.xlane.xlu0 %1206  ;;  %13760 = vst [vmem:[#allocation88_spill] sm:$0xff] %v10275_v4  ;;  %v10290_v19 = vmul.f32 0.00390625, %v9953_v60  ;;  %v1779_v22 = vrot.slane %v10263_v21, %v10099_v1  ;;  %v2016_v23 = vrot.slane %v10275_v4, %v10099_v1 }
 0x214   : > { %13762 = vst [vmem:[#allocation90_spill] sm:$0xff] %v10290_v19 }
 0x216   : > { %v10183_v61 = vpop.xlane.xlu1 %1212  ;;  %v10185_v62 = vpop.xlane.xlu0 %1210 }
 0x21a   : > { %v10225_v57 = vpop.xlane.xlu1 %1216  ;;  %v10227_v20 = vpop.xlane.xlu0 %1214 }
 0x21e   : > { %v1221_v53 = vpop.xlane.xlu1 %1220  ;;  %v1219_v50 = vpop.xlane.xlu0 %1218 }
 0x21f   : > { %v10265_v44 = vmul.f32 0.00390625, %v1221_v53  ;;  %v10267_v56 = vmul.f32 0.00390625, %v1219_v50  ;;  %v2011_v50 = vrot.slane %v10253_v52, %v10085_v45  ;;  %v10284_v53 = vmul.f32 0.00390625, %v10116_v47 }
 0x220   : > { %v1770_v47 = vsel %vm1666_vm2, %v1769_v24, %v1765_v40  ;;  %v10314_v24 = vmul.f32 0.00390625, %v10139_v16 }
 0x221   : > { %13758 = vst [vmem:[#allocation86_spill] sm:$0xff] %v10265_v44  ;;  %13759 = vst [vmem:[#allocation87_spill] sm:$0xff] %v10267_v56  ;;  %v2075_v33 = vrot.slane %v10265_v44, %v10041_v17  ;;  %v2071_v15 = vrot.slane %v10267_v56, %v10053_v46  ;;  %v1775_v60 = vsel %vm1673_vm3, %v1774_v30, %v1770_v47  ;;  %v10308_v56 = vmul.f32 0.00390625, %v10114_v58 }
 0x222   : > { %13761 = vst [vmem:[#allocation89_spill] sm:$0xff] %v10284_v53  ;;  %v1225_v43 = vpop.xlane.xlu1 %1224  ;;  %v1223_v37 = vpop.xlane.xlu0 %1222  ;;  %v2007_v44 = vsel %vm1666_vm2, %v2006_v55, %v2002_v51  ;;  %v2021_v21 = vrot.slane %v10284_v53, %v10108_v48  ;;  %13766 = vst [vmem:[#allocation94_spill] sm:$0xff] %v10314_v24  ;;  %v10319_v30 = vmul.f32 0.00390625, %v9951_v59  ;;  %v1784_v55 = vrot.slane %v10290_v19, %v10108_v48  ;;  %v13807_v19 = vld [vmem:[#allocation24_spill] sm:$0xff] }
 0x223   : > { %v10299_v10 = vmul.f32 0.00390625, %v1225_v43  ;;  %v10301_v36 = vmul.f32 0.00390625, %v1223_v37  ;;  %13765 = vst [vmem:[#allocation93_spill] sm:$0xff] %v10308_v56  ;;  %v2012_v18 = vsel %vm1673_vm3, %v2011_v50, %v2007_v44  ;;  %v2076_v58 = vsel %vm1652_vm0, %v2075_v33, %v2071_v15 }
 0x224   : > { %13767 = vst [vmem:[#allocation95_spill] sm:$0xff] %v10319_v30  ;;  %v1780_v43 = vsel %vm1680_vm4, %v1779_v22, %v1775_v60  ;;  %v10333_v59 = vmul.f32 0.00390625, %v9957_v3  ;;  %v2017_v33 = vsel %vm1680_vm4, %v2016_v23, %v2012_v18  ;;  %v10339_v15 = vmul.f32 0.00390625, %v10137_v8 }
 0x225   : > { %13763 = vst [vmem:[#allocation91_spill] sm:$0xff] %v10299_v10  ;;  %13764 = vst [vmem:[#allocation92_spill] sm:$0xff] %v10301_v36  ;;  %v2080_v40 = vrot.slane %v10301_v36, %v10062_v54  ;;  %v2085_v44 = vrot.slane %v10299_v10, %v10075_v34  ;;  %v2026_v36 = vrot.slane %v10308_v56, %v10122_v12  ;;  %v10345_v60 = vmul.f32 0.00390625, %v10157_v9 }
 0x226   : > { %v1229_v51 = vpop.xlane.xlu1 %1228  ;;  %v1227_v50 = vpop.xlane.xlu0 %1226  ;;  %13770 = vst [vmem:[#allocation98_spill] sm:$0xff] %v10333_v59  ;;  %13771 = vst [vmem:[#allocation99_spill] sm:$0xff] %v10339_v15  ;;  %v2022_v10 = vsel %vm1687_vm5, %v2021_v21, %v2017_v33  ;;  %v2031_v22 = vrot.slane %v10314_v24, %v10132_v0  ;;  %v10578_v28 = vmul.f32 0.00390625, %v13807_v19  ;;  %v13822_v24 = vld [vmem:[#allocation25_spill] sm:$0xff] }
 0x227   : > { %v2081_v16 = vsel %vm1659_vm1, %v2080_v40, %v2076_v58  ;;  %v10328_v37 = vmul.f32 0.00390625, %v1229_v51  ;;  %v10330_v47 = vmul.f32 0.00390625, %v1227_v50  ;;  %13772 = vst [vmem:[#allocation100_spill] sm:$0xff] %v10345_v60  ;;  %v1789_v40 = vrot.slane %v10319_v30, %v10122_v12 }
 0x228   : > { %v1785_v58 = vsel %vm1687_vm5, %v1784_v55, %v1780_v43  ;;  %v2086_v18 = vsel %vm1666_vm2, %v2085_v44, %v2081_v16  ;;  %v10356_v51 = vmul.f32 0.00390625, %v9955_v2  ;;  %v10366_v55 = vmul.f32 0.00390625, %v9961_v14 }
 0x229   : > { %13768 = vst [vmem:[#allocation96_spill] sm:$0xff] %v10328_v37  ;;  %13769 = vst [vmem:[#allocation97_spill] sm:$0xff] %v10330_v47  ;;  %v2090_v3 = vrot.slane %v10330_v47, %v10085_v45  ;;  %v2095_v8 = vrot.slane %v10328_v37, %v10099_v1  ;;  %v1794_v47 = vrot.slane %v10333_v59, %v10132_v0  ;;  %v10373_v16 = vmul.f32 0.00390625, %v10155_v6 }
 0x22a   : > { %v1233_v21 = vpop.xlane.xlu1 %1232  ;;  %v1231_v23 = vpop.xlane.xlu0 %1230  ;;  %13773 = vst [vmem:[#allocation101_spill] sm:$0xff] %v10356_v51  ;;  %13776 = vst [vmem:[#allocation104_spill] sm:$0xff] %v10366_v55  ;;  %v2036_v44 = vrot.slane %v10339_v15, %v10147_v5  ;;  %v2027_v43 = vsel %vm1694_vm6, %v2026_v36, %v2022_v10  ;;  %v10381_v14 = vmul.f32 0.00390625, %v10185_v62  ;;  %v1799_v6 = vrot.slane %v10356_v51, %v10147_v5 }
 0x22b   : > { %v2091_v9 = vsel %vm1673_vm3, %v2090_v3, %v2086_v18  ;;  %v10359_v50 = vmul.f32 0.00390625, %v1233_v21  ;;  %v10361_v33 = vmul.f32 0.00390625, %v1231_v23  ;;  %v2032_v2 = vsel %vm1701_vm7, %v2031_v22, %v2027_v43  ;;  %13777 = vst [vmem:[#allocation105_spill] sm:$0xff] %v10373_v16 }
 0x22c   : > { %v2041_v3 = vrot.slane %v10345_v60, %v10160_v11  ;;  %v1790_v21 = vsel %vm1694_vm6, %v1789_v40, %v1785_v58  ;;  %13778 = vst [vmem:[#allocation106_spill] sm:$0xff] %v10381_v14  ;;  %v2096_v10 = vsel %vm1680_vm4, %v2095_v8, %v2091_v9  ;;  %v10395_v62 = vmul.f32 0.00390625, %v9959_v13  ;;  %v13815_v60 = vld [vmem:[#allocation32_spill] sm:$0xff] }
 0x22d   : > { %13774 = vst [vmem:[#allocation102_spill] sm:$0xff] %v10359_v50  ;;  %13775 = vst [vmem:[#allocation103_spill] sm:$0xff] %v10361_v33  ;;  %v2100_v18 = vrot.slane %v10361_v33, %v10108_v48  ;;  %v2105_v23 = vrot.slane %v10359_v50, %v10122_v12  ;;  %v1795_v40 = vsel %vm1701_vm7, %v1794_v47, %v1790_v21  ;;  %v10401_v9 = vmul.f32 0.00390625, %v9965_v29 }
 0x22e   : > { %v1237_v36 = vpop.xlane.xlu1 %1236  ;;  %v1235_v22 = vpop.xlane.xlu0 %1234  ;;  %13781 = vst [vmem:[#allocation109_spill] sm:$0xff] %v10395_v62  ;;  %v1804_v58 = vrot.slane %v10366_v55, %v10160_v11  ;;  %v2037_v8 = vsel %vm1708_vm8, %v2036_v44, %v2032_v2  ;;  %v10409_v13 = vmul.f32 0.00390625, %v10183_v61  ;;  %v2051_v47 = vrot.slane %v10381_v14, %v10190_v27 }
 0x22f   : > { %v2101_v43 = vsel %vm1687_vm5, %v2100_v18, %v2096_v10  ;;  %v10389_v37 = vmul.f32 0.00390625, %v1237_v36  ;;  %v10391_v33 = vmul.f32 0.00390625, %v1235_v22  ;;  %13782 = vst [vmem:[#allocation110_spill] sm:$0xff] %v10401_v9  ;;  %v2046_v18 = vrot.slane %v10373_v16, %v10167_v63 }
 0x230   : > { %v2042_v10 = vsel %vm1715_vm9, %v2041_v3, %v2037_v8  ;;  %13783 = vst [vmem:[#allocation111_spill] sm:$0xff] %v10409_v13  ;;  %v2106_v29 = vsel %vm1694_vm6, %v2105_v23, %v2101_v43  ;;  %v1800_v22 = vsel %vm1708_vm8, %v1799_v6, %v1795_v40  ;;  %v1809_v61 = vrot.slane %v10395_v62, %v10167_v63  ;;  %v13803_v62 = vld [vmem:[#allocation19_spill] sm:$0xff] }
 0x231   : > { %13779 = vst [vmem:[#allocation107_spill] sm:$0xff] %v10389_v37  ;;  %13780 = vst [vmem:[#allocation108_spill] sm:$0xff] %v10391_v33  ;;  %v2110_v36 = vrot.slane %v10391_v33, %v10132_v0  ;;  %v2115_v44 = vrot.slane %v10389_v37, %v10147_v5  ;;  %v1805_v33 = vsel %vm1715_vm9, %v1804_v58, %v1800_v22  ;;  %v10426_v37 = vmul.f32 0.00390625, %v9963_v26 }
 0x232   : > { %v1241_v2 = vpop.xlane.xlu1 %1240  ;;  %v1239_v21 = vpop.xlane.xlu0 %1238  ;;  %v10429_v23 = vmul.f32 0.00390625, %v10227_v20  ;;  %v1814_v6 = vrot.slane %v10401_v9, %v10190_v27  ;;  %v10434_v43 = vmul.f32 0.00390625, %v9969_v42  ;;  %v2047_v40 = vsel %vm1722_vm10, %v2046_v18, %v2042_v10  ;;  %v13804_v9 = vld [vmem:[#allocation22_spill] sm:$0xff] }
 0x233   : > { %v2111_v3 = vsel %vm1701_vm7, %v2110_v36, %v2106_v29  ;;  %v10418_v8 = vmul.f32 0.00390625, %v1241_v2  ;;  %v10420_v50 = vmul.f32 0.00390625, %v1239_v21  ;;  %13786 = vst [vmem:[#allocation114_spill] sm:$0xff] %v10426_v37  ;;  %v2056_v58 = vrot.slane %v10409_v13, %v10197_v39 }
 0x234   : > { %13787 = vst [vmem:[#allocation115_spill] sm:$0xff] %v10429_v23  ;;  %13788 = vst [vmem:[#allocation116_spill] sm:$0xff] %v10434_v43  ;;  %v2052_v26 = vsel %vm1729_vm11, %v2051_v47, %v2047_v40  ;;  %v2116_v29 = vsel %vm1708_vm8, %v2115_v44, %v2111_v3  ;;  %v10446_v42 = vmul.f32 0.00390625, %v10225_v57  ;;  %v1810_v47 = vsel %vm1722_vm10, %v1809_v61, %v1805_v33 }
 0x235   : > { %13784 = vst [vmem:[#allocation112_spill] sm:$0xff] %v10418_v8  ;;  %13785 = vst [vmem:[#allocation113_spill] sm:$0xff] %v10420_v50  ;;  %v2120_v36 = vrot.slane %v10420_v50, %v10160_v11  ;;  %v2125_v20 = vrot.slane %v10418_v8, %v10167_v63  ;;  %v1819_v50 = vrot.slane %v10426_v37, %v10197_v39  ;;  %v10457_v40 = vmul.f32 0.00390625, %v9967_v41 }
 0x236   : > { %v1245_v2 = vpop.xlane.xlu1 %1244  ;;  %v1243_v21 = vpop.xlane.xlu0 %1242  ;;  %13789 = vst [vmem:[#allocation117_spill] sm:$0xff] %v10446_v42  ;;  %v2061_v44 = vrot.slane %v10429_v23, %v10231_v49  ;;  %v10462_v57 = vmul.f32 0.00390625, %v9935_v35  ;;  %v1815_v3 = vsel %vm1729_vm11, %v1814_v6, %v1810_v47  ;;  %v1742_v33 = vrot.slane %v10287_v31, %v10231_v49  ;;  %v13813_v23 = vld [vmem:[#allocation30_spill] sm:$0xff] }
 0x237   : > { %v2121_v18 = vsel %vm1715_vm9, %v2120_v36, %v2116_v29  ;;  %v10449_v10 = vmul.f32 0.00390625, %v1245_v2  ;;  %v10451_v22 = vmul.f32 0.00390625, %v1243_v21  ;;  %13792 = vst [vmem:[#allocation120_spill] sm:$0xff] %v10457_v40  ;;  %v1824_v36 = vrot.slane %v10434_v43, %v10231_v49 }
 0x238   : > { %v2126_v61 = vsel %vm1722_vm10, %v2125_v20, %v2121_v18  ;;  %v2057_v35 = vsel %vm1736_vm12, %v2056_v58, %v2052_v26  ;;  %v2066_v6 = vrot.slane %v10446_v42, %v10248_v7  ;;  %v1829_v37 = vrot.slane %v10457_v40, %v10248_v7  ;;  %v13796_v40 = vld [vmem:[#allocation13_spill] sm:$0xff] }
 0x239   : > { %13790 = vst [vmem:[#allocation118_spill] sm:$0xff] %v10449_v10  ;;  %13791 = vst [vmem:[#allocation119_spill] sm:$0xff] %v10451_v22  ;;  %v2130_v29 = vrot.slane %v10451_v22, %v10190_v27  ;;  %v2135_v41 = vrot.slane %v10449_v10, %v10197_v39  ;;  %v1820_v10 = vsel %vm1736_vm12, %v1819_v50, %v1815_v3  ;;  %v10591_v16 = vmul.f32 0.00390625, %v13813_v23 }
 0x23a   : > { %v1249_v2 = vpop.xlane.xlu1 %1248  ;;  %v1247_v21 = vpop.xlane.xlu0 %1246  ;;  %v13795_v20 = vrot.slane %v10216_v38, %v10197_v39  ;;  %v2062_v26 = vsel %vm1743_vm13, %v2061_v44, %v2057_v35  ;;  %v1749_v18 = vrot.slane %v10462_v57, %v10248_v7  ;;  %v1883_v15 = vrot.slane %v10578_v28, %v10160_v11 }
 0x23b   : > { %v2131_v47 = vsel %vm1729_vm11, %v2130_v29, %v2126_v61  ;;  %v10478_v8 = vmul.f32 0.00390625, %v1249_v2  ;;  %v10480_v22 = vmul.f32 0.00390625, %v1247_v21  ;;  %v1825_v2 = vsel %vm1743_vm13, %v1824_v36, %v1820_v10  ;;  %v13797_v10 = vld [vmem:[#allocation14_spill] sm:$0xff] }
 0x23c   : > { %v1737_v58 = vsel %vm1736_vm12, %v13795_v20, %v10278_v32  ;;  %v2136_v21 = vsel %vm1736_vm12, %v2135_v41, %v2131_v47  ;;  %v2067_v35 = vsel %vm1750_vm14, %v2066_v6, %v2062_v26  ;;  %v1830_v20 = vsel %vm1750_vm14, %v1829_v37, %v1825_v2  ;;  %13808 = vst [vmem:[#allocation14_spill] sm:$0xff] %v10578_v28 }
 0x23d   : > { %13793 = vst [vmem:[#allocation121_spill] sm:$0xff] %v10478_v8  ;;  %13794 = vst [vmem:[#allocation122_spill] sm:$0xff] %v10480_v22  ;;  %v2145_v29 = vrot.slane %v10478_v8, %v10248_v7  ;;  %v2140_v61 = vrot.slane %v10480_v22, %v10231_v49  ;;  %v1744_v32 = vsel %vm1743_vm13, %v1742_v33, %v1737_v58  ;;  %v10505_v22 = vmul.f32 0.00390625, %v13796_v40  ;;  %v13798_v33 = vld [vmem:[#allocation16_spill] sm:$0xff] }
 0x23e   : > { %v1253_v50 = vpop.xlane.xlu1 %1252  ;;  %v1251_v3 = vpop.xlane.xlu0 %1250  ;;  %v10508_v36 = vmul.f32 0.00390625, %v13797_v10  ;;  %v1751_v41 = vsel %vm1750_vm14, %v1749_v18, %v1744_v32  ;;  %v10513_v47 = vmul.f32 0.00390625, %v13798_v33  ;;  %v13802_v33 = vld [vmem:[#allocation20_spill] sm:$0xff]  ;;  %v10615_v4 = vmul.f32 0.00390625, %v13822_v24  ;;  %v13826_v24 = vld [vmem:[#allocation34_spill] sm:$0xff] }
 0x23f   : > { %v2141_v44 = vsel %vm1743_vm13, %v2140_v61, %v2136_v21  ;;  %v2306_v37 = vsel %vm2305_vm15, %v2067_v35, %v1751_v41  ;;  %v1838_v40 = vrot.slane %v10505_v22, %v10041_v17  ;;  %v13800_v61 = vld [vmem:[#allocation18_spill] sm:$0xff]  ;;  %v13801_v35 = vld [vmem:[#allocation17_spill] sm:$0xff] }
 0x240   : > { %v2146_v8 = vsel %vm1750_vm14, %v2145_v29, %v2141_v44  ;;  %v1834_v26 = vrot.slane %v10508_v36, %v10053_v46  ;;  %v13799_v29 = vld [vmem:[#allocation15_spill] sm:$0xff]  ;;  %v1843_v18 = vrot.slane %v10513_v47, %v10062_v54  ;;  %v10528_v2 = vmul.f32 0.00390625, %v13800_v61  ;;  %13814 = vst [vmem:[#allocation18_spill] sm:$0xff] %v10591_v16  ;;  %13823 = vst [vmem:[#allocation24_spill] sm:$0xff] %v10615_v4 }
 0x241   : > { %v2307_v43 = vsel %vm2305_vm15, %v2146_v8, %v1830_v20  ;;  %v10523_v8 = vmul.f32 0.00390625, %v13799_v29  ;;  %v10536_v20 = vmul.f32 0.00390625, %v13801_v35  ;;  %v10552_v35 = vmul.f32 0.00390625, %v13803_v62 }
 0x242   : > { %v10515_v58 = vpop.xlane.xlu1 %1256  ;;  %2378 = vmatprep.mubr.f32.mxu0 %v2307_v43  ;;  %v1255_v6 = vpop.xlane.xlu0 %1254  ;;  %v1839_v32 = vsel %vm1652_vm0, %v1838_v40, %v1834_v26  ;;  %v1853_v41 = vrot.slane %v10528_v2, %v10085_v45 }
 0x243   : > { %2379 = vmatmul.mubr.f32.vlgmr.msra.gmra.mxu0 %v2306_v37  ;;  %v1848_v44 = vrot.slane %v10523_v8, %v10075_v34  ;;  %v1844_v10 = vsel %vm1659_vm1, %v1843_v18, %v1839_v32  ;;  %v10542_v37 = vmul.f32 0.00390625, %v13802_v33  ;;  %v1858_v40 = vrot.slane %v10536_v20, %v10099_v1 }
 0x244   : > { %v10558_v33 = vmul.f32 0.00390625, %v13804_v9  ;;  %v1868_v30 = vrot.slane %v10552_v35, %v10122_v12  ;;  %v10612_v56 = vmul.f32 0.00390625, %v1255_v6 }
 0x245   : > { %v1849_v26 = vsel %vm1666_vm2, %v1848_v44, %v1844_v10  ;;  %v1863_v32 = vrot.slane %v10542_v37, %v10108_v48  ;;  %v13805_v10 = vld [vmem:[#allocation21_spill] sm:$0xff] }
 0x246   : > { %v10530_v43 = vpop.xlane.xlu1 %1260  ;;  %v1259_v21 = vpop.xlane.xlu0 %1258  ;;  %v1854_v18 = vsel %vm1673_vm3, %v1853_v41, %v1849_v26  ;;  %v10568_v62 = vmul.f32 0.00390625, %v13805_v10  ;;  %v1873_v26 = vrot.slane %v10558_v33, %v10132_v0  ;;  %13821 = vst [vmem:[#allocation21_spill] sm:$0xff] %v10612_v56 }
 0x247   : > { %v1859_v44 = vsel %vm1680_vm4, %v1858_v40, %v1854_v18  ;;  %v13809_v18 = vld [vmem:[#allocation23_spill] sm:$0xff] }
 0x248   : > { %13806 = vst [vmem:[#allocation13_spill] sm:$0xff] %v10568_v62  ;;  %v1864_v41 = vsel %vm1687_vm5, %v1863_v32, %v1859_v44  ;;  %v1878_v42 = vrot.slane %v10568_v62, %v10147_v5  ;;  %v10584_v10 = vmul.f32 0.00390625, %v13809_v18  ;;  %v13811_v44 = vld [vmem:[#allocation29_spill] sm:$0xff]  ;;  %v10604_v18 = vmul.f32 0.00390625, %v1251_v3  ;;  %v13824_v3 = vld [vmem:[#allocation31_spill] sm:$0xff] }
 0x249   : > { %v1869_v40 = vsel %vm1694_vm6, %v1868_v30, %v1864_v41  ;;  %v10588_v13 = vmul.f32 0.00390625, %v13811_v44  ;;  %v10600_v30 = vmul.f32 0.00390625, %v13815_v60  ;;  %v10602_v41 = vmul.f32 0.00390625, %v1253_v50 }
 0x24a   : > { %v10544_v29 = vpop.xlane.xlu1 %1264  ;;  %v10546_v61 = vpop.xlane.xlu0 %1262  ;;  %13810 = vst [vmem:[#allocation16_spill] sm:$0xff] %v10584_v10  ;;  %v1874_v32 = vsel %vm1701_vm7, %v1873_v26, %v1869_v40  ;;  %13818 = vst [vmem:[#allocation19_spill] sm:$0xff] %v10604_v18  ;;  %v1888_v26 = vrot.slane %v10584_v10, %v10167_v63  ;;  %v13819_v40 = vld [vmem:[#allocation26_spill] sm:$0xff]  ;;  %v1913_v50 = vrot.slane %v10591_v16, %v10053_v46  ;;  %v10622_v53 = vmul.f32 0.00390625, %v13824_v3 }
 0x24b   : > { %13812 = vst [vmem:[#allocation15_spill] sm:$0xff] %v10588_v13  ;;  %13816 = vst [vmem:[#allocation17_spill] sm:$0xff] %v10600_v30  ;;  %v1879_v23 = vsel %vm1708_vm8, %v1878_v42, %v1874_v32  ;;  %v10610_v44 = vmul.f32 0.00390625, %v13819_v40  ;;  %v1917_v60 = vrot.slane %v10588_v13, %v10041_v17  ;;  %v1922_v6 = vrot.slane %v10600_v30, %v10062_v54 }
 0x24c   : > { %13817 = vst [vmem:[#allocation20_spill] sm:$0xff] %v10602_v41  ;;  %13825 = vst [vmem:[#allocation23_spill] sm:$0xff] %v10622_v53  ;;  %v1884_v32 = vsel %vm1715_vm9, %v1883_v15, %v1879_v23  ;;  %v10632_v40 = vmul.f32 0.00390625, %v13826_v24  ;;  %v2154_v13 = vrot.slane %v10602_v41, %v10041_v17  ;;  %v2150_v16 = vrot.slane %v10604_v18, %v10053_v46 }
 0x24d   : > { %13820 = vst [vmem:[#allocation22_spill] sm:$0xff] %v10610_v44  ;;  %v10639_v3 = vmul.f32 0.00390625, %v10515_v58  ;;  %v1893_v52 = vrot.slane %v10610_v44, %v10190_v27  ;;  %v2159_v15 = vrot.slane %v10612_v56, %v10062_v54  ;;  %v10645_v23 = vmul.f32 0.00390625, %v1259_v21  ;;  %v13830_v44 = vld [vmem:[#allocation33_spill] sm:$0xff] }
 0x24e   : > { %v10560_v51 = vpop.xlane.xlu1 %1268  ;;  %v10562_v55 = vpop.xlane.xlu0 %1266  ;;  %13827 = vst [vmem:[#allocation29_spill] sm:$0xff] %v10632_v40  ;;  %v1889_v30 = vsel %vm1722_vm10, %v1888_v26, %v1884_v32  ;;  %v1918_v41 = vsel %vm1652_vm0, %v1917_v60, %v1913_v50  ;;  %v1927_v18 = vrot.slane %v10622_v53, %v10075_v34  ;;  %v10655_v28 = vmul.f32 0.00390625, %v13830_v44 }
 0x24f   : > { %13828 = vst [vmem:[#allocation30_spill] sm:$0xff] %v10639_v3  ;;  %13829 = vst [vmem:[#allocation32_spill] sm:$0xff] %v10645_v23  ;;  %v1923_v62 = vsel %vm1659_vm1, %v1922_v6, %v1918_v41  ;;  %v1932_v24 = vrot.slane %v10632_v40, %v10085_v45  ;;  %v2155_v26 = vsel %vm1652_vm0, %v2154_v13, %v2150_v16  ;;  %v10667_v50 = vmul.f32 0.00390625, %v10530_v43  ;;  %v13836_v6 = vld [vmem:[#allocation28_spill] sm:$0xff] }
 0x250   : > { %13831 = vst [vmem:[#allocation26_spill] sm:$0xff] %v10655_v28  ;;  %v2164_v60 = vrot.slane %v10639_v3, %v10075_v34  ;;  %v10670_v41 = vsel %vm1729_vm11, %v1893_v52, %v1889_v30  ;;  %v2160_v44 = vsel %vm1659_vm1, %v2159_v15, %v2155_v26  ;;  %v10676_v32 = vmul.f32 0.00390625, %v10546_v61  ;;  %v13838_v16 = vld [vmem:[#allocation36_spill] sm:$0xff] }
 0x251   : > { %13834 = vst [vmem:[#allocation34_spill] sm:$0xff] %v10667_v50  ;;  %v10682_v13 = vmul.f32 0.00390625, %v13838_v16  ;;  %v1937_v26 = vrot.slane %v10655_v28, %v10099_v1  ;;  %v1928_v61 = vsel %vm1666_vm2, %v1927_v18, %v1923_v62  ;;  %v2174_v40 = vrot.slane %v10667_v50, %v10099_v1 }
 0x252   : > { %v10573_v59 = vpop.xlane.xlu1 %1272  ;;  %v10575_v9 = vpop.xlane.xlu0 %1270  ;;  %13835 = vst [vmem:[#allocation33_spill] sm:$0xff] %v10676_v32  ;;  %v1933_v16 = vsel %vm1673_vm3, %v1932_v24, %v1928_v61  ;;  %v10706_v62 = vmul.f32 0.00390625, %v10562_v55  ;;  %v13844_v24 = vld [vmem:[#allocation35_spill] sm:$0xff] }
 0x253   : > { %13839 = vst [vmem:[#allocation36_spill] sm:$0xff] %v10682_v13 }
 0x254   : > { %13843 = vst [vmem:[#allocation126_spill] sm:$0xff] %v10706_v62 }
 0x256   : > { %v10593_v14 = vpop.xlane.xlu1 %1276  ;;  %v10595_v19 = vpop.xlane.xlu0 %1274 }
 0x25a   : > { %v10624_v25 = vpop.xlane.xlu1 %1280  ;;  %v10626_v42 = vpop.xlane.xlu0 %1278 }
 0x25e   : > { %v1285_v58 = vpop.xlane.xlu1 %1284  ;;  %v1283_v10 = vpop.xlane.xlu0 %1282 }
 0x25f   : > { %v10657_v56 = vmul.f32 0.00390625, %v1285_v58  ;;  %v10659_v21 = vmul.f32 0.00390625, %v1283_v10  ;;  %v2169_v10 = vrot.slane %v10645_v23, %v10085_v45  ;;  %v10679_v58 = vmul.f32 0.00390625, %v13836_v6 }
 0x261   : > { %13832 = vst [vmem:[#allocation25_spill] sm:$0xff] %v10657_v56  ;;  %13833 = vst [vmem:[#allocation31_spill] sm:$0xff] %v10659_v21  ;;  %v2233_v43 = vrot.slane %v10657_v56, %v10041_v17  ;;  %v2229_v52 = vrot.slane %v10659_v21, %v10053_v46  ;;  %v2165_v56 = vsel %vm1666_vm2, %v2164_v60, %v2160_v44  ;;  %v10700_v21 = vmul.f32 0.00390625, %v10544_v29 }
 0x262   : > { %13837 = vst [vmem:[#allocation28_spill] sm:$0xff] %v10679_v58  ;;  %v1287_v30 = vpop.xlane.xlu0 %1286  ;;  %v1289_v15 = vpop.xlane.xlu1 %1288  ;;  %v2170_v17 = vsel %vm1673_vm3, %v2169_v10, %v2165_v56  ;;  %v2179_v46 = vrot.slane %v10676_v32, %v10108_v48  ;;  %v1942_v60 = vrot.slane %v10682_v13, %v10108_v48 }
 0x263   : > { %v10691_v53 = vmul.f32 0.00390625, %v1287_v30  ;;  %v10693_v6 = vmul.f32 0.00390625, %v1289_v15  ;;  %13842 = vst [vmem:[#allocation125_spill] sm:$0xff] %v10700_v21  ;;  %v10711_v30 = vmul.f32 0.00390625, %v13844_v24  ;;  %v2234_v29 = vsel %vm1652_vm0, %v2233_v43, %v2229_v52  ;;  %v13848_v24 = vld [vmem:[#allocation38_spill] sm:$0xff] }
 0x264   : > { %v1938_v15 = vsel %vm1680_vm4, %v1937_v26, %v1933_v16  ;;  %v2184_v28 = vrot.slane %v10700_v21, %v10122_v12  ;;  %v2175_v43 = vsel %vm1680_vm4, %v2174_v40, %v2170_v17  ;;  %v10731_v52 = vmul.f32 0.00390625, %v10560_v51 }
 0x265   : > { %13840 = vst [vmem:[#allocation123_spill] sm:$0xff] %v10691_v53  ;;  %13841 = vst [vmem:[#allocation124_spill] sm:$0xff] %v10693_v6  ;;  %v2238_v18 = vrot.slane %v10691_v53, %v10062_v54  ;;  %v2243_v56 = vrot.slane %v10693_v6, %v10075_v34  ;;  %v10725_v54 = vmul.f32 0.00390625, %v13848_v24  ;;  %v2180_v6 = vsel %vm1687_vm5, %v2179_v46, %v2175_v43 }
 0x266   : > { %13845 = vst [vmem:[#allocation35_spill] sm:$0xff] %v10711_v30  ;;  %v1291_v44 = vpop.xlane.xlu0 %1290  ;;  %v1293_v10 = vpop.xlane.xlu1 %1292  ;;  %13850 = vst [vmem:[#allocation129_spill] sm:$0xff] %v10731_v52  ;;  %v2189_v26 = vrot.slane %v10706_v62, %v10132_v0  ;;  %v10737_v16 = vmul.f32 0.00390625, %v10575_v9  ;;  %v13894_v62 = vld [vmem:[#allocation49_spill] sm:$0xff] }
 0x267   : > { %v2239_v55 = vsel %vm1659_vm1, %v2238_v18, %v2234_v29  ;;  %v10720_v61 = vmul.f32 0.00390625, %v1291_v44  ;;  %v10722_v53 = vmul.f32 0.00390625, %v1293_v10  ;;  %13849 = vst [vmem:[#allocation38_spill] sm:$0xff] %v10725_v54  ;;  %v1947_v29 = vrot.slane %v10711_v30, %v10122_v12  ;;  %v13852_v10 = vld [vmem:[#allocation37_spill] sm:$0xff] }
 0x268   : > { %13851 = vst [vmem:[#allocation130_spill] sm:$0xff] %v10737_v16  ;;  %v1943_v44 = vsel %vm1687_vm5, %v1942_v60, %v1938_v15  ;;  %v2244_v17 = vsel %vm1666_vm2, %v2243_v56, %v2239_v55  ;;  %v10748_v24 = vmul.f32 0.00390625, %v13852_v10  ;;  %v1952_v34 = vrot.slane %v10725_v54, %v10132_v0  ;;  %v13856_v60 = vld [vmem:[#allocation40_spill] sm:$0xff] }
 0x269   : > { %13846 = vst [vmem:[#allocation127_spill] sm:$0xff] %v10720_v61  ;;  %13847 = vst [vmem:[#allocation128_spill] sm:$0xff] %v10722_v53  ;;  %v2248_v18 = vrot.slane %v10720_v61, %v10085_v45  ;;  %v2253_v51 = vrot.slane %v10722_v53, %v10099_v1  ;;  %v10758_v15 = vmul.f32 0.00390625, %v13856_v60  ;;  %v2194_v56 = vrot.slane %v10731_v52, %v10147_v5 }
 0x26a   : > { %v1295_v46 = vpop.xlane.xlu0 %1294  ;;  %v1297_v40 = vpop.xlane.xlu1 %1296  ;;  %13853 = vst [vmem:[#allocation37_spill] sm:$0xff] %v10748_v24  ;;  %v2185_v55 = vsel %vm1694_vm6, %v2184_v28, %v2180_v6  ;;  %v10765_v53 = vmul.f32 0.00390625, %v10573_v59  ;;  %v1957_v59 = vrot.slane %v10748_v24, %v10147_v5  ;;  %v9490_v24 = vmov 0  }
 0x26b   : > { %v2249_v9 = vsel %vm1673_vm3, %v2248_v18, %v2244_v17  ;;  %v10751_v43 = vmul.f32 0.00390625, %v1295_v46  ;;  %v10753_v61 = vmul.f32 0.00390625, %v1297_v40  ;;  %13857 = vst [vmem:[#allocation40_spill] sm:$0xff] %v10758_v15  ;;  %v2190_v10 = vsel %vm1701_vm7, %v2189_v26, %v2185_v55  ;;  %9298 = vset.pattern.permute.xlu0 %v9490_v24  ;;  %9299 = vset.pattern.permute.xlu1 %v9490_v24 }
 0x26c   : > { %13858 = vst [vmem:[#allocation133_spill] sm:$0xff] %v10765_v53  ;;  %v2199_v18 = vrot.slane %v10737_v16, %v10160_v11  ;;  %v1948_v46 = vsel %vm1694_vm6, %v1947_v29, %v1943_v44  ;;  %v10773_v40 = vmul.f32 0.00390625, %v10595_v19  ;;  %v2254_v60 = vsel %vm1680_vm4, %v2253_v51, %v2249_v9  ;;  %v13862_v19 = vld [vmem:[#allocation39_spill] sm:$0xff] }
 0x26d   : > { %13854 = vst [vmem:[#allocation131_spill] sm:$0xff] %v10751_v43  ;;  %13855 = vst [vmem:[#allocation132_spill] sm:$0xff] %v10753_v61  ;;  %v2258_v17 = vrot.slane %v10751_v43, %v10108_v48  ;;  %v2263_v28 = vrot.slane %v10753_v61, %v10122_v12  ;;  %v1953_v29 = vsel %vm1701_vm7, %v1952_v34, %v1948_v46  ;;  %v10787_v44 = vmul.f32 0.00390625, %v13862_v19  ;;  %v13864_v61 = vld [vmem:[#allocation42_spill] sm:$0xff]  ;;  %v13869_v48 = vld [vmem:[#allocation41_spill] sm:$0xff] }
 0x26e   : > { %13859 = vst [vmem:[#allocation134_spill] sm:$0xff] %v10773_v40  ;;  %v1299_v6 = vpop.xlane.xlu0 %1298  ;;  %v1301_v26 = vpop.xlane.xlu1 %1300  ;;  %v1962_v51 = vrot.slane %v10758_v15, %v10160_v11  ;;  %v2195_v9 = vsel %vm1708_vm8, %v2194_v56, %v2190_v10  ;;  %v10793_v12 = vmul.f32 0.00390625, %v13864_v61  ;;  %v10801_v34 = vmul.f32 0.00390625, %v10593_v14 }
 0x26f   : > { %v2259_v55 = vsel %vm1687_vm5, %v2258_v17, %v2254_v60  ;;  %v10781_v1 = vmul.f32 0.00390625, %v1299_v6  ;;  %v10783_v43 = vmul.f32 0.00390625, %v1301_v26  ;;  %13863 = vst [vmem:[#allocation39_spill] sm:$0xff] %v10787_v44  ;;  %v2204_v17 = vrot.slane %v10765_v53, %v10167_v63 }
 0x270   : > { %13865 = vst [vmem:[#allocation42_spill] sm:$0xff] %v10793_v12  ;;  %v2200_v60 = vsel %vm1715_vm9, %v2199_v18, %v2195_v9  ;;  %13866 = vst [vmem:[#allocation137_spill] sm:$0xff] %v10801_v34  ;;  %v2209_v46 = vrot.slane %v10773_v40, %v10190_v27  ;;  %v2264_v26 = vsel %vm1694_vm6, %v2263_v28, %v2259_v55  ;;  %v10818_v28 = vmul.f32 0.00390625, %v13869_v48 }
 0x271   : > { %13860 = vst [vmem:[#allocation135_spill] sm:$0xff] %v10781_v1  ;;  %13861 = vst [vmem:[#allocation136_spill] sm:$0xff] %v10783_v43  ;;  %v2268_v6 = vrot.slane %v10781_v1, %v10132_v0  ;;  %v2273_v61 = vrot.slane %v10783_v43, %v10147_v5  ;;  %v1958_v19 = vsel %vm1708_vm8, %v1957_v59, %v1953_v29  ;;  %v10821_v55 = vmul.f32 0.00390625, %v10626_v42  ;;  %v13872_v29 = vld [vmem:[#allocation44_spill] sm:$0xff] }
 0x272   : > { %v1303_v56 = vpop.xlane.xlu0 %1302  ;;  %v1305_v10 = vpop.xlane.xlu1 %1304  ;;  %v1967_v14 = vrot.slane %v10787_v44, %v10167_v63  ;;  %v1963_v0 = vsel %vm1715_vm9, %v1962_v51, %v1958_v19  ;;  %13870 = vst [vmem:[#allocation41_spill] sm:$0xff] %v10818_v28  ;;  %v1972_v59 = vrot.slane %v10793_v12, %v10190_v27  ;;  %v2214_v51 = vrot.slane %v10801_v34, %v10197_v39 }
 0x273   : > { %v2269_v18 = vsel %vm1701_vm7, %v2268_v6, %v2264_v26  ;;  %v10810_v9 = vmul.f32 0.00390625, %v1303_v56  ;;  %v10812_v1 = vmul.f32 0.00390625, %v1305_v10  ;;  %13871 = vst [vmem:[#allocation140_spill] sm:$0xff] %v10821_v55  ;;  %v10826_v6 = vmul.f32 0.00390625, %v13872_v29 }
 0x274   : > { %v2205_v26 = vsel %vm1722_vm10, %v2204_v17, %v2200_v60  ;;  %v2274_v10 = vsel %vm1708_vm8, %v2273_v61, %v2269_v18  ;;  %v10838_v29 = vmul.f32 0.00390625, %v10624_v25  ;;  %v1977_v5 = vrot.slane %v10818_v28, %v10197_v39  ;;  %v13877_v61 = vld [vmem:[#allocation43_spill] sm:$0xff] }
 0x275   : > { %13867 = vst [vmem:[#allocation138_spill] sm:$0xff] %v10810_v9  ;;  %13868 = vst [vmem:[#allocation139_spill] sm:$0xff] %v10812_v1  ;;  %v2278_v56 = vrot.slane %v10810_v9, %v10160_v11  ;;  %v2210_v48 = vsel %vm1729_vm11, %v2209_v46, %v2205_v26  ;;  %v2283_v42 = vrot.slane %v10812_v1, %v10167_v63  ;;  %v10849_v18 = vmul.f32 0.00390625, %v13877_v61  ;;  %v13879_v1 = vld [vmem:[#allocation27_spill] sm:$0xff] }
 0x276   : > { %13873 = vst [vmem:[#allocation44_spill] sm:$0xff] %v10826_v6  ;;  %v1307_v19 = vpop.xlane.xlu0 %1306  ;;  %v1309_v43 = vpop.xlane.xlu1 %1308  ;;  %13874 = vst [vmem:[#allocation141_spill] sm:$0xff] %v10838_v29  ;;  %v1968_v46 = vsel %vm1722_vm10, %v1967_v14, %v1963_v0  ;;  %v2219_v26 = vrot.slane %v10821_v55, %v10231_v49  ;;  %v10854_v25 = vmul.f32 0.00390625, %v13879_v1  ;;  %v1903_v0 = vrot.slane %v10679_v58, %v10231_v49 }
 0x277   : > { %v2279_v17 = vsel %vm1715_vm9, %v2278_v56, %v2274_v10  ;;  %v10841_v60 = vmul.f32 0.00390625, %v1307_v19  ;;  %v10843_v9 = vmul.f32 0.00390625, %v1309_v43  ;;  %13878 = vst [vmem:[#allocation43_spill] sm:$0xff] %v10849_v18  ;;  %v1973_v56 = vsel %vm1729_vm11, %v1972_v59, %v1968_v46 }
 0x278   : > { %13880 = vst [vmem:[#allocation27_spill] sm:$0xff] %v10854_v25  ;;  %v1982_v43 = vrot.slane %v10826_v6, %v10231_v49  ;;  %v2284_v14 = vsel %vm1722_vm10, %v2283_v42, %v2279_v17  ;;  %v2215_v1 = vsel %vm1736_vm12, %v2214_v51, %v2210_v48  ;;  %v2224_v59 = vrot.slane %v10838_v29, %v10248_v7 }
 0x279   : > { %13875 = vst [vmem:[#allocation142_spill] sm:$0xff] %v10841_v60  ;;  %13876 = vst [vmem:[#allocation143_spill] sm:$0xff] %v10843_v9  ;;  %v2288_v10 = vrot.slane %v10841_v60, %v10190_v27  ;;  %v2293_v19 = vrot.slane %v10843_v9, %v10197_v39  ;;  %v1987_v27 = vrot.slane %v10849_v18, %v10248_v7  ;;  %v9491_v53 = vmov 1983009808  }
 0x27a   : > { %v1311_v61 = vpop.xlane.xlu0 %1310  ;;  %v1313_v63 = vpop.xlane.xlu1 %1312  ;;  %v1978_v42 = vsel %vm1736_vm12, %v1977_v5, %v1973_v56  ;;  %v13883_v17 = vrot.slane %v10615_v4, %v10197_v39  ;;  %v2220_v48 = vsel %vm1743_vm13, %v2219_v26, %v2215_v1  ;;  %v3633_v40 = vunpack.c.l.s4 %v9491_v53  ;;  %v13897_v53 = vld [vmem:[#allocation47_spill] sm:$0xff] }
 0x27b   : > { %v2289_v46 = vsel %vm1729_vm11, %v2288_v10, %v2284_v14  ;;  %v10870_v11 = vmul.f32 0.00390625, %v1311_v61  ;;  %v10872_v60 = vmul.f32 0.00390625, %v1313_v63  ;;  %v1908_v10 = vrot.slane %v10854_v25, %v10248_v7 }
 0x27c   : > { %v1899_v51 = vsel %vm1736_vm12, %v13883_v17, %v10670_v41  ;;  %v1983_v61 = vsel %vm1743_vm13, %v1982_v43, %v1978_v42  ;;  %v2294_v5 = vsel %vm1736_vm12, %v2293_v19, %v2289_v46  ;;  %v2225_v41 = vsel %vm1750_vm14, %v2224_v59, %v2220_v48  ;;  %v2516_v43 = vld [vmem:[#allocation8 + $0x1e8] sm:$0xff]  ;;  %v2518_v19 = vld [vmem:[#allocation8 + $0x1f8] sm:$0xff]  ;;  %v2515_v46 = vld [vmem:[#allocation8 + $0x1e0] sm:$0xff] }
 0x27d   : > { %13881 = vst [vmem:[#allocation144_spill] sm:$0xff] %v10870_v11  ;;  %13882 = vst [vmem:[#allocation145_spill] sm:$0xff] %v10872_v60  ;;  %v2298_v63 = vrot.slane %v10870_v11, %v10231_v49  ;;  %v2303_v14 = vrot.slane %v10872_v60, %v10248_v7  ;;  %v1904_v56 = vsel %vm1743_vm13, %v1903_v0, %v1899_v51  ;;  %2541 = vmatprep.subr.mxu0 %v2516_v43  ;;  %v2517_v0 = vld [vmem:[#allocation8 + $0x1f0] sm:$0xff]  ;;  %v2512_v42 = vld [vmem:[#allocation8 + $0x1c8] sm:$0xff] }
 0x27e   : > { %v1988_v26 = vsel %vm1750_vm14, %v1987_v27, %v1983_v61  ;;  %v1909_v11 = vsel %vm1750_vm14, %v1908_v10, %v1904_v56  ;;  %2612 = vmatprep.subr.mxu1 %v2518_v19  ;;  %v2514_v59 = vld [vmem:[#allocation8 + $0x1d8] sm:$0xff]  ;;  %2542 = vmatpush1.msra.mxu0 %v2515_v46  ;;  %v2511_v27 = vld [vmem:[#allocation8 + $0x1c0] sm:$0xff]  ;;  %v2508_v51 = vld [vmem:[#allocation8 + $0x1a8] sm:$0xff]  ;;  %v3634_v21 = vunpack.c.0.s8 %v3633_v40 }
 0x27f   : > { %v2299_v9 = vsel %vm1743_vm13, %v2298_v63, %v2294_v5  ;;  %v2308_v60 = vsel %vm2305_vm15, %v2225_v41, %v1909_v11  ;;  %2543 = vmatprep.subr.mxu0 %v2512_v42  ;;  %v2510_v48 = vld [vmem:[#allocation8 + $0x1b8] sm:$0xff]  ;;  %v2507_v10 = vld [vmem:[#allocation8 + $0x1a0] sm:$0xff]  ;;  %v2509_v63 = vld [vmem:[#allocation8 + $0x1b0] sm:$0xff] }
 0x280   : > { %v2304_v1 = vsel %vm1750_vm14, %v2303_v14, %v2299_v9  ;;  %v2513_v9 = vld [vmem:[#allocation8 + $0x1d0] sm:$0xff]  ;;  %2544 = vmatpush1.msra.mxu0 %v2511_v27  ;;  %v2504_v11 = vld [vmem:[#allocation8 + $0x188] sm:$0xff]  ;;  %v2503_v14 = vld [vmem:[#allocation8 + $0x180] sm:$0xff] }
 0x281   : > { %v2309_v17 = vsel %vm2305_vm15, %v2304_v1, %v1988_v26  ;;  %2545 = vmatprep.subr.mxu0 %v2508_v51  ;;  %v2505_v61 = vld [vmem:[#allocation8 + $0x190] sm:$0xff]  ;;  %v2500_v5 = vld [vmem:[#allocation8 + $0x168] sm:$0xff]  ;;  %v2502_v56 = vld [vmem:[#allocation8 + $0x178] sm:$0xff] }
 0x282   : > { %2448 = vmatprep.mubr.f32.mxu1 %v2309_v17  ;;  %2546 = vmatpush1.msra.mxu0 %v2507_v10  ;;  %v2499_v41 = vld [vmem:[#allocation8 + $0x160] sm:$0xff]  ;;  %v2501_v26 = vld [vmem:[#allocation8 + $0x170] sm:$0xff]  ;;  %v2496_v1 = vld [vmem:[#allocation8 + $0x148] sm:$0xff] }
 0x283   : > { %2449 = vmatmul.mubr.f32.vlgmr.msra.gmra.mxu1 %v2308_v60  ;;  %v2506_v60 = vld [vmem:[#allocation8 + $0x198] sm:$0xff]  ;;  %2547 = vmatprep.subr.mxu0 %v2504_v11  ;;  %v2495_v43 = vld [vmem:[#allocation8 + $0x140] sm:$0xff]  ;;  %v2497_v19 = vld [vmem:[#allocation8 + $0x150] sm:$0xff] }
 0x284   : > { %2613 = vmatpush1.msra.mxu1 %v2517_v0  ;;  %2548 = vmatpush1.msra.mxu0 %v2503_v14  ;;  %v2498_v17 = vld [vmem:[#allocation8 + $0x158] sm:$0xff]  ;;  %v2492_v46 = vld [vmem:[#allocation8 + $0x128] sm:$0xff]  ;;  %v2491_v42 = vld [vmem:[#allocation8 + $0x120] sm:$0xff] }
 0x285   : > { %2614 = vmatprep.subr.mxu1 %v2514_v59  ;;  %2549 = vmatprep.subr.mxu0 %v2500_v5  ;;  %v2494_v0 = vld [vmem:[#allocation8 + $0x138] sm:$0xff]  ;;  %v2493_v59 = vld [vmem:[#allocation8 + $0x130] sm:$0xff]  ;;  %v2488_v27 = vld [vmem:[#allocation8 + $0x108] sm:$0xff] }
 0x286   : > { %2615 = vmatpush1.msra.mxu1 %v2513_v9  ;;  %2550 = vmatpush1.msra.mxu0 %v2499_v41  ;;  %v2490_v9 = vld [vmem:[#allocation8 + $0x118] sm:$0xff]  ;;  %v2487_v51 = vld [vmem:[#allocation8 + $0x100] sm:$0xff]  ;;  %v2484_v10 = vld [vmem:[#allocation8 + $0xe8] sm:$0xff] }
 0x287   : > { %2616 = vmatprep.subr.mxu1 %v2510_v48  ;;  %2551 = vmatprep.subr.mxu0 %v2496_v1  ;;  %v2489_v48 = vld [vmem:[#allocation8 + $0x110] sm:$0xff]  ;;  %v2483_v11 = vld [vmem:[#allocation8 + $0xe0] sm:$0xff]  ;;  %v2480_v14 = vld [vmem:[#allocation8 + $0xc8] sm:$0xff] }
 0x288   : > { %2617 = vmatpush1.msra.mxu1 %v2509_v63  ;;  %2552 = vmatpush1.msra.mxu0 %v2495_v43  ;;  %v2486_v63 = vld [vmem:[#allocation8 + $0xf8] sm:$0xff]  ;;  %v2479_v5 = vld [vmem:[#allocation8 + $0xc0] sm:$0xff]  ;;  %v2476_v41 = vld [vmem:[#allocation8 + $0xa8] sm:$0xff] }
 0x289   : > { %2618 = vmatprep.subr.mxu1 %v2506_v60  ;;  %2553 = vmatprep.subr.mxu0 %v2492_v46  ;;  %v2485_v60 = vld [vmem:[#allocation8 + $0xf0] sm:$0xff]  ;;  %v2475_v1 = vld [vmem:[#allocation8 + $0xa0] sm:$0xff]  ;;  %v2472_v43 = vld [vmem:[#allocation8 + $0x88] sm:$0xff] }
 0x28a   : > { %2619 = vmatpush1.msra.mxu1 %v2505_v61  ;;  %2554 = vmatpush1.msra.mxu0 %v2491_v42  ;;  %v2482_v61 = vld [vmem:[#allocation8 + $0xd8] sm:$0xff]  ;;  %v2471_v46 = vld [vmem:[#allocation8 + $0x80] sm:$0xff]  ;;  %v2468_v42 = vld [vmem:[#allocation8 + $0x68] sm:$0xff] }
 0x28b   : > { %2620 = vmatprep.subr.mxu1 %v2502_v56  ;;  %2555 = vmatprep.subr.mxu0 %v2488_v27  ;;  %v2481_v56 = vld [vmem:[#allocation8 + $0xd0] sm:$0xff]  ;;  %v2467_v27 = vld [vmem:[#allocation8 + $0x60] sm:$0xff] }
 0x28c   : > { %2621 = vmatpush1.msra.mxu1 %v2501_v26  ;;  %2556 = vmatpush1.msra.mxu0 %v2487_v51  ;;  %v2478_v26 = vld [vmem:[#allocation8 + $0xb8] sm:$0xff]  ;;  %v2464_v51 = vld [vmem:[#allocation8 + $0x48] sm:$0xff] }
 0x28d   : > { %2622 = vmatprep.subr.mxu1 %v2498_v17  ;;  %2557 = vmatprep.subr.mxu0 %v2484_v10  ;;  %v2477_v17 = vld [vmem:[#allocation8 + $0xb0] sm:$0xff]  ;;  %v2463_v10 = vld [vmem:[#allocation8 + $0x40] sm:$0xff] }
 0x28e   : > { %2623 = vmatpush1.msra.mxu1 %v2497_v19  ;;  %2558 = vmatpush1.msra.mxu0 %v2483_v11  ;;  %v2474_v19 = vld [vmem:[#allocation8 + $0x98] sm:$0xff]  ;;  %v2460_v11 = vld [vmem:[#allocation8 + $0x28] sm:$0xff] }
 0x28f   : > { %2624 = vmatprep.subr.mxu1 %v2494_v0  ;;  %2559 = vmatprep.subr.mxu0 %v2480_v14  ;;  %v2473_v0 = vld [vmem:[#allocation8 + $0x90] sm:$0xff]  ;;  %v2459_v14 = vld [vmem:[#allocation8 + $0x20] sm:$0xff] }
 0x290   : > { %2625 = vmatpush1.msra.mxu1 %v2493_v59  ;;  %2560 = vmatpush1.msra.mxu0 %v2479_v5  ;;  %v2470_v59 = vld [vmem:[#allocation8 + $0x78] sm:$0xff]  ;;  %v2456_v5 = vld [vmem:[#allocation8 + $0x8] sm:$0xff] }
 0x291   : > { %2626 = vmatprep.subr.mxu1 %v2490_v9  ;;  %2561 = vmatprep.subr.mxu0 %v2476_v41  ;;  %v2469_v9 = vld [vmem:[#allocation8 + $0x70] sm:$0xff]  ;;  %v2455_v41 = vld [vmem:[#allocation8] sm:$0xff] }
 0x292   : > { %2627 = vmatpush1.msra.mxu1 %v2489_v48  ;;  %2562 = vmatpush1.msra.mxu0 %v2475_v1  ;;  %v2466_v48 = vld [vmem:[#allocation8 + $0x58] sm:$0xff]  ;;  %v9489_v1 = vmov 0.0  }
 0x293   : > { %2628 = vmatprep.subr.mxu1 %v2486_v63  ;;  %2563 = vmatprep.subr.mxu0 %v2472_v43  ;;  %v2465_v63 = vld [vmem:[#allocation8 + $0x50] sm:$0xff] }
 0x294   : > { %2629 = vmatpush1.msra.mxu1 %v2485_v60  ;;  %2564 = vmatpush1.msra.mxu0 %v2471_v46  ;;  %v2462_v60 = vld [vmem:[#allocation8 + $0x38] sm:$0xff]  ;;  %v9127_v46 = vld [vmem:[%s13470_s2] ss:$0 sm:$0xff] }
 0x295   : > { %2630 = vmatprep.subr.mxu1 %v2482_v61  ;;  %2565 = vmatprep.subr.mxu0 %v2468_v42  ;;  %v2461_v61 = vld [vmem:[#allocation8 + $0x30] sm:$0xff] }
 0x296   : > { %2631 = vmatpush1.msra.mxu1 %v2481_v56  ;;  %2566 = vmatpush1.msra.mxu0 %v2467_v27  ;;  %v2458_v56 = vld [vmem:[#allocation8 + $0x18] sm:$0xff] }
 0x297   : > { %2632 = vmatprep.subr.mxu1 %v2478_v26  ;;  %2567 = vmatprep.subr.mxu0 %v2464_v51  ;;  %v2457_v26 = vld [vmem:[#allocation8 + $0x10] sm:$0xff] }
 0x298   : > { %2633 = vmatpush1.msra.mxu1 %v2477_v17  ;;  %2568 = vmatpush1.msra.mxu0 %v2463_v10 }
 0x299   : > { %2634 = vmatprep.subr.mxu1 %v2474_v19  ;;  %2569 = vmatprep.subr.mxu0 %v2460_v11 }
 0x29a   : > { %2635 = vmatpush1.msra.mxu1 %v2473_v0  ;;  %2570 = vmatpush1.msra.mxu0 %v2459_v14 }
 0x29b   : > { %2636 = vmatprep.subr.mxu1 %v2470_v59  ;;  %2571 = vmatprep.subr.mxu0 %v2456_v5 }
 0x29c   : > { %2637 = vmatpush1.msra.mxu1 %v2469_v9  ;;  %2572 = vmatpush1.msra.mxu0 %v2455_v41 }
 0x29d   : > { %2638 = vmatprep.subr.mxu1 %v2466_v48  ;;  %2605 = vmatprep.mubr.f32.mxu0 %v9489_v1  ;;  %v13884_v48 = vld [vmem:[#allocation45_spill] sm:$0xff] }
 0x29e   : > { %2639 = vmatpush1.msra.mxu1 %v2465_v63  ;;  %2676 = vmatprep.mubr.f32.mxu1 %v9489_v1  ;;  %v10903_v10 = vsub.s32 0, %v13884_v48  ;;  %v10908_v63 = vld [vmem:[%s13472_s4] sm:$0xf]  ;;  %v2531_v5 = vsub.s32 2, %v13884_v48 }
 0x29f   : > { %2640 = vmatprep.subr.mxu1 %v2462_v60 }
 0x2a0   : > { %2641 = vmatpush1.msra.mxu1 %v2461_v61  ;;  %v2524_v11 = vrot.slane %v10908_v63, %v10903_v10 }
 0x2a1   : > { %2642 = vmatprep.subr.mxu1 %v2458_v56  ;;  %v2532_v56 = vrot.slane %v10908_v63, %v2531_v5 }
 0x2a2   : > { %2643 = vmatpush1.msra.mxu1 %v2457_v26 }
 0x303   : > { %v9168_v17 = vpop.f32.mrf.mxu0 }
 0x305   : > { %v9169_v43 = vpop.f32.mrf.mxu0 }
 0x306   : > { %v9170_v19 = vadd.f32 %v9169_v43, %v9168_v17 }
 0x308   : > { %v2381_v59 = vadd.f32 %v9170_v19, %v9127_v46 }
 0x343   : > { %v9203_v0 = vpop.f32.mrf.mxu1 }
 0x345   : > { %v9204_v42 = vpop.f32.mrf.mxu1 }
 0x346   : > { %v9205_v27 = vadd.f32 %v9204_v42, %v9203_v0 }
 0x348   : > { %v2451_v9 = vadd.f32 %v9205_v27, %v2381_v59 }
 0x34a   : > { %v2454_v51 = vmax.f32 %v2451_v9, 0.0  ;;  %v10917_v9 = vsub.s32 1, %v13884_v48 }
 0x34c   : > { %2606 = vmatmul.mubr.f32.vlgmr.msra.gmra.mxu0 %v2454_v51  ;;  %2677 = vmatmul.mubr.f32.vlgmr.msra.gmra.mxu1 %v2454_v51 }
 0x40c   : > { %v2607_v60 = vpop.f32.mrf.mxu0  ;;  %v2678_v41 = vpop.f32.mrf.mxu1 }
 0x40d   : > { %v2608_v14 = vadd.f32 %v2607_v60, %v2524_v11  ;;  %v2679_v17 = vadd.f32 %v2678_v41, %v2532_v56  ;;  %v2528_v11 = vrot.slane %v10908_v63, %v10917_v9 }
 0x40e   : > { %v2609_v60 = vpop.f32.mrf.mxu0 }
 0x40f   : > { %v9128_v61 = vmul.f32 -1.442695, %v2608_v14  ;;  %v9130_v43 = vmul.f32 -1.442695, %v2679_v17  ;;  %v2610_v14 = vadd.f32 %v2609_v60, %v2528_v11  ;;  %v2680_v17 = vpop.f32.mrf.mxu1 }
 0x411   : > { %9300 = vpow2.f32 %v9128_v61  ;;  %v9129_v61 = vmul.f32 -1.442695, %v2610_v14 }
 0x41e   : > { %v9301_v26 = vpop.eup %9300 }
 0x41f   : > { %v2695_v1 = vadd.f32 1.0, %v9301_v26  ;;  %v2535_v26 = vsub.s32 3, %v13884_v48 }
 0x421   : > { %9302 = vrcp.f32 %v2695_v1  ;;  %v2536_v1 = vrot.slane %v10908_v63, %v2535_v26 }
 0x422   : > { %9304 = vpow2.f32 %v9130_v43 }
 0x423   : > { %v2681_v43 = vadd.f32 %v2680_v17, %v2536_v1 }
 0x42e   : > { %v9303_v19 = vpop.eup %9302 }
 0x42f   : > { %v2714_v46 = vrot.slane %v9303_v19, %v10903_v10  ;;  %v9305_v0 = vpop.eup %9304  ;;  %v2982_v51 = vrot.slane %v9303_v19, %v10917_v9 }
 0x430   : > { %v2697_v42 = vadd.f32 1.0, %v9305_v0  ;;  %v9131_v0 = vmul.f32 -1.442695, %v2681_v43 }
 0x431   : > { %2720 = vbcast.lane.b32.xlu1 %v2714_v46, 264  ;;  %2716 = vbcast.lane.b32.xlu0 %v2714_v46, 256 }
 0x432   : > { %9306 = vrcp.f32 %v2697_v42 }
 0x433   : > { %9308 = vpow2.f32 %v9129_v61 }
 0x435   : > { %2724 = vbcast.lane.b32.xlu1 %v2714_v46, 272  ;;  %2732 = vbcast.lane.b32.xlu0 %v2714_v46, 288 }
 0x439   : > { %2728 = vbcast.lane.b32.xlu1 %v2714_v46, 280  ;;  %2740 = vbcast.lane.b32.xlu0 %v2714_v46, 304 }
 0x43d   : > { %2736 = vbcast.lane.b32.xlu1 %v2714_v46, 296  ;;  %2748 = vbcast.lane.b32.xlu0 %v2714_v46, 320 }
 0x43f   : > { %v9307_v59 = vpop.eup %9306 }
 0x440   : > { %v2848_v27 = vrot.slane %v9307_v59, %v10903_v10  ;;  %v3116_v5 = vrot.slane %v9307_v59, %v10917_v9  ;;  %v9309_v56 = vpop.eup %9308 }
 0x441   : > { %2744 = vbcast.lane.b32.xlu1 %v2714_v46, 312  ;;  %2756 = vbcast.lane.b32.xlu0 %v2714_v46, 336  ;;  %v2696_v41 = vadd.f32 1.0, %v9309_v56 }
 0x443   : > { %9310 = vrcp.f32 %v2696_v41 }
 0x444   : > { %9312 = vpow2.f32 %v9131_v0 }
 0x445   : > { %2752 = vbcast.lane.b32.xlu1 %v2714_v46, 328  ;;  %2764 = vbcast.lane.b32.xlu0 %v2714_v46, 352 }
 0x449   : > { %2760 = vbcast.lane.b32.xlu1 %v2714_v46, 344  ;;  %2772 = vbcast.lane.b32.xlu0 %v2714_v46, 368 }
 0x44d   : > { %2768 = vbcast.lane.b32.xlu1 %v2714_v46, 360  ;;  %2850 = vbcast.lane.b32.xlu0 %v2848_v27, 256 }
 0x451   : > { %2776 = vbcast.lane.b32.xlu1 %v2714_v46, 376  ;;  %2858 = vbcast.lane.b32.xlu0 %v2848_v27, 272 }
 0x455   : > { %2854 = vbcast.lane.b32.xlu1 %v2848_v27, 264  ;;  %2866 = vbcast.lane.b32.xlu0 %v2848_v27, 288 }
 0x459   : > { %2862 = vbcast.lane.b32.xlu1 %v2848_v27, 280  ;;  %2874 = vbcast.lane.b32.xlu0 %v2848_v27, 304 }
 0x45d   : > { %2870 = vbcast.lane.b32.xlu1 %v2848_v27, 296  ;;  %2882 = vbcast.lane.b32.xlu0 %v2848_v27, 320 }
 0x461   : > { %2878 = vbcast.lane.b32.xlu1 %v2848_v27, 312  ;;  %2890 = vbcast.lane.b32.xlu0 %v2848_v27, 336 }
 0x465   : > { %2886 = vbcast.lane.b32.xlu1 %v2848_v27, 328  ;;  %2898 = vbcast.lane.b32.xlu0 %v2848_v27, 352 }
 0x469   : > { %2894 = vbcast.lane.b32.xlu1 %v2848_v27, 344  ;;  %2906 = vbcast.lane.b32.xlu0 %v2848_v27, 368 }
 0x46d   : > { %2902 = vbcast.lane.b32.xlu1 %v2848_v27, 360  ;;  %2984 = vbcast.lane.b32.xlu0 %v2982_v51, 256 }
 0x471   : > { %2910 = vbcast.lane.b32.xlu1 %v2848_v27, 376  ;;  %2992 = vbcast.lane.b32.xlu0 %v2982_v51, 272  ;;  %v10933_v27 = vpop.eup %9310 }
 0x472   : > { %v2781_v11 = vrot.slane %v10933_v27, %v10903_v10  ;;  %v9313_v41 = vpop.eup %9312  ;;  %v11013_v23 = vrot.slane %v10933_v27, %v10917_v9 }
 0x473   : > { %v2698_v17 = vadd.f32 1.0, %v9313_v41 }
 0x475   : > { %2988 = vbcast.lane.b32.xlu1 %v2982_v51, 264  ;;  %3000 = vbcast.lane.b32.xlu0 %v2982_v51, 288  ;;  %9314 = vrcp.f32 %v2698_v17 }
 0x479   : > { %2996 = vbcast.lane.b32.xlu1 %v2982_v51, 280  ;;  %3008 = vbcast.lane.b32.xlu0 %v2982_v51, 304 }
 0x47d   : > { %3004 = vbcast.lane.b32.xlu1 %v2982_v51, 296  ;;  %3016 = vbcast.lane.b32.xlu0 %v2982_v51, 320 }
 0x481   : > { %3012 = vbcast.lane.b32.xlu1 %v2982_v51, 312  ;;  %3024 = vbcast.lane.b32.xlu0 %v2982_v51, 336 }
 0x482   : > { %v10969_v18 = vpop.eup %9314 }
 0x483   : > { %v2915_v6 = vrot.slane %v10969_v18, %v10903_v10 }
 0x485   : > { %3020 = vbcast.lane.b32.xlu1 %v2982_v51, 328  ;;  %3032 = vbcast.lane.b32.xlu0 %v2982_v51, 352 }
 0x489   : > { %3028 = vbcast.lane.b32.xlu1 %v2982_v51, 344  ;;  %3040 = vbcast.lane.b32.xlu0 %v2982_v51, 368 }
 0x48d   : > { %3036 = vbcast.lane.b32.xlu1 %v2982_v51, 360  ;;  %3118 = vbcast.lane.b32.xlu0 %v3116_v5, 256 }
 0x491   : > { %3044 = vbcast.lane.b32.xlu1 %v2982_v51, 376  ;;  %3126 = vbcast.lane.b32.xlu0 %v3116_v5, 272 }
 0x495   : > { %3122 = vbcast.lane.b32.xlu1 %v3116_v5, 264  ;;  %3134 = vbcast.lane.b32.xlu0 %v3116_v5, 288 }
 0x499   : > { %3130 = vbcast.lane.b32.xlu1 %v3116_v5, 280  ;;  %3142 = vbcast.lane.b32.xlu0 %v3116_v5, 304 }
 0x49d   : > { %3138 = vbcast.lane.b32.xlu1 %v3116_v5, 296  ;;  %3150 = vbcast.lane.b32.xlu0 %v3116_v5, 320 }
 0x4a1   : > { %3146 = vbcast.lane.b32.xlu1 %v3116_v5, 312  ;;  %3158 = vbcast.lane.b32.xlu0 %v3116_v5, 336 }
 0x4a3   : > { %v10925_v19 = vpop.permute.xlu1 %2720  ;;  %v10927_v46 = vpop.permute.xlu0 %2716 }
 0x4a4   : > { %v3375_v50 = vmul.f32 %v10927_v46, %v13894_v62 }
 0x4a5   : > { %3154 = vbcast.lane.b32.xlu1 %v3116_v5, 328  ;;  %3166 = vbcast.lane.b32.xlu0 %v3116_v5, 352 }
 0x4a6   : > { %v3631_v40 = vcombine.high %v3375_v50, %v3375_v50 }
 0x4a7   : > { %v10929_v42 = vpop.permute.xlu1 %2724  ;;  %v10931_v59 = vpop.permute.xlu0 %2732 }
 0x4a9   : > { %3162 = vbcast.lane.b32.xlu1 %v3116_v5, 344  ;;  %3174 = vbcast.lane.b32.xlu0 %v3116_v5, 368 }
 0x4ab   : > { %v10935_v63 = vpop.permute.xlu1 %2728  ;;  %v10937_v51 = vpop.permute.xlu0 %2740 }
 0x4ad   : > { %3170 = vbcast.lane.b32.xlu1 %v3116_v5, 360  ;;  %2783 = vbcast.lane.b32.xlu0 %v2781_v11, 256 }
 0x4af   : > { %v10941_v60 = vpop.permute.xlu1 %2736  ;;  %v10943_v14 = vpop.permute.xlu0 %2748 }
 0x4b1   : > { %3178 = vbcast.lane.b32.xlu1 %v3116_v5, 376  ;;  %2791 = vbcast.lane.b32.xlu0 %v2781_v11, 272 }
 0x4b3   : > { %v10945_v61 = vpop.permute.xlu1 %2744  ;;  %v10947_v56 = vpop.permute.xlu0 %2756 }
 0x4b5   : > { %2787 = vbcast.lane.b32.xlu1 %v2781_v11, 264  ;;  %2799 = vbcast.lane.b32.xlu0 %v2781_v11, 288 }
 0x4b7   : > { %v10949_v26 = vpop.permute.xlu1 %2752  ;;  %v10951_v1 = vpop.permute.xlu0 %2764 }
 0x4b9   : > { %2795 = vbcast.lane.b32.xlu1 %v2781_v11, 280  ;;  %2807 = vbcast.lane.b32.xlu0 %v2781_v11, 304 }
 0x4bb   : > { %v10953_v43 = vpop.permute.xlu1 %2760  ;;  %v10955_v0 = vpop.permute.xlu0 %2772 }
 0x4bd   : > { %2803 = vbcast.lane.b32.xlu1 %v2781_v11, 296  ;;  %2815 = vbcast.lane.b32.xlu0 %v2781_v11, 320 }
 0x4bf   : > { %v10957_v5 = vpop.permute.xlu1 %2768  ;;  %v10959_v7 = vpop.permute.xlu0 %2850 }
 0x4c1   : > { %2811 = vbcast.lane.b32.xlu1 %v2781_v11, 312  ;;  %2823 = vbcast.lane.b32.xlu0 %v2781_v11, 336 }
 0x4c3   : > { %v10961_v49 = vpop.permute.xlu1 %2776  ;;  %v10963_v39 = vpop.permute.xlu0 %2858 }
 0x4c5   : > { %2819 = vbcast.lane.b32.xlu1 %v2781_v11, 328  ;;  %2831 = vbcast.lane.b32.xlu0 %v2781_v11, 352 }
 0x4c7   : > { %v10965_v41 = vpop.permute.xlu1 %2854  ;;  %v10967_v45 = vpop.permute.xlu0 %2866 }
 0x4c9   : > { %2827 = vbcast.lane.b32.xlu1 %v2781_v11, 344  ;;  %2839 = vbcast.lane.b32.xlu0 %v2781_v11, 368 }
 0x4cb   : > { %v10971_v17 = vpop.permute.xlu1 %2862  ;;  %v10973_v28 = vpop.permute.xlu0 %2874 }
 0x4cd   : > { %2835 = vbcast.lane.b32.xlu1 %v2781_v11, 360  ;;  %2917 = vbcast.lane.b32.xlu0 %v2915_v6, 256 }
 0x4cf   : > { %v10977_v44 = vpop.permute.xlu1 %2870  ;;  %v10979_v12 = vpop.permute.xlu0 %2882 }
 0x4d1   : > { %2843 = vbcast.lane.b32.xlu1 %v2781_v11, 376  ;;  %2925 = vbcast.lane.b32.xlu0 %v2915_v6, 272 }
 0x4d3   : > { %v10981_v15 = vpop.permute.xlu1 %2878  ;;  %v10983_v30 = vpop.permute.xlu0 %2890 }
 0x4d5   : > { %2921 = vbcast.lane.b32.xlu1 %v2915_v6, 264  ;;  %2933 = vbcast.lane.b32.xlu0 %v2915_v6, 288 }
 0x4d7   : > { %v10985_v54 = vpop.permute.xlu1 %2886  ;;  %v10987_v10 = vpop.permute.xlu0 %2898 }
 0x4d8   : > { %13885 = vst [vmem:[#allocation45_spill] sm:$0xff] %v10987_v10 }
 0x4d9   : > { %2929 = vbcast.lane.b32.xlu1 %v2915_v6, 280  ;;  %2941 = vbcast.lane.b32.xlu0 %v2915_v6, 304 }
 0x4db   : > { %v10989_v13 = vpop.permute.xlu1 %2894  ;;  %v10991_v29 = vpop.permute.xlu0 %2906 }
 0x4dc   : > { %13886 = vst [vmem:[#allocation146_spill] sm:$0xff] %v10989_v13  ;;  %13887 = vst [vmem:[#allocation147_spill] sm:$0xff] %v10991_v29 }
 0x4dd   : > { %2937 = vbcast.lane.b32.xlu1 %v2915_v6, 296  ;;  %2949 = vbcast.lane.b32.xlu0 %v2915_v6, 320 }
 0x4df   : > { %v10993_v24 = vpop.permute.xlu1 %2902  ;;  %v10995_v11 = vpop.permute.xlu0 %2984 }
 0x4e0   : > { %13888 = vst [vmem:[#allocation148_spill] sm:$0xff] %v10993_v24  ;;  %13889 = vst [vmem:[#allocation149_spill] sm:$0xff] %v10995_v11  ;;  %v13904_v11 = vld [vmem:[#allocation53_spill] sm:$0xff] }
 0x4e1   : > { %2945 = vbcast.lane.b32.xlu1 %v2915_v6, 312  ;;  %2957 = vbcast.lane.b32.xlu0 %v2915_v6, 336 }
 0x4e3   : > { %v10997_v34 = vpop.permute.xlu1 %2910  ;;  %v10999_v55 = vpop.permute.xlu0 %2992 }
 0x4e4   : > { %13890 = vst [vmem:[#allocation150_spill] sm:$0xff] %v10997_v34  ;;  %13891 = vst [vmem:[#allocation151_spill] sm:$0xff] %v10999_v55  ;;  %v3376_v55 = vmul.f32 %v10925_v19, %v13897_v53  ;;  %v13901_v34 = vld [vmem:[#allocation55_spill] sm:$0xff] }
 0x4e5   : > { %2953 = vbcast.lane.b32.xlu1 %v2915_v6, 328  ;;  %2965 = vbcast.lane.b32.xlu0 %v2915_v6, 352  ;;  %v3379_v19 = vmul.f32 %v10931_v59, %v13901_v34  ;;  %v3378_v34 = vmul.f32 %v10935_v63, %v13904_v11  ;;  %v13905_v59 = vld [vmem:[#allocation59_spill] sm:$0xff] }
 0x4e6   : > { %v3648_v46 = vcombine.high %v3376_v55, %v3376_v55 }
 0x4e7   : > { %v11001_v52 = vpop.permute.xlu1 %2988  ;;  %v11003_v16 = vpop.permute.xlu0 %3000  ;;  %v3682_v29 = vcombine.high %v3378_v34, %v3378_v34 }
 0x4e8   : > { %13892 = vst [vmem:[#allocation152_spill] sm:$0xff] %v11001_v52  ;;  %13893 = vst [vmem:[#allocation153_spill] sm:$0xff] %v11003_v16  ;;  %v11018_v52 = vsub.s32 %v3634_v21, %v13884_v48 }
 0x4e9   : > { %2961 = vbcast.lane.b32.xlu1 %v2915_v6, 344  ;;  %2973 = vbcast.lane.b32.xlu0 %v2915_v6, 368 }
 0x4ea   : > { %v3655_v27 = vrot.slane %v3376_v55, %v11018_v52  ;;  %v3638_v21 = vrot.slane %v3375_v50, %v11018_v52  ;;  %v3645_v48 = vrot.slane %v3631_v40, %v11018_v52  ;;  %v3381_v40 = vmul.f32 %v10937_v51, %v13905_v59 }
 0x4eb   : > { %v11007_v32 = vpop.permute.xlu1 %2996  ;;  %v11009_v3 = vpop.permute.xlu0 %3008  ;;  %v3706_v24 = vrot.slane %v3379_v19, %v11018_v52  ;;  %v11057_v51 = vrot.slane %v10969_v18, %v10917_v9  ;;  %v3689_v59 = vrot.slane %v3378_v34, %v11018_v52 }
 0x4ec   : > { %13895 = vst [vmem:[#allocation49_spill] sm:$0xff] %v11007_v32  ;;  %13896 = vst [vmem:[#allocation154_spill] sm:$0xff] %v11009_v3  ;;  %v13900_v3 = vld [vmem:[#allocation51_spill] sm:$0xff]  ;;  %v3646_v50 = vcombine.high %v3638_v21, %v3638_v21  ;;  %v3740_v34 = vrot.slane %v3381_v40, %v11018_v52 }
 0x4ed   : > { %2969 = vbcast.lane.b32.xlu1 %v2915_v6, 360  ;;  %3051 = vbcast.lane.b32.xlu0 %v11013_v23, 256  ;;  %v3377_v32 = vmul.f32 %v10929_v42, %v13900_v3  ;;  %v3663_v3 = vcombine.high %v3655_v27, %v3655_v27  ;;  %v3699_v42 = vcombine.high %v3379_v19, %v3379_v19 }
 0x4ee   : > { %v3733_v19 = vcombine.high %v3381_v40, %v3381_v40  ;;  %v3714_v9 = vcombine.high %v3706_v24, %v3706_v24 }
 0x4ef   : > { %v11021_v16 = vpop.permute.xlu1 %3004  ;;  %v11023_v62 = vpop.permute.xlu0 %3016  ;;  %v3665_v25 = vcombine.high %v3377_v32, %v3377_v32  ;;  %v3672_v55 = vrot.slane %v3377_v32, %v11018_v52  ;;  %v11051_v4 = vcombine.low %v3655_v27, %v3663_v3  ;;  %v3713_v11 = vrot.slane %v3699_v42, %v11018_v52  ;;  %v13910_v3 = vld [vmem:[#allocation63_spill] sm:$0xff] }
 0x4f0   : > { %13898 = vst [vmem:[#allocation47_spill] sm:$0xff] %v11021_v16  ;;  %13899 = vst [vmem:[#allocation155_spill] sm:$0xff] %v11023_v62  ;;  %v3662_v62 = vrot.slane %v3648_v46, %v11018_v52  ;;  %v3383_v42 = vmul.f32 %v10943_v14, %v13910_v3  ;;  %v3697_v14 = vcombine.high %v3689_v59, %v3689_v59 }
 0x4f1   : > { %2977 = vbcast.lane.b32.xlu1 %v2915_v6, 376  ;;  %3059 = vbcast.lane.b32.xlu0 %v11013_v23, 272  ;;  %v3647_v6 = vcombine.high %v3645_v48, %v3645_v48  ;;  %v3679_v32 = vrot.slane %v3665_v25, %v11018_v52  ;;  %13908 = vst [vmem:[#allocation156_spill] sm:$0xff] %v11051_v4  ;;  %v13918_v4 = vld [vmem:[#allocation67_spill] sm:$0xff] }
 0x4f2   : > { %v3680_v63 = vcombine.high %v3672_v55, %v3672_v55  ;;  %v5807_v25 = vcombine.low %v3638_v21, %v3646_v50  ;;  %v3715_v21 = vcombine.high %v3713_v11, %v3713_v11  ;;  %v3747_v3 = vrot.slane %v3733_v19, %v11018_v52 }
 0x4f3   : > { %v11033_v53 = vpop.permute.xlu1 %3012  ;;  %v11035_v16 = vpop.permute.xlu0 %3024  ;;  %v5808_v27 = vcombine.low %v3645_v48, %v3647_v6  ;;  %v3681_v18 = vcombine.high %v3679_v32, %v3679_v32  ;;  %v3696_v48 = vrot.slane %v3682_v29, %v11018_v52 }
 0x4f4   : > { %13902 = vst [vmem:[#allocation51_spill] sm:$0xff] %v11033_v53  ;;  %13903 = vst [vmem:[#allocation55_spill] sm:$0xff] %v11035_v16  ;;  %v3664_v53 = vcombine.high %v3662_v62, %v3662_v62  ;;  %v5815_v40 = vrot.slane %v5807_v25, %v11018_v52  ;;  %v11096_v25 = vcombine.low %v3713_v11, %v3715_v21 }
 0x4f5   : > { %3055 = vbcast.lane.b32.xlu1 %v11013_v23, 264  ;;  %3067 = vbcast.lane.b32.xlu0 %v11013_v23, 288  ;;  %v5822_v29 = vrot.slane %v5808_v27, %v11018_v52  ;;  %v3698_v19 = vcombine.high %v3696_v48, %v3696_v48 }
 0x4f6   : > { %v11069_v10 = vcombine.low %v3662_v62, %v3664_v53  ;;  %v13914_v62 = vld [vmem:[#allocation61_spill] sm:$0xff]  ;;  %13917 = vst [vmem:[#allocation159_spill] sm:$0xff] %v11096_v25 }
 0x4f7   : > { %v11045_v16 = vpop.permute.xlu1 %3020  ;;  %v11047_v46 = vpop.permute.xlu0 %3032  ;;  %v3382_v53 = vmul.f32 %v10945_v61, %v13914_v62  ;;  %v3774_v61 = vrot.slane %v3383_v42, %v11018_v52  ;;  %v11119_v25 = vcombine.low %v3696_v48, %v3698_v19 }
 0x4f8   : > { %13906 = vst [vmem:[#allocation53_spill] sm:$0xff] %v11045_v16  ;;  %13907 = vst [vmem:[#allocation59_spill] sm:$0xff] %v11047_v46  ;;  %v13909_v46 = vld [vmem:[#allocation57_spill] sm:$0xff] }
 0x4f9   : > { %3063 = vbcast.lane.b32.xlu1 %v11013_v23, 280  ;;  %v3380_v16 = vmul.f32 %v10941_v60, %v13909_v46  ;;  %3075 = vbcast.lane.b32.xlu0 %v11013_v23, 304  ;;  %v11074_v46 = vcombine.low %v3672_v55, %v3680_v63  ;;  %v3767_v55 = vcombine.high %v3383_v42, %v3383_v42 }
 0x4fa   : > { %v3750_v27 = vcombine.high %v3382_v53, %v3382_v53  ;;  %v3749_v42 = vcombine.high %v3747_v3, %v3747_v3  ;;  %v3757_v11 = vrot.slane %v3382_v53, %v11018_v52 }
 0x4fb   : > { %v11065_v58 = vpop.permute.xlu1 %3028  ;;  %v11067_v13 = vpop.permute.xlu0 %3040  ;;  %13913 = vst [vmem:[#allocation157_spill] sm:$0xff] %v11074_v46  ;;  %v3716_v50 = vcombine.high %v3380_v16, %v3380_v16  ;;  %v3723_v6 = vrot.slane %v3380_v16, %v11018_v52  ;;  %v3748_v16 = vcombine.high %v3740_v34, %v3740_v34  ;;  %v13921_v46 = vld [vmem:[#allocation77_spill] sm:$0xff] }
 0x4fc   : > { %13911 = vst [vmem:[#allocation57_spill] sm:$0xff] %v11065_v58  ;;  %13912 = vst [vmem:[#allocation63_spill] sm:$0xff] %v11067_v13  ;;  %v11089_v13 = vcombine.low %v3679_v32, %v3681_v18  ;;  %v11091_v58 = vcombine.low %v3706_v24, %v3714_v9  ;;  %v3781_v18 = vrot.slane %v3767_v55, %v11018_v52  ;;  %v13919_v9 = vld [vmem:[#allocation65_spill] sm:$0xff] }
 0x4fd   : > { %3071 = vbcast.lane.b32.xlu1 %v11013_v23, 296  ;;  %3083 = vbcast.lane.b32.xlu0 %v11013_v23, 320  ;;  %v3730_v32 = vrot.slane %v3716_v50, %v11018_v52  ;;  %v3731_v24 = vcombine.high %v3723_v6, %v3723_v6  ;;  %v3384_v21 = vmul.f32 %v10949_v26, %v13919_v9 }
 0x4fe   : > { %v11117_v50 = vcombine.low %v5815_v40, %v5822_v29  ;;  %v3387_v26 = vmul.f32 %v10951_v1, %v13921_v46  ;;  %v11131_v48 = vcombine.low %v3747_v3, %v3749_v42  ;;  %v3783_v40 = vcombine.high %v3781_v18, %v3781_v18 }
 0x4ff   : > { %v11084_v63 = vpop.permute.xlu1 %3036  ;;  %v11086_v60 = vpop.permute.xlu0 %3118  ;;  %v3765_v29 = vcombine.high %v3757_v11, %v3757_v11 }
 0x500   : > { %13915 = vst [vmem:[#allocation61_spill] sm:$0xff] %v11084_v63  ;;  %13916 = vst [vmem:[#allocation158_spill] sm:$0xff] %v11086_v60  ;;  %v3385_v63 = vmul.f32 %v10947_v56, %v13918_v4  ;;  %v11101_v60 = vcombine.low %v3689_v59, %v3697_v14  ;;  %v11115_v59 = vcombine.low %v3740_v34, %v3748_v16 }
 0x501   : > { %3079 = vbcast.lane.b32.xlu1 %v11013_v23, 312  ;;  %3091 = vbcast.lane.b32.xlu0 %v11013_v23, 336  ;;  %v3782_v14 = vcombine.high %v3774_v61, %v3774_v61  ;;  %v11127_v56 = vcombine.low %v3723_v6, %v3731_v24  ;;  %v3764_v34 = vrot.slane %v3750_v27, %v11018_v52  ;;  %v13926_v24 = vld [vmem:[#allocation69_spill] sm:$0xff] }
 0x502   : > { %v3801_v55 = vcombine.high %v3385_v63, %v3385_v63  ;;  %v3808_v53 = vrot.slane %v3385_v63, %v11018_v52  ;;  %13922 = vst [vmem:[#allocation65_spill] sm:$0xff] %v11131_v48  ;;  %v3784_v63 = vcombine.high %v3384_v21, %v3384_v21  ;;  %v3791_v6 = vrot.slane %v3384_v21, %v11018_v52 }
 0x503   : > { %v11109_v62 = vpop.permute.xlu1 %3044  ;;  %v11111_v4 = vpop.permute.xlu0 %3126  ;;  %v11139_v19 = vcombine.low %v3774_v61, %v3782_v14  ;;  %v3386_v27 = vmul.f32 %v10953_v43, %v13926_v24  ;;  %v3835_v9 = vcombine.high %v3387_v26, %v3387_v26  ;;  %v3842_v48 = vrot.slane %v3387_v26, %v11018_v52 }
 0x504   : > { %13920 = vst [vmem:[#allocation67_spill] sm:$0xff] %v11111_v4  ;;  %v3732_v4 = vcombine.high %v3730_v32, %v3730_v32  ;;  %v3815_v3 = vrot.slane %v3801_v55, %v11018_v52  ;;  %v3816_v42 = vcombine.high %v3808_v53, %v3808_v53  ;;  %v3766_v61 = vcombine.high %v3764_v34, %v3764_v34 }
 0x505   : > { %3087 = vbcast.lane.b32.xlu1 %v11013_v23, 328  ;;  %3099 = vbcast.lane.b32.xlu0 %v11013_v23, 352  ;;  %13925 = vst [vmem:[#allocation161_spill] sm:$0xff] %v11139_v19  ;;  %v3389_v21 = vmul.f32 %v10955_v0, %v10287_v31  ;;  %v11154_v43 = vcombine.low %v3781_v18, %v3783_v40 }
 0x506   : > { %v11156_v14 = vcombine.low %v3757_v11, %v3765_v29  ;;  %v3798_v55 = vrot.slane %v3784_v63, %v11018_v52  ;;  %v3388_v26 = vmul.f32 %v10957_v5, %v10216_v38  ;;  %v3799_v46 = vcombine.high %v3791_v6, %v3791_v6 }
 0x507   : > { %v11133_v16 = vpop.permute.xlu1 %3122  ;;  %v11135_v1 = vpop.permute.xlu0 %3134  ;;  %v3818_v31 = vcombine.high %v3386_v27, %v3386_v27  ;;  %v3407_v0 = vmul.f32 %v10959_v7, %v10508_v36  ;;  %v3817_v18 = vcombine.high %v3815_v3, %v3815_v3  ;;  %v11169_v11 = vcombine.low %v3808_v53, %v3816_v42 }
 0x508   : > { %13923 = vst [vmem:[#allocation77_spill] sm:$0xff] %v11133_v16  ;;  %13924 = vst [vmem:[#allocation160_spill] sm:$0xff] %v11135_v1  ;;  %v11147_v16 = vcombine.low %v3730_v32, %v3732_v4  ;;  %v3849_v40 = vrot.slane %v3835_v9, %v11018_v52  ;;  %v3850_v29 = vcombine.high %v3842_v48, %v3842_v48 }
 0x509   : > { %3095 = vbcast.lane.b32.xlu1 %v11013_v23, 344  ;;  %3107 = vbcast.lane.b32.xlu0 %v11013_v23, 368  ;;  %v11173_v38 = vcombine.low %v3764_v34, %v3766_v61  ;;  %v3825_v5 = vrot.slane %v3386_v27, %v11018_v52  ;;  %v3869_v63 = vcombine.high %v3389_v21, %v3389_v21 }
 0x50a   : > { %v3876_v24 = vrot.slane %v3389_v21, %v11018_v52  ;;  %v3800_v36 = vcombine.high %v3798_v55, %v3798_v55  ;;  %v3852_v53 = vcombine.high %v3388_v26, %v3388_v26  ;;  %v3859_v42 = vrot.slane %v3388_v26, %v11018_v52 }
 0x50b   : > { %v11161_v32 = vpop.permute.xlu1 %3130  ;;  %v11163_v4 = vpop.permute.xlu0 %3142  ;;  %v11185_v34 = vcombine.low %v3791_v6, %v3799_v46  ;;  %v3832_v27 = vrot.slane %v3818_v31, %v11018_v52  ;;  %v4175_v61 = vcombine.high %v3407_v0, %v3407_v0  ;;  %v4182_v21 = vrot.slane %v3407_v0, %v11018_v52 }
 0x50c   : > { %13927 = vst [vmem:[#allocation69_spill] sm:$0xff] %v11161_v32  ;;  %13928 = vst [vmem:[#allocation162_spill] sm:$0xff] %v11163_v4  ;;  %v11189_v32 = vcombine.low %v3815_v3, %v3817_v18  ;;  %v3851_v1 = vcombine.high %v3849_v40, %v3849_v40  ;;  %v11193_v19 = vcombine.low %v3842_v48, %v3850_v29 }
 0x50d   : > { %3103 = vbcast.lane.b32.xlu1 %v11013_v23, 360  ;;  %3185 = vbcast.lane.b32.xlu0 %v11057_v51, 256  ;;  %v3833_v26 = vcombine.high %v3825_v5, %v3825_v5  ;;  %v3884_v46 = vcombine.high %v3876_v24, %v3876_v24  ;;  %v3390_v6 = vmul.f32 %v10961_v49, %v10462_v57 }
 0x50e   : > { %v11200_v31 = vcombine.low %v3798_v55, %v3800_v36  ;;  %v3866_v3 = vrot.slane %v3852_v53, %v11018_v52  ;;  %v3867_v0 = vcombine.high %v3859_v42, %v3859_v42  ;;  %v3409_v48 = vmul.f32 %v10963_v39, %v10513_v47 }
 0x50f   : > { %v11181_v9 = vpop.permute.xlu1 %3138  ;;  %v11183_v4 = vpop.permute.xlu0 %3150  ;;  %v4189_v49 = vrot.slane %v4175_v61, %v11018_v52  ;;  %v4190_v57 = vcombine.high %v4182_v21, %v4182_v21  ;;  %v11212_v7 = vcombine.low %v3849_v40, %v3851_v1  ;;  %v3408_v36 = vmul.f32 %v10965_v41, %v10505_v22 }
 0x510   : > { %13929 = vst [vmem:[#allocation163_spill] sm:$0xff] %v11183_v4  ;;  %v3883_v4 = vrot.slane %v3869_v63, %v11018_v52  ;;  %v3834_v63 = vcombine.high %v3832_v27, %v3832_v27  ;;  %v3411_v39 = vmul.f32 %v10967_v45, %v10528_v2  ;;  %v11221_v47 = vcombine.low %v3825_v5, %v3833_v26 }
 0x511   : > { %3111 = vbcast.lane.b32.xlu1 %v11013_v23, 376  ;;  %3193 = vbcast.lane.b32.xlu0 %v11057_v51, 272  ;;  %v11223_v29 = vcombine.low %v3876_v24, %v3884_v46  ;;  %v3886_v61 = vcombine.high %v3390_v6, %v3390_v6  ;;  %v3868_v1 = vcombine.high %v3866_v3, %v3866_v3 }
 0x512   : > { %v3885_v53 = vcombine.high %v3883_v4, %v3883_v4  ;;  %v11226_v40 = vcombine.low %v3859_v42, %v3867_v0  ;;  %v3893_v55 = vrot.slane %v3390_v6, %v11018_v52  ;;  %v11233_v45 = vcombine.low %v3832_v27, %v3834_v63 }
 0x513   : > { %v11205_v18 = vpop.permute.xlu1 %3146  ;;  %v11207_v23 = vpop.permute.xlu0 %3158  ;;  %v4191_v2 = vcombine.high %v4189_v49, %v4189_v49  ;;  %v11235_v5 = vcombine.low %v4182_v21, %v4190_v57  ;;  %v4216_v24 = vrot.slane %v3409_v48, %v11018_v52  ;;  %v4192_v26 = vcombine.high %v3408_v36, %v3408_v36 }
 0x514   : > { %13930 = vst [vmem:[#allocation164_spill] sm:$0xff] %v11205_v18  ;;  %13931 = vst [vmem:[#allocation165_spill] sm:$0xff] %v11207_v23  ;;  %v4209_v23 = vcombine.high %v3409_v48, %v3409_v48  ;;  %v4199_v46 = vrot.slane %v3408_v36, %v11018_v52  ;;  %v4243_v18 = vcombine.high %v3411_v39, %v3411_v39 }
 0x515   : > { %3189 = vbcast.lane.b32.xlu1 %v11057_v51, 264  ;;  %3201 = vbcast.lane.b32.xlu0 %v11057_v51, 288  ;;  %13934 = vst [vmem:[#allocation168_spill] sm:$0xff] %v11235_v5  ;;  %v3410_v42 = vmul.f32 %v10971_v17, %v10523_v8  ;;  %v11244_v0 = vcombine.low %v3883_v4, %v3885_v53  ;;  %v13959_v5 = vld [vmem:[#allocation28_spill] sm:$0xff] }
 0x516   : > { %v3900_v27 = vrot.slane %v3886_v61, %v11018_v52  ;;  %v4250_v21 = vrot.slane %v3411_v39, %v11018_v52  ;;  %v11251_v63 = vcombine.low %v3866_v3, %v3868_v1  ;;  %v3901_v57 = vcombine.high %v3893_v55, %v3893_v55 }
 0x517   : > { %v11229_v22 = vpop.permute.xlu1 %3154  ;;  %v11231_v41 = vpop.permute.xlu0 %3166  ;;  %v4223_v8 = vrot.slane %v4209_v23, %v11018_v52  ;;  %v11260_v53 = vcombine.low %v4189_v49, %v4191_v2  ;;  %v4224_v39 = vcombine.high %v4216_v24, %v4216_v24  ;;  %v3413_v61 = vmul.f32 %v10973_v28, %v10542_v37 }
 0x518   : > { %13932 = vst [vmem:[#allocation166_spill] sm:$0xff] %v11229_v22  ;;  %13933 = vst [vmem:[#allocation167_spill] sm:$0xff] %v11231_v41  ;;  %v4206_v48 = vrot.slane %v4192_v26, %v11018_v52  ;;  %v4207_v3 = vcombine.high %v4199_v46, %v4199_v46  ;;  %v4257_v1 = vrot.slane %v4243_v18, %v11018_v52 }
 0x519   : > { %3197 = vbcast.lane.b32.xlu1 %v11057_v51, 280  ;;  %3209 = vbcast.lane.b32.xlu0 %v11057_v51, 304  ;;  %13937 = vst [vmem:[#allocation171_spill] sm:$0xff] %v11260_v53  ;;  %v4226_v6 = vcombine.high %v3410_v42, %v3410_v42  ;;  %v3902_v23 = vcombine.high %v3900_v27, %v3900_v27 }
 0x51a   : > { %v3412_v49 = vmul.f32 %v10977_v44, %v10536_v20  ;;  %v11273_v28 = vcombine.low %v3893_v55, %v3901_v57  ;;  %v4225_v2 = vcombine.high %v4223_v8, %v4223_v8  ;;  %v11279_v4 = vcombine.low %v4216_v24, %v4224_v39 }
 0x51b   : > { %v11254_v17 = vpop.permute.xlu1 %3162  ;;  %v11256_v36 = vpop.permute.xlu0 %3174  ;;  %v4277_v41 = vcombine.high %v3413_v61, %v3413_v61  ;;  %v3415_v20 = vmul.f32 %v10979_v12, %v10558_v33  ;;  %v4208_v22 = vcombine.high %v4206_v48, %v4206_v48  ;;  %v11286_v37 = vcombine.low %v4199_v46, %v4207_v3 }
 0x51c   : > { %13935 = vst [vmem:[#allocation169_spill] sm:$0xff] %v11254_v17  ;;  %13936 = vst [vmem:[#allocation170_spill] sm:$0xff] %v11256_v36  ;;  %v4258_v17 = vcombine.high %v4250_v21, %v4250_v21  ;;  %v4233_v36 = vrot.slane %v3410_v42, %v11018_v52  ;;  %v4284_v42 = vrot.slane %v3413_v61, %v11018_v52 }
 0x51d   : > { %3205 = vbcast.lane.b32.xlu1 %v11057_v51, 296  ;;  %3217 = vbcast.lane.b32.xlu0 %v11057_v51, 320  ;;  %13939 = vst [vmem:[#allocation173_spill] sm:$0xff] %v11279_v4  ;;  %v4259_v55 = vcombine.high %v4257_v1, %v4257_v1  ;;  %v4240_v57 = vrot.slane %v4226_v6, %v11018_v52  ;;  %v13953_v4 = vld [vmem:[#allocation45_spill] sm:$0xff] }
 0x51e   : > { %v11292_v24 = vcombine.low %v4250_v21, %v4258_v17  ;;  %v4241_v39 = vcombine.high %v4233_v36, %v4233_v36  ;;  %v4260_v18 = vcombine.high %v3412_v49, %v3412_v49  ;;  %v11297_v33 = vcombine.low %v4223_v8, %v4225_v2 }
 0x51f   : > { %v11275_v26 = vpop.permute.xlu1 %3170  ;;  %v11284_v44 = vpop.permute.xlu0 %2783  ;;  %v4267_v46 = vrot.slane %v3412_v49, %v11018_v52  ;;  %v3414_v6 = vmul.f32 %v10981_v15, %v10552_v35  ;;  %v4291_v21 = vrot.slane %v4277_v41, %v11018_v52  ;;  %v4292_v17 = vcombine.high %v4284_v42, %v4284_v42  ;;  %v13945_v49 = vld [vmem:[#allocation14_spill] sm:$0xff] }
 0x520   : > { %13938 = vst [vmem:[#allocation172_spill] sm:$0xff] %v11275_v26  ;;  %13940 = vst [vmem:[#allocation174_spill] sm:$0xff] %v11284_v44  ;;  %v11290_v26 = vcombine.low %v3900_v27, %v3902_v23  ;;  %v4311_v3 = vcombine.high %v3415_v20, %v3415_v20  ;;  %v11309_v44 = vcombine.low %v4206_v48, %v4208_v22  ;;  %v13955_v35 = vld [vmem:[#allocation146_spill] sm:$0xff] }
 0x521   : > { %3213 = vbcast.lane.b32.xlu1 %v11057_v51, 312  ;;  %13941 = vst [vmem:[#allocation175_spill] sm:$0xff] %v11292_v24  ;;  %3225 = vbcast.lane.b32.xlu0 %v11057_v51, 336  ;;  %13942 = vst [vmem:[#allocation176_spill] sm:$0xff] %v11297_v33  ;;  %v4242_v8 = vcombine.high %v4240_v57, %v4240_v57  ;;  %v4318_v2 = vrot.slane %v3415_v20, %v11018_v52 }
 0x522   : > { %v3417_v12 = vmul.f32 %v10983_v30, %v13945_v49  ;;  %v11317_v15 = vcombine.low %v4257_v1, %v4259_v55  ;;  %v11319_v41 = vcombine.low %v4233_v36, %v4241_v39  ;;  %v4274_v27 = vrot.slane %v4260_v18, %v11018_v52 }
 0x523   : > { %v11302_v61 = vpop.permute.xlu1 %3178  ;;  %v11307_v23 = vpop.permute.xlu0 %2791  ;;  %v4275_v22 = vcombine.high %v4267_v46, %v4267_v46  ;;  %v4294_v48 = vcombine.high %v3414_v6, %v3414_v6  ;;  %v4301_v20 = vrot.slane %v3414_v6, %v11018_v52  ;;  %v4293_v1 = vcombine.high %v4291_v21, %v4291_v21  ;;  %v13952_v6 = vld [vmem:[#allocation22_spill] sm:$0xff] }
 0x524   : > { %13943 = vst [vmem:[#allocation177_spill] sm:$0xff] %v11302_v61  ;;  %13944 = vst [vmem:[#allocation178_spill] sm:$0xff] %v11307_v23  ;;  %v13948_v61 = vld [vmem:[#allocation13_spill] sm:$0xff]  ;;  %v11330_v55 = vcombine.low %v4284_v42, %v4292_v17  ;;  %v4325_v36 = vrot.slane %v4311_v3, %v11018_v52  ;;  %v11335_v39 = vcombine.low %v4240_v57, %v4242_v8  ;;  %v13954_v17 = vld [vmem:[#allocation16_spill] sm:$0xff] }
 0x525   : > { %3221 = vbcast.lane.b32.xlu1 %v11057_v51, 328  ;;  %13946 = vst [vmem:[#allocation14_spill] sm:$0xff] %v11317_v15  ;;  %13947 = vst [vmem:[#allocation179_spill] sm:$0xff] %v11319_v41  ;;  %3233 = vbcast.lane.b32.xlu0 %v11057_v51, 352  ;;  %v3416_v30 = vmul.f32 %v10985_v54, %v13948_v61  ;;  %v4326_v23 = vcombine.high %v4318_v2, %v4318_v2 }
 0x526   : > { %13950 = vst [vmem:[#allocation180_spill] sm:$0xff] %v11330_v55  ;;  %v4345_v15 = vcombine.high %v3417_v12, %v3417_v12  ;;  %v3419_v33 = vmul.f32 %v13953_v4, %v13952_v6  ;;  %v4276_v61 = vcombine.high %v4274_v27, %v4274_v27  ;;  %v4352_v42 = vrot.slane %v3417_v12, %v11018_v52  ;;  %v13960_v12 = vld [vmem:[#allocation147_spill] sm:$0xff] }
 0x527   : > { %v11326_v49 = vpop.permute.xlu1 %2787  ;;  %v11333_v18 = vpop.permute.xlu0 %2799  ;;  %v3418_v3 = vmul.f32 %v13955_v35, %v13954_v17  ;;  %v11346_v57 = vcombine.low %v4267_v46, %v4275_v22  ;;  %v4308_v8 = vrot.slane %v4294_v48, %v11018_v52  ;;  %v11351_v6 = vcombine.low %v4291_v21, %v4293_v1 }
 0x528   : > { %13949 = vst [vmem:[#allocation13_spill] sm:$0xff] %v11326_v49  ;;  %13951 = vst [vmem:[#allocation181_spill] sm:$0xff] %v11333_v18  ;;  %v4309_v18 = vcombine.high %v4301_v20, %v4301_v20  ;;  %v4328_v49 = vcombine.high %v3416_v30, %v3416_v30  ;;  %v4327_v24 = vcombine.high %v4325_v36, %v4325_v36 }
 0x529   : > { %3229 = vbcast.lane.b32.xlu1 %v11057_v51, 344  ;;  %3241 = vbcast.lane.b32.xlu0 %v11057_v51, 368  ;;  %13956 = vst [vmem:[#allocation22_spill] sm:$0xff] %v11346_v57  ;;  %13958 = vst [vmem:[#allocation16_spill] sm:$0xff] %v11351_v6  ;;  %v4335_v54 = vrot.slane %v3416_v30, %v11018_v52  ;;  %v3421_v53 = vmul.f32 %v13960_v12, %v13959_v5 }
 0x52a   : > { %v4359_v35 = vrot.slane %v4345_v15, %v11018_v52  ;;  %v4379_v22 = vcombine.high %v3419_v33, %v3419_v33  ;;  %v4386_v48 = vrot.slane %v3419_v33, %v11018_v52  ;;  %v11363_v21 = vcombine.low %v4274_v27, %v4276_v61 }
 0x52b   : > { %v11349_v4 = vpop.permute.xlu1 %2795  ;;  %v11356_v41 = vpop.permute.xlu0 %2807  ;;  %v11365_v1 = vcombine.low %v4318_v2, %v4326_v23  ;;  %v4360_v30 = vcombine.high %v4352_v42, %v4352_v42  ;;  %v4362_v17 = vcombine.high %v3418_v3, %v3418_v3  ;;  %v4310_v12 = vcombine.high %v4308_v8, %v4308_v8 }
 0x52c   : > { %13957 = vst [vmem:[#allocation45_spill] sm:$0xff] %v11349_v4  ;;  %13961 = vst [vmem:[#allocation146_spill] sm:$0xff] %v11356_v41  ;;  %v11370_v46 = vcombine.low %v4301_v20, %v4309_v18  ;;  %v4342_v15 = vrot.slane %v4328_v49, %v11018_v52  ;;  %v11375_v33 = vcombine.low %v4325_v36, %v4327_v24  ;;  %v13968_v36 = vld [vmem:[#allocation24_spill] sm:$0xff]  ;;  %v13975_v20 = vld [vmem:[#allocation150_spill] sm:$0xff] }
 0x52d   : > { %3237 = vbcast.lane.b32.xlu1 %v11057_v51, 360  ;;  %13962 = vst [vmem:[#allocation28_spill] sm:$0xff] %v11365_v1  ;;  %7984 = vperm.xlu0 %9298, %v11117_v50   ;;  %v4343_v27 = vcombine.high %v4335_v54, %v4335_v54  ;;  %v4369_v23 = vrot.slane %v3418_v3, %v11018_v52  ;;  %v13969_v18 = vld [vmem:[#allocation148_spill] sm:$0xff] }
 0x52e   : > { %13963 = vst [vmem:[#allocation147_spill] sm:$0xff] %v11370_v46  ;;  %13965 = vst [vmem:[#allocation183_spill] sm:$0xff] %v11375_v33  ;;  %v4413_v2 = vcombine.high %v3421_v53, %v3421_v53  ;;  %v4361_v4 = vcombine.high %v4359_v35, %v4359_v35  ;;  %v4393_v50 = vrot.slane %v4379_v22, %v11018_v52  ;;  %v13970_v33 = vld [vmem:[#allocation76_spill] sm:$0xff] }
 0x52f   : > { %v11373_v41 = vpop.permute.xlu1 %2803  ;;  %v11378_v61 = vpop.permute.xlu0 %2815  ;;  %v4394_v55 = vcombine.high %v4386_v48, %v4386_v48  ;;  %v4420_v5 = vrot.slane %v3421_v53, %v11018_v52  ;;  %v11385_v49 = vcombine.low %v4352_v42, %v4360_v30  ;;  %v4376_v24 = vrot.slane %v4362_v17, %v11018_v52  ;;  %v13971_v53 = vld [vmem:[#allocation149_spill] sm:$0xff]  ;;  %v13974_v17 = vld [vmem:[#allocation27_spill] sm:$0xff] }
 0x530   : > { %13964 = vst [vmem:[#allocation182_spill] sm:$0xff] %v11373_v41  ;;  %13966 = vst [vmem:[#allocation184_spill] sm:$0xff] %v11378_v61  ;;  %v3420_v3 = vmul.f32 %v13969_v18, %v13968_v36  ;;  %v11390_v41 = vcombine.low %v4308_v8, %v4310_v12  ;;  %v4344_v61 = vcombine.high %v4342_v15, %v4342_v15 }
 0x531   : > { %3245 = vbcast.lane.b32.xlu1 %v11057_v51, 376  ;;  %13967 = vst [vmem:[#allocation185_spill] sm:$0xff] %v11385_v49  ;;  %v3439_v6 = vmul.f32 %v13971_v53, %v13970_v33  ;;  %v11398_v57 = vcombine.low %v4335_v54, %v4343_v27  ;;  %v4377_v42 = vcombine.high %v4369_v23, %v4369_v23  ;;  %v13979_v27 = vld [vmem:[#allocation78_spill] sm:$0xff] }
 0x532   : > { %v4427_v30 = vrot.slane %v4413_v2, %v11018_v52  ;;  %v3422_v1 = vmul.f32 %v13975_v20, %v13974_v17  ;;  %v11405_v8 = vcombine.low %v4359_v35, %v4361_v4  ;;  %v4395_v12 = vcombine.high %v4393_v50, %v4393_v50 }
 0x533   : > { %v11396_v51 = vpop.permute.xlu1 %2811  ;;  %13973 = vst [vmem:[#allocation148_spill] sm:$0xff] %v11398_v57  ;;  %v11403_v36 = vpop.permute.xlu0 %2823  ;;  %v11407_v18 = vcombine.low %v4386_v48, %v4394_v55  ;;  %v4428_v22 = vcombine.high %v4420_v5, %v4420_v5  ;;  %v4378_v53 = vcombine.high %v4376_v24, %v4376_v24  ;;  %v4396_v54 = vcombine.high %v3420_v3, %v3420_v3 }
 0x534   : > { %13972 = vst [vmem:[#allocation24_spill] sm:$0xff] %v11396_v51  ;;  %13976 = vst [vmem:[#allocation76_spill] sm:$0xff] %v11403_v36  ;;  %v13980_v51 = vld [vmem:[#allocation151_spill] sm:$0xff]  ;;  %v11413_v2 = vcombine.low %v4342_v15, %v4344_v61  ;;  %v4403_v20 = vrot.slane %v3420_v3, %v11018_v52  ;;  %v4719_v17 = vcombine.high %v3439_v6, %v3439_v6 }
 0x535   : > { %13977 = vst [vmem:[#allocation149_spill] sm:$0xff] %v11405_v8  ;;  %13978 = vst [vmem:[#allocation27_spill] sm:$0xff] %v11407_v18  ;;  %v3441_v46 = vmul.f32 %v13980_v51, %v13979_v27  ;;  %v4726_v4 = vrot.slane %v3439_v6, %v11018_v52  ;;  %v11421_v48 = vcombine.low %v4369_v23, %v4377_v42  ;;  %v13995_v18 = vld [vmem:[#allocation82_spill] sm:$0xff] }
 0x536   : > { %13981 = vst [vmem:[#allocation150_spill] sm:$0xff] %v11413_v2  ;;  %v4429_v33 = vcombine.high %v4427_v30, %v4427_v30  ;;  %v4430_v36 = vcombine.high %v3422_v1, %v3422_v1  ;;  %v11425_v8 = vcombine.low %v4393_v50, %v4395_v12  ;;  %v11429_v61 = vcombine.low %v4420_v5, %v4428_v22  ;;  %v13988_v50 = vld [vmem:[#allocation75_spill] sm:$0xff]  ;;  %v13989_v12 = vld [vmem:[#allocation152_spill] sm:$0xff] }
 0x537   : > { %v11417_v35 = vpop.permute.xlu1 %2819  ;;  %13983 = vst [vmem:[#allocation151_spill] sm:$0xff] %v11421_v48  ;;  %v11423_v49 = vpop.permute.xlu0 %2831  ;;  %v4437_v6 = vrot.slane %v3422_v1, %v11018_v52  ;;  %v11432_v3 = vcombine.low %v4376_v24, %v4378_v53  ;;  %v4410_v51 = vrot.slane %v4396_v54, %v11018_v52  ;;  %v4753_v27 = vcombine.high %v3441_v46, %v3441_v46  ;;  %v13992_v22 = vld [vmem:[#allocation84_spill] sm:$0xff]  ;;  %v13993_v53 = vld [vmem:[#allocation153_spill] sm:$0xff] }
 0x538   : > { %13982 = vst [vmem:[#allocation78_spill] sm:$0xff] %v11417_v35  ;;  %13984 = vst [vmem:[#allocation186_spill] sm:$0xff] %v11423_v49  ;;  %v4760_v23 = vrot.slane %v3441_v46, %v11018_v52  ;;  %v4411_v42 = vcombine.high %v4403_v20, %v4403_v20  ;;  %v4733_v55 = vrot.slane %v4719_v17, %v11018_v52 }
 0x539   : > { %13985 = vst [vmem:[#allocation187_spill] sm:$0xff] %v11425_v8  ;;  %13986 = vst [vmem:[#allocation188_spill] sm:$0xff] %v11429_v61  ;;  %v4734_v49 = vcombine.high %v4726_v4, %v4726_v4  ;;  %v3440_v35 = vmul.f32 %v13989_v12, %v13988_v50  ;;  %v11443_v1 = vcombine.low %v4427_v30, %v4429_v33  ;;  %v13996_v50 = vld [vmem:[#allocation49_spill] sm:$0xff] }
 0x53a   : > { %13987 = vst [vmem:[#allocation189_spill] sm:$0xff] %v11432_v3  ;;  %v4444_v24 = vrot.slane %v4430_v36, %v11018_v52  ;;  %v3443_v54 = vmul.f32 %v13993_v53, %v13992_v22  ;;  %v4445_v15 = vcombine.high %v4437_v6, %v4437_v6  ;;  %v3442_v12 = vmul.f32 %v13996_v50, %v13995_v18  ;;  %v13998_v3 = vld [vmem:[#allocation154_spill] sm:$0xff] }
 0x53b   : > { %v11439_v8 = vpop.permute.xlu1 %2827  ;;  %13991 = vst [vmem:[#allocation152_spill] sm:$0xff] %v11443_v1  ;;  %v11448_v46 = vpop.permute.xlu0 %2839  ;;  %v4412_v5 = vcombine.high %v4410_v51, %v4410_v51  ;;  %v4767_v30 = vrot.slane %v4753_v27, %v11018_v52  ;;  %v4768_v33 = vcombine.high %v4760_v23, %v4760_v23  ;;  %v13999_v36 = vrot.slane %v11119_v25, %v11018_v52 }
 0x53c   : > { %13990 = vst [vmem:[#allocation75_spill] sm:$0xff] %v11439_v8  ;;  %13994 = vst [vmem:[#allocation84_spill] sm:$0xff] %v11448_v46  ;;  %v13997_v8 = vld [vmem:[#allocation89_spill] sm:$0xff]  ;;  %v14000_v22 = vrot.slane %v11101_v60, %v11018_v52  ;;  %v11463_v46 = vcombine.low %v4403_v20, %v4411_v42  ;;  %v4735_v17 = vcombine.high %v4733_v55, %v4733_v55 }
 0x53d   : > { %v3445_v57 = vmul.f32 %v13998_v3, %v13997_v8  ;;  %v11465_v61 = vcombine.low %v4726_v4, %v4734_v49  ;;  %v4736_v18 = vcombine.high %v3440_v35, %v3440_v35  ;;  %v4446_v8 = vcombine.high %v4444_v24, %v4444_v24 }
 0x53e   : > { %v5874_v53 = vcombine.low %v14000_v22, %v13999_v36  ;;  %14001 = vst [vmem:[#allocation153_spill] sm:$0xff] %v11463_v46  ;;  %v4743_v3 = vrot.slane %v3440_v35, %v11018_v52  ;;  %v4787_v27 = vcombine.high %v3443_v54, %v3443_v54  ;;  %v4794_v1 = vrot.slane %v3443_v54, %v11018_v52  ;;  %v14016_v46 = vld [vmem:[#allocation51_spill] sm:$0xff] }
 0x53f   : > { %14002 = vst [vmem:[#allocation82_spill] sm:$0xff] %v11465_v61  ;;  %v11467_v50 = vpop.permute.xlu1 %2835  ;;  %v11471_v25 = vpop.permute.xlu0 %2917  ;;  %v4770_v48 = vcombine.high %v3442_v12, %v3442_v12  ;;  %v4777_v60 = vrot.slane %v3442_v12, %v11018_v52  ;;  %v4821_v20 = vcombine.high %v3445_v57, %v3445_v57  ;;  %v4828_v42 = vrot.slane %v3445_v57, %v11018_v52  ;;  %v14014_v61 = vld [vmem:[#allocation155_spill] sm:$0xff] }
 0x540   : > { %14003 = vst [vmem:[#allocation49_spill] sm:$0xff] %v11467_v50  ;;  %7993 = vperm.xlu0 %9298, %v5874_v53   ;;  %14004 = vst [vmem:[#allocation89_spill] sm:$0xff] %v11471_v25  ;;  %v11475_v49 = vcombine.low %v4410_v51, %v4412_v5  ;;  %v11477_v4 = vcombine.low %v4437_v6, %v4445_v15  ;;  %v4769_v36 = vcombine.high %v4767_v30, %v4767_v30  ;;  %v14010_v6 = vld [vmem:[#allocation88_spill] sm:$0xff]  ;;  %v14011_v5 = vld [vmem:[#allocation47_spill] sm:$0xff] }
 0x541   : > { %v11479_v22 = vcombine.low %v4760_v23, %v4768_v33  ;;  %v11483_v54 = vcombine.low %v4733_v55, %v4735_v17  ;;  %v4750_v12 = vrot.slane %v4736_v18, %v11018_v52  ;;  %v4751_v57 = vcombine.high %v4743_v3, %v4743_v3 }
 0x542   : > { %14005 = vst [vmem:[#allocation154_spill] sm:$0xff] %v11475_v49  ;;  %14006 = vst [vmem:[#allocation190_spill] sm:$0xff] %v11477_v4  ;;  %v4801_v51 = vrot.slane %v4787_v27, %v11018_v52  ;;  %v4802_v15 = vcombine.high %v4794_v1, %v4794_v1  ;;  %v3444_v23 = vmul.f32 %v14011_v5, %v14010_v6 }
 0x543   : > { %14007 = vst [vmem:[#allocation191_spill] sm:$0xff] %v11479_v22  ;;  %14008 = vst [vmem:[#allocation192_spill] sm:$0xff] %v11483_v54  ;;  %v11488_v25 = vpop.permute.xlu1 %2843  ;;  %v11493_v33 = vpop.permute.xlu0 %2925  ;;  %v4784_v35 = vrot.slane %v4770_v48, %v11018_v52  ;;  %v4785_v55 = vcombine.high %v4777_v60, %v4777_v60  ;;  %v4835_v17 = vrot.slane %v4821_v20, %v11018_v52  ;;  %v14015_v54 = vld [vmem:[#allocation93_spill] sm:$0xff]  ;;  %v14019_v20 = vld [vmem:[#allocation55_spill] sm:$0xff] }
 0x544   : > { %14009 = vst [vmem:[#allocation193_spill] sm:$0xff] %v11488_v25  ;;  %14012 = vst [vmem:[#allocation88_spill] sm:$0xff] %v11493_v33  ;;  %v4836_v50 = vcombine.high %v4828_v42, %v4828_v42  ;;  %v11497_v53 = vcombine.low %v4444_v24, %v4446_v8  ;;  %v14013_v25 = vld [vmem:[#allocation94_spill] sm:$0xff]  ;;  %v3446_v49 = vmul.f32 %v14016_v46, %v14015_v54  ;;  %v14018_v33 = vld [vmem:[#allocation100_spill] sm:$0xff] }
 0x545   : > { %v3447_v27 = vmul.f32 %v14014_v61, %v14013_v25  ;;  %v11505_v6 = vcombine.low %v4767_v30, %v4769_v36  ;;  %v4752_v5 = vcombine.high %v4750_v12, %v4750_v12  ;;  %v3449_v2 = vmul.f32 %v14019_v20, %v14018_v33 }
 0x546   : > { %v11513_v8 = vcombine.low %v4743_v3, %v4751_v57  ;;  %v4803_v18 = vcombine.high %v4801_v51, %v4801_v51  ;;  %v11515_v4 = vcombine.low %v4794_v1, %v4802_v15  ;;  %v4804_v61 = vcombine.high %v3444_v23, %v3444_v23 }
 0x547   : > { %14017 = vst [vmem:[#allocation47_spill] sm:$0xff] %v11505_v6  ;;  %v11511_v24 = vpop.permute.xlu1 %2921  ;;  %v11517_v25 = vpop.permute.xlu0 %2933  ;;  %v4786_v46 = vcombine.high %v4784_v35, %v4784_v35  ;;  %v11519_v30 = vcombine.low %v4777_v60, %v4785_v55  ;;  %v4837_v36 = vcombine.high %v4835_v17, %v4835_v17  ;;  %v11521_v54 = vcombine.low %v4828_v42, %v4836_v50 }
 0x548   : > { %14020 = vst [vmem:[#allocation94_spill] sm:$0xff] %v11511_v24  ;;  %14021 = vst [vmem:[#allocation155_spill] sm:$0xff] %v11515_v4  ;;  %v4811_v48 = vrot.slane %v3444_v23, %v11018_v52  ;;  %v4855_v22 = vcombine.high %v3447_v27, %v3447_v27  ;;  %v4862_v33 = vrot.slane %v3447_v27, %v11018_v52  ;;  %v14032_v24 = vld [vmem:[#allocation53_spill] sm:$0xff] }
 0x549   : > { %14022 = vst [vmem:[#allocation93_spill] sm:$0xff] %v11517_v25  ;;  %14023 = vst [vmem:[#allocation51_spill] sm:$0xff] %v11521_v54  ;;  %v4838_v20 = vcombine.high %v3446_v49, %v3446_v49  ;;  %v11525_v3 = vcombine.low %v4750_v12, %v4752_v5  ;;  %v4845_v1 = vrot.slane %v3446_v49, %v11018_v52 }
 0x54a   : > { %v4889_v57 = vcombine.high %v3449_v2, %v3449_v2  ;;  %v5839_v15 = vrot.slane %v11069_v10, %v11018_v52  ;;  %v11534_v60 = vcombine.low %v4801_v51, %v4803_v18  ;;  %v4818_v42 = vrot.slane %v4804_v61, %v11018_v52  ;;  %v14031_v10 = vld [vmem:[#allocation99_spill] sm:$0xff] }
 0x54b   : > { %v11530_v25 = vpop.permute.xlu1 %2929  ;;  %v4896_v23 = vrot.slane %v3449_v2, %v11018_v52  ;;  %v11538_v55 = vpop.permute.xlu0 %2941  ;;  %v11542_v12 = vcombine.low %v4784_v35, %v4786_v46  ;;  %v11546_v27 = vcombine.low %v4835_v17, %v4837_v36  ;;  %v4819_v5 = vcombine.high %v4811_v48, %v4811_v48 }
 0x54c   : > { %14024 = vst [vmem:[#allocation100_spill] sm:$0xff] %v11530_v25  ;;  %14025 = vst [vmem:[#allocation55_spill] sm:$0xff] %v11534_v60  ;;  %v4869_v51 = vrot.slane %v4855_v22, %v11018_v52  ;;  %v4870_v18 = vcombine.high %v4862_v33, %v4862_v33  ;;  %v4852_v61 = vrot.slane %v4838_v20, %v11018_v52  ;;  %v14038_v60 = vld [vmem:[#allocation57_spill] sm:$0xff] }
 0x54d   : > { %14026 = vst [vmem:[#allocation194_spill] sm:$0xff] %v11538_v55  ;;  %14027 = vst [vmem:[#allocation195_spill] sm:$0xff] %v11546_v27  ;;  %v4853_v50 = vcombine.high %v4845_v1, %v4845_v1  ;;  %v4903_v2 = vrot.slane %v4889_v57, %v11018_v52  ;;  %v14028_v55 = vld [vmem:[#allocation156_spill] sm:$0xff]  ;;  %v5907_v35 = vrot.slane %v11147_v16, %v11018_v52 }
 0x54e   : > { %v14029_v25 = vrot.slane %v14028_v55, %v11018_v52  ;;  %v4820_v17 = vcombine.high %v4818_v42, %v4818_v42  ;;  %v4904_v36 = vcombine.high %v4896_v23, %v4896_v23  ;;  %v3448_v22 = vmul.f32 %v14032_v24, %v14031_v10  ;;  %v14034_v55 = vld [vmem:[#allocation106_spill] sm:$0xff] }
 0x54f   : > { %v11556_v46 = vpop.permute.xlu1 %2937  ;;  %v5856_v20 = vrot.slane %v11089_v13, %v11018_v52  ;;  %v11562_v27 = vpop.permute.xlu0 %2949  ;;  %v14036_v16 = vrot.slane %v11127_v56, %v11018_v52  ;;  %v5941_v4 = vrot.slane %v11173_v38, %v11018_v52  ;;  %v11573_v24 = vcombine.low %v4811_v48, %v4819_v5  ;;  %v14043_v5 = vld [vmem:[#allocation115_spill] sm:$0xff] }
 0x550   : > { %v5840_v49 = vcombine.low %v14029_v25, %v5839_v15  ;;  %14030 = vst [vmem:[#allocation156_spill] sm:$0xff] %v11556_v46  ;;  %14033 = vst [vmem:[#allocation99_spill] sm:$0xff] %v11562_v27  ;;  %v14035_v25 = vld [vmem:[#allocation59_spill] sm:$0xff]  ;;  %v4871_v10 = vcombine.high %v4869_v51, %v4869_v51  ;;  %v11575_v13 = vcombine.low %v4862_v33, %v4870_v18  ;;  %v14037_v27 = vld [vmem:[#allocation105_spill] sm:$0xff] }
 0x551   : > { %v3451_v15 = vmul.f32 %v14035_v25, %v14034_v55  ;;  %v5908_v46 = vcombine.low %v14036_v16, %v5907_v35  ;;  %v3450_v6 = vmul.f32 %v14038_v60, %v14037_v27  ;;  %v4854_v57 = vcombine.high %v4852_v61, %v4852_v61  ;;  %v14044_v18 = vld [vmem:[#allocation63_spill] sm:$0xff] }
 0x552   : > { %7987 = vperm.xlu1 %9299, %v5840_v49   ;;  %v11579_v54 = vcombine.low %v4845_v1, %v4853_v50  ;;  %v4905_v55 = vcombine.high %v4903_v2, %v4903_v2  ;;  %v14039_v49 = vld [vmem:[#allocation157_spill] sm:$0xff]  ;;  %v11586_v38 = vcombine.low %v4818_v42, %v4820_v17  ;;  %v11588_v48 = vcombine.low %v4896_v23, %v4904_v36  ;;  %v14053_v23 = vld [vmem:[#allocation19_spill] sm:$0xff] }
 0x553   : > { %7999 = vperm.xlu0 %9298, %v5908_v46   ;;  %v14040_v56 = vrot.slane %v14039_v49, %v11018_v52  ;;  %v11584_v25 = vpop.permute.xlu1 %2945  ;;  %v4872_v33 = vcombine.high %v3448_v22, %v3448_v22  ;;  %v3453_v16 = vmul.f32 %v14044_v18, %v14043_v5  ;;  %v11592_v60 = vpop.permute.xlu0 %2957  ;;  %v4879_v1 = vrot.slane %v3448_v22, %v11018_v52 }
 0x554   : > { %14041 = vst [vmem:[#allocation53_spill] sm:$0xff] %v11584_v25  ;;  %14042 = vst [vmem:[#allocation106_spill] sm:$0xff] %v11588_v48  ;;  %v4923_v50 = vcombine.high %v3451_v15, %v3451_v15  ;;  %v14046_v27 = vrot.slane %v11156_v14, %v11018_v52  ;;  %v11602_v17 = vcombine.low %v4869_v51, %v4871_v10 }
 0x555   : > { %v5857_v35 = vcombine.low %v14040_v56, %v5856_v20  ;;  %14045 = vst [vmem:[#allocation59_spill] sm:$0xff] %v11592_v60  ;;  %v14047_v20 = vld [vmem:[#allocation159_spill] sm:$0xff]  ;;  %v4930_v36 = vrot.slane %v3451_v15, %v11018_v52  ;;  %v4906_v49 = vcombine.high %v3450_v6, %v3450_v6  ;;  %v11607_v56 = vcombine.low %v4852_v61, %v4854_v57  ;;  %v14057_v60 = vld [vmem:[#allocation21_spill] sm:$0xff] }
 0x556   : > { %v5942_v46 = vcombine.low %v14046_v27, %v5941_v4  ;;  %v5890_v42 = vrot.slane %v14047_v20, %v11018_v52  ;;  %v4913_v4 = vrot.slane %v3450_v6, %v11018_v52  ;;  %v11614_v5 = vcombine.low %v4903_v2, %v4905_v55 }
 0x557   : > { %7990 = vperm.xlu1 %9299, %v5857_v35   ;;  %v11612_v35 = vpop.permute.xlu1 %2953  ;;  %v4886_v51 = vrot.slane %v4872_v33, %v11018_v52  ;;  %v4957_v10 = vcombine.high %v3453_v16, %v3453_v16  ;;  %v4964_v15 = vrot.slane %v3453_v16, %v11018_v52  ;;  %v11618_v18 = vpop.permute.xlu0 %2965  ;;  %v4887_v27 = vcombine.high %v4879_v1, %v4879_v1  ;;  %v14052_v16 = vld [vmem:[#allocation61_spill] sm:$0xff] }
 0x558   : > { %8005 = vperm.xlu0 %9298, %v5942_v46   ;;  %14048 = vst [vmem:[#allocation105_spill] sm:$0xff] %v11612_v35  ;;  %14049 = vst [vmem:[#allocation57_spill] sm:$0xff] %v11618_v18  ;;  %v4937_v61 = vrot.slane %v4923_v50, %v11018_v52  ;;  %v14050_v57 = vrot.slane %v11091_v58, %v11018_v52  ;;  %v5975_v6 = vrot.slane %v11200_v31, %v11018_v52  ;;  %v14051_v46 = vld [vmem:[#allocation111_spill] sm:$0xff]  ;;  %v14054_v18 = vld [vmem:[#allocation158_spill] sm:$0xff] }
 0x559   : > { %v4938_v55 = vcombine.high %v4930_v36, %v4930_v36  ;;  %v4920_v33 = vrot.slane %v4906_v49, %v11018_v52  ;;  %v3452_v22 = vmul.f32 %v14052_v16, %v14051_v46  ;;  %v4921_v14 = vcombine.high %v4913_v4, %v4913_v4  ;;  %v14055_v35 = vld [vmem:[#allocation117_spill] sm:$0xff]  ;;  %v14058_v49 = vld [vmem:[#allocation67_spill] sm:$0xff] }
 0x55a   : > { %v5891_v20 = vcombine.low %v14050_v57, %v5890_v42  ;;  %v3471_v50 = vmul.f32 %v14054_v18, %v14053_v23  ;;  %v3454_v58 = vmul.f32 %v11109_v62, %v14055_v35  ;;  %v14056_v31 = vrot.slane %v11185_v34, %v11018_v52  ;;  %v14059_v46 = vld [vmem:[#allocation65_spill] sm:$0xff] }
 0x55b   : > { %v4971_v57 = vrot.slane %v4957_v10, %v11018_v52  ;;  %v4972_v2 = vcombine.high %v4964_v15, %v4964_v15  ;;  %v3473_v25 = vmul.f32 %v14058_v49, %v14057_v60  ;;  %v5924_v16 = vrot.slane %v14059_v46, %v11018_v52  ;;  %v11643_v48 = vpop.permute.xlu1 %2961 }
 0x55c   : > { %7996 = vperm.xlu1 %9299, %v5891_v20   ;;  %v5976_v42 = vcombine.low %v14056_v31, %v5975_v6  ;;  %14060 = vst [vmem:[#allocation157_spill] sm:$0xff] %v11643_v48  ;;  %v4888_v23 = vcombine.high %v4886_v51, %v4886_v51  ;;  %v11645_v18 = vcombine.low %v4879_v1, %v4887_v27  ;;  %v11654_v31 = vpop.permute.xlu0 %2973 }
 0x55d   : > { %v4939_v62 = vcombine.high %v4937_v61, %v4937_v61  ;;  %v6009_v34 = vrot.slane %v11233_v45, %v11018_v52  ;;  %v11649_v35 = vcombine.low %v4930_v36, %v4938_v55  ;;  %v4922_v10 = vcombine.high %v4920_v33, %v4920_v33  ;;  %14062 = vst [vmem:[#allocation115_spill] sm:$0xff] %v11654_v31 }
 0x55e   : > { %8011 = vperm.xlu0 %9298, %v5976_v42   ;;  %v4940_v20 = vcombine.high %v3452_v22, %v3452_v22  ;;  %v14061_v60 = vrot.slane %v11115_v59, %v11018_v52  ;;  %v11656_v49 = vcombine.low %v4913_v4, %v4921_v14  ;;  %v4947_v1 = vrot.slane %v3452_v22, %v11018_v52 }
 0x55f   : > { %v5263_v27 = vcombine.high %v3471_v50, %v3471_v50  ;;  %v14063_v42 = vrot.slane %v11221_v47, %v11018_v52  ;;  %v4973_v45 = vcombine.high %v4971_v57, %v4971_v57  ;;  %v11662_v36 = vcombine.low %v4964_v15, %v4972_v2 }
 0x560   : > { %v5925_v6 = vcombine.low %v14061_v60, %v5924_v16  ;;  %v5270_v55 = vrot.slane %v3471_v50, %v11018_v52  ;;  %v4974_v48 = vcombine.high %v3454_v58, %v3454_v58  ;;  %v11665_v59 = vcombine.low %v4886_v51, %v4888_v23  ;;  %v11676_v50 = vpop.permute.xlu1 %2969 }
 0x561   : > { %v6010_v46 = vcombine.low %v14063_v42, %v6009_v34  ;;  %v4981_v4 = vrot.slane %v3454_v58, %v11018_v52  ;;  %v5297_v22 = vcombine.high %v3473_v25, %v3473_v25  ;;  %v11670_v16 = vcombine.low %v4937_v61, %v4939_v62  ;;  %14064 = vst [vmem:[#allocation63_spill] sm:$0xff] %v11676_v50  ;;  %v14069_v50 = vld [vmem:[#allocation20_spill] sm:$0xff] }
 0x562   : > { %8002 = vperm.xlu1 %9299, %v5925_v6   ;;  %v4954_v15 = vrot.slane %v4940_v20, %v11018_v52  ;;  %v5304_v2 = vrot.slane %v3473_v25, %v11018_v52  ;;  %v4955_v51 = vcombine.high %v4947_v1, %v4947_v1  ;;  %v5277_v23 = vrot.slane %v5263_v27, %v11018_v52  ;;  %v11688_v25 = vpop.permute.xlu0 %3051  ;;  %v14066_v27 = vld [vmem:[#allocation161_spill] sm:$0xff] }
 0x563   : > { %8017 = vperm.xlu0 %9298, %v6010_v46   ;;  %v5958_v34 = vrot.slane %v11154_v43, %v11018_v52  ;;  %v6043_v58 = vrot.slane %v11251_v63, %v11018_v52  ;;  %v11683_v61 = vcombine.low %v4920_v33, %v4922_v10  ;;  %v5278_v60 = vcombine.high %v5270_v55, %v5270_v55 }
 0x564   : > { %v4988_v20 = vrot.slane %v4974_v48, %v11018_v52  ;;  %14065 = vst [vmem:[#allocation159_spill] sm:$0xff] %v11688_v25  ;;  %v4989_v6 = vcombine.high %v4981_v4, %v4981_v4  ;;  %v5311_v42 = vrot.slane %v5297_v22, %v11018_v52  ;;  %v14067_v46 = vrot.slane %v14066_v27, %v11018_v52  ;;  %v14070_v22 = vld [vmem:[#allocation77_spill] sm:$0xff]  ;;  %v14071_v27 = vld [vmem:[#allocation32_spill] sm:$0xff] }
 0x565   : > { %v14068_v63 = vrot.slane %v11226_v40, %v11018_v52  ;;  %v11697_v10 = vcombine.low %v4971_v57, %v4973_v45  ;;  %v4956_v62 = vcombine.high %v4954_v15, %v4954_v15  ;;  %v5312_v48 = vcombine.high %v5304_v2, %v5304_v2  ;;  %v14072_v40 = vld [vmem:[#allocation160_spill] sm:$0xff] }
 0x566   : > { %v5959_v43 = vcombine.low %v14067_v46, %v5958_v34  ;;  %v11701_v14 = vcombine.low %v4947_v1, %v4955_v51  ;;  %v5279_v25 = vcombine.high %v5277_v23, %v5277_v23  ;;  %v3472_v31 = vmul.f32 %v14070_v22, %v14069_v50  ;;  %v11713_v46 = vpop.permute.xlu1 %2977  ;;  %v14074_v50 = vld [vmem:[#allocation30_spill] sm:$0xff] }
 0x567   : > { %v6044_v33 = vcombine.low %v14068_v63, %v6043_v58  ;;  %v11705_v34 = vcombine.low %v5270_v55, %v5278_v60  ;;  %v3475_v58 = vmul.f32 %v14072_v40, %v14071_v27  ;;  %v5992_v57 = vrot.slane %v11189_v32, %v11018_v52  ;;  %14073 = vst [vmem:[#allocation111_spill] sm:$0xff] %v11713_v46  ;;  %v14077_v60 = vld [vmem:[#allocation33_spill] sm:$0xff]  ;;  %v14078_v22 = vld [vmem:[#allocation162_spill] sm:$0xff]  ;;  %v11729_v46 = vpop.permute.xlu0 %3059 }
 0x568   : > { %8008 = vperm.xlu1 %9299, %v5959_v43   ;;  %v6077_v45 = vrot.slane %v11290_v26, %v11018_v52  ;;  %v4990_v1 = vcombine.high %v4988_v20, %v4988_v20  ;;  %v11715_v51 = vcombine.low %v4981_v4, %v4989_v6  ;;  %v5313_v63 = vcombine.high %v5311_v42, %v5311_v42  ;;  %v14075_v43 = vld [vmem:[#allocation69_spill] sm:$0xff] }
 0x569   : > { %8023 = vperm.xlu0 %9298, %v6044_v33   ;;  %v3474_v33 = vmul.f32 %v14075_v43, %v14074_v50  ;;  %v11719_v55 = vcombine.low %v5304_v2, %v5312_v48  ;;  %v3477_v27 = vmul.f32 %v14078_v22, %v14077_v60  ;;  %v14079_v32 = vrot.slane %v11169_v11, %v11018_v52 }
 0x56a   : > { %v14080_v26 = vrot.slane %v11273_v28, %v11018_v52  ;;  %14081 = vst [vmem:[#allocation19_spill] sm:$0xff] %v11729_v46  ;;  %v11731_v4 = vcombine.low %v4954_v15, %v4956_v62  ;;  %v5280_v2 = vcombine.high %v3472_v31, %v3472_v31  ;;  %v5287_v48 = vrot.slane %v3472_v31, %v11018_v52  ;;  %v14089_v28 = vld [vmem:[#allocation163_spill] sm:$0xff] }
 0x56b   : > { %14076 = vst [vmem:[#allocation61_spill] sm:$0xff] %v11719_v55  ;;  %v5993_v40 = vcombine.low %v14079_v32, %v5992_v57  ;;  %v11736_v50 = vcombine.low %v5277_v23, %v5279_v25  ;;  %v5331_v43 = vcombine.high %v3475_v58, %v3475_v58  ;;  %v5338_v11 = vrot.slane %v3475_v58, %v11018_v52  ;;  %v11750_v25 = vpop.permute.xlu1 %3055 }
 0x56c   : > { %v6078_v47 = vcombine.low %v14080_v26, %v6077_v45  ;;  %v11741_v57 = vcombine.low %v4988_v20, %v4990_v1  ;;  %v5314_v62 = vcombine.high %v3474_v33, %v3474_v33  ;;  %v5321_v45 = vrot.slane %v3474_v33, %v11018_v52  ;;  %14082 = vst [vmem:[#allocation158_spill] sm:$0xff] %v11750_v25  ;;  %v11763_v26 = vpop.permute.xlu0 %3067 }
 0x56d   : > { %8014 = vperm.xlu1 %9299, %v5993_v40   ;;  %v5365_v60 = vcombine.high %v3477_v27, %v3477_v27  ;;  %v6026_v31 = vrot.slane %v11212_v7, %v11018_v52  ;;  %v6383_v23 = vrot.slane %v11309_v44, %v11018_v52  ;;  %v5294_v20 = vrot.slane %v5280_v2, %v11018_v52  ;;  %v14087_v2 = vld [vmem:[#allocation34_spill] sm:$0xff] }
 0x56e   : > { %8029 = vperm.xlu0 %9298, %v6078_v47   ;;  %v11752_v47 = vcombine.low %v5311_v42, %v5313_v63  ;;  %v5295_v58 = vcombine.high %v5287_v48, %v5287_v48  ;;  %v5372_v1 = vrot.slane %v3477_v27, %v11018_v52  ;;  %v5345_v22 = vrot.slane %v5331_v43, %v11018_v52  ;;  %v14088_v43 = vld [vmem:[#allocation126_spill] sm:$0xff]  ;;  %v14093_v42 = vld [vmem:[#allocation165_spill] sm:$0xff] }
 0x56f   : > { %v5346_v32 = vcombine.high %v5338_v11, %v5338_v11  ;;  %v14084_v33 = vrot.slane %v11193_v19, %v11018_v52  ;;  %v14085_v7 = vrot.slane %v11286_v37, %v11018_v52  ;;  %14086 = vst [vmem:[#allocation21_spill] sm:$0xff] %v11763_v26  ;;  %v5328_v63 = vrot.slane %v5314_v62, %v11018_v52 }
 0x570   : > { %14083 = vst [vmem:[#allocation117_spill] sm:$0xff] %v11752_v47  ;;  %v3476_v27 = vmul.f32 %v11181_v9, %v14087_v2  ;;  %v3479_v15 = vmul.f32 %v14089_v28, %v14088_v43  ;;  %v5329_v6 = vcombine.high %v5321_v45, %v5321_v45  ;;  %v5379_v19 = vrot.slane %v5365_v60, %v11018_v52  ;;  %v14092_v47 = vld [vmem:[#allocation130_spill] sm:$0xff]  ;;  %v11785_v43 = vpop.permute.xlu1 %3063  ;;  %v11796_v26 = vpop.permute.xlu0 %3075 }
 0x571   : > { %v6027_v40 = vcombine.low %v14084_v33, %v6026_v31  ;;  %v6384_v44 = vcombine.low %v14085_v7, %v6383_v23  ;;  %v14090_v31 = vld [vmem:[#allocation125_spill] sm:$0xff]  ;;  %v14091_v33 = vld [vmem:[#allocation164_spill] sm:$0xff]  ;;  %v5296_v23 = vcombine.high %v5294_v20, %v5294_v20  ;;  %v5380_v7 = vcombine.high %v5372_v1, %v5372_v1  ;;  %14095 = vst [vmem:[#allocation65_spill] sm:$0xff] %v11785_v43 }
 0x572   : > { %v3478_v37 = vmul.f32 %v14091_v33, %v14090_v31  ;;  %v3481_v55 = vmul.f32 %v14093_v42, %v14092_v47  ;;  %v6060_v62 = vrot.slane %v11244_v0, %v11018_v52  ;;  %v11779_v9 = vcombine.low %v5287_v48, %v5295_v58  ;;  %v14098_v58 = vld [vmem:[#allocation179_spill] sm:$0xff]  ;;  %14100 = vst [vmem:[#allocation20_spill] sm:$0xff] %v11796_v26  ;;  %v14207_v26 = vld [vmem:[#allocation76_spill] sm:$0xff] }
 0x573   : > { %8020 = vperm.xlu1 %9299, %v6027_v40   ;;  %8083 = vperm.xlu0 %9298, %v6384_v44   ;;  %v5347_v2 = vcombine.high %v5345_v22, %v5345_v22  ;;  %v11781_v28 = vcombine.low %v5338_v11, %v5346_v32  ;;  %v6417_v60 = vrot.slane %v11335_v39, %v11018_v52 }
 0x574   : > { %v5330_v40 = vcombine.high %v5328_v63, %v5328_v63  ;;  %v5348_v44 = vcombine.high %v3476_v27, %v3476_v27  ;;  %v5355_v31 = vrot.slane %v3476_v27, %v11018_v52  ;;  %v14096_v47 = vrot.slane %v11223_v29, %v11018_v52 }
 0x575   : > { %14094 = vst [vmem:[#allocation67_spill] sm:$0xff] %v11781_v28  ;;  %v11791_v33 = vcombine.low %v5321_v45, %v5329_v6  ;;  %v5381_v0 = vcombine.high %v5379_v19, %v5379_v19  ;;  %v5399_v48 = vcombine.high %v3479_v15, %v3479_v15  ;;  %v14099_v11 = vrot.slane %v14098_v58, %v11018_v52  ;;  %v14107_v6 = vld [vmem:[#allocation22_spill] sm:$0xff] }
 0x576   : > { %v6061_v42 = vcombine.low %v14096_v47, %v6060_v62  ;;  %v11798_v39 = vcombine.low %v5372_v1, %v5380_v7  ;;  %v5406_v43 = vrot.slane %v3479_v15, %v11018_v52  ;;  %v5382_v25 = vcombine.high %v3478_v37, %v3478_v37  ;;  %v14102_v62 = vld [vmem:[#allocation171_spill] sm:$0xff] }
 0x577   : > { %14097 = vst [vmem:[#allocation161_spill] sm:$0xff] %v11791_v33  ;;  %v6418_v32 = vcombine.low %v14099_v11, %v6417_v60  ;;  %v5389_v27 = vrot.slane %v3478_v37, %v11018_v52  ;;  %v11802_v29 = vcombine.low %v5294_v20, %v5296_v23  ;;  %v5433_v45 = vcombine.high %v3481_v55, %v3481_v55 }
 0x578   : > { %14101 = vst [vmem:[#allocation77_spill] sm:$0xff] %v11798_v39  ;;  %8026 = vperm.xlu1 %9299, %v6061_v42   ;;  %v6366_v60 = vrot.slane %v14102_v62, %v11018_v52  ;;  %v5362_v47 = vrot.slane %v5348_v44, %v11018_v52  ;;  %v5363_v1 = vcombine.high %v5355_v31, %v5355_v31  ;;  %v14104_v42 = vld [vmem:[#allocation168_spill] sm:$0xff] }
 0x579   : > { %8089 = vperm.xlu0 %9298, %v6418_v32   ;;  %v5440_v7 = vrot.slane %v3481_v55, %v11018_v52  ;;  %v6451_v15 = vrot.slane %v11363_v21, %v11018_v52  ;;  %v11812_v37 = vcombine.low %v5345_v22, %v5347_v2  ;;  %v5413_v23 = vrot.slane %v5399_v48, %v11018_v52  ;;  %v11820_v32 = vpop.permute.xlu1 %3071 }
 0x57a   : > { %v14105_v58 = vrot.slane %v14104_v42, %v11018_v52  ;;  %14106 = vst [vmem:[#allocation160_spill] sm:$0xff] %v11820_v32  ;;  %v5414_v44 = vcombine.high %v5406_v43, %v5406_v43  ;;  %v5396_v62 = vrot.slane %v5382_v25, %v11018_v52  ;;  %v5397_v55 = vcombine.high %v5389_v27, %v5389_v27  ;;  %v14118_v25 = vld [vmem:[#allocation134_spill] sm:$0xff] }
 0x57b   : > { %14103 = vst [vmem:[#allocation32_spill] sm:$0xff] %v11812_v37  ;;  %v14108_v21 = vrot.slane %v14107_v6, %v11018_v52  ;;  %v11826_v2 = vcombine.low %v5328_v63, %v5330_v40  ;;  %v11830_v48 = vcombine.low %v5379_v19, %v5381_v0  ;;  %v5447_v42 = vrot.slane %v5433_v45, %v11018_v52  ;;  %v14113_v40 = vld [vmem:[#allocation129_spill] sm:$0xff]  ;;  %v14115_v19 = vld [vmem:[#allocation176_spill] sm:$0xff] }
 0x57c   : > { %v6367_v11 = vcombine.low %v14105_v58, %v6366_v60  ;;  %v11833_v60 = vpop.permute.xlu0 %3083  ;;  %v5364_v58 = vcombine.high %v5362_v47, %v5362_v47  ;;  %v11837_v28 = vcombine.low %v5355_v31, %v5363_v1  ;;  %v5448_v6 = vcombine.high %v5440_v7, %v5440_v7  ;;  %v14119_v31 = vld [vmem:[#allocation167_spill] sm:$0xff]  ;;  %v14121_v37 = vld [vmem:[#allocation169_spill] sm:$0xff] }
 0x57d   : > { %v6452_v22 = vcombine.low %v14108_v21, %v6451_v15  ;;  %14109 = vst [vmem:[#allocation30_spill] sm:$0xff] %v11826_v2  ;;  %14110 = vst [vmem:[#allocation69_spill] sm:$0xff] %v11830_v48  ;;  %v5415_v63 = vcombine.high %v5413_v23, %v5413_v23  ;;  %v14114_v15 = vld [vmem:[#allocation166_spill] sm:$0xff]  ;;  %v6400_v0 = vrot.slane %v14115_v19, %v11018_v52  ;;  %v14122_v2 = vld [vmem:[#allocation173_spill] sm:$0xff] }
 0x57e   : > { %8080 = vperm.xlu1 %9299, %v6367_v11   ;;  %14111 = vst [vmem:[#allocation33_spill] sm:$0xff] %v11833_v60  ;;  %14112 = vst [vmem:[#allocation162_spill] sm:$0xff] %v11837_v28  ;;  %v3480_v21 = vmul.f32 %v14114_v15, %v14113_v40  ;;  %v6485_v45 = vrot.slane %v11390_v41, %v11018_v52  ;;  %v11845_v11 = vcombine.low %v5406_v43, %v5414_v44  ;;  %v14124_v19 = vld [vmem:[#allocation147_spill] sm:$0xff]  ;;  %v11859_v43 = vpop.permute.xlu1 %3079  ;;  %v14141_v28 = vld [vmem:[#allocation178_spill] sm:$0xff] }
 0x57f   : > { %8095 = vperm.xlu0 %9298, %v6452_v22   ;;  %v5398_v20 = vcombine.high %v5396_v62, %v5396_v62  ;;  %v11847_v48 = vcombine.low %v5389_v27, %v5397_v55  ;;  %v3483_v1 = vmul.f32 %v14119_v31, %v14118_v25  ;;  %v5449_v39 = vcombine.high %v5447_v42, %v5447_v42  ;;  %v14120_v22 = vld [vmem:[#allocation133_spill] sm:$0xff]  ;;  %v14129_v25 = vld [vmem:[#allocation140_spill] sm:$0xff]  ;;  %v14130_v31 = vld [vmem:[#allocation170_spill] sm:$0xff] }
 0x580   : > { %14116 = vst [vmem:[#allocation34_spill] sm:$0xff] %v11845_v11  ;;  %v3482_v33 = vmul.f32 %v14121_v37, %v14120_v22  ;;  %v14123_v40 = vrot.slane %v14122_v2, %v11018_v52  ;;  %v14125_v60 = vrot.slane %v14124_v19, %v11018_v52  ;;  %14126 = vst [vmem:[#allocation163_spill] sm:$0xff] %v11859_v43  ;;  %v14139_v27 = vld [vmem:[#allocation174_spill] sm:$0xff] }
 0x581   : > { %14117 = vst [vmem:[#allocation126_spill] sm:$0xff] %v11847_v48  ;;  %v11861_v44 = vcombine.low %v5362_v47, %v5364_v58  ;;  %v11865_v55 = vcombine.low %v5440_v7, %v5448_v6  ;;  %v3485_v37 = vmul.f32 %v14130_v31, %v14129_v25  ;;  %v5416_v22 = vcombine.high %v3480_v21, %v3480_v21  ;;  %v14134_v25 = vld [vmem:[#allocation175_spill] sm:$0xff] }
 0x582   : > { %v6401_v15 = vcombine.low %v14123_v40, %v6400_v0  ;;  %v6486_v41 = vcombine.low %v14125_v60, %v6485_v45  ;;  %v5423_v2 = vrot.slane %v3480_v21, %v11018_v52  ;;  %v14131_v0 = vld [vmem:[#allocation14_spill] sm:$0xff]  ;;  %v11872_v45 = vpop.permute.xlu0 %3091  ;;  %v11874_v47 = vcombine.low %v5413_v23, %v5415_v63  ;;  %v14138_v58 = vld [vmem:[#allocation71_spill] sm:$0xff] }
 0x583   : > { %14127 = vst [vmem:[#allocation125_spill] sm:$0xff] %v11861_v44  ;;  %14128 = vst [vmem:[#allocation164_spill] sm:$0xff] %v11865_v55  ;;  %v6434_v60 = vrot.slane %v14131_v0, %v11018_v52  ;;  %v5467_v7 = vcombine.high %v3483_v1, %v3483_v1  ;;  %v5474_v6 = vrot.slane %v3483_v1, %v11018_v52 }
 0x584   : > { %8086 = vperm.xlu1 %9299, %v6401_v15   ;;  %8101 = vperm.xlu0 %9298, %v6486_v41   ;;  %14132 = vst [vmem:[#allocation130_spill] sm:$0xff] %v11872_v45  ;;  %14133 = vst [vmem:[#allocation165_spill] sm:$0xff] %v11874_v47  ;;  %v5450_v40 = vcombine.high %v3482_v33, %v3482_v33  ;;  %v5457_v19 = vrot.slane %v3482_v33, %v11018_v52  ;;  %v14136_v41 = vld [vmem:[#allocation150_spill] sm:$0xff]  ;;  %v14140_v33 = vld [vmem:[#allocation73_spill] sm:$0xff] }
 0x585   : > { %v14135_v21 = vrot.slane %v14134_v25, %v11018_v52  ;;  %v6519_v31 = vrot.slane %v14136_v41, %v11018_v52  ;;  %v11885_v0 = vcombine.low %v5396_v62, %v5398_v20  ;;  %v5501_v63 = vcombine.high %v3485_v37, %v3485_v37  ;;  %v11897_v20 = vpop.permute.xlu1 %3087 }
 0x586   : > { %v3391_v11 = vmul.f32 %v14139_v27, %v14138_v58  ;;  %v5430_v1 = vrot.slane %v5416_v22, %v11018_v52  ;;  %v5431_v47 = vcombine.high %v5423_v2, %v5423_v2  ;;  %v3393_v44 = vmul.f32 %v14141_v28, %v14140_v33  ;;  %14144 = vst [vmem:[#allocation171_spill] sm:$0xff] %v11897_v20  ;;  %v14147_v27 = vld [vmem:[#allocation16_spill] sm:$0xff] }
 0x587   : > { %v6435_v15 = vcombine.low %v14135_v21, %v6434_v60  ;;  %14137 = vst [vmem:[#allocation179_spill] sm:$0xff] %v11885_v0  ;;  %v14142_v60 = vld [vmem:[#allocation148_spill] sm:$0xff]  ;;  %v11899_v62 = vcombine.low %v5447_v42, %v5449_v39  ;;  %v5481_v41 = vrot.slane %v5467_v7, %v11018_v52  ;;  %v11903_v23 = vrot.slane %v3485_v37, %v11018_v52  ;;  %v14150_v42 = vld [vmem:[#allocation137_spill] sm:$0xff] }
 0x588   : > { %v14143_v25 = vrot.slane %v14142_v60, %v11018_v52  ;;  %v6468_v22 = vrot.slane %v14147_v27, %v11018_v52  ;;  %v5482_v58 = vcombine.high %v5474_v6, %v5474_v6  ;;  %v5465_v33 = vcombine.high %v5457_v19, %v5457_v19  ;;  %v14151_v7 = vld [vmem:[#allocation172_spill] sm:$0xff] }
 0x589   : > { %8092 = vperm.xlu1 %9299, %v6435_v15   ;;  %14145 = vst [vmem:[#allocation168_spill] sm:$0xff] %v11899_v62  ;;  %14146 = vst [vmem:[#allocation22_spill] sm:$0xff] %v11903_v23  ;;  %v5464_v15 = vrot.slane %v5450_v40, %v11018_v52  ;;  %v11913_v39 = vrot.slane %v5501_v63, %v11018_v52  ;;  %v3484_v37 = vmul.f32 %v14151_v7, %v14150_v42  ;;  %v14153_v62 = vld [vmem:[#allocation177_spill] sm:$0xff]  ;;  %v14156_v63 = vld [vmem:[#allocation180_spill] sm:$0xff] }
 0x58a   : > { %v6520_v21 = vcombine.low %v14143_v25, %v6519_v31  ;;  %v11910_v31 = vpop.permute.xlu0 %3099  ;;  %v3903_v60 = vcombine.high %v3391_v11, %v3391_v11  ;;  %v14152_v25 = vld [vmem:[#allocation141_spill] sm:$0xff]  ;;  %v5432_v48 = vcombine.high %v5430_v1, %v5430_v1  ;;  %v11921_v28 = vcombine.low %v5423_v2, %v5431_v47  ;;  %v14167_v47 = vld [vmem:[#allocation70_spill] sm:$0xff] }
 0x58b   : > { %14148 = vst [vmem:[#allocation129_spill] sm:$0xff] %v11910_v31  ;;  %14149 = vst [vmem:[#allocation166_spill] sm:$0xff] %v11913_v39  ;;  %v11919_v27 = vmul.f32 %v14153_v62, %v14152_v25  ;;  %v3910_v40 = vrot.slane %v3391_v11, %v11018_v52  ;;  %v3937_v55 = vcombine.high %v3393_v44, %v3393_v44  ;;  %v14158_v42 = vld [vmem:[#allocation189_spill] sm:$0xff]  ;;  %v11936_v11 = vpop.permute.xlu1 %3095 }
 0x58c   : > { %8107 = vperm.xlu0 %9298, %v6520_v21   ;;  %14155 = vst [vmem:[#allocation134_spill] sm:$0xff] %v11921_v28  ;;  %v5483_v21 = vcombine.high %v5481_v41, %v5481_v41  ;;  %v14157_v31 = vrot.slane %v14156_v63, %v11018_v52  ;;  %v6553_v7 = vrot.slane %v14158_v42, %v11018_v52  ;;  %14161 = vst [vmem:[#allocation169_spill] sm:$0xff] %v11936_v11  ;;  %v14162_v63 = vld [vmem:[#allocation151_spill] sm:$0xff]  ;;  %v14169_v39 = vld [vmem:[#allocation81_spill] sm:$0xff] }
 0x58d   : > { %14154 = vst [vmem:[#allocation176_spill] sm:$0xff] %v11919_v27  ;;  %v11931_v45 = vcombine.low %v5474_v6, %v5482_v58  ;;  %v5466_v62 = vcombine.high %v5464_v15, %v5464_v15  ;;  %v11933_v25 = vcombine.low %v5457_v19, %v5465_v33  ;;  %v3944_v2 = vrot.slane %v3393_v44, %v11018_v52  ;;  %v14164_v6 = vld [vmem:[#allocation183_spill] sm:$0xff] }
 0x58e   : > { %v6469_v20 = vcombine.low %v14157_v31, %v6468_v22  ;;  %v3917_v0 = vrot.slane %v3903_v60, %v11018_v52  ;;  %v14163_v22 = vrot.slane %v14162_v63, %v11018_v52  ;;  %v6502_v58 = vrot.slane %v14164_v6, %v11018_v52  ;;  %v11951_v23 = vpop.permute.xlu0 %3107  ;;  %v14168_v60 = vld [vmem:[#allocation13_spill] sm:$0xff]  ;;  %v14175_v28 = vld [vmem:[#allocation79_spill] sm:$0xff] }
 0x58f   : > { %14159 = vst [vmem:[#allocation167_spill] sm:$0xff] %v11931_v45  ;;  %14160 = vst [vmem:[#allocation133_spill] sm:$0xff] %v11933_v25  ;;  %v11946_v42 = vcombine.low %v5430_v1, %v5432_v48  ;;  %v3918_v19 = vcombine.high %v3910_v40, %v3910_v40  ;;  %v3951_v33 = vrot.slane %v3937_v55, %v11018_v52  ;;  %v14170_v45 = vld [vmem:[#allocation181_spill] sm:$0xff]  ;;  %v14173_v1 = vld [vmem:[#allocation154_spill] sm:$0xff] }
 0x590   : > { %8098 = vperm.xlu1 %9299, %v6469_v20   ;;  %v6554_v31 = vcombine.low %v14163_v22, %v6553_v7  ;;  %14166 = vst [vmem:[#allocation147_spill] sm:$0xff] %v11951_v23  ;;  %v3392_v20 = vmul.f32 %v14168_v60, %v14167_v47  ;;  %v3395_v63 = vmul.f32 %v14170_v45, %v14169_v39  ;;  %v14171_v7 = vld [vmem:[#allocation28_spill] sm:$0xff]  ;;  %v14178_v60 = vld [vmem:[#allocation90_spill] sm:$0xff]  ;;  %v14189_v25 = vld [vmem:[#allocation85_spill] sm:$0xff] }
 0x591   : > { %14165 = vst [vmem:[#allocation173_spill] sm:$0xff] %v11946_v42  ;;  %v14172_v22 = vrot.slane %v14171_v7, %v11018_v52  ;;  %v6587_v6 = vrot.slane %v14173_v1, %v11018_v52  ;;  %v11962_v44 = vcombine.low %v5481_v41, %v5483_v21  ;;  %v5484_v27 = vcombine.high %v3484_v37, %v3484_v37  ;;  %v14176_v42 = vld [vmem:[#allocation45_spill] sm:$0xff]  ;;  %v14179_v45 = vld [vmem:[#allocation146_spill] sm:$0xff] }
 0x592   : > { %8113 = vperm.xlu0 %9298, %v6554_v31   ;;  %v3952_v55 = vcombine.high %v3944_v2, %v3944_v2  ;;  %v3394_v23 = vmul.f32 %v14176_v42, %v14175_v28  ;;  %v11966_v11 = vcombine.low %v5464_v15, %v5466_v62  ;;  %v3919_v47 = vcombine.high %v3917_v0, %v3917_v0  ;;  %v14180_v31 = vld [vmem:[#allocation153_spill] sm:$0xff]  ;;  %v11979_v15 = vpop.permute.xlu1 %3103 }
 0x593   : > { %v6503_v48 = vcombine.low %v14172_v22, %v6502_v58  ;;  %14174 = vst [vmem:[#allocation140_spill] sm:$0xff] %v11962_v44  ;;  %v3397_v39 = vmul.f32 %v14179_v45, %v14178_v60  ;;  %v14181_v58 = vrot.slane %v14180_v31, %v11018_v52  ;;  %v11975_v21 = vcombine.low %v3910_v40, %v3918_v19  ;;  %v14182_v1 = vld [vmem:[#allocation149_spill] sm:$0xff]  ;;  %v11991_v31 = vpop.permute.xlu0 %3185 }
 0x594   : > { %14177 = vst [vmem:[#allocation170_spill] sm:$0xff] %v11966_v11  ;;  %v3953_v22 = vcombine.high %v3951_v33, %v3951_v33  ;;  %v6536_v28 = vrot.slane %v14182_v1, %v11018_v52  ;;  %14183 = vst [vmem:[#allocation14_spill] sm:$0xff] %v11979_v15  ;;  %v3920_v62 = vcombine.high %v3392_v20, %v3392_v20 }
 0x595   : > { %8104 = vperm.xlu1 %9299, %v6503_v48   ;;  %v6588_v7 = vcombine.low %v14181_v58, %v6587_v6  ;;  %v3927_v42 = vrot.slane %v3392_v20, %v11018_v52  ;;  %v3971_v60 = vcombine.high %v3395_v63, %v3395_v63  ;;  %v3978_v48 = vrot.slane %v3395_v63, %v11018_v52 }
 0x596   : > { %v11984_v6 = vrot.slane %v3484_v37, %v11018_v52  ;;  %v11987_v45 = vrot.slane %v5484_v27, %v11018_v52  ;;  %v11989_v40 = vcombine.low %v3944_v2, %v3952_v55  ;;  %v3954_v19 = vcombine.high %v3394_v23, %v3394_v23  ;;  %14186 = vst [vmem:[#allocation71_spill] sm:$0xff] %v11991_v31  ;;  %v14196_v31 = vld [vmem:[#allocation184_spill] sm:$0xff] }
 0x597   : > { %8119 = vperm.xlu0 %9298, %v6588_v7   ;;  %v11993_v58 = vcombine.low %v3917_v0, %v3919_v47  ;;  %v3961_v1 = vrot.slane %v3394_v23, %v11018_v52  ;;  %v4005_v20 = vcombine.high %v3397_v39, %v3397_v39  ;;  %v4012_v41 = vrot.slane %v3397_v39, %v11018_v52  ;;  %v14187_v7 = vld [vmem:[#allocation185_spill] sm:$0xff] }
 0x598   : > { %14184 = vst [vmem:[#allocation175_spill] sm:$0xff] %v11984_v6  ;;  %14185 = vst [vmem:[#allocation150_spill] sm:$0xff] %v11987_v45  ;;  %v11999_v37 = vcombine.low %v3951_v33, %v3953_v22  ;;  %v14188_v27 = vrot.slane %v14187_v7, %v11018_v52  ;;  %v6621_v55 = vrot.slane %v11497_v53, %v11018_v52  ;;  %v14190_v6 = vld [vmem:[#allocation182_spill] sm:$0xff]  ;;  %v12016_v53 = vpop.permute.xlu1 %3111 }
 0x599   : > { %v3934_v0 = vrot.slane %v3920_v62, %v11018_v52  ;;  %v3935_v47 = vcombine.high %v3927_v42, %v3927_v42  ;;  %v3985_v23 = vrot.slane %v3971_v60, %v11018_v52  ;;  %v3986_v44 = vcombine.high %v3978_v48, %v3978_v48  ;;  %v14191_v33 = vld [vmem:[#allocation190_spill] sm:$0xff]  ;;  %14194 = vst [vmem:[#allocation174_spill] sm:$0xff] %v12016_v53  ;;  %v12030_v53 = vpop.permute.xlu0 %3193 }
 0x59a   : > { %v6537_v2 = vcombine.low %v14188_v27, %v6536_v28  ;;  %v3968_v39 = vrot.slane %v3954_v19, %v11018_v52  ;;  %v3396_v63 = vmul.f32 %v14190_v6, %v14189_v25  ;;  %v14192_v22 = vrot.slane %v14191_v33, %v11018_v52  ;;  %v14193_v28 = vld [vmem:[#allocation187_spill] sm:$0xff]  ;;  %v14195_v45 = vld [vmem:[#allocation98_spill] sm:$0xff]  ;;  %14201 = vst [vmem:[#allocation73_spill] sm:$0xff] %v12030_v53  ;;  %v14206_v53 = vld [vmem:[#allocation104_spill] sm:$0xff] }
 0x59b   : > { %v6570_v27 = vrot.slane %v14193_v28, %v11018_v52  ;;  %v3969_v60 = vcombine.high %v3961_v1, %v3961_v1  ;;  %v4019_v11 = vrot.slane %v4005_v20, %v11018_v52  ;;  %v4020_v19 = vcombine.high %v4012_v41, %v4012_v41  ;;  %v14197_v6 = vld [vmem:[#allocation95_spill] sm:$0xff] }
 0x59c   : > { %8110 = vperm.xlu1 %9299, %v6537_v2   ;;  %v6622_v7 = vcombine.low %v14192_v22, %v6621_v55  ;;  %v3399_v25 = vmul.f32 %v14196_v31, %v14195_v45  ;;  %v14198_v2 = vld [vmem:[#allocation24_spill] sm:$0xff]  ;;  %v14199_v55 = vld [vmem:[#allocation27_spill] sm:$0xff]  ;;  %v6927_v28 = vrot.slane %v11525_v3, %v11018_v52  ;;  %v3936_v62 = vcombine.high %v3934_v0, %v3934_v0 }
 0x59d   : > { %v3398_v15 = vmul.f32 %v14198_v2, %v14197_v6  ;;  %v14200_v33 = vrot.slane %v14199_v55, %v11018_v52  ;;  %v12032_v43 = vcombine.low %v3927_v42, %v3935_v47  ;;  %v3987_v20 = vcombine.high %v3985_v23, %v3985_v23  ;;  %v14205_v42 = vld [vmem:[#allocation152_spill] sm:$0xff] }
 0x59e   : > { %8125 = vperm.xlu0 %9298, %v6622_v7   ;;  %v12034_v32 = vcombine.low %v3978_v48, %v3986_v44  ;;  %v3970_v45 = vcombine.high %v3968_v39, %v3968_v39  ;;  %v3988_v31 = vcombine.high %v3396_v63, %v3396_v63  ;;  %v3995_v6 = vrot.slane %v3396_v63, %v11018_v52 }
 0x59f   : > { %v6571_v22 = vcombine.low %v14200_v33, %v6570_v27  ;;  %v14203_v7 = vrot.slane %v11513_v8, %v11018_v52  ;;  %v12040_v2 = vcombine.low %v3961_v1, %v3969_v60  ;;  %v4021_v3 = vcombine.high %v4019_v11, %v4019_v11  ;;  %v14213_v60 = vld [vmem:[#allocation101_spill] sm:$0xff] }
 0x5a0   : > { %14202 = vst [vmem:[#allocation178_spill] sm:$0xff] %v12034_v32  ;;  %v12042_v55 = vcombine.low %v4012_v41, %v4020_v19  ;;  %v6604_v47 = vrot.slane %v14205_v42, %v11018_v52  ;;  %v4039_v33 = vcombine.high %v3399_v25, %v3399_v25  ;;  %v4046_v44 = vrot.slane %v3399_v25, %v11018_v52  ;;  %v14218_v42 = vld [vmem:[#allocation110_spill] sm:$0xff] }
 0x5a1   : > { %8116 = vperm.xlu1 %9299, %v6571_v22   ;;  %v6928_v27 = vcombine.low %v14203_v7, %v6927_v28  ;;  %v4022_v48 = vcombine.high %v3398_v15, %v3398_v15  ;;  %v3401_v63 = vmul.f32 %v14207_v26, %v14206_v53  ;;  %v12049_v22 = vpop.permute.xlu1 %3189  ;;  %v12051_v8 = vcombine.low %v3934_v0, %v3936_v62  ;;  %v12063_v53 = vpop.permute.xlu0 %3201  ;;  %v14211_v7 = vld [vmem:[#allocation188_spill] sm:$0xff]  ;;  %v14214_v0 = vld [vmem:[#allocation78_spill] sm:$0xff] }
 0x5a2   : > { %14204 = vst [vmem:[#allocation148_spill] sm:$0xff] %v12042_v55  ;;  %14208 = vst [vmem:[#allocation16_spill] sm:$0xff] %v12049_v22  ;;  %v12055_v41 = vcombine.low %v3985_v23, %v3987_v20  ;;  %v12059_v19 = vcombine.low %v3968_v39, %v3970_v45  ;;  %v4002_v25 = vrot.slane %v3988_v31, %v11018_v52  ;;  %v14219_v22 = vld [vmem:[#allocation186_spill] sm:$0xff] }
 0x5a3   : > { %8179 = vperm.xlu0 %9298, %v6928_v27   ;;  %v4003_v28 = vcombine.high %v3995_v6, %v3995_v6  ;;  %v4029_v26 = vrot.slane %v3398_v15, %v11018_v52  ;;  %14209 = vst [vmem:[#allocation137_spill] sm:$0xff] %v12063_v53  ;;  %v12067_v62 = vcombine.low %v4019_v11, %v4021_v3 }
 0x5a4   : > { %v14212_v23 = vrot.slane %v14211_v7, %v11018_v52  ;;  %v6961_v39 = vrot.slane %v11542_v12, %v11018_v52  ;;  %v4053_v45 = vrot.slane %v4039_v33, %v11018_v52  ;;  %v4054_v31 = vcombine.high %v4046_v44, %v4046_v44  ;;  %v14216_v7 = vld [vmem:[#allocation192_spill] sm:$0xff] }
 0x5a5   : > { %14210 = vst [vmem:[#allocation172_spill] sm:$0xff] %v12067_v62  ;;  %v4036_v27 = vrot.slane %v4022_v48, %v11018_v52  ;;  %v4073_v15 = vcombine.high %v3401_v63, %v3401_v63  ;;  %v3400_v11 = vmul.f32 %v14214_v0, %v14213_v60  ;;  %v14215_v3 = vrot.slane %v11519_v30, %v11018_v52  ;;  %v12088_v53 = vpop.permute.xlu1 %3197  ;;  %v14220_v60 = vld [vmem:[#allocation109_spill] sm:$0xff]  ;;  %v14221_v0 = vld [vmem:[#allocation75_spill] sm:$0xff]  ;;  %v14222_v30 = vld [vmem:[#allocation82_spill] sm:$0xff]  ;;  %v12102_v62 = vpop.permute.xlu0 %3209 }
 0x5a6   : > { %v6605_v20 = vcombine.low %v14212_v23, %v6604_v47  ;;  %v6910_v12 = vrot.slane %v14216_v7, %v11018_v52  ;;  %v4004_v23 = vcombine.high %v4002_v25, %v4002_v25  ;;  %v12085_v33 = vcombine.low %v3995_v6, %v4003_v28  ;;  %14217 = vst [vmem:[#allocation141_spill] sm:$0xff] %v12088_v53 }
 0x5a7   : > { %v6962_v47 = vcombine.low %v14215_v3, %v6961_v39  ;;  %v4037_v1 = vcombine.high %v4029_v26, %v4029_v26  ;;  %v4080_v48 = vrot.slane %v3401_v63, %v11018_v52  ;;  %v3403_v55 = vmul.f32 %v14219_v22, %v14218_v42  ;;  %14225 = vst [vmem:[#allocation180_spill] sm:$0xff] %v12102_v62 }
 0x5a8   : > { %8122 = vperm.xlu1 %9299, %v6605_v20   ;;  %v3402_v20 = vmul.f32 %v14221_v0, %v14220_v60  ;;  %v14223_v39 = vrot.slane %v14222_v30, %v11018_v52  ;;  %v6995_v6 = vrot.slane %v11586_v38, %v11018_v52  ;;  %v4055_v28 = vcombine.high %v4053_v45, %v4053_v45  ;;  %v14226_v60 = vld [vmem:[#allocation116_spill] sm:$0xff] }
 0x5a9   : > { %8185 = vperm.xlu0 %9298, %v6962_v47   ;;  %v12099_v7 = vcombine.low %v4046_v44, %v4054_v31  ;;  %v4038_v63 = vcombine.high %v4036_v27, %v4036_v27  ;;  %v4087_v53 = vrot.slane %v4073_v15, %v11018_v52  ;;  %v4056_v22 = vcombine.high %v3400_v11, %v3400_v11  ;;  %v14227_v47 = vld [vmem:[#allocation84_spill] sm:$0xff]  ;;  %v14230_v15 = vld [vmem:[#allocation47_spill] sm:$0xff] }
 0x5aa   : > { %v6911_v3 = vcombine.low %v14223_v39, %v6910_v12  ;;  %v4063_v42 = vrot.slane %v3400_v11, %v11018_v52  ;;  %v3405_v0 = vmul.f32 %v14227_v47, %v14226_v60  ;;  %v14228_v12 = vrot.slane %v11573_v24, %v11018_v52 }
 0x5ab   : > { %14224 = vst [vmem:[#allocation177_spill] sm:$0xff] %v12099_v7  ;;  %v12110_v38 = vcombine.low %v4002_v25, %v4004_v23  ;;  %v12112_v44 = vcombine.low %v4029_v26, %v4037_v1  ;;  %v4088_v31 = vcombine.high %v4080_v48, %v4080_v48  ;;  %v6944_v39 = vrot.slane %v14230_v15, %v11018_v52  ;;  %v12126_v26 = vpop.permute.xlu1 %3205  ;;  %v14240_v7 = vld [vmem:[#allocation18_spill] sm:$0xff] }
 0x5ac   : > { %8176 = vperm.xlu1 %9299, %v6911_v3   ;;  %v6996_v30 = vcombine.low %v14228_v12, %v6995_v6  ;;  %v4107_v62 = vcombine.high %v3403_v55, %v3403_v55  ;;  %v4114_v46 = vrot.slane %v3403_v55, %v11018_v52  ;;  %v4090_v11 = vcombine.high %v3402_v20, %v3402_v20  ;;  %v14233_v12 = vld [vmem:[#allocation191_spill] sm:$0xff] }
 0x5ad   : > { %14229 = vst [vmem:[#allocation189_spill] sm:$0xff] %v12112_v44  ;;  %v4097_v32 = vrot.slane %v3402_v20, %v11018_v52  ;;  %v12120_v24 = vcombine.low %v4053_v45, %v4055_v28  ;;  %v12124_v25 = vcombine.low %v4036_v27, %v4038_v63  ;;  %14232 = vst [vmem:[#allocation183_spill] sm:$0xff] %v12126_v26  ;;  %v12138_v63 = vpop.permute.xlu0 %3217  ;;  %v14236_v20 = vld [vmem:[#allocation114_spill] sm:$0xff]  ;;  %v14242_v44 = vld [vmem:[#allocation120_spill] sm:$0xff] }
 0x5ae   : > { %8191 = vperm.xlu0 %9298, %v6996_v30   ;;  %v4089_v23 = vcombine.high %v4087_v53, %v4087_v53  ;;  %v4070_v6 = vrot.slane %v4056_v22, %v11018_v52  ;;  %v4071_v55 = vcombine.high %v4063_v42, %v4063_v42  ;;  %v4141_v60 = vcombine.high %v3405_v0, %v3405_v0 }
 0x5af   : > { %14231 = vst [vmem:[#allocation151_spill] sm:$0xff] %v12120_v24  ;;  %v12131_v47 = vcombine.low %v4080_v48, %v4088_v31  ;;  %v14234_v45 = vrot.slane %v14233_v12, %v11018_v52  ;;  %v7029_v27 = vrot.slane %v11607_v56, %v11018_v52  ;;  %14235 = vst [vmem:[#allocation70_spill] sm:$0xff] %v12138_v63  ;;  %v14237_v48 = vld [vmem:[#allocation49_spill] sm:$0xff]  ;;  %v14239_v56 = vld [vmem:[#allocation55_spill] sm:$0xff] }
 0x5b0   : > { %v4121_v30 = vrot.slane %v4107_v62, %v11018_v52  ;;  %v4122_v15 = vcombine.high %v4114_v46, %v4114_v46  ;;  %v4104_v22 = vrot.slane %v4090_v11, %v11018_v52  ;;  %v4105_v1 = vcombine.high %v4097_v32, %v4097_v32 }
 0x5b1   : > { %v6945_v28 = vcombine.low %v14234_v45, %v6944_v39  ;;  %v4148_v3 = vrot.slane %v3405_v0, %v11018_v52  ;;  %v3404_v31 = vmul.f32 %v14237_v48, %v14236_v20  ;;  %v14238_v39 = vrot.slane %v11579_v54, %v11018_v52  ;;  %v14241_v0 = vld [vmem:[#allocation89_spill] sm:$0xff]  ;;  %v14244_v48 = vld [vmem:[#allocation155_spill] sm:$0xff] }
 0x5b2   : > { %v6978_v45 = vrot.slane %v14239_v56, %v11018_v52  ;;  %v12150_v63 = vcombine.low %v4087_v53, %v4089_v23  ;;  %v4072_v62 = vcombine.high %v4070_v6, %v4070_v6  ;;  %v12152_v26 = vcombine.low %v4063_v42, %v4071_v55  ;;  %v14243_v20 = vld [vmem:[#allocation193_spill] sm:$0xff]  ;;  %v12164_v23 = vpop.permute.xlu1 %3213 }
 0x5b3   : > { %8182 = vperm.xlu1 %9299, %v6945_v28   ;;  %v7030_v12 = vcombine.low %v14238_v39, %v7029_v27  ;;  %v4155_v11 = vrot.slane %v4141_v60, %v11018_v52  ;;  %v3423_v24 = vmul.f32 %v14241_v0, %v14240_v7  ;;  %v3406_v28 = vmul.f32 %v14243_v20, %v14242_v44  ;;  %v12174_v0 = vpop.permute.xlu0 %3225 }
 0x5b4   : > { %v14245_v54 = vrot.slane %v14244_v48, %v11018_v52  ;;  %v7063_v53 = vrot.slane %v11665_v59, %v11018_v52  ;;  %14246 = vst [vmem:[#allocation13_spill] sm:$0xff] %v12164_v23  ;;  %v4123_v42 = vcombine.high %v4121_v30, %v4121_v30  ;;  %v12166_v55 = vcombine.low %v4114_v46, %v4122_v15 }
 0x5b5   : > { %8197 = vperm.xlu0 %9298, %v7030_v12   ;;  %v4106_v60 = vcombine.high %v4104_v22, %v4104_v22  ;;  %v12168_v39 = vcombine.low %v4097_v32, %v4105_v1  ;;  %v4156_v7 = vcombine.high %v4148_v3, %v4148_v3  ;;  %v4124_v56 = vcombine.high %v3404_v31, %v3404_v31  ;;  %v14250_v32 = vld [vmem:[#allocation195_spill] sm:$0xff] }
 0x5b6   : > { %v6979_v27 = vcombine.low %v14245_v54, %v6978_v45  ;;  %14247 = vst [vmem:[#allocation81_spill] sm:$0xff] %v12166_v55  ;;  %v4131_v44 = vrot.slane %v3404_v31, %v11018_v52  ;;  %v14248_v12 = vrot.slane %v11645_v18, %v11018_v52  ;;  %14249 = vst [vmem:[#allocation181_spill] sm:$0xff] %v12174_v0  ;;  %v14251_v54 = vld [vmem:[#allocation17_spill] sm:$0xff]  ;;  %v14259_v18 = vld [vmem:[#allocation15_spill] sm:$0xff] }
 0x5b7   : > { %v12178_v20 = vcombine.low %v4070_v6, %v4072_v62  ;;  %v4157_v46 = vcombine.high %v4155_v11, %v4155_v11  ;;  %v7012_v1 = vrot.slane %v14250_v32, %v11018_v52  ;;  %v4447_v15 = vcombine.high %v3423_v24, %v3423_v24 }
 0x5b8   : > { %8188 = vperm.xlu1 %9299, %v6979_v27   ;;  %v7064_v45 = vcombine.low %v14248_v12, %v7063_v53  ;;  %v4454_v48 = vrot.slane %v3423_v24, %v11018_v52  ;;  %v4158_v31 = vcombine.high %v3406_v28, %v3406_v28  ;;  %v14252_v27 = vld [vmem:[#allocation88_spill] sm:$0xff]  ;;  %v12187_v53 = vcombine.low %v4121_v30, %v4123_v42  ;;  %v14256_v42 = vld [vmem:[#allocation51_spill] sm:$0xff]  ;;  %v12210_v12 = vpop.permute.xlu0 %3233 }
 0x5b9   : > { %v3425_v23 = vmul.f32 %v14252_v27, %v14251_v54  ;;  %v12191_v62 = vcombine.low %v4104_v22, %v4106_v60  ;;  %v12195_v32 = vcombine.low %v4148_v3, %v4156_v7  ;;  %v4138_v24 = vrot.slane %v4124_v56, %v11018_v52  ;;  %v12198_v54 = vpop.permute.xlu1 %3221  ;;  %14258 = vst [vmem:[#allocation45_spill] sm:$0xff] %v12210_v12 }
 0x5ba   : > { %8203 = vperm.xlu0 %9298, %v7064_v45   ;;  %v4139_v59 = vcombine.high %v4131_v44, %v4131_v44  ;;  %14254 = vst [vmem:[#allocation154_spill] sm:$0xff] %v12198_v54  ;;  %v12200_v45 = vcombine.low %v4155_v11, %v4157_v46  ;;  %v4165_v30 = vrot.slane %v3406_v28, %v11018_v52  ;;  %v14260_v11 = vld [vmem:[#allocation94_spill] sm:$0xff]  ;;  %v14261_v54 = vld [vmem:[#allocation29_spill] sm:$0xff] }
 0x5bb   : > { %14253 = vst [vmem:[#allocation28_spill] sm:$0xff] %v12195_v32  ;;  %v14257_v27 = vrot.slane %v14256_v42, %v11018_v52  ;;  %v7097_v22 = vrot.slane %v11683_v61, %v11018_v52  ;;  %v4461_v60 = vrot.slane %v4447_v15, %v11018_v52  ;;  %v4462_v3 = vcombine.high %v4454_v48, %v4454_v48  ;;  %v14262_v28 = vld [vmem:[#allocation93_spill] sm:$0xff] }
 0x5bc   : > { %14255 = vst [vmem:[#allocation79_spill] sm:$0xff] %v12200_v45  ;;  %v4172_v7 = vrot.slane %v4158_v31, %v11018_v52  ;;  %v4481_v56 = vcombine.high %v3425_v23, %v3425_v23  ;;  %v3424_v46 = vmul.f32 %v14260_v11, %v14259_v18  ;;  %v3427_v0 = vmul.f32 %v14262_v28, %v14261_v54  ;;  %v14264_v11 = vld [vmem:[#allocation23_spill] sm:$0xff]  ;;  %v14265_v45 = vld [vmem:[#allocation100_spill] sm:$0xff] }
 0x5bd   : > { %v7013_v6 = vcombine.low %v14257_v27, %v7012_v1  ;;  %v14263_v1 = vrot.slane %v11656_v49, %v11018_v52  ;;  %v7046_v61 = vrot.slane %v11602_v17, %v11018_v52  ;;  %v4140_v31 = vcombine.high %v4138_v24, %v4138_v24 }
 0x5be   : > { %v12223_v27 = vcombine.low %v4131_v44, %v4139_v59  ;;  %v4488_v12 = vrot.slane %v3425_v23, %v11018_v52  ;;  %v4173_v18 = vcombine.high %v4165_v30, %v4165_v30  ;;  %v3426_v54 = vmul.f32 %v14265_v45, %v14264_v11  ;;  %v12236_v59 = vpop.permute.xlu1 %3229 }
 0x5bf   : > { %8194 = vperm.xlu1 %9299, %v7013_v6   ;;  %v7098_v42 = vcombine.low %v14263_v1, %v7097_v22  ;;  %v14266_v49 = vrot.slane %v11575_v13, %v11018_v52  ;;  %v7131_v17 = vrot.slane %v11731_v4, %v11018_v52  ;;  %v4463_v22 = vcombine.high %v4461_v60, %v4461_v60 }
 0x5c0   : > { %v12233_v28 = vcombine.low %v4454_v48, %v4462_v3  ;;  %v4174_v1 = vcombine.high %v4172_v7, %v4172_v7  ;;  %v4495_v44 = vrot.slane %v4481_v56, %v11018_v52  ;;  %14268 = vst [vmem:[#allocation146_spill] sm:$0xff] %v12236_v59  ;;  %v4464_v23 = vcombine.high %v3424_v46, %v3424_v46  ;;  %v12247_v56 = vpop.permute.xlu0 %3241  ;;  %v14272_v59 = vld [vmem:[#allocation194_spill] sm:$0xff] }
 0x5c1   : > { %8209 = vperm.xlu0 %9298, %v7098_v42   ;;  %v7047_v6 = vcombine.low %v14266_v49, %v7046_v61  ;;  %v4471_v15 = vrot.slane %v3424_v46, %v11018_v52  ;;  %v4515_v45 = vcombine.high %v3427_v0, %v3427_v0  ;;  %v14269_v13 = vrot.slane %v11701_v14, %v11018_v52 }
 0x5c2   : > { %14267 = vst [vmem:[#allocation90_spill] sm:$0xff] %v12233_v28  ;;  %v12242_v61 = vcombine.low %v4138_v24, %v4140_v31  ;;  %v4496_v4 = vcombine.high %v4488_v12, %v4488_v12  ;;  %v4522_v48 = vrot.slane %v3427_v0, %v11018_v52  ;;  %v7080_v3 = vrot.slane %v11614_v5, %v11018_v52 }
 0x5c3   : > { %8200 = vperm.xlu1 %9299, %v7047_v6   ;;  %v7132_v42 = vcombine.low %v14269_v13, %v7131_v17  ;;  %14270 = vst [vmem:[#allocation153_spill] sm:$0xff] %v12247_v56  ;;  %v12249_v11 = vcombine.low %v4165_v30, %v4173_v18  ;;  %v4498_v49 = vcombine.high %v3426_v54, %v3426_v54  ;;  %v14271_v6 = vld [vmem:[#allocation36_spill] sm:$0xff]  ;;  %v14274_v13 = vld [vmem:[#allocation106_spill] sm:$0xff] }
 0x5c4   : > { %v4505_v46 = vrot.slane %v3426_v54, %v11018_v52  ;;  %v3429_v32 = vmul.f32 %v14272_v59, %v14271_v6  ;;  %v12256_v24 = vcombine.low %v4461_v60, %v4463_v22  ;;  %v4497_v5 = vcombine.high %v4495_v44, %v4495_v44  ;;  %v12271_v22 = vpop.permute.xlu1 %3237  ;;  %v12273_v0 = vpop.permute.xlu0 %7984  ;;  %v14280_v56 = vld [vmem:[#allocation38_spill] sm:$0xff] }
 0x5c5   : > { %8215 = vperm.xlu0 %9298, %v7132_v42   ;;  %v12260_v31 = vcombine.low %v4172_v7, %v4174_v1  ;;  %v4478_v30 = vrot.slane %v4464_v23, %v11018_v52  ;;  %v4479_v18 = vcombine.high %v4471_v15, %v4471_v15  ;;  %v4529_v54 = vrot.slane %v4515_v45, %v11018_v52  ;;  %v14278_v45 = vld [vmem:[#allocation26_spill] sm:$0xff] }
 0x5c6   : > { %14273 = vst [vmem:[#allocation149_spill] sm:$0xff] %v12256_v24  ;;  %v12264_v17 = vcombine.low %v4488_v12, %v4496_v4  ;;  %v4530_v59 = vcombine.high %v4522_v48, %v4522_v48  ;;  %v14275_v42 = vrot.slane %v14274_v13, %v11018_v52  ;;  %v7165_v60 = vrot.slane %v11741_v57, %v11018_v52  ;;  %v14279_v4 = vld [vmem:[#allocation156_spill] sm:$0xff]  ;;  %v14281_v13 = vld [vmem:[#allocation99_spill] sm:$0xff] }
 0x5c7   : > { %14276 = vst [vmem:[#allocation185_spill] sm:$0xff] %v12271_v22  ;;  %14277 = vst [vmem:[#allocation85_spill] sm:$0xff] %v12273_v0  ;;  %v4512_v1 = vrot.slane %v4498_v49, %v11018_v52  ;;  %v4513_v23 = vcombine.high %v4505_v46, %v4505_v46  ;;  %v4549_v12 = vcombine.high %v3429_v32, %v3429_v32 }
 0x5c8   : > { %v7081_v6 = vcombine.low %v14275_v42, %v7080_v3  ;;  %v3428_v14 = vmul.f32 %v14279_v4, %v14278_v45  ;;  %v3431_v3 = vmul.f32 %v14281_v13, %v14280_v56  ;;  %v14282_v57 = vrot.slane %v11715_v51, %v11018_v52  ;;  %v14283_v45 = vld [vmem:[#allocation35_spill] sm:$0xff]  ;;  %v14284_v4 = vld [vmem:[#allocation53_spill] sm:$0xff]  ;;  %v12310_v13 = vpop.permute.xlu0 %7993 }
 0x5c9   : > { %v7114_v0 = vrot.slane %v11670_v16, %v11018_v52  ;;  %v12287_v22 = vcombine.low %v4495_v44, %v4497_v5  ;;  %v4480_v7 = vcombine.high %v4478_v30, %v4478_v30  ;;  %v12289_v49 = vcombine.low %v4471_v15, %v4479_v18  ;;  %14288 = vst [vmem:[#allocation190_spill] sm:$0xff] %v12310_v13  ;;  %v14297_v13 = vld [vmem:[#allocation57_spill] sm:$0xff] }
 0x5ca   : > { %8206 = vperm.xlu1 %9299, %v7081_v6   ;;  %v7166_v42 = vcombine.low %v14282_v57, %v7165_v60  ;;  %v4531_v28 = vcombine.high %v4529_v54, %v4529_v54  ;;  %v12291_v24 = vcombine.low %v4522_v48, %v4530_v59  ;;  %v3430_v55 = vmul.f32 %v14284_v4, %v14283_v45  ;;  %v14293_v4 = vld [vmem:[#allocation37_spill] sm:$0xff] }
 0x5cb   : > { %v14285_v56 = vrot.slane %v11649_v35, %v11018_v52  ;;  %v7471_v6 = vrot.slane %v11802_v29, %v11018_v52  ;;  %v4514_v16 = vcombine.high %v4512_v1, %v4512_v1  ;;  %v12300_v44 = vcombine.low %v4505_v46, %v4513_v23  ;;  %v14290_v23 = vld [vmem:[#allocation59_spill] sm:$0xff]  ;;  %v14294_v29 = vld [vmem:[#allocation105_spill] sm:$0xff] }
 0x5cc   : > { %8221 = vperm.xlu0 %9298, %v7166_v42   ;;  %v4556_v15 = vrot.slane %v3429_v32, %v11018_v52  ;;  %v4563_v5 = vrot.slane %v4549_v12, %v11018_v52  ;;  %v4532_v48 = vcombine.high %v3428_v14, %v3428_v14  ;;  %v4539_v18 = vrot.slane %v3428_v14, %v11018_v52  ;;  %v14289_v32 = vld [vmem:[#allocation40_spill] sm:$0xff] }
 0x5cd   : > { %v7115_v51 = vcombine.low %v14285_v56, %v7114_v0  ;;  %v4583_v59 = vcombine.high %v3431_v3, %v3431_v3  ;;  %v14286_v60 = vrot.slane %v11779_v9, %v11018_v52  ;;  %v12308_v0 = vpop.permute.xlu1 %3245  ;;  %v12314_v46 = vcombine.low %v4478_v30, %v4480_v7 }
 0x5ce   : > { %14287 = vst [vmem:[#allocation182_spill] sm:$0xff] %v12308_v0  ;;  %v3433_v12 = vmul.f32 %v14290_v23, %v14289_v32  ;;  %v7148_v14 = vrot.slane %v11697_v10, %v11018_v52  ;;  %v12322_v9 = vcombine.low %v4529_v54, %v4531_v28  ;;  %v4590_v42 = vrot.slane %v3431_v3, %v11018_v52 }
 0x5cf   : > { %8212 = vperm.xlu1 %9299, %v7115_v51   ;;  %v7472_v35 = vcombine.low %v14286_v60, %v7471_v6  ;;  %v4566_v45 = vcombine.high %v3430_v55, %v3430_v55  ;;  %v12327_v30 = vcombine.low %v4512_v1, %v4514_v16  ;;  %v4564_v7 = vcombine.high %v4556_v15, %v4556_v15  ;;  %v12345_v51 = vpop.permute.xlu0 %7999 }
 0x5d0   : > { %v4565_v56 = vcombine.high %v4563_v5, %v4563_v5  ;;  %v4546_v10 = vrot.slane %v4532_v48, %v11018_v52  ;;  %v4547_v6 = vcombine.high %v4539_v18, %v4539_v18  ;;  %v4597_v28 = vrot.slane %v4583_v59, %v11018_v52  ;;  %14295 = vst [vmem:[#allocation98_spill] sm:$0xff] %v12345_v51 }
 0x5d1   : > { %8275 = vperm.xlu0 %9298, %v7472_v35   ;;  %v12333_v54 = vpop.permute.xlu1 %7987  ;;  %v4573_v3 = vrot.slane %v3430_v55, %v11018_v52  ;;  %v4617_v60 = vcombine.high %v3433_v12, %v3433_v12  ;;  %v14292_v35 = vrot.slane %v11662_v36, %v11018_v52  ;;  %v6111_v16 = vrot.slane %v12051_v8, %v11018_v52  ;;  %v14296_v55 = vld [vmem:[#allocation42_spill] sm:$0xff] }
 0x5d2   : > { %14291 = vst [vmem:[#allocation187_spill] sm:$0xff] %v12333_v54  ;;  %v4598_v32 = vcombine.high %v4590_v42, %v4590_v42  ;;  %v4580_v23 = vrot.slane %v4566_v45, %v11018_v52  ;;  %v4624_v48 = vrot.slane %v3433_v12, %v11018_v52  ;;  %v3432_v59 = vmul.f32 %v14294_v29, %v14293_v4 }
 0x5d3   : > { %v7149_v1 = vcombine.low %v14292_v35, %v7148_v14  ;;  %v12347_v57 = vcombine.low %v4556_v15, %v4564_v7  ;;  %v3435_v54 = vmul.f32 %v14297_v13, %v14296_v55  ;;  %v14298_v36 = vrot.slane %v12032_v43, %v11018_v52 }
 0x5d4   : > { %v7454_v14 = vrot.slane %v11736_v50, %v11018_v52  ;;  %v12356_v45 = vcombine.low %v4563_v5, %v4565_v56  ;;  %v4548_v12 = vcombine.high %v4546_v10, %v4546_v10  ;;  %v12358_v35 = vcombine.low %v4539_v18, %v4547_v6  ;;  %v12370_v6 = vpop.permute.xlu0 %8005 }
 0x5d5   : > { %8218 = vperm.xlu1 %9299, %v7149_v1   ;;  %v6112_v8 = vcombine.low %v14298_v36, %v6111_v16  ;;  %v4599_v29 = vcombine.high %v4597_v28, %v4597_v28  ;;  %v12360_v4 = vpop.permute.xlu1 %7990  ;;  %v4581_v15 = vcombine.high %v4573_v3, %v4573_v3  ;;  %v4631_v7 = vrot.slane %v4617_v60, %v11018_v52  ;;  %v14302_v36 = vld [vmem:[#allocation39_spill] sm:$0xff]  ;;  %v14303_v60 = vld [vmem:[#allocation157_spill] sm:$0xff] }
 0x5d6   : > { %14299 = vst [vmem:[#allocation184_spill] sm:$0xff] %v12360_v4  ;;  %v14300_v13 = vrot.slane %v11705_v34, %v11018_v52  ;;  %v6145_v1 = vrot.slane %v12059_v19, %v11018_v52  ;;  %v12368_v50 = vcombine.low %v4590_v42, %v4598_v32  ;;  %v4582_v5 = vcombine.high %v4580_v23, %v4580_v23 }
 0x5d7   : > { %8035 = vperm.xlu0 %9298, %v6112_v8   ;;  %v4632_v56 = vcombine.high %v4624_v48, %v4624_v48  ;;  %v4600_v18 = vcombine.high %v3432_v59, %v3432_v59  ;;  %14301 = vst [vmem:[#allocation95_spill] sm:$0xff] %v12370_v6  ;;  %v4607_v16 = vrot.slane %v3432_v59, %v11018_v52 }
 0x5d8   : > { %v7455_v43 = vcombine.low %v14300_v13, %v7454_v14  ;;  %v4651_v55 = vcombine.high %v3435_v54, %v3435_v54  ;;  %v3434_v8 = vmul.f32 %v14303_v60, %v14302_v36  ;;  %v14304_v34 = vrot.slane %v12040_v2, %v11018_v52  ;;  %v14305_v36 = vld [vmem:[#allocation44_spill] sm:$0xff]  ;;  %v14306_v60 = vld [vmem:[#allocation115_spill] sm:$0xff] }
 0x5d9   : > { %v12380_v42 = vcombine.low %v4546_v10, %v4548_v12  ;;  %v4658_v32 = vrot.slane %v3435_v54, %v11018_v52  ;;  %v6094_v13 = vrot.slane %v11993_v58, %v11018_v52  ;;  %v12387_v6 = vcombine.low %v4573_v3, %v4581_v15  ;;  %v12398_v58 = vpop.permute.xlu1 %7996 }
 0x5da   : > { %8272 = vperm.xlu1 %9299, %v7455_v43   ;;  %v6146_v14 = vcombine.low %v14304_v34, %v6145_v1  ;;  %v4633_v43 = vcombine.high %v4631_v7, %v4631_v7  ;;  %v3437_v2 = vmul.f32 %v14306_v60, %v14305_v36  ;;  %v12391_v1 = vcombine.low %v4597_v28, %v4599_v29  ;;  %v14311_v36 = vld [vmem:[#allocation63_spill] sm:$0xff] }
 0x5db   : > { %v12395_v12 = vcombine.low %v4580_v23, %v4582_v5  ;;  %v4614_v54 = vrot.slane %v4600_v18, %v11018_v52  ;;  %14307 = vst [vmem:[#allocation24_spill] sm:$0xff] %v12398_v58  ;;  %v12400_v34 = vcombine.low %v4624_v48, %v4632_v56  ;;  %v4615_v3 = vcombine.high %v4607_v16, %v4607_v16  ;;  %v12409_v5 = vpop.permute.xlu0 %8011  ;;  %v14337_v58 = vld [vmem:[#allocation21_spill] sm:$0xff] }
 0x5dc   : > { %8041 = vperm.xlu0 %9298, %v6146_v14   ;;  %v4665_v15 = vrot.slane %v4651_v55, %v11018_v52  ;;  %v4634_v19 = vcombine.high %v3434_v8, %v3434_v8  ;;  %v4666_v59 = vcombine.high %v4658_v32, %v4658_v32  ;;  %v4641_v14 = vrot.slane %v3434_v8, %v11018_v52  ;;  %v14310_v55 = vld [vmem:[#allocation41_spill] sm:$0xff] }
 0x5dd   : > { %v14308_v28 = vrot.slane %v11975_v21, %v11018_v52  ;;  %v6179_v23 = vrot.slane %v12110_v38, %v11018_v52  ;;  %14309 = vst [vmem:[#allocation27_spill] sm:$0xff] %v12409_v5  ;;  %v12413_v56 = vcombine.low %v4631_v7, %v4633_v43  ;;  %v4685_v18 = vcombine.high %v3437_v2, %v3437_v2  ;;  %v14321_v5 = vld [vmem:[#allocation111_spill] sm:$0xff] }
 0x5de   : > { %v3436_v60 = vmul.f32 %v14311_v36, %v14310_v55  ;;  %v4616_v10 = vcombine.high %v4614_v54, %v4614_v54  ;;  %v4692_v8 = vrot.slane %v3437_v2, %v11018_v52  ;;  %v14312_v21 = vrot.slane %v12085_v33, %v11018_v52 }
 0x5df   : > { %v6095_v29 = vcombine.low %v14308_v28, %v6094_v13  ;;  %v6128_v38 = vrot.slane %v11999_v37, %v11018_v52  ;;  %v12425_v7 = vcombine.low %v4607_v16, %v4615_v3  ;;  %v4667_v43 = vcombine.high %v4665_v15, %v4665_v15  ;;  %v12435_v37 = vpop.permute.xlu1 %8002 }
 0x5e0   : > { %v6180_v13 = vcombine.low %v14312_v21, %v6179_v23  ;;  %v4648_v48 = vrot.slane %v4634_v19, %v11018_v52  ;;  %v12428_v55 = vcombine.low %v4658_v32, %v4666_v59  ;;  %v4649_v36 = vcombine.high %v4641_v14, %v4641_v14  ;;  %14314 = vst [vmem:[#allocation152_spill] sm:$0xff] %v12435_v37  ;;  %v12437_v23 = vpop.permute.xlu0 %8017  ;;  %v14316_v21 = vld [vmem:[#allocation87_spill] sm:$0xff] }
 0x5e1   : > { %8032 = vperm.xlu1 %9299, %v6095_v29   ;;  %v14313_v2 = vrot.slane %v11989_v40, %v11018_v52  ;;  %v6213_v29 = vrot.slane %v12124_v25, %v11018_v52  ;;  %14315 = vst [vmem:[#allocation104_spill] sm:$0xff] %v12437_v23  ;;  %v4699_v16 = vrot.slane %v4685_v18, %v11018_v52  ;;  %v14317_v19 = vld [vmem:[#allocation159_spill] sm:$0xff] }
 0x5e2   : > { %8047 = vperm.xlu0 %9298, %v6180_v13   ;;  %v4668_v3 = vcombine.high %v3436_v60, %v3436_v60  ;;  %v3455_v32 = vmul.f32 %v14317_v19, %v14316_v21  ;;  %v6162_v59 = vrot.slane %v12055_v41, %v11018_v52  ;;  %v12444_v13 = vcombine.low %v4614_v54, %v4616_v10  ;;  %v14320_v19 = vld [vmem:[#allocation43_spill] sm:$0xff]  ;;  %v14333_v54 = vld [vmem:[#allocation86_spill] sm:$0xff] }
 0x5e3   : > { %v6129_v33 = vcombine.low %v14313_v2, %v6128_v38  ;;  %v4700_v40 = vcombine.high %v4692_v8, %v4692_v8  ;;  %v14318_v38 = vld [vmem:[#allocation189_spill] sm:$0xff]  ;;  %v6247_v28 = vrot.slane %v12178_v20, %v11018_v52  ;;  %v4650_v23 = vcombine.high %v4648_v48, %v4648_v48 }
 0x5e4   : > { %v14319_v25 = vrot.slane %v14318_v38, %v11018_v52  ;;  %v4675_v21 = vrot.slane %v3436_v60, %v11018_v52  ;;  %v3438_v41 = vmul.f32 %v14321_v5, %v14320_v19  ;;  %v12456_v10 = vcombine.low %v4665_v15, %v4667_v43  ;;  %v14324_v15 = vld [vmem:[#allocation92_spill] sm:$0xff]  ;;  %v14325_v5 = vld [vmem:[#allocation19_spill] sm:$0xff] }
 0x5e5   : > { %8038 = vperm.xlu1 %9299, %v6129_v33   ;;  %v12460_v33 = vcombine.low %v4641_v14, %v4649_v36  ;;  %v4682_v18 = vrot.slane %v4668_v3, %v11018_v52  ;;  %v4991_v51 = vcombine.high %v3455_v32, %v3455_v32  ;;  %v4998_v60 = vrot.slane %v3455_v32, %v11018_v52 }
 0x5e6   : > { %v6214_v2 = vcombine.low %v14319_v25, %v6213_v29  ;;  %v14322_v29 = vld [vmem:[#allocation178_spill] sm:$0xff]  ;;  %v4701_v25 = vcombine.high %v4699_v16, %v4699_v16  ;;  %v12467_v37 = vcombine.low %v4692_v8, %v4700_v40  ;;  %v3457_v43 = vmul.f32 %v14325_v5, %v14324_v15  ;;  %v14332_v5 = vld [vmem:[#allocation151_spill] sm:$0xff] }
 0x5e7   : > { %v14323_v20 = vrot.slane %v14322_v29, %v11018_v52  ;;  %v14326_v14 = vrot.slane %v12152_v26, %v11018_v52  ;;  %v12478_v29 = vpop.permute.xlu0 %8023  ;;  %v12480_v3 = vcombine.low %v4648_v48, %v4650_v23  ;;  %v4683_v32 = vcombine.high %v4675_v21, %v4675_v21 }
 0x5e8   : > { %8053 = vperm.xlu0 %9298, %v6214_v2   ;;  %v14327_v2 = vld [vmem:[#allocation172_spill] sm:$0xff]  ;;  %14329 = vst [vmem:[#allocation188_spill] sm:$0xff] %v12478_v29  ;;  %v4702_v8 = vcombine.high %v3438_v41, %v3438_v41  ;;  %v6281_v40 = vrot.slane %v12191_v62, %v11018_v52  ;;  %v4709_v26 = vrot.slane %v3438_v41, %v11018_v52  ;;  %v14334_v29 = vld [vmem:[#allocation158_spill] sm:$0xff] }
 0x5e9   : > { %v6163_v38 = vcombine.low %v14323_v20, %v6162_v59  ;;  %v6248_v36 = vcombine.low %v14326_v14, %v6247_v28  ;;  %v6196_v19 = vrot.slane %v14327_v2, %v11018_v52  ;;  %v12476_v59 = vpop.permute.xlu1 %8008  ;;  %v14330_v28 = vld [vmem:[#allocation148_spill] sm:$0xff]  ;;  %v6230_v14 = vrot.slane %v14332_v5, %v11018_v52  ;;  %v14336_v5 = vld [vmem:[#allocation97_spill] sm:$0xff] }
 0x5ea   : > { %14328 = vst [vmem:[#allocation76_spill] sm:$0xff] %v12476_v59  ;;  %v4684_v48 = vcombine.high %v4682_v18, %v4682_v18  ;;  %v5005_v23 = vrot.slane %v4991_v51, %v11018_v52  ;;  %v5006_v2 = vcombine.high %v4998_v60, %v4998_v60  ;;  %v3456_v62 = vmul.f32 %v14334_v29, %v14333_v54 }
 0x5eb   : > { %8044 = vperm.xlu1 %9299, %v6163_v38   ;;  %v14331_v38 = vrot.slane %v14330_v28, %v11018_v52  ;;  %v5025_v59 = vcombine.high %v3457_v43, %v3457_v43  ;;  %v5032_v20 = vrot.slane %v3457_v43, %v11018_v52  ;;  %v14335_v41 = vrot.slane %v12168_v39, %v11018_v52  ;;  %v12510_v43 = vpop.permute.xlu0 %8029 }
 0x5ec   : > { %8059 = vperm.xlu0 %9298, %v6248_v36   ;;  %v12501_v28 = vcombine.low %v4699_v16, %v4701_v25  ;;  %v4716_v51 = vrot.slane %v4702_v8, %v11018_v52  ;;  %v3459_v54 = vmul.f32 %v14337_v58, %v14336_v5  ;;  %14339 = vst [vmem:[#allocation78_spill] sm:$0xff] %v12510_v43  ;;  %v14354_v43 = vld [vmem:[#allocation160_spill] sm:$0xff] }
 0x5ed   : > { %v6197_v15 = vcombine.low %v14331_v38, %v6196_v19  ;;  %v6282_v36 = vcombine.low %v14335_v41, %v6281_v40  ;;  %v6315_v19 = vrot.slane %v12242_v61, %v11018_v52  ;;  %v12503_v38 = vcombine.low %v4675_v21, %v4683_v32  ;;  %v12508_v29 = vpop.permute.xlu1 %8014 }
 0x5ee   : > { %14338 = vst [vmem:[#allocation101_spill] sm:$0xff] %v12508_v29  ;;  %v4717_v40 = vcombine.high %v4709_v26, %v4709_v26  ;;  %v6264_v21 = vrot.slane %v12150_v63, %v11018_v52  ;;  %v12519_v25 = vcombine.low %v4682_v18, %v4684_v48  ;;  %v5007_v32 = vcombine.high %v5005_v23, %v5005_v23 }
 0x5ef   : > { %8050 = vperm.xlu1 %9299, %v6197_v15   ;;  %v14340_v15 = vld [vmem:[#allocation177_spill] sm:$0xff]  ;;  %v12521_v58 = vcombine.low %v4998_v60, %v5006_v2  ;;  %v5008_v8 = vcombine.high %v3456_v62, %v3456_v62  ;;  %v5039_v41 = vrot.slane %v5025_v59, %v11018_v52  ;;  %v5040_v5 = vcombine.high %v5032_v20, %v5032_v20 }
 0x5f0   : > { %8065 = vperm.xlu0 %9298, %v6282_v36   ;;  %v14341_v61 = vrot.slane %v14340_v15, %v11018_v52  ;;  %v14342_v36 = vrot.slane %v12223_v27, %v11018_v52  ;;  %v4718_v18 = vcombine.high %v4716_v51, %v4716_v51  ;;  %v5015_v48 = vrot.slane %v3456_v62, %v11018_v52  ;;  %v14343_v15 = vld [vmem:[#allocation91_spill] sm:$0xff]  ;;  %v14344_v59 = vld [vmem:[#allocation65_spill] sm:$0xff] }
 0x5f1   : > { %v5059_v60 = vcombine.high %v3459_v54, %v3459_v54  ;;  %v12532_v2 = vcombine.low %v4709_v26, %v4717_v40  ;;  %v14345_v27 = vrot.slane %v12131_v47, %v11018_v52  ;;  %v5022_v62 = vrot.slane %v5008_v8, %v11018_v52  ;;  %v12547_v40 = vpop.permute.xlu1 %8020  ;;  %v14348_v8 = vld [vmem:[#allocation103_spill] sm:$0xff] }
 0x5f2   : > { %v6231_v16 = vcombine.low %v14341_v61, %v6230_v14  ;;  %v6316_v39 = vcombine.low %v14342_v36, %v6315_v19  ;;  %v6349_v14 = vrot.slane %v12260_v31, %v11018_v52  ;;  %v3458_v61 = vmul.f32 %v14344_v59, %v14343_v15  ;;  %14346 = vst [vmem:[#allocation192_spill] sm:$0xff] %v12547_v40  ;;  %v12549_v15 = vpop.permute.xlu0 %8083 }
 0x5f3   : > { %v6265_v19 = vcombine.low %v14345_v27, %v6264_v21  ;;  %v6298_v31 = vrot.slane %v12187_v53, %v11018_v52  ;;  %v5066_v26 = vrot.slane %v3459_v54, %v11018_v52  ;;  %v12551_v59 = vcombine.low %v5032_v20, %v5040_v5  ;;  %v14349_v27 = vld [vmem:[#allocation20_spill] sm:$0xff]  ;;  %v14356_v20 = vld [vmem:[#allocation33_spill] sm:$0xff] }
 0x5f4   : > { %8056 = vperm.xlu1 %9299, %v6231_v16   ;;  %8071 = vperm.xlu0 %9298, %v6316_v39   ;;  %v12541_v16 = vcombine.low %v5005_v23, %v5007_v32  ;;  %v5041_v39 = vcombine.high %v5039_v41, %v5039_v41  ;;  %v14347_v47 = vrot.slane %v12249_v11, %v11018_v52 }
 0x5f5   : > { %v6655_v23 = vrot.slane %v12314_v46, %v11018_v52  ;;  %v12558_v21 = vcombine.low %v4716_v51, %v4718_v18  ;;  %v5023_v32 = vcombine.high %v5015_v48, %v5015_v48  ;;  %v5073_v54 = vrot.slane %v5059_v60, %v11018_v52  ;;  %v14353_v60 = vld [vmem:[#allocation96_spill] sm:$0xff] }
 0x5f6   : > { %v6350_v53 = vcombine.low %v14347_v47, %v6349_v14  ;;  %v3461_v36 = vmul.f32 %v14349_v27, %v14348_v8  ;;  %v5042_v5 = vcombine.high %v3458_v61, %v3458_v61  ;;  %v14352_v47 = vld [vmem:[#allocation79_spill] sm:$0xff]  ;;  %v5024_v51 = vcombine.high %v5022_v62, %v5022_v62  ;;  %v14355_v27 = vld [vmem:[#allocation108_spill] sm:$0xff] }
 0x5f7   : > { %v6332_v46 = vrot.slane %v14352_v47, %v11018_v52  ;;  %v5074_v18 = vcombine.high %v5066_v26, %v5066_v26  ;;  %v5049_v63 = vrot.slane %v3458_v61, %v11018_v52  ;;  %v3460_v40 = vmul.f32 %v14354_v43, %v14353_v60  ;;  %v14361_v60 = vld [vmem:[#allocation149_spill] sm:$0xff] }
 0x5f8   : > { %8062 = vperm.xlu1 %9299, %v6265_v19   ;;  %8077 = vperm.xlu0 %9298, %v6350_v53   ;;  %v14350_v19 = vld [vmem:[#allocation81_spill] sm:$0xff]  ;;  %v12573_v8 = vcombine.low %v5039_v41, %v5041_v39  ;;  %v3463_v29 = vmul.f32 %v14356_v20, %v14355_v27  ;;  %v14357_v53 = vrot.slane %v12289_v49, %v11018_v52  ;;  %v12588_v39 = vpop.permute.xlu0 %8089  ;;  %v14359_v49 = vld [vmem:[#allocation28_spill] sm:$0xff] }
 0x5f9   : > { %v14351_v11 = vrot.slane %v14350_v19, %v11018_v52  ;;  %v6689_v19 = vrot.slane %v12327_v30, %v11018_v52  ;;  %v12586_v47 = vcombine.low %v5015_v48, %v5023_v32  ;;  %v5075_v43 = vcombine.high %v5073_v54, %v5073_v54 }
 0x5fa   : > { %v5093_v41 = vcombine.high %v3461_v36, %v3461_v36  ;;  %v5056_v20 = vrot.slane %v5042_v5, %v11018_v52  ;;  %v6638_v27 = vrot.slane %v14361_v60, %v11018_v52  ;;  %v12599_v48 = vcombine.low %v5066_v26, %v5074_v18  ;;  %v14364_v18 = vld [vmem:[#allocation163_spill] sm:$0xff] }
 0x5fb   : > { %v6299_v14 = vcombine.low %v14351_v11, %v6298_v31  ;;  %v6656_v31 = vcombine.low %v14357_v53, %v6655_v23  ;;  %v12582_v11 = vpop.permute.xlu1 %8026  ;;  %v14360_v23 = vrot.slane %v14359_v49, %v11018_v52  ;;  %v12597_v53 = vcombine.low %v5022_v62, %v5024_v51  ;;  %v14363_v51 = vld [vmem:[#allocation102_spill] sm:$0xff] }
 0x5fc   : > { %14358 = vst [vmem:[#allocation110_spill] sm:$0xff] %v12582_v11  ;;  %v5057_v32 = vcombine.high %v5049_v63, %v5049_v63  ;;  %v5076_v61 = vcombine.high %v3460_v40, %v3460_v40  ;;  %v5083_v11 = vrot.slane %v3460_v40, %v11018_v52  ;;  %v5127_v4 = vcombine.high %v3463_v29, %v3463_v29 }
 0x5fd   : > { %8068 = vperm.xlu1 %9299, %v6299_v14   ;;  %v5100_v14 = vrot.slane %v3461_v36, %v11018_v52  ;;  %8131 = vperm.xlu0 %9298, %v6656_v31   ;;  %v6333_v30 = vcombine.low %v14360_v23, %v6332_v46  ;;  %v14362_v36 = vrot.slane %v12300_v44, %v11018_v52  ;;  %v14365_v44 = vld [vmem:[#allocation90_spill] sm:$0xff] }
 0x5fe   : > { %v6723_v46 = vrot.slane %v12380_v42, %v11018_v52  ;;  %v12609_v62 = vcombine.low %v5073_v54, %v5075_v43  ;;  %v5107_v26 = vrot.slane %v5093_v41, %v11018_v52  ;;  %v3462_v49 = vmul.f32 %v14364_v18, %v14363_v51  ;;  %v14367_v51 = vld [vmem:[#allocation113_spill] sm:$0xff]  ;;  %v14368_v18 = vld [vmem:[#allocation130_spill] sm:$0xff] }
 0x5ff   : > { %v6690_v5 = vcombine.low %v14362_v36, %v6689_v19  ;;  %v12614_v40 = vpop.permute.xlu1 %8080  ;;  %v5058_v23 = vcombine.high %v5056_v20, %v5056_v20  ;;  %v14366_v19 = vrot.slane %v14365_v44, %v11018_v52  ;;  %v6672_v42 = vrot.slane %v12287_v22, %v11018_v52  ;;  %v12621_v36 = vpop.permute.xlu0 %8095 }
 0x600   : > { %v12623_v54 = vcombine.low %v5049_v63, %v5057_v32  ;;  %v5090_v43 = vrot.slane %v5076_v61, %v11018_v52  ;;  %v5134_v41 = vrot.slane %v3463_v29, %v11018_v52  ;;  %v3465_v31 = vmul.f32 %v14368_v18, %v14367_v51 }
 0x601   : > { %8074 = vperm.xlu1 %9299, %v6333_v30   ;;  %v5108_v30 = vcombine.high %v5100_v14, %v5100_v14  ;;  %8137 = vperm.xlu0 %9298, %v6690_v5   ;;  %v6639_v60 = vcombine.low %v14366_v19, %v6638_v27  ;;  %v5091_v0 = vcombine.high %v5083_v11, %v5083_v11 }
 0x602   : > { %v5141_v5 = vrot.slane %v5127_v4, %v11018_v52  ;;  %v14369_v27 = vrot.slane %v12358_v35, %v11018_v52  ;;  %v6757_v22 = vrot.slane %v12395_v12, %v11018_v52  ;;  %v5109_v61 = vcombine.high %v5107_v26, %v5107_v26  ;;  %v14373_v12 = vld [vmem:[#allocation171_spill] sm:$0xff] }
 0x603   : > { %v5110_v32 = vcombine.high %v3462_v49, %v3462_v49  ;;  %v5117_v29 = vrot.slane %v3462_v49, %v11018_v52  ;;  %v12638_v19 = vcombine.low %v5056_v20, %v5058_v23  ;;  %v12640_v51 = vcombine.low %v5100_v14, %v5108_v30  ;;  %v8087_v63 = vpop.permute.xlu1 %8086  ;;  %v12656_v30 = vpop.permute.xlu0 %8101 }
 0x604   : > { %v6724_v44 = vcombine.low %v14369_v27, %v6723_v46  ;;  %v14370_v4 = vrot.slane %v12264_v17, %v11018_v52  ;;  %v6706_v46 = vrot.slane %v12322_v9, %v11018_v52  ;;  %v5142_v18 = vcombine.high %v5134_v41, %v5134_v41 }
 0x605   : > { %8128 = vperm.xlu1 %9299, %v6639_v60   ;;  %v5092_v60 = vcombine.high %v5090_v43, %v5090_v43  ;;  %v5161_v27 = vcombine.high %v3465_v31, %v3465_v31  ;;  %v12649_v49 = vcombine.low %v5083_v11, %v5091_v0  ;;  %v5143_v20 = vcombine.high %v5141_v5, %v5141_v5 }
 0x606   : > { %8143 = vperm.xlu0 %9298, %v6724_v44   ;;  %v6673_v35 = vcombine.low %v14370_v4, %v6672_v42  ;;  %v14371_v14 = vrot.slane %v12387_v6, %v11018_v52  ;;  %v6791_v17 = vrot.slane %v12444_v13, %v11018_v52  ;;  %v5124_v9 = vrot.slane %v5110_v32, %v11018_v52  ;;  %v14372_v4 = vld [vmem:[#allocation107_spill] sm:$0xff] }
 0x607   : > { %v5125_v42 = vcombine.high %v5117_v29, %v5117_v29  ;;  %v5168_v44 = vrot.slane %v3465_v31, %v11018_v52  ;;  %v3464_v0 = vmul.f32 %v14373_v12, %v14372_v4  ;;  %v12662_v11 = vcombine.low %v5107_v26, %v5109_v61  ;;  %v14375_v12 = vld [vmem:[#allocation119_spill] sm:$0xff]  ;;  %v14376_v26 = vld [vmem:[#allocation129_spill] sm:$0xff] }
 0x608   : > { %v6758_v23 = vcombine.low %v14371_v14, %v6757_v22  ;;  %v14374_v6 = vrot.slane %v12291_v24, %v11018_v52  ;;  %v6740_v22 = vrot.slane %v12356_v45, %v11018_v52  ;;  %v12671_v32 = vcombine.low %v5090_v43, %v5092_v60  ;;  %v8093_v43 = vpop.permute.xlu1 %8092 }
 0x609   : > { %8134 = vperm.xlu1 %9299, %v6673_v35   ;;  %v12673_v14 = vcombine.low %v5134_v41, %v5142_v18  ;;  %v5175_v31 = vrot.slane %v5161_v27, %v11018_v52  ;;  %v3467_v61 = vmul.f32 %v14376_v26, %v14375_v12  ;;  %v14377_v24 = vrot.slane %v12425_v7, %v11018_v52  ;;  %v14380_v26 = vld [vmem:[#allocation50_spill] sm:$0xff] }
 0x60a   : > { %8149 = vperm.xlu0 %9298, %v6758_v23   ;;  %v6707_v13 = vcombine.low %v14374_v6, %v6706_v46  ;;  %v12680_v23 = vcombine.low %v5141_v5, %v5143_v20  ;;  %v6825_v45 = vrot.slane %v12480_v3, %v11018_v52  ;;  %v5126_v41 = vcombine.high %v5124_v9, %v5124_v9  ;;  %v12697_v3 = vpop.permute.xlu0 %8107 }
 0x60b   : > { %v6792_v46 = vcombine.low %v14377_v24, %v6791_v17  ;;  %v12687_v60 = vcombine.low %v5117_v29, %v5125_v42  ;;  %v5176_v18 = vcombine.high %v5168_v44, %v5168_v44  ;;  %v5144_v27 = vcombine.high %v3464_v0, %v3464_v0  ;;  %v14379_v17 = vld [vmem:[#allocation48_spill] sm:$0xff] }
 0x60c   : > { %v5151_v6 = vrot.slane %v3464_v0, %v11018_v52  ;;  %v14378_v5 = vrot.slane %v12347_v57, %v11018_v52  ;;  %v6774_v7 = vrot.slane %v12391_v1, %v11018_v52  ;;  %v5177_v42 = vcombine.high %v5175_v31, %v5175_v31  ;;  %v14382_v1 = vld [vmem:[#allocation46_spill] sm:$0xff] }
 0x60d   : > { %8140 = vperm.xlu1 %9299, %v6707_v13   ;;  %v8528_v13 = vrot.slane %v12614_v40, %v14379_v17  ;;  %v5195_v12 = vcombine.high %v3467_v61, %v3467_v61  ;;  %v8537_v0 = vrot.slane %v8087_v63, %v14380_v26  ;;  %v5202_v24 = vrot.slane %v3467_v61, %v11018_v52 }
 0x60e   : > { %8155 = vperm.xlu0 %9298, %v6792_v46   ;;  %v6741_v20 = vcombine.low %v14378_v5, %v6740_v22  ;;  %v14381_v57 = vrot.slane %v12460_v33, %v11018_v52  ;;  %v8532_v46 = vrot.slane %v12549_v15, %v14382_v1  ;;  %v6859_v40 = vrot.slane %v12519_v25, %v11018_v52 }
 0x60f   : > { %v12710_v5 = vcombine.low %v5124_v9, %v5126_v41  ;;  %v12714_v35 = vcombine.low %v5168_v44, %v5176_v18  ;;  %v5158_v63 = vrot.slane %v5144_v27, %v11018_v52  ;;  %v5159_v61 = vcombine.high %v5151_v6, %v5151_v6  ;;  %v8099_v9 = vpop.permute.xlu1 %8098  ;;  %v14386_v27 = vld [vmem:[#allocation54_spill] sm:$0xff] }
 0x610   : > { %v6826_v22 = vcombine.low %v14381_v57, %v6825_v45  ;;  %v14383_v33 = vrot.slane %v12368_v50, %v11018_v52  ;;  %v6808_v15 = vrot.slane %v12413_v56, %v11018_v52  ;;  %v8533_v25 = vsel %vm1652_vm0, %v8532_v46, %v8528_v13  ;;  %v14385_v57 = vld [vmem:[#allocation169_spill] sm:$0xff] }
 0x611   : > { %8146 = vperm.xlu1 %9299, %v6741_v20   ;;  %v5209_v41 = vrot.slane %v5195_v12, %v11018_v52  ;;  %v14384_v20 = vld [vmem:[#allocation112_spill] sm:$0xff]  ;;  %v8538_v18 = vsel %vm1659_vm1, %v8537_v0, %v8533_v25  ;;  %v8547_v29 = vrot.slane %v8093_v43, %v14386_v27  ;;  %v14387_v50 = vrot.slane %v12503_v38, %v11018_v52  ;;  %v12735_v12 = vpop.permute.xlu0 %8113  ;;  %v14389_v25 = vld [vmem:[#allocation122_spill] sm:$0xff] }
 0x612   : > { %8161 = vperm.xlu0 %9298, %v6826_v22   ;;  %v6775_v45 = vcombine.low %v14383_v33, %v6774_v7  ;;  %v3466_v44 = vmul.f32 %v14385_v57, %v14384_v20  ;;  %v5210_v22 = vcombine.high %v5202_v24, %v5202_v24  ;;  %v14388_v33 = vld [vmem:[#allocation52_spill] sm:$0xff]  ;;  %v6893_v13 = vrot.slane %v12558_v21, %v11018_v52  ;;  %v14392_v0 = vld [vmem:[#allocation58_spill] sm:$0xff] }
 0x613   : > { %v6860_v7 = vcombine.low %v14387_v50, %v6859_v40  ;;  %v8542_v56 = vrot.slane %v12588_v39, %v14388_v33  ;;  %v12737_v46 = vcombine.low %v5175_v31, %v5177_v42  ;;  %v5160_v43 = vcombine.high %v5158_v63, %v5158_v63  ;;  %v8105_v27 = vpop.permute.xlu1 %8104 }
 0x614   : > { %v12743_v57 = vcombine.low %v5151_v6, %v5159_v61  ;;  %v14391_v38 = vrot.slane %v12400_v34, %v11018_v52  ;;  %v6842_v21 = vrot.slane %v12456_v10, %v11018_v52  ;;  %v5211_v42 = vcombine.high %v5209_v41, %v5209_v41  ;;  %v14394_v61 = vld [vmem:[#allocation56_spill] sm:$0xff] }
 0x615   : > { %8152 = vperm.xlu1 %9299, %v6775_v45   ;;  %v14390_v45 = vld [vmem:[#allocation147_spill] sm:$0xff]  ;;  %v8543_v31 = vsel %vm1666_vm2, %v8542_v56, %v8538_v18  ;;  %v5178_v40 = vcombine.high %v3466_v44, %v3466_v44  ;;  %v8557_v4 = vrot.slane %v8099_v9, %v14392_v0  ;;  %v14393_v6 = vrot.slane %v12532_v2, %v11018_v52  ;;  %v14396_v56 = vld [vmem:[#allocation118_spill] sm:$0xff] }
 0x616   : > { %v3469_v20 = vmul.f32 %v14390_v45, %v14389_v25  ;;  %8167 = vperm.xlu0 %9298, %v6860_v7   ;;  %v6809_v39 = vcombine.low %v14391_v38, %v6808_v15  ;;  %v8548_v50 = vsel %vm1673_vm3, %v8547_v29, %v8543_v31  ;;  %v12753_v25 = vcombine.low %v5202_v24, %v5210_v22  ;;  %v12766_v24 = vpop.permute.xlu0 %8119  ;;  %v14400_v31 = vld [vmem:[#allocation60_spill] sm:$0xff] }
 0x617   : > { %v6894_v34 = vcombine.low %v14393_v6, %v6893_v13  ;;  %v8552_v15 = vrot.slane %v12621_v36, %v14394_v61  ;;  %v7199_v10 = vrot.slane %v12597_v53, %v11018_v52  ;;  %v12762_v18 = vcombine.low %v5158_v63, %v5160_v43  ;;  %v14397_v13 = vld [vmem:[#allocation14_spill] sm:$0xff] }
 0x618   : > { %v5185_v29 = vrot.slane %v3466_v44, %v11018_v52  ;;  %v5229_v7 = vcombine.high %v3469_v20, %v3469_v20  ;;  %v5236_v9 = vrot.slane %v3469_v20, %v11018_v52  ;;  %v7328_v22 = vrot.slane %v12743_v57, %v11018_v52  ;;  %v14398_v20 = vld [vmem:[#allocation62_spill] sm:$0xff] }
 0x619   : > { %8158 = vperm.xlu1 %9299, %v6809_v39   ;;  %v14395_v2 = vrot.slane %v12428_v55, %v11018_v52  ;;  %v6876_v53 = vrot.slane %v12501_v28, %v11018_v52  ;;  %v8553_v63 = vsel %vm1680_vm4, %v8552_v15, %v8548_v50  ;;  %v5192_v44 = vrot.slane %v5178_v40, %v11018_v52 }
 0x61a   : > { %8173 = vperm.xlu0 %9298, %v6894_v34   ;;  %v3468_v43 = vmul.f32 %v14397_v13, %v14396_v56  ;;  %v8558_v45 = vsel %vm1687_vm5, %v8557_v4, %v8553_v63  ;;  %v8567_v38 = vrot.slane %v8105_v27, %v14398_v20  ;;  %v12781_v39 = vcombine.low %v5209_v41, %v5211_v42  ;;  %v8111_v41 = vpop.permute.xlu1 %8110  ;;  %v14401_v42 = vld [vmem:[#allocation31_spill] sm:$0xff]  ;;  %v12803_v13 = vpop.permute.xlu0 %8125 }
 0x61b   : > { %v6843_v36 = vcombine.low %v14395_v2, %v6842_v21  ;;  %v14399_v55 = vrot.slane %v12586_v47, %v11018_v52  ;;  %v8562_v28 = vrot.slane %v12656_v30, %v14400_v31  ;;  %v7233_v40 = vrot.slane %v12638_v19, %v11018_v52  ;;  %v14402_v34 = vld [vmem:[#allocation71_spill] sm:$0xff] }
 0x61c   : > { %v7379_v50 = vrot.slane %v12753_v25, %v11018_v52  ;;  %v5193_v6 = vcombine.high %v5185_v29, %v5185_v29  ;;  %v5243_v4 = vrot.slane %v5229_v7, %v11018_v52  ;;  %v5244_v27 = vcombine.high %v5236_v9, %v5236_v9  ;;  %v14404_v7 = vld [vmem:[#allocation66_spill] sm:$0xff] }
 0x61d   : > { %8164 = vperm.xlu1 %9299, %v6843_v36   ;;  %v7200_v21 = vcombine.low %v14399_v55, %v7199_v10  ;;  %v3487_v15 = vmul.f32 %v14402_v34, %v14401_v42  ;;  %v14403_v47 = vrot.slane %v12467_v37, %v11018_v52  ;;  %v7182_v30 = vrot.slane %v12541_v16, %v11018_v52  ;;  %v14405_v55 = vld [vmem:[#allocation121_spill] sm:$0xff]  ;;  %v14406_v42 = vld [vmem:[#allocation174_spill] sm:$0xff]  ;;  %v14408_v34 = vld [vmem:[#allocation64_spill] sm:$0xff] }
 0x61e   : > { %v8563_v19 = vsel %vm1694_vm6, %v8562_v28, %v8558_v45  ;;  %v5194_v2 = vcombine.high %v5192_v44, %v5192_v44  ;;  %v5212_v36 = vcombine.high %v3468_v43, %v3468_v43  ;;  %v8577_v56 = vrot.slane %v8111_v41, %v14404_v7 }
 0x61f   : > { %8227 = vperm.xlu0 %9298, %v7200_v21   ;;  %v6877_v10 = vcombine.low %v14403_v47, %v6876_v53  ;;  %v8568_v63 = vsel %vm1701_vm7, %v8567_v38, %v8563_v19  ;;  %v3470_v21 = vmul.f32 %v14406_v42, %v14405_v55  ;;  %v14407_v37 = vrot.slane %v12623_v54, %v11018_v52  ;;  %v8117_v19 = vpop.permute.xlu1 %8116 }
 0x620   : > { %v8572_v16 = vrot.slane %v12697_v3, %v14408_v34  ;;  %v7267_v45 = vrot.slane %v12671_v32, %v11018_v52  ;;  %v12814_v28 = vcombine.low %v5185_v29, %v5193_v6  ;;  %v5245_v38 = vcombine.high %v5243_v4, %v5243_v4  ;;  %v14410_v6 = vld [vmem:[#allocation72_spill] sm:$0xff] }
 0x621   : > { %8170 = vperm.xlu1 %9299, %v6877_v10   ;;  %v7234_v53 = vcombine.low %v14407_v37, %v7233_v40  ;;  %v12816_v41 = vcombine.low %v5236_v9, %v5244_v27  ;;  %v5219_v47 = vrot.slane %v3468_v43, %v11018_v52  ;;  %v5535_v55 = vcombine.high %v3487_v15, %v3487_v15 }
 0x622   : > { %v14409_v54 = vrot.slane %v12521_v58, %v11018_v52  ;;  %v7216_v3 = vrot.slane %v12573_v8, %v11018_v52  ;;  %v8573_v10 = vsel %vm1708_vm8, %v8572_v16, %v8568_v63  ;;  %v5226_v32 = vrot.slane %v5212_v36, %v11018_v52  ;;  %v8180_v63 = vpop.permute.xlu0 %8179  ;;  %v14414_v16 = vld [vmem:[#allocation73_spill] sm:$0xff] }
 0x623   : > { %8233 = vperm.xlu0 %9298, %v7234_v53   ;;  %v5542_v29 = vrot.slane %v3487_v15, %v11018_v52  ;;  %v8578_v9 = vsel %vm1715_vm9, %v8577_v56, %v8573_v10  ;;  %v8587_v43 = vrot.slane %v8117_v19, %v14410_v6  ;;  %v5246_v27 = vcombine.high %v3470_v21, %v3470_v21  ;;  %v14413_v53 = vld [vmem:[#allocation123_spill] sm:$0xff] }
 0x624   : > { %v7183_v40 = vcombine.low %v14409_v54, %v7182_v30  ;;  %v14411_v42 = vrot.slane %v12649_v49, %v11018_v52  ;;  %v14412_v30 = vld [vmem:[#allocation68_spill] sm:$0xff]  ;;  %v7301_v8 = vrot.slane %v12710_v5, %v11018_v52  ;;  %v7355_v36 = vcombine.low %v5192_v44, %v5194_v2 }
 0x625   : > { %v8582_v37 = vrot.slane %v12735_v12, %v14412_v30  ;;  %v7362_v15 = vrot.slane %v12814_v28, %v11018_v52  ;;  %v5227_v56 = vcombine.high %v5219_v47, %v5219_v47  ;;  %v3489_v19 = vmul.f32 %v14414_v16, %v14413_v53 }
 0x626   : > { %8224 = vperm.xlu1 %9299, %v7183_v40   ;;  %v7268_v58 = vcombine.low %v14411_v42, %v7267_v45  ;;  %v12840_v54 = vcombine.low %v5243_v4, %v5245_v38  ;;  %v14415_v49 = vrot.slane %v12551_v59, %v11018_v52  ;;  %v7250_v12 = vrot.slane %v12609_v62, %v11018_v52  ;;  %v14417_v59 = vld [vmem:[#allocation74_spill] sm:$0xff]  ;;  %v12868_v16 = vpop.permute.xlu0 %8185 }
 0x627   : > { %v8583_v5 = vsel %vm1722_vm10, %v8582_v37, %v8578_v9  ;;  %v5228_v44 = vcombine.high %v5226_v32, %v5226_v32  ;;  %v5549_v2 = vrot.slane %v5535_v55, %v11018_v52  ;;  %v5550_v28 = vcombine.high %v5542_v29, %v5542_v29  ;;  %v8123_v9 = vpop.permute.xlu1 %8122  ;;  %v14418_v37 = vld [vmem:[#allocation80_spill] sm:$0xff] }
 0x628   : > { %8239 = vperm.xlu0 %9298, %v7268_v58   ;;  %v7217_v45 = vcombine.low %v14415_v49, %v7216_v3  ;;  %v8588_v40 = vsel %vm1729_vm11, %v8587_v43, %v8583_v5  ;;  %v5260_v10 = vrot.slane %v5246_v27, %v11018_v52  ;;  %v14416_v4 = vrot.slane %v12687_v60, %v11018_v52  ;;  %v14420_v60 = vld [vmem:[#allocation83_spill] sm:$0xff]  ;;  %v14422_v49 = vld [vmem:[#allocation16_spill] sm:$0xff] }
 0x629   : > { %v8592_v3 = vrot.slane %v12766_v24, %v14417_v59  ;;  %v7335_v62 = vrot.slane %v12762_v18, %v11018_v52  ;;  %v7388_v42 = vcombine.low %v5219_v47, %v5227_v56  ;;  %v5253_v55 = vrot.slane %v3470_v21, %v11018_v52  ;;  %v14421_v56 = vld [vmem:[#allocation25_spill] sm:$0xff] }
 0x62a   : > { %8230 = vperm.xlu1 %9299, %v7217_v45   ;;  %v7302_v38 = vcombine.low %v14416_v4, %v7301_v8  ;;  %v5569_v58 = vcombine.high %v3489_v19, %v3489_v19  ;;  %v8597_v43 = vrot.slane %v8123_v9, %v14418_v37  ;;  %v14419_v27 = vrot.slane %v12599_v48, %v11018_v52 }
 0x62b   : > { %v8602_v8 = vrot.slane %v12803_v13, %v14420_v60  ;;  %v7284_v24 = vrot.slane %v12662_v11, %v11018_v52  ;;  %v8593_v18 = vsel %vm1736_vm12, %v8592_v3, %v8588_v40  ;;  %v7389_v47 = vcombine.low %v5226_v32, %v5228_v44  ;;  %v8177_v40 = vpop.permute.xlu1 %8176  ;;  %v14423_v44 = vld [vmem:[#allocation127_spill] sm:$0xff] }
 0x62c   : > { %8245 = vperm.xlu0 %9298, %v7302_v38   ;;  %v7251_v53 = vcombine.low %v14419_v27, %v7250_v12  ;;  %v5576_v21 = vrot.slane %v3489_v19, %v11018_v52  ;;  %v3488_v45 = vmul.f32 %v14422_v49, %v14421_v56  ;;  %v8598_v5 = vsel %vm1743_vm13, %v8597_v43, %v8593_v18  ;;  %v14424_v19 = vld [vmem:[#allocation137_spill] sm:$0xff] }
 0x62d   : > { %v5262_v48 = vcombine.high %v5260_v10, %v5260_v10  ;;  %v7336_v13 = vcombine.low %v7328_v22, %v7335_v62  ;;  %v7369_v11 = vrot.slane %v7355_v36, %v11018_v52  ;;  %v12879_v12 = vsel %vm1750_vm14, %v8602_v8, %v8598_v5 }
 0x62e   : > { %8236 = vperm.xlu1 %9299, %v7251_v53   ;;  %v5261_v32 = vcombine.high %v5253_v55, %v5253_v55  ;;  %v3491_v4 = vmul.f32 %v14424_v19, %v14423_v44  ;;  %v8690_v38 = vrot.slane %v8180_v63, %v14382_v1  ;;  %v8686_v3 = vrot.slane %v8177_v40, %v14379_v17  ;;  %v8192_v63 = vpop.permute.xlu0 %8191  ;;  %v14427_v44 = vld [vmem:[#allocation124_spill] sm:$0xff]  ;;  %v14428_v19 = vld [vmem:[#allocation141_spill] sm:$0xff] }
 0x62f   : > { %v5551_v9 = vcombine.high %v5549_v2, %v5549_v2  ;;  %v5583_v43 = vrot.slane %v5569_v58, %v11018_v52  ;;  %v14425_v57 = vrot.slane %v12640_v51, %v11018_v52  ;;  %v7318_v36 = vrot.slane %v12680_v23, %v11018_v52 }
 0x630   : > { %8251 = vperm.xlu0 %9298, %v7336_v13   ;;  %v12891_v62 = vcombine.low %v5542_v29, %v5550_v28  ;;  %v5584_v27 = vcombine.high %v5576_v21, %v5576_v21  ;;  %v5552_v53 = vcombine.high %v3488_v45, %v3488_v45  ;;  %v8691_v8 = vsel %vm1652_vm0, %v8690_v38, %v8686_v3 }
 0x631   : > { %v7285_v22 = vcombine.low %v14425_v57, %v7284_v24  ;;  %v7423_v18 = vcombine.low %v5260_v10, %v5262_v48  ;;  %v5559_v56 = vrot.slane %v3488_v45, %v11018_v52  ;;  %v7370_v58 = vcombine.low %v7362_v15, %v7369_v11 }
 0x632   : > { %v7403_v49 = vrot.slane %v7389_v47, %v11018_v52  ;;  %v7413_v51 = vrot.slane %v12816_v41, %v11018_v52  ;;  %v7396_v24 = vrot.slane %v7388_v42, %v11018_v52  ;;  %v7422_v23 = vcombine.low %v5253_v55, %v5261_v32  ;;  %v12920_v3 = vpop.permute.xlu0 %8197 }
 0x633   : > { %8242 = vperm.xlu1 %9299, %v7285_v22   ;;  %v5603_v29 = vcombine.high %v3491_v4, %v3491_v4  ;;  %v12899_v28 = vcombine.low %v5549_v2, %v5551_v9  ;;  %v5585_v5 = vcombine.high %v5583_v43, %v5583_v43  ;;  %v14426_v10 = vrot.slane %v12673_v14, %v11018_v52  ;;  %v8183_v2 = vpop.permute.xlu1 %8182 }
 0x634   : > { %8257 = vperm.xlu0 %9298, %v7370_v58   ;;  %v7352_v15 = vrot.slane %v12737_v46, %v11018_v52  ;;  %v7719_v47 = vrot.slane %v12891_v62, %v11018_v52  ;;  %v12908_v45 = vcombine.low %v5576_v21, %v5584_v27  ;;  %v5566_v42 = vrot.slane %v5552_v53, %v11018_v52  ;;  %v14431_v58 = vld [vmem:[#allocation180_spill] sm:$0xff]  ;;  %v14469_v62 = vld [vmem:[#allocation34_spill] sm:$0xff] }
 0x635   : > { %v7319_v48 = vcombine.low %v14426_v10, %v7318_v36  ;;  %v5610_v55 = vrot.slane %v3491_v4, %v11018_v52  ;;  %v5567_v13 = vcombine.high %v5559_v56, %v5559_v56  ;;  %v7404_v11 = vcombine.low %v7396_v24, %v7403_v49 }
 0x636   : > { %v7437_v40 = vrot.slane %v7423_v18, %v11018_v52  ;;  %v8695_v14 = vrot.slane %v8183_v2, %v14380_v26  ;;  %v7430_v32 = vrot.slane %v7422_v23, %v11018_v52  ;;  %v5617_v46 = vrot.slane %v5603_v29, %v11018_v52  ;;  %v14430_v18 = vld [vmem:[#allocation131_spill] sm:$0xff] }
 0x637   : > { %8248 = vperm.xlu1 %9299, %v7319_v48   ;;  %v3490_v21 = vmul.f32 %v14428_v19, %v14427_v44  ;;  %v8700_v38 = vrot.slane %v12868_v16, %v14388_v33  ;;  %v12922_v4 = vcombine.low %v5583_v43, %v5585_v5  ;;  %v14429_v9 = vrot.slane %v12714_v35, %v11018_v52  ;;  %v8189_v16 = vpop.permute.xlu1 %8188  ;;  %v14432_v35 = vld [vmem:[#allocation30_spill] sm:$0xff] }
 0x638   : > { %8263 = vperm.xlu0 %9298, %v7404_v11   ;;  %v7386_v22 = vrot.slane %v12781_v39, %v11018_v52  ;;  %v8696_v36 = vsel %vm1659_vm1, %v8695_v14, %v8691_v8  ;;  %v5568_v27 = vcombine.high %v5566_v42, %v5566_v42  ;;  %v5618_v53 = vcombine.high %v5610_v55, %v5610_v55  ;;  %v14433_v5 = vld [vmem:[#allocation54_spill] sm:$0xff]  ;;  %v14434_v8 = vld [vmem:[#allocation128_spill] sm:$0xff] }
 0x639   : > { %v7353_v57 = vcombine.low %v14429_v9, %v7352_v15  ;;  %v3493_v49 = vmul.f32 %v14431_v58, %v14430_v18  ;;  %v8701_v24 = vsel %vm1666_vm2, %v8700_v38, %v8696_v36  ;;  %v12933_v43 = vcombine.low %v5559_v56, %v5567_v13  ;;  %v14435_v15 = vld [vmem:[#allocation183_spill] sm:$0xff]  ;;  %v14440_v36 = vld [vmem:[#allocation125_spill] sm:$0xff] }
 0x63a   : > { %v7438_v23 = vcombine.low %v7430_v32, %v7437_v40  ;;  %v7505_v29 = vrot.slane %v14432_v35, %v11018_v52  ;;  %v8705_v10 = vrot.slane %v8189_v16, %v14433_v5  ;;  %v5619_v39 = vcombine.high %v5617_v46, %v5617_v46  ;;  %v8204_v32 = vpop.permute.xlu0 %8203  ;;  %v14436_v9 = vld [vmem:[#allocation135_spill] sm:$0xff]  ;;  %v14441_v35 = vld [vmem:[#allocation117_spill] sm:$0xff] }
 0x63b   : > { %8254 = vperm.xlu1 %9299, %v7353_v57   ;;  %v5586_v48 = vcombine.high %v3490_v21, %v3490_v21  ;;  %v3492_v2 = vmul.f32 %v14435_v15, %v14434_v8  ;;  %v8710_v11 = vrot.slane %v8192_v63, %v14394_v61  ;;  %v5593_v14 = vrot.slane %v3490_v21, %v11018_v52  ;;  %v14437_v57 = vld [vmem:[#allocation70_spill] sm:$0xff] }
 0x63c   : > { %8269 = vperm.xlu0 %9298, %v7438_v23   ;;  %v7387_v56 = vcombine.low %v7379_v50, %v7386_v22  ;;  %v7420_v13 = vrot.slane %v12840_v54, %v11018_v52  ;;  %v8706_v40 = vsel %vm1673_vm3, %v8705_v10, %v8701_v24  ;;  %v7753_v44 = vrot.slane %v12908_v45, %v11018_v52  ;;  %v14438_v50 = vld [vmem:[#allocation161_spill] sm:$0xff]  ;;  %v8195_v10 = vpop.permute.xlu1 %8194 }
 0x63d   : > { %v5637_v19 = vcombine.high %v3493_v49, %v3493_v49  ;;  %v5644_v38 = vrot.slane %v3493_v49, %v11018_v52  ;;  %v8711_v63 = vsel %vm1680_vm4, %v8710_v11, %v8706_v40  ;;  %v12952_v21 = vcombine.low %v5610_v55, %v5618_v53  ;;  %v14444_v11 = vld [vmem:[#allocation179_spill] sm:$0xff] }
 0x63e   : > { %v3495_v25 = vmul.f32 %v14437_v57, %v14436_v9  ;;  %v14439_v54 = vrot.slane %v14438_v50, %v11018_v52  ;;  %v7539_v18 = vrot.slane %v14440_v36, %v11018_v52  ;;  %v12961_v58 = vcombine.low %v5566_v42, %v5568_v27 }
 0x63f   : > { %8260 = vperm.xlu1 %9299, %v7387_v56   ;;  %v7736_v49 = vrot.slane %v12933_v43, %v11018_v52  ;;  %v5600_v16 = vrot.slane %v5586_v48, %v11018_v52  ;;  %v5620_v55 = vcombine.high %v3492_v2, %v3492_v2  ;;  %v12966_v53 = vcombine.low %v5617_v46, %v5619_v39  ;;  %v14442_v39 = vld [vmem:[#allocation162_spill] sm:$0xff] }
 0x640   : > { %v7506_v22 = vcombine.low %v14439_v54, %v7505_v29  ;;  %v5601_v24 = vcombine.high %v5593_v14, %v5593_v14  ;;  %v7421_v23 = vcombine.low %v7413_v51, %v7420_v13  ;;  %v7488_v29 = vrot.slane %v14441_v35, %v11018_v52  ;;  %v12983_v13 = vpop.permute.xlu0 %8209 }
 0x641   : > { %v5651_v42 = vrot.slane %v5637_v19, %v11018_v52  ;;  %v5652_v27 = vcombine.high %v5644_v38, %v5644_v38  ;;  %v5627_v8 = vrot.slane %v3492_v2, %v11018_v52  ;;  %v8715_v48 = vrot.slane %v8195_v10, %v14392_v0 }
 0x642   : > { %8281 = vperm.xlu0 %9298, %v7506_v22   ;;  %v5671_v15 = vcombine.high %v3495_v25, %v3495_v25  ;;  %v8720_v46 = vrot.slane %v12920_v3, %v14400_v31  ;;  %v14443_v41 = vrot.slane %v14442_v39, %v11018_v52  ;;  %v7573_v56 = vrot.slane %v14444_v11, %v11018_v52  ;;  %v14445_v3 = vld [vmem:[#allocation61_spill] sm:$0xff]  ;;  %v14447_v22 = vld [vmem:[#allocation32_spill] sm:$0xff] }
 0x643   : > { %8266 = vperm.xlu1 %9299, %v7421_v23   ;;  %v5602_v40 = vcombine.high %v5600_v16, %v5600_v16  ;;  %v5634_v19 = vrot.slane %v5620_v55, %v11018_v52  ;;  %v5678_v2 = vrot.slane %v3495_v25, %v11018_v52  ;;  %v8716_v9 = vsel %vm1687_vm5, %v8715_v48, %v8711_v63  ;;  %v14450_v39 = vld [vmem:[#allocation173_spill] sm:$0xff]  ;;  %v14451_v11 = vld [vmem:[#allocation132_spill] sm:$0xff] }
 0x644   : > { %v7540_v51 = vcombine.low %v14443_v41, %v7539_v18  ;;  %v12988_v57 = vcombine.low %v5593_v14, %v5601_v24  ;;  %v14446_v50 = vrot.slane %v14445_v3, %v11018_v52  ;;  %v7522_v36 = vrot.slane %v14447_v22, %v11018_v52  ;;  %v8201_v18 = vpop.permute.xlu1 %8200  ;;  %v14448_v24 = vld [vmem:[#allocation126_spill] sm:$0xff]  ;;  %v8216_v3 = vpop.permute.xlu0 %8215 }
 0x645   : > { %v8721_v23 = vsel %vm1694_vm6, %v8720_v46, %v8716_v9  ;;  %v5653_v35 = vcombine.high %v5651_v42, %v5651_v42  ;;  %v12996_v10 = vcombine.low %v5644_v38, %v5652_v27  ;;  %v5635_v55 = vcombine.high %v5627_v8, %v5627_v8  ;;  %v14452_v38 = vld [vmem:[#allocation13_spill] sm:$0xff] }
 0x646   : > { %8287 = vperm.xlu0 %9298, %v7540_v51   ;;  %v7489_v54 = vcombine.low %v14446_v50, %v7488_v29  ;;  %v8725_v25 = vrot.slane %v8201_v18, %v14398_v20  ;;  %v5685_v14 = vrot.slane %v5671_v15, %v11018_v52  ;;  %v8730_v63 = vrot.slane %v8204_v32, %v14408_v34  ;;  %v14453_v32 = vld [vmem:[#allocation67_spill] sm:$0xff] }
 0x647   : > { %v14449_v29 = vrot.slane %v14448_v24, %v11018_v52  ;;  %v7607_v41 = vrot.slane %v14450_v39, %v11018_v52  ;;  %v5636_v51 = vcombine.high %v5634_v19, %v5634_v19  ;;  %v5686_v46 = vcombine.high %v5678_v2, %v5678_v2  ;;  %v14457_v39 = vld [vmem:[#allocation181_spill] sm:$0xff] }
 0x648   : > { %8278 = vperm.xlu1 %9299, %v7489_v54   ;;  %v3494_v27 = vmul.f32 %v14452_v38, %v14451_v11  ;;  %v8726_v9 = vsel %vm1701_vm7, %v8725_v25, %v8721_v23  ;;  %v7787_v15 = vrot.slane %v12952_v21, %v11018_v52  ;;  %v14454_v50 = vrot.slane %v14453_v32, %v11018_v52  ;;  %v14456_v25 = vld [vmem:[#allocation138_spill] sm:$0xff] }
 0x649   : > { %v7574_v48 = vcombine.low %v14449_v29, %v7573_v56  ;;  %v14455_v56 = vld [vmem:[#allocation69_spill] sm:$0xff]  ;;  %v8731_v18 = vsel %vm1708_vm8, %v8730_v63, %v8726_v9  ;;  %v13017_v24 = vcombine.low %v5600_v16, %v5602_v40  ;;  %v13021_v23 = vcombine.low %v5627_v8, %v5635_v55  ;;  %v14458_v38 = vld [vmem:[#allocation134_spill] sm:$0xff] }
 0x64a   : > { %v7523_v54 = vcombine.low %v14454_v50, %v7522_v36  ;;  %v7556_v22 = vrot.slane %v14455_v56, %v11018_v52  ;;  %v3497_v11 = vmul.f32 %v14457_v39, %v14456_v25  ;;  %v14459_v32 = vrot.slane %v14458_v38, %v11018_v52  ;;  %v8207_v50 = vpop.permute.xlu1 %8206  ;;  %v14464_v38 = vld [vmem:[#allocation146_spill] sm:$0xff] }
 0x64b   : > { %8293 = vperm.xlu0 %9298, %v7574_v48   ;;  %v13025_v48 = vcombine.low %v5651_v42, %v5653_v35  ;;  %v7726_v16 = vrot.slane %v12899_v28, %v11018_v52  ;;  %v13034_v40 = vcombine.low %v5634_v19, %v5636_v51  ;;  %v5687_v8 = vcombine.high %v5685_v14, %v5685_v14  ;;  %v14460_v35 = vld [vmem:[#allocation77_spill] sm:$0xff] }
 0x64c   : > { %8284 = vperm.xlu1 %9299, %v7523_v54   ;;  %v7608_v63 = vcombine.low %v14459_v32, %v7607_v41  ;;  %v13036_v55 = vcombine.low %v5678_v2, %v5686_v46  ;;  %v5654_v9 = vcombine.high %v3494_v27, %v3494_v27  ;;  %v5661_v42 = vrot.slane %v3494_v27, %v11018_v52  ;;  %v14462_v41 = vld [vmem:[#allocation165_spill] sm:$0xff]  ;;  %v8222_v46 = vpop.permute.xlu0 %8221  ;;  %v14463_v27 = vld [vmem:[#allocation139_spill] sm:$0xff] }
 0x64d   : > { %v14461_v54 = vrot.slane %v14460_v35, %v11018_v52  ;;  %v8735_v25 = vrot.slane %v8207_v50, %v14404_v7  ;;  %v7590_v39 = vrot.slane %v14462_v41, %v11018_v52  ;;  %v5705_v19 = vcombine.high %v3497_v11, %v3497_v11  ;;  %v14468_v28 = vld [vmem:[#allocation45_spill] sm:$0xff] }
 0x64e   : > { %v5712_v2 = vrot.slane %v3497_v11, %v11018_v52  ;;  %v8740_v51 = vrot.slane %v12983_v13, %v14412_v30  ;;  %v3498_v32 = vmul.f32 %v14464_v38, %v14463_v27  ;;  %v7760_v50 = vrot.slane %v12922_v4, %v11018_v52  ;;  %v14465_v11 = vld [vmem:[#allocation136_spill] sm:$0xff]  ;;  %v14467_v13 = vld [vmem:[#allocation142_spill] sm:$0xff]  ;;  %v8213_v36 = vpop.permute.xlu1 %8212 }
 0x64f   : > { %8299 = vperm.xlu0 %9298, %v7608_v63   ;;  %v7557_v56 = vcombine.low %v14461_v54, %v7556_v22  ;;  %v7727_v22 = vcombine.low %v7719_v47, %v7726_v16  ;;  %v8736_v63 = vsel %vm1715_vm9, %v8735_v25, %v8731_v18  ;;  %v5668_v35 = vrot.slane %v5654_v9, %v11018_v52  ;;  %v14466_v54 = vld [vmem:[#allocation154_spill] sm:$0xff]  ;;  %v14471_v4 = vld [vmem:[#allocation168_spill] sm:$0xff] }
 0x650   : > { %v3496_v41 = vmul.f32 %v14466_v54, %v14465_v11  ;;  %v3499_v29 = vmul.f32 %v14468_v28, %v14467_v13  ;;  %v5669_v27 = vcombine.high %v5661_v42, %v5661_v42  ;;  %v14470_v47 = vrot.slane %v14469_v62, %v11018_v52  ;;  %v14472_v62 = vld [vmem:[#allocation164_spill] sm:$0xff] }
 0x651   : > { %8290 = vperm.xlu1 %9299, %v7557_v56   ;;  %v8741_v56 = vsel %vm1722_vm10, %v8740_v51, %v8736_v63  ;;  %v8745_v16 = vrot.slane %v8213_v36, %v14410_v6  ;;  %v7624_v9 = vrot.slane %v14471_v4, %v11018_v52  ;;  %v13070_v25 = vcombine.low %v5685_v14, %v5687_v8 }
 0x652   : > { %v7591_v18 = vcombine.low %v14470_v47, %v7590_v39  ;;  %v5719_v38 = vrot.slane %v5705_v19, %v11018_v52  ;;  %v5720_v11 = vcombine.high %v5712_v2, %v5712_v2  ;;  %v8750_v28 = vrot.slane %v8216_v3, %v14417_v59 }
 0x653   : > { %8320 = vperm.xlu0 %9298, %v7727_v22   ;;  %v5722_v54 = vcombine.high %v3498_v32, %v3498_v32  ;;  %v7761_v51 = vcombine.low %v7753_v44, %v7760_v50  ;;  %v8746_v39 = vsel %vm1729_vm11, %v8745_v16, %v8741_v56  ;;  %v8276_v22 = vpop.permute.xlu0 %8275  ;;  %v7794_v36 = vrot.slane %v12966_v53, %v11018_v52  ;;  %v14475_v16 = vld [vmem:[#allocation185_spill] sm:$0xff] }
 0x654   : > { %v5670_v63 = vcombine.high %v5668_v35, %v5668_v35  ;;  %v5688_v14 = vcombine.high %v3496_v41, %v3496_v41  ;;  %v5739_v8 = vcombine.high %v3499_v29, %v3499_v29  ;;  %v8751_v19 = vsel %vm1736_vm12, %v8750_v28, %v8746_v39  ;;  %v14477_v39 = vld [vmem:[#allocation153_spill] sm:$0xff] }
 0x655   : > { %8296 = vperm.xlu1 %9299, %v7591_v18   ;;  %v7855_v3 = vrot.slane %v13036_v55, %v11018_v52  ;;  %v13083_v13 = vcombine.low %v5661_v42, %v5669_v27  ;;  %v14473_v45 = vrot.slane %v14472_v62, %v11018_v52  ;;  %v7743_v50 = vrot.slane %v12961_v58, %v11018_v52  ;;  %v14474_v18 = vld [vmem:[#allocation143_spill] sm:$0xff] }
 0x656   : > { %v5721_v56 = vcombine.high %v5719_v38, %v5719_v38  ;;  %v13090_v53 = vcombine.low %v5712_v2, %v5720_v11  ;;  %v5695_v47 = vrot.slane %v3496_v41, %v11018_v52  ;;  %v3500_v4 = vmul.f32 %v14475_v16, %v14474_v18 }
 0x657   : > { %8326 = vperm.xlu0 %9298, %v7761_v51   ;;  %v7625_v44 = vcombine.low %v14473_v45, %v7624_v9  ;;  %v13096_v55 = vrot.slane %v3499_v29, %v11018_v52  ;;  %v5736_v42 = vrot.slane %v5722_v54, %v11018_v52  ;;  %v7795_v27 = vcombine.low %v7787_v15, %v7794_v36  ;;  %v8219_v9 = vpop.permute.xlu1 %8218  ;;  %v8036_v51 = vpop.permute.xlu0 %8035 }
 0x658   : > { %v7828_v58 = vrot.slane %v13025_v48, %v11018_v52  ;;  %v13104_v2 = vcombine.low %v5668_v35, %v5670_v63  ;;  %v5702_v41 = vrot.slane %v5688_v14, %v11018_v52  ;;  %v5753_v11 = vrot.slane %v5739_v8, %v11018_v52  ;;  %v14476_v35 = vld [vmem:[#allocation144_spill] sm:$0xff] }
 0x659   : > { %8302 = vperm.xlu1 %9299, %v7625_v44   ;;  %v8755_v29 = vrot.slane %v8219_v9, %v14418_v37  ;;  %v5729_v28 = vrot.slane %v3498_v32, %v11018_v52  ;;  %v8760_v54 = vrot.slane %v8222_v46, %v14420_v60  ;;  %v7744_v21 = vcombine.low %v7736_v49, %v7743_v50  ;;  %v14481_v9 = vld [vmem:[#allocation182_spill] sm:$0xff] }
 0x65a   : > { %v7777_v15 = vrot.slane %v13017_v24, %v11018_v52  ;;  %v7882_v48 = vcombine.low %v5719_v38, %v5721_v56  ;;  %v3501_v36 = vmul.f32 %v14477_v39, %v14476_v35  ;;  %v5756_v63 = vcombine.high %v3500_v4, %v3500_v4 }
 0x65b   : > { %8332 = vperm.xlu0 %9298, %v7795_v27   ;;  %v8756_v14 = vsel %vm1743_vm13, %v8755_v29, %v8751_v19  ;;  %v5738_v8 = vcombine.high %v5736_v42, %v5736_v42  ;;  %v14478_v46 = vrot.slane %v12996_v10, %v11018_v52  ;;  %v8273_v49 = vpop.permute.xlu1 %8272  ;;  %v7862_v24 = vrot.slane %v13070_v25, %v11018_v52  ;;  %v14480_v25 = vld [vmem:[#allocation145_spill] sm:$0xff]  ;;  %v8042_v29 = vpop.permute.xlu0 %8041 }
 0x65c   : > { %v13120_v32 = vsel %vm1750_vm14, %v8760_v54, %v8756_v14  ;;  %v5703_v38 = vcombine.high %v5695_v47, %v5695_v47  ;;  %v5704_v62 = vcombine.high %v5702_v41, %v5702_v41  ;;  %v8848_v45 = vrot.slane %v8276_v22, %v14382_v1 }
 0x65d   : > { %8323 = vperm.xlu1 %9299, %v7744_v21   ;;  %v7829_v43 = vcombine.low %v14478_v46, %v7828_v58  ;;  %v8844_v44 = vrot.slane %v8273_v49, %v14379_v17  ;;  %v5755_v19 = vcombine.high %v5753_v11, %v5753_v11  ;;  %v5737_v50 = vcombine.high %v5729_v28, %v5729_v28 }
 0x65e   : > { %v14479_v56 = vrot.slane %v12988_v57, %v11018_v52  ;;  %v7811_v10 = vrot.slane %v13034_v40, %v11018_v52  ;;  %v5773_v16 = vcombine.high %v3501_v36, %v3501_v36  ;;  %v5770_v27 = vrot.slane %v5756_v63, %v11018_v52 }
 0x65f   : > { %8338 = vperm.xlu0 %9298, %v7829_v43   ;;  %v3502_v58 = vmul.f32 %v14481_v9, %v14480_v25  ;;  %v13138_v22 = vsel %vm1652_vm0, %v8848_v45, %v8844_v44  ;;  %v7838_v54 = vrot.slane %v13083_v13, %v11018_v52  ;;  %v7899_v21 = vcombine.low %v5736_v42, %v5738_v8  ;;  %v8033_v43 = vpop.permute.xlu1 %8032 }
 0x660   : > { %v7778_v18 = vcombine.low %v14479_v56, %v7777_v15  ;;  %v7863_v57 = vcombine.low %v7855_v3, %v7862_v24  ;;  %v7896_v15 = vrot.slane %v7882_v48, %v11018_v52  ;;  %v7889_v40 = vrot.slane %v13090_v53, %v11018_v52  ;;  %v14483_v24 = vld [vmem:[#allocation176_spill] sm:$0xff] }
 0x661   : > { %v7864_v35 = vcombine.low %v5695_v47, %v5703_v38  ;;  %v5754_v39 = vcombine.high %v13096_v55, %v13096_v55  ;;  %v5763_v63 = vrot.slane %v3500_v4, %v11018_v52  ;;  %v7865_v14 = vcombine.low %v5702_v41, %v5704_v62  ;;  %v8048_v62 = vpop.permute.xlu0 %8047 }
 0x662   : > { %8329 = vperm.xlu1 %9299, %v7778_v18   ;;  %v7898_v46 = vcombine.low %v5729_v28, %v5737_v50  ;;  %v14482_v13 = vrot.slane %v13021_v23, %v11018_v52  ;;  %v7845_v3 = vrot.slane %v13104_v2, %v11018_v52  ;;  %v7916_v48 = vcombine.low %v5753_v11, %v5755_v19  ;;  %v14484_v50 = vld [vmem:[#allocation150_spill] sm:$0xff] }
 0x663   : > { %8344 = vperm.xlu0 %9298, %v7863_v57   ;;  %v5787_v8 = vrot.slane %v5773_v16, %v11018_v52  ;;  %v5772_v53 = vcombine.high %v5770_v27, %v5770_v27  ;;  %v5790_v47 = vcombine.high %v3502_v58, %v3502_v58  ;;  %v8453_v49 = vrot.slane %v8036_v51, %v14382_v1 }
 0x664   : > { %v7812_v42 = vcombine.low %v14482_v13, %v7811_v10  ;;  %v8449_v4 = vrot.slane %v8033_v43, %v14379_v17  ;;  %v7897_v41 = vcombine.low %v7889_v40, %v7896_v15  ;;  %v7913_v28 = vrot.slane %v7899_v21, %v11018_v52 }
 0x665   : > { %v5518_v23 = vcombine.high %v14483_v24, %v14483_v24  ;;  %v7915_v38 = vcombine.low %v13096_v55, %v5754_v39  ;;  %v5780_v2 = vrot.slane %v3501_v36, %v11018_v52  ;;  %v5771_v11 = vcombine.high %v5763_v63, %v5763_v63  ;;  %v8039_v55 = vpop.permute.xlu1 %8038  ;;  %v8054_v39 = vpop.permute.xlu0 %8053 }
 0x666   : > { %8335 = vperm.xlu1 %9299, %v7812_v42   ;;  %v7906_v45 = vrot.slane %v7898_v46, %v11018_v52  ;;  %v8454_v44 = vsel %vm1652_vm0, %v8453_v49, %v8449_v4  ;;  %v7846_v51 = vcombine.low %v7838_v54, %v7845_v3  ;;  %v7879_v19 = vrot.slane %v7865_v14, %v11018_v52  ;;  %v14485_v46 = vld [vmem:[#allocation170_spill] sm:$0xff]  ;;  %v14486_v42 = vld [vmem:[#allocation175_spill] sm:$0xff] }
 0x667   : > { %8350 = vperm.xlu0 %9298, %v7897_v41   ;;  %v5500_v56 = vcombine.high %v14484_v50, %v14484_v50  ;;  %v7872_v18 = vrot.slane %v7864_v35, %v11018_v52  ;;  %v5789_v10 = vcombine.high %v5787_v8, %v5787_v8  ;;  %v7933_v16 = vcombine.low %v5770_v27, %v5772_v53 }
 0x668   : > { %v5804_v36 = vrot.slane %v5790_v47, %v11018_v52  ;;  %v8458_v25 = vrot.slane %v8039_v55, %v14380_v26  ;;  %v7914_v9 = vcombine.low %v7906_v45, %v7913_v28  ;;  %v7930_v21 = vrot.slane %v7916_v48, %v11018_v52  ;;  %v14487_v45 = vld [vmem:[#allocation133_spill] sm:$0xff] }
 0x669   : > { %v7923_v54 = vrot.slane %v7915_v38, %v11018_v52  ;;  %v5788_v57 = vcombine.high %v5780_v2, %v5780_v2  ;;  %v7932_v15 = vcombine.low %v5763_v63, %v5771_v11  ;;  %v8463_v40 = vrot.slane %v8042_v29, %v14388_v33  ;;  %v8045_v47 = vpop.permute.xlu1 %8044  ;;  %v8060_v11 = vpop.permute.xlu0 %8059 }
 0x66a   : > { %8341 = vperm.xlu1 %9299, %v7846_v51   ;;  %v5797_v35 = vrot.slane %v3502_v58, %v11018_v52  ;;  %v8459_v27 = vsel %vm1659_vm1, %v8458_v25, %v8454_v44  ;;  %v7880_v14 = vcombine.low %v7872_v18, %v7879_v19  ;;  %v7641_v13 = vrot.slane %v14485_v46, %v11018_v52  ;;  %v14489_v19 = vld [vmem:[#allocation140_spill] sm:$0xff] }
 0x66b   : > { %8353 = vperm.xlu0 %9298, %v7914_v9   ;;  %v5499_v3 = vcombine.high %v14486_v42, %v14486_v42  ;;  %v5532_v48 = vrot.slane %v5518_v23, %v11018_v52  ;;  %v7950_v53 = vcombine.low %v5787_v8, %v5789_v10  ;;  %v8464_v63 = vsel %vm1666_vm2, %v8463_v40, %v8459_v27  ;;  %v14490_v10 = vld [vmem:[#allocation167_spill] sm:$0xff] }
 0x66c   : > { %v5806_v29 = vcombine.high %v5804_v36, %v5804_v36  ;;  %v8468_v43 = vrot.slane %v8045_v47, %v14433_v5  ;;  %v7931_v58 = vcombine.low %v7923_v54, %v7930_v21  ;;  %v7947_v49 = vrot.slane %v7933_v16, %v11018_v52  ;;  %v14491_v54 = vld [vmem:[#allocation166_spill] sm:$0xff] }
 0x66d   : > { %v7661_v4 = vcombine.low %v14484_v50, %v5500_v56  ;;  %v7949_v41 = vcombine.low %v5780_v2, %v5788_v57  ;;  %v7940_v28 = vrot.slane %v7932_v15, %v11018_v52  ;;  %v8473_v38 = vrot.slane %v8048_v62, %v14394_v61  ;;  %v8051_v56 = vpop.permute.xlu1 %8050 }
 0x66e   : > { %8347 = vperm.xlu1 %9299, %v7880_v14   ;;  %v5805_v23 = vcombine.high %v5797_v35, %v5797_v35  ;;  %v8469_v8 = vsel %vm1673_vm3, %v8468_v43, %v8464_v63  ;;  %v14488_v44 = vrot.slane %v14487_v45, %v11018_v52  ;;  %v7658_v18 = vrot.slane %v14489_v19, %v11018_v52  ;;  %v8066_v14 = vpop.permute.xlu0 %8065 }
 0x66f   : > { %8356 = vperm.xlu0 %9298, %v7931_v58   ;;  %v7651_v50 = vrot.slane %v14490_v10, %v11018_v52  ;;  %v7660_v2 = vcombine.low %v14486_v42, %v5499_v3  ;;  %v5525_v62 = vrot.slane %v14483_v24, %v11018_v52  ;;  %v8474_v16 = vsel %vm1680_vm4, %v8473_v38, %v8469_v8  ;;  %v14493_v3 = vld [vmem:[#allocation22_spill] sm:$0xff] }
 0x670   : > { %v7642_v51 = vcombine.low %v14488_v44, %v7641_v13  ;;  %v7967_v55 = vcombine.low %v5804_v36, %v5806_v29  ;;  %v8478_v25 = vrot.slane %v8051_v56, %v14392_v0  ;;  %v7948_v9 = vcombine.low %v7940_v28, %v7947_v49 }
 0x671   : > { %v7964_v21 = vrot.slane %v7950_v53, %v11018_v52  ;;  %v14492_v57 = vcombine.high %v14491_v54, %v14491_v54  ;;  %v5534_v40 = vcombine.high %v5532_v48, %v5532_v48  ;;  %v7957_v27 = vrot.slane %v7949_v41, %v11018_v52  ;;  %v8057_v29 = vpop.permute.xlu1 %8056 }
 0x672   : > { %8305 = vperm.xlu1 %9299, %v7642_v51   ;;  %v8483_v24 = vrot.slane %v8054_v39, %v14400_v31  ;;  %v7966_v46 = vcombine.low %v5797_v35, %v5805_v23  ;;  %v8479_v36 = vsel %vm1687_vm5, %v8478_v25, %v8474_v16  ;;  %v7659_v13 = vcombine.low %v7651_v50, %v7658_v18  ;;  %v8072_v28 = vpop.permute.xlu0 %8071 }
 0x673   : > { %v7678_v15 = vcombine.low %v14491_v54, %v14492_v57  ;;  %8359 = vperm.xlu0 %9298, %v7948_v9   ;;  %v7675_v42 = vrot.slane %v7661_v4, %v11018_v52  ;;  %v14494_v53 = vcombine.high %v14493_v3, %v14493_v3  ;;  %v5533_v63 = vcombine.high %v5525_v62, %v5525_v62 }
 0x674   : > { %v8484_v43 = vsel %vm1694_vm6, %v8483_v24, %v8479_v36  ;;  %v7668_v58 = vrot.slane %v7660_v2, %v11018_v52  ;;  %v8488_v39 = vrot.slane %v8057_v29, %v14398_v20  ;;  %v7965_v35 = vcombine.low %v7957_v27, %v7964_v21 }
 0x675   : > { %v7677_v47 = vcombine.low %v14493_v3, %v14494_v53  ;;  %v7981_v49 = vrot.slane %v7967_v55, %v11018_v52  ;;  %v7695_v41 = vcombine.low %v5532_v48, %v5534_v40  ;;  %v8493_v4 = vrot.slane %v8060_v11, %v14408_v34  ;;  %v8063_v44 = vpop.permute.xlu1 %8062 }
 0x676   : > { %8308 = vperm.xlu1 %9299, %v7659_v13   ;;  %v7974_v38 = vrot.slane %v7966_v46, %v11018_v52  ;;  %v8489_v23 = vsel %vm1701_vm7, %v8488_v39, %v8484_v43  ;;  %v7676_v8 = vcombine.low %v7668_v58, %v7675_v42  ;;  %v7692_v45 = vrot.slane %v7678_v15, %v11018_v52  ;;  %v8078_v50 = vpop.permute.xlu0 %8077 }
 0x677   : > { %8362 = vperm.xlu0 %9298, %v7965_v35   ;;  %v8494_v51 = vsel %vm1708_vm8, %v8493_v4, %v8489_v23  ;;  %v7685_v19 = vrot.slane %v7677_v47, %v11018_v52  ;;  %v7694_v18 = vcombine.low %v5525_v62, %v5533_v63  ;;  %v8498_v10 = vrot.slane %v8063_v44, %v14404_v7 }
 0x678   : > { %v7982_v48 = vcombine.low %v7974_v38, %v7981_v49  ;;  %v8503_v11 = vrot.slane %v8066_v14, %v14412_v30  ;;  %v7709_v16 = vrot.slane %v7695_v41, %v11018_v52  ;;  %v8513_v21 = vrot.slane %v8072_v28, %v14417_v59 }
 0x679   : > { %v8499_v2 = vsel %vm1715_vm9, %v8498_v10, %v8494_v51  ;;  %v7693_v56 = vcombine.low %v7685_v19, %v7692_v45  ;;  %v8069_v55 = vpop.permute.xlu1 %8068  ;;  %v7702_v9 = vrot.slane %v7694_v18, %v11018_v52  ;;  %v8523_v14 = vrot.slane %v8078_v50, %v14420_v60 }
 0x67a   : > { %8311 = vperm.xlu1 %9299, %v7676_v8   ;;  %v8504_v25 = vsel %vm1722_vm10, %v8503_v11, %v8499_v2  ;;  %v8508_v62 = vrot.slane %v8069_v55, %v14410_v6  ;;  %v8132_v54 = vpop.permute.xlu0 %8131 }
 0x67b   : > { %8365 = vperm.xlu0 %9298, %v7982_v48   ;;  %v7710_v15 = vcombine.low %v7702_v9, %v7709_v16  ;;  %v8611_v3 = vrot.slane %v8132_v54, %v14382_v1 }
 0x67c   : > { %v8509_v57 = vsel %vm1729_vm11, %v8508_v62, %v8504_v25 }
 0x67d   : > { %v8075_v40 = vpop.permute.xlu1 %8074  ;;  %v8514_v27 = vsel %vm1736_vm12, %v8513_v21, %v8509_v57 }
 0x67e   : > { %8314 = vperm.xlu1 %9299, %v7693_v56   ;;  %v8518_v24 = vrot.slane %v8075_v40, %v14418_v37  ;;  %v8138_v46 = vpop.permute.xlu0 %8137 }
 0x67f   : > { %v8621_v58 = vrot.slane %v8138_v46, %v14388_v33 }
 0x680   : > { %v8519_v36 = vsel %vm1743_vm13, %v8518_v24, %v8514_v27 }
 0x681   : > { %v13235_v13 = vsel %vm1750_vm14, %v8523_v14, %v8519_v36  ;;  %v8129_v42 = vpop.permute.xlu1 %8128 }
 0x682   : > { %8317 = vperm.xlu1 %9299, %v7710_v15   ;;  %v8607_v53 = vrot.slane %v8129_v42, %v14379_v17  ;;  %v8144_v47 = vpop.permute.xlu0 %8143 }
 0x683   : > { %v8631_v28 = vrot.slane %v8144_v47, %v14394_v61  ;;  %v14495_v47 = vld [vmem:[#allocation187_spill] sm:$0xff] }
 0x684   : > { %v8612_v63 = vsel %vm1652_vm0, %v8611_v3, %v8607_v53 }
 0x685   : > { %v8135_v29 = vpop.permute.xlu1 %8134 }
 0x686   : > { %v8616_v43 = vrot.slane %v8135_v29, %v14380_v26  ;;  %v8150_v39 = vpop.permute.xlu0 %8149 }
 0x687   : > { %v8641_v51 = vrot.slane %v8150_v39, %v14400_v31 }
 0x688   : > { %v8617_v35 = vsel %vm1659_vm1, %v8616_v43, %v8612_v63  ;;  %v8374_v63 = vrot.slane %v14495_v47, %v14382_v1 }
 0x689   : > { %v8141_v49 = vpop.permute.xlu1 %8140  ;;  %v8622_v41 = vsel %vm1666_vm2, %v8621_v58, %v8617_v35  ;;  %v14496_v58 = vld [vmem:[#allocation184_spill] sm:$0xff] }
 0x68a   : > { %v8626_v4 = vrot.slane %v8141_v49, %v14433_v5  ;;  %v8156_v38 = vpop.permute.xlu0 %8155  ;;  %v8379_v39 = vrot.slane %v14496_v58, %v14380_v26 }
 0x68b   : > { %v8651_v50 = vrot.slane %v8156_v38, %v14408_v34 }
 0x68c   : > { %v8627_v23 = vsel %vm1673_vm3, %v8626_v4, %v8622_v41  ;;  %v14497_v41 = vld [vmem:[#allocation85_spill] sm:$0xff] }
 0x68d   : > { %v8147_v8 = vpop.permute.xlu1 %8146  ;;  %v8632_v45 = vsel %vm1680_vm4, %v8631_v28, %v8627_v23  ;;  %v8370_v4 = vrot.slane %v14497_v41, %v14379_v17 }
 0x68e   : > { %v8636_v44 = vrot.slane %v8147_v8, %v14392_v0  ;;  %v8162_v19 = vpop.permute.xlu0 %8161 }
 0x68f   : > { %v8661_v9 = vrot.slane %v8162_v19, %v14412_v30  ;;  %v8375_v23 = vsel %vm1652_vm0, %v8374_v63, %v8370_v4  ;;  %v14504_v4 = vld [vmem:[#allocation101_spill] sm:$0xff] }
 0x690   : > { %v8637_v18 = vsel %vm1687_vm5, %v8636_v44, %v8632_v45  ;;  %v8380_v45 = vsel %vm1659_vm1, %v8379_v39, %v8375_v23  ;;  %v14498_v44 = vld [vmem:[#allocation24_spill] sm:$0xff]  ;;  %v14505_v23 = vld [vmem:[#allocation27_spill] sm:$0xff] }
 0x691   : > { %v8153_v10 = vpop.permute.xlu1 %8152  ;;  %v8642_v48 = vsel %vm1694_vm6, %v8641_v51, %v8637_v18  ;;  %v8389_v51 = vrot.slane %v14498_v44, %v14433_v5  ;;  %v14499_v18 = vld [vmem:[#allocation190_spill] sm:$0xff] }
 0x692   : > { %v8646_v11 = vrot.slane %v8153_v10, %v14398_v20  ;;  %v8168_v2 = vpop.permute.xlu0 %8167  ;;  %v8384_v10 = vrot.slane %v14499_v18, %v14388_v33 }
 0x693   : > { %v8671_v40 = vrot.slane %v8168_v2, %v14417_v59 }
 0x694   : > { %v8647_v56 = vsel %vm1701_vm7, %v8646_v11, %v8642_v48  ;;  %v8385_v2 = vsel %vm1666_vm2, %v8384_v10, %v8380_v45 }
 0x695   : > { %v8159_v16 = vpop.permute.xlu1 %8158  ;;  %v8652_v55 = vsel %vm1708_vm8, %v8651_v50, %v8647_v56 }
 0x696   : > { %v8656_v25 = vrot.slane %v8159_v16, %v14404_v7  ;;  %v8174_v62 = vpop.permute.xlu0 %8173 }
 0x697   : > { %v8681_v42 = vrot.slane %v8174_v62, %v14420_v60 }
 0x698   : > { %v8657_v21 = vsel %vm1715_vm9, %v8656_v25, %v8652_v55  ;;  %v8390_v55 = vsel %vm1673_vm3, %v8389_v51, %v8385_v2  ;;  %v14500_v25 = vld [vmem:[#allocation152_spill] sm:$0xff] }
 0x699   : > { %v8165_v54 = vpop.permute.xlu1 %8164  ;;  %v8662_v57 = vsel %vm1722_vm10, %v8661_v9, %v8657_v21  ;;  %v8399_v9 = vrot.slane %v14500_v25, %v14392_v0  ;;  %v14501_v21 = vld [vmem:[#allocation98_spill] sm:$0xff] }
 0x69a   : > { %v8666_v15 = vrot.slane %v8165_v54, %v14410_v6  ;;  %v8228_v27 = vpop.permute.xlu0 %8227  ;;  %v8394_v54 = vrot.slane %v14501_v21, %v14394_v61 }
 0x69b   : > { %v8769_v35 = vrot.slane %v8228_v27, %v14382_v1 }
 0x69c   : > { %v8667_v24 = vsel %vm1729_vm11, %v8666_v15, %v8662_v57  ;;  %v8395_v27 = vsel %vm1680_vm4, %v8394_v54, %v8390_v55 }
 0x69d   : > { %v8171_v14 = vpop.permute.xlu1 %8170  ;;  %v8672_v46 = vsel %vm1736_vm12, %v8671_v40, %v8667_v24 }
 0x69e   : > { %v8676_v36 = vrot.slane %v8171_v14, %v14418_v37  ;;  %v8234_v3 = vpop.permute.xlu0 %8233 }
 0x69f   : > { %v8779_v48 = vrot.slane %v8234_v3, %v14388_v33 }
 0x6a0   : > { %v8677_v53 = vsel %vm1743_vm13, %v8676_v36, %v8672_v46  ;;  %v8400_v46 = vsel %vm1687_vm5, %v8399_v9, %v8395_v27  ;;  %v14502_v36 = vld [vmem:[#allocation76_spill] sm:$0xff] }
 0x6a1   : > { %v13270_v29 = vsel %vm1750_vm14, %v8681_v42, %v8677_v53  ;;  %v8225_v43 = vpop.permute.xlu1 %8224  ;;  %v8409_v42 = vrot.slane %v14502_v36, %v14398_v20  ;;  %v14503_v53 = vld [vmem:[#allocation95_spill] sm:$0xff] }
 0x6a2   : > { %v8765_v49 = vrot.slane %v8225_v43, %v14379_v17  ;;  %v8404_v47 = vrot.slane %v14503_v53, %v14400_v31 }
 0x6a3   : > { %v8240_v28 = vpop.permute.xlu0 %8239 }
 0x6a4   : > { %v8770_v38 = vsel %vm1652_vm0, %v8769_v35, %v8765_v49  ;;  %v8789_v57 = vrot.slane %v8240_v28, %v14394_v61  ;;  %v8405_v39 = vsel %vm1694_vm6, %v8404_v47, %v8400_v46  ;;  %v8419_v28 = vrot.slane %v14504_v4, %v14404_v7 }
 0x6a5   : > { %v8231_v8 = vpop.permute.xlu1 %8230  ;;  %v8410_v41 = vsel %vm1701_vm7, %v8409_v42, %v8405_v39 }
 0x6a6   : > { %v8774_v19 = vrot.slane %v8231_v8, %v14380_v26  ;;  %v8414_v8 = vrot.slane %v14505_v23, %v14408_v34 }
 0x6a7   : > { %v8246_v11 = vpop.permute.xlu0 %8245 }
 0x6a8   : > { %v8775_v50 = vsel %vm1659_vm1, %v8774_v19, %v8770_v38  ;;  %v8799_v63 = vrot.slane %v8246_v11, %v14400_v31  ;;  %v8415_v19 = vsel %vm1708_vm8, %v8414_v8, %v8410_v41  ;;  %v14506_v11 = vld [vmem:[#allocation192_spill] sm:$0xff] }
 0x6a9   : > { %v8237_v56 = vpop.permute.xlu1 %8236  ;;  %v8780_v16 = vsel %vm1666_vm2, %v8779_v48, %v8775_v50  ;;  %v8420_v48 = vsel %vm1715_vm9, %v8419_v28, %v8415_v19  ;;  %v8429_v50 = vrot.slane %v14506_v11, %v14410_v6 }
 0x6aa   : > { %v8784_v62 = vrot.slane %v8237_v56, %v14433_v5  ;;  %v14507_v56 = vld [vmem:[#allocation104_spill] sm:$0xff] }
 0x6ab   : > { %v8252_v15 = vpop.permute.xlu0 %8251 }
 0x6ac   : > { %v8785_v40 = vsel %vm1673_vm3, %v8784_v62, %v8780_v16  ;;  %v8809_v45 = vrot.slane %v8252_v15, %v14408_v34  ;;  %v8424_v16 = vrot.slane %v14507_v56, %v14412_v30  ;;  %v14508_v15 = vld [vmem:[#allocation110_spill] sm:$0xff] }
 0x6ad   : > { %v8790_v14 = vsel %vm1680_vm4, %v8789_v57, %v8785_v40  ;;  %v8439_v40 = vrot.slane %v14508_v15, %v14418_v37 }
 0x6ae   : > { %v8243_v24 = vpop.permute.xlu1 %8242  ;;  %v8425_v62 = vsel %vm1722_vm10, %v8424_v16, %v8420_v48 }
 0x6af   : > { %v8794_v3 = vrot.slane %v8243_v24, %v14392_v0  ;;  %v8258_v43 = vpop.permute.xlu0 %8257  ;;  %v8430_v57 = vsel %vm1729_vm11, %v8429_v50, %v8425_v62  ;;  %v14509_v24 = vld [vmem:[#allocation188_spill] sm:$0xff] }
 0x6b0   : > { %v8819_v55 = vrot.slane %v8258_v43, %v14412_v30  ;;  %v14510_v43 = vld [vmem:[#allocation78_spill] sm:$0xff] }
 0x6b1   : > { %v8795_v58 = vsel %vm1687_vm5, %v8794_v3, %v8790_v14  ;;  %v8434_v14 = vrot.slane %v14509_v24, %v14417_v59 }
 0x6b2   : > { %v8249_v35 = vpop.permute.xlu1 %8248  ;;  %v8800_v49 = vsel %vm1694_vm6, %v8799_v63, %v8795_v58  ;;  %v8444_v58 = vrot.slane %v14510_v43, %v14420_v60 }
 0x6b3   : > { %v8804_v38 = vrot.slane %v8249_v35, %v14398_v20  ;;  %v8264_v44 = vpop.permute.xlu0 %8263  ;;  %v8435_v42 = vsel %vm1736_vm12, %v8434_v14, %v8430_v57 }
 0x6b4   : > { %v8829_v3 = vrot.slane %v8264_v44, %v14417_v59  ;;  %v8440_v47 = vsel %vm1743_vm13, %v8439_v40, %v8435_v42 }
 0x6b5   : > { %v8805_v51 = vsel %vm1701_vm7, %v8804_v38, %v8800_v49  ;;  %v8445_v4 = vsel %vm1750_vm14, %v8444_v58, %v8440_v47 }
 0x6b6   : > { %v8255_v18 = vpop.permute.xlu1 %8254  ;;  %v8810_v10 = vsel %vm1708_vm8, %v8809_v45, %v8805_v51  ;;  %v13350_v23 = vsel %vm2305_vm15, %v13120_v32, %v8445_v4 }
 0x6b7   : > { %v8814_v2 = vrot.slane %v8255_v18, %v14404_v7  ;;  %v8270_v25 = vpop.permute.xlu0 %8269 }
 0x6b8   : > { %v8839_v39 = vrot.slane %v8270_v25, %v14420_v60 }
 0x6b9   : > { %v8815_v9 = vsel %vm1715_vm9, %v8814_v2, %v8810_v10 }
 0x6ba   : > { %v8261_v21 = vpop.permute.xlu1 %8260  ;;  %v8820_v54 = vsel %vm1722_vm10, %v8819_v55, %v8815_v9 }
 0x6bb   : > { %v8824_v27 = vrot.slane %v8261_v21, %v14410_v6 }
 0x6bd   : > { %v8282_v46 = vpop.permute.xlu0 %8281  ;;  %v8825_v36 = vsel %vm1729_vm11, %v8824_v27, %v8820_v54 }
 0x6be   : > { %v8267_v53 = vpop.permute.xlu1 %8266  ;;  %v8830_v35 = vsel %vm1736_vm12, %v8829_v3, %v8825_v36 }
 0x6bf   : > { %v8834_v63 = vrot.slane %v8267_v53, %v14418_v37 }
 0x6c1   : > { %v8288_v49 = vpop.permute.xlu0 %8287  ;;  %v8835_v41 = vsel %vm1743_vm13, %v8834_v63, %v8830_v35 }
 0x6c2   : > { %v8840_v28 = vsel %vm1750_vm14, %v8839_v39, %v8835_v41 }
 0x6c3   : > { %v8279_v38 = vpop.permute.xlu1 %8278  ;;  %v13354_v8 = vsel %vm2305_vm15, %v8840_v28, %v13235_v13 }
 0x6c4   : > { %v9003_v45 = vcombine.low %v13350_v23, %v13354_v8 }
 0x6c6   : > { %v8294_v44 = vpop.permute.xlu0 %8293 }
 0x6c7   : > { %v8285_v51 = vpop.permute.xlu1 %8284 }
 0x6c8   : > { %v8863_v43 = vrot.slane %v8285_v51, %v14433_v5 }
 0x6ca   : > { %v13358_v19 = vpop.permute.xlu0 %8299 }
 0x6cc   : > { %v8291_v18 = vpop.permute.xlu1 %8290 }
 0x6ce   : > { %v8321_v10 = vpop.permute.xlu0 %8320 }
 0x6cf   : > { %v8923_v55 = vrot.slane %v8321_v10, %v14379_v17  ;;  %v8853_v17 = vrot.slane %v8279_v38, %v14380_v26 }
 0x6d0   : > { %v8297_v48 = vpop.permute.xlu1 %8296 }
 0x6d1   : > { %v8854_v63 = vsel %vm1659_vm1, %v8853_v17, %v13138_v22  ;;  %v8873_v22 = vrot.slane %v8291_v18, %v14392_v0 }
 0x6d2   : > { %v8327_v11 = vpop.permute.xlu0 %8326 }
 0x6d3   : > { %v8932_v21 = vrot.slane %v8327_v11, %v14380_v26  ;;  %v8858_v26 = vrot.slane %v8282_v46, %v14388_v33  ;;  %v8868_v11 = vrot.slane %v8288_v49, %v14394_v61 }
 0x6d4   : > { %v13360_v50 = vpop.permute.xlu1 %8302 }
 0x6d5   : > { %v8859_v38 = vsel %vm1666_vm2, %v8858_v26, %v8854_v63  ;;  %v9011_v63 = vrot.slane %v9003_v45, %v11018_v52 }
 0x6d6   : > { %v8333_v2 = vpop.permute.xlu0 %8332  ;;  %v8864_v10 = vsel %vm1673_vm3, %v8863_v43, %v8859_v38 }
 0x6d8   : > { %v8324_v32 = vpop.permute.xlu1 %8323 }
 0x6d9   : > { %v8927_v16 = vrot.slane %v8324_v32, %v14382_v1  ;;  %v8942_v1 = vrot.slane %v8333_v2, %v14433_v5  ;;  %v8869_v32 = vsel %vm1680_vm4, %v8868_v11, %v8864_v10 }
 0x6da   : > { %v8339_v56 = vpop.permute.xlu0 %8338 }
 0x6db   : > { %v8928_v9 = vsel %vm1652_vm0, %v8927_v16, %v8923_v55  ;;  %v8952_v53 = vrot.slane %v8339_v56, %v14392_v0  ;;  %v8874_v56 = vsel %vm1687_vm5, %v8873_v22, %v8869_v32  ;;  %v8883_v16 = vrot.slane %v8297_v48, %v14398_v20 }
 0x6dc   : > { %v8933_v57 = vsel %vm1659_vm1, %v8932_v21, %v8928_v9  ;;  %v8878_v0 = vrot.slane %v8294_v44, %v14400_v31  ;;  %v8888_v48 = vrot.slane %v13358_v19, %v14408_v34 }
 0x6dd   : > { %v8330_v13 = vpop.permute.xlu1 %8329 }
 0x6de   : > { %v8345_v25 = vpop.permute.xlu0 %8344  ;;  %v8937_v62 = vrot.slane %v8330_v13, %v14388_v33 }
 0x6df   : > { %v8962_v4 = vrot.slane %v8345_v25, %v14398_v20 }
 0x6e0   : > { %v8938_v40 = vsel %vm1666_vm2, %v8937_v62, %v8933_v57  ;;  %v8893_v62 = vrot.slane %v13360_v50, %v14404_v7 }
 0x6e1   : > { %v8336_v54 = vpop.permute.xlu1 %8335  ;;  %v8943_v14 = vsel %vm1673_vm3, %v8942_v1, %v8938_v40 }
 0x6e2   : > { %v8351_v15 = vpop.permute.xlu0 %8350  ;;  %v8947_v27 = vrot.slane %v8336_v54, %v14394_v61  ;;  %v8879_v61 = vsel %vm1694_vm6, %v8878_v0, %v8874_v56 }
 0x6e3   : > { %v8972_v46 = vrot.slane %v8351_v15, %v14404_v7  ;;  %v8884_v9 = vsel %vm1701_vm7, %v8883_v16, %v8879_v61 }
 0x6e4   : > { %v8948_v42 = vsel %vm1680_vm4, %v8947_v27, %v8943_v14  ;;  %v8889_v27 = vsel %vm1708_vm8, %v8888_v48, %v8884_v9 }
 0x6e5   : > { %v8342_v24 = vpop.permute.xlu1 %8341  ;;  %v8953_v58 = vsel %vm1687_vm5, %v8952_v53, %v8948_v42  ;;  %v8894_v1 = vsel %vm1715_vm9, %v8893_v62, %v8889_v27 }
 0x6e6   : > { %v8354_v36 = vpop.permute.xlu0 %8353  ;;  %v8957_v3 = vrot.slane %v8342_v24, %v14400_v31 }
 0x6e7   : > { %v8977_v18 = vrot.slane %v8354_v36, %v14412_v30 }
 0x6e8   : > { %v8958_v35 = vsel %vm1694_vm6, %v8957_v3, %v8953_v58 }
 0x6e9   : > { %v8348_v47 = vpop.permute.xlu1 %8347  ;;  %v8963_v5 = vsel %vm1701_vm7, %v8962_v4, %v8958_v35 }
 0x6ea   : > { %v8357_v39 = vpop.permute.xlu0 %8356  ;;  %v8967_v41 = vrot.slane %v8348_v47, %v14408_v34 }
 0x6eb   : > { %v8982_v21 = vrot.slane %v8357_v39, %v14410_v6 }
 0x6ec   : > { %v8968_v33 = vsel %vm1708_vm8, %v8967_v41, %v8963_v5 }
 0x6ed   : > { %v8306_v28 = vpop.permute.xlu1 %8305  ;;  %v8973_v13 = vsel %vm1715_vm9, %v8972_v46, %v8968_v33 }
 0x6ee   : > { %v8360_v51 = vpop.permute.xlu0 %8359  ;;  %v8978_v49 = vsel %vm1722_vm10, %v8977_v18, %v8973_v13  ;;  %v8898_v31 = vrot.slane %v8306_v28, %v14412_v30 }
 0x6ef   : > { %v8987_v44 = vrot.slane %v8360_v51, %v14417_v59  ;;  %v8983_v54 = vsel %vm1729_vm11, %v8982_v21, %v8978_v49 }
 0x6f0   : > { %v8899_v30 = vsel %vm1722_vm10, %v8898_v31, %v8894_v1 }
 0x6f1   : > { %v8309_v2 = vpop.permute.xlu1 %8308  ;;  %v8988_v19 = vsel %vm1736_vm12, %v8987_v44, %v8983_v54 }
 0x6f2   : > { %v8363_v55 = vpop.permute.xlu0 %8362  ;;  %v8903_v57 = vrot.slane %v8309_v2, %v14410_v6 }
 0x6f3   : > { %v8992_v15 = vrot.slane %v8363_v55, %v14418_v37 }
 0x6f4   : > { %v8904_v24 = vsel %vm1729_vm11, %v8903_v57, %v8899_v30 }
 0x6f5   : > { %v8312_v25 = vpop.permute.xlu1 %8311  ;;  %v8993_v6 = vsel %vm1743_vm13, %v8992_v15, %v8988_v19 }
 0x6f6   : > { %v8366_v20 = vpop.permute.xlu0 %8365  ;;  %v8908_v7 = vrot.slane %v8312_v25, %v14417_v59 }
 0x6f7   : > { %v8997_v50 = vrot.slane %v8366_v20, %v14420_v60 }
 0x6f8   : > { %v8909_v14 = vsel %vm1736_vm12, %v8908_v7, %v8904_v24 }
 0x6f9   : > { %v8315_v40 = vpop.permute.xlu1 %8314  ;;  %v8998_v36 = vsel %vm1750_vm14, %v8997_v50, %v8993_v6 }
 0x6fa   : > { %v8913_v34 = vrot.slane %v8315_v40, %v14418_v37  ;;  %v9002_v37 = vsel %vm2305_vm15, %v8998_v36, %v13270_v29 }
 0x6fc   : > { %v8914_v42 = vsel %vm1743_vm13, %v8913_v34, %v8909_v14 }
 0x6fd   : > { %v8318_v17 = vpop.permute.xlu1 %8317 }
 0x6fe   : > { %v8918_v59 = vrot.slane %v8318_v17, %v14420_v60 }
 0x700   : > { %v8919_v3 = vsel %vm1750_vm14, %v8918_v59, %v8914_v42 }
 0x701   : > { %v9001_v53 = vsel %vm2305_vm15, %v8919_v3, %v12879_v12 }
 0x702   : > { %v9004_v47 = vcombine.low %v9001_v53, %v9002_v37 }
 0x704   : > { %v9018_v43 = vrot.slane %v9004_v47, %v11018_v52 }
 0x706   : > { %v9019_v58 = vcombine.low %v9011_v63, %v9018_v43 }
 0x708   : > { %9021 = vst [vmem:[#allocation9] sm:$0xff] %v9019_v58 }
 0x709 PF: > { %s14511_s27 = sadd.s32 4294967295, %s9478_s23   ;;  %s9492_s28 = smov [#allocation9]  }
 0x70a   : > { %p13435_p4 = scmp.eq.s32.totalorder %s14511_s27, 1  ;;  %s9032_s30 = sshll.u32 %s9492_s28, 4  ;;  %s9033_s30 = int_to_ptr.vmem [resolvable:$true] %s9032_s30 }
 0x70b   : > { %s9396_s17 = scalar_lea.vmem %s9033_s30, 128  ;;  %p9403_p9 = scmp.lt.s32.totalorder %s9033_s30, %s9033_s30 }
 0x70c   : > { %p9397_p13 = scmp.ne.s32.totalorder %s9033_s30, %s9396_s17  ;;  %p9404_p5 = scmp.lt.s32.totalorder %s9396_s17, %s9396_s17 }
 0x70e   : > { %p9398_p6 = pnand %p9397_p13, %p13435_p4  ;;  %p9405_p3 = por %p9404_p5, %p9403_p9 }
 0x710   : > { %p9399_p10 = pneg %p9398_p6 }
 0x712   : > { %p9406_p11 = pnand %p9405_p3, %p9399_p10 }
 0x714   : > { %9409 = shalt.err (!%p9406_p11)
}
 0x715   : > { %9217 = dma.vmem_to_hbm [thread:$0]  (%p13435_p4), %s9033_s30, 128, %s13473_s5, [#allocation5]  }
 0x716   : > { %9453 = dma.done.wait (%p13435_p4), [#allocation5], 128  }
 0x717   : > { %9455 = vsyncadd (%p13435_p4), [#allocation5], 4294967168 }
 0x718 PF: > { %s20_s23 = sadd.s32 1, %s9478_s23   ;;  %s14513_s18 = smov %s9462_s19 }
 0x719   : > { %p17_p0 = scmp.ge.s32.totalorder %s20_s23, 4   ;;  %s14514_s19 = smov %s9466_s20 }
 0x71a   : > { %s14515_s20 = smov %s9634_s10  ;;  %s14516_s21 = smov %s9474_s22 }
 0x71b   : > { %s14517_s22 = smov %s14519_s7  ;;  %19 = sbr.rel (!%p17_p0) target bundleno = 6 (0x6), region = 94 }
 0x720   :  { %9045 = vsyncpa [#allocation4], 1 }
 0x721   :  { %9047 = vsyncpa [#allocation4 + $0x1], 1 }
 0x722   :  { %9048 = vsyncpa [#allocation7], 1 }
 0x723   :  { %9049 = vsyncpa [#allocation5], 1 }
 0x724   :  { %9051 = vsyncpa [#allocation5 + $0x1], 1 }

</bundles_post_ra>
